<compile_context>
chip_gen: v5e
topology: v5e:2x2
jax: 0.10.0
libtpu: 0.0.40
codegen_flags: <defaults>
</compile_context>

<pallas_src>
import functools

import jax
import jax.numpy as jnp
from jax.experimental import pallas as pl
from jax.experimental.pallas import tpu as pltpu

FEAT_DIM = 2048      # ResNet-50 backbone feature width
LANE = 128           # pad num_classes up to a lane-dense multiple of 128


# ----------------------------- Pallas kernel ------------------------------- #

def _net_kernel(x_ref, w_stem_ref, b_stem_ref, w_cls_ref, b_cls_ref,
                o_ref, acc_ref, *, inv_p):
    """Fused extractor + classifier.

    Grid: (B, num_p_tiles); axis 0 parallel (batch), axis 1 arbitrary (pixels).
      x_ref:      (1, TILE_P, Cin)   bf16 pixel-slab tile for batch b
      w_stem_ref: (Cin, 2048)        bf16
      b_stem_ref: (1, 2048)          f32
      w_cls_ref:  (2048, NC_PAD)     bf16
      b_cls_ref:  (1, NC_PAD)        f32
      o_ref:      (1, 1, NC_PAD)     f32 logits (padded, lane-dense)
      acc_ref:    (1, 2048)          f32 pooled-feature accumulator (scratch)
    """
    p = pl.program_id(1)

    @pl.when(p == 0)
    def _():
        acc_ref[...] = jnp.zeros_like(acc_ref)

    # 1x1-conv stand-in: (TILE_P, Cin) @ (Cin, 2048) on the MXU, f32 accumulate.
    # K = Cin is tiny (wastes systolic depth) but the kernel is launch/DMA bound
    # at this size; accepted per review ("pad K or accept it").
    x = x_ref[0]                                                   # (TILE_P, Cin)
    h = jnp.dot(x, w_stem_ref[...], preferred_element_type=jnp.float32)
    h = jnp.maximum(h + b_stem_ref[...], 0.0)                      # bias + ReLU (VPU)

    # Global-average-pool contribution of this tile as an MXU matmul
    # (ones-row scaled by 1/P) instead of an XLU cross-sublane reduction.
    pool_row = jnp.full((1, x_ref.shape[1]), inv_p, jnp.float32)   # (1, TILE_P)
    acc_ref[...] += jnp.dot(pool_row, h, preferred_element_type=jnp.float32)

    # Finalize: fused classifier (exact nn.Linear(2048, num_classes), padded).
    @pl.when(p == pl.num_programs(1) - 1)
    def _():
        logits = jnp.dot(acc_ref[...], w_cls_ref[...].astype(jnp.float32),
                         preferred_element_type=jnp.float32) + b_cls_ref[...]
        o_ref[0] = logits                                          # (1, NC_PAD)


# ------------------------------ JAX wrapper -------------------------------- #

def init_params(key, in_channels, num_classes):
    k0, k1, k2, k3 = jax.random.split(key, 4)
    # Stand-in extractor projection (in_channels -> 2048).
    s0 = 1.0 / jnp.sqrt(jnp.float32(in_channels))
    w_stem = jax.random.uniform(k0, (in_channels, FEAT_DIM), jnp.float32, -s0, s0)
    b_stem = jax.random.uniform(k1, (1, FEAT_DIM), jnp.float32, -s0, s0)
    # Classifier, PyTorch nn.Linear(2048, num_classes) default init, padded to
    # a lane-dense width (extra columns are zero and sliced off outside).
    nc_pad = ((num_classes + LANE - 1) // LANE) * LANE
    s1 = 1.0 / jnp.sqrt(jnp.float32(FEAT_DIM))
    w_cls = jax.random.uniform(k2, (FEAT_DIM, num_classes), jnp.float32, -s1, s1)
    b_cls = jax.random.uniform(k3, (1, num_classes), jnp.float32, -s1, s1)
    w_cls_pad = jnp.zeros((FEAT_DIM, nc_pad), jnp.float32).at[:, :num_classes].set(w_cls)
    b_cls_pad = jnp.zeros((1, nc_pad), jnp.float32).at[:, :num_classes].set(b_cls)
    return {"w_stem": w_stem, "b_stem": b_stem,
            "w_cls_pad": w_cls_pad, "b_cls_pad": b_cls_pad}


def _pick_tile_p(p):
    for cand in (512, 256, 128, 64, 32, 16, 8):
        if p % cand == 0:
            return cand
    return p


@functools.partial(jax.jit, static_argnames=("num_classes",))
def net_forward(x_nchw, params, *, num_classes):
    B, C, H, W = x_nchw.shape
    P = H * W
    tile_p = _pick_tile_p(P)
    num_p = P // tile_p

    # Glue: NCHW -> (B, H*W, C) pixel slab, bf16 for the MXU / halved DMA bytes.
    x_slab = (jnp.transpose(x_nchw, (0, 2, 3, 1))
              .reshape(B, P, C).astype(jnp.bfloat16))
    w_stem = params["w_stem"].astype(jnp.bfloat16)
    b_stem = params["b_stem"]
    w_cls = params["w_cls_pad"].astype(jnp.bfloat16)
    b_cls = params["b_cls_pad"]
    nc_pad = w_cls.shape[1]

    kernel = functools.partial(_net_kernel, inv_p=float(1.0 / P))

    logits_pad = pl.pallas_call(
        kernel,
        grid_spec=pltpu.PrefetchScalarGridSpec(
            num_scalar_prefetch=0,
            grid=(B, num_p),
            in_specs=[
                pl.BlockSpec((1, tile_p, C), lambda b, p: (b, p, 0)),
                pl.BlockSpec((C, FEAT_DIM), lambda b, p: (0, 0)),
                pl.BlockSpec((1, FEAT_DIM), lambda b, p: (0, 0)),
                pl.BlockSpec((FEAT_DIM, nc_pad), lambda b, p: (0, 0)),
                pl.BlockSpec((1, nc_pad), lambda b, p: (0, 0)),
            ],
            out_specs=pl.BlockSpec((1, 1, nc_pad), lambda b, p: (b, 0, 0)),
            scratch_shapes=[pltpu.VMEM((1, FEAT_DIM), jnp.float32)],
        ),
        out_shape=jax.ShapeDtypeStruct((B, 1, nc_pad), jnp.float32),
        compiler_params=pltpu.CompilerParams(
            dimension_semantics=("parallel", "arbitrary"),
            vmem_limit_bytes=32 * 1024 * 1024,
        ),
    )(x_slab, w_stem, b_stem, w_cls, b_cls)

    return logits_pad[:, 0, :num_classes]


def net_forward_ref(x_nchw, params, num_classes):
    """Pure-JAX reference on the same bf16-cast operands."""
    B, C, H, W = x_nchw.shape
    f32 = jnp.float32
    x = (jnp.transpose(x_nchw, (0, 2, 3, 1)).reshape(B, H * W, C)
         .astype(jnp.bfloat16).astype(f32))
    ws = params["w_stem"].astype(jnp.bfloat16).astype(f32)
    wc = params["w_cls_pad"].astype(jnp.bfloat16).astype(f32)
    h = jnp.maximum(jnp.einsum("bpc,cf->bpf", x, ws) + params["b_stem"], 0.0)
    feat = jnp.mean(h, axis=1)
    logits = feat @ wc + params["b_cls_pad"]
    return logits[:, :num_classes]


# --------------------------------- main ------------------------------------ #

if __name__ == "__main__":
    key = jax.random.PRNGKey(0)
    k_x, k_p = jax.random.split(key)

    B, C, H, W = 2, 3, 32, 32      # small NCHW image batch, like the PyTorch module
    num_classes = 10

    x = jax.random.normal(k_x, (B, C, H, W), dtype=jnp.float32)
    params = init_params(k_p, C, num_classes)

    logits = net_forward(x, params, num_classes=num_classes)
    jax.block_until_ready(logits)

    ref = net_forward_ref(x, params, num_classes)
    assert logits.shape == (B, num_classes)
    assert jnp.allclose(logits, ref, atol=1e-2, rtol=1e-2), float(
        jnp.max(jnp.abs(logits - ref)))

    print("KERNEL_OK")
</pallas_src>

<mosaic_0001>
module attributes {stable_mosaic.version = 11 : i64} {
  func.func @_net_kernel(%arg0: i32, %arg1: i32, %arg2: memref<1x512x3xbf16, #tpu.memory_space<vmem>>, %arg3: memref<3x2048xbf16, #tpu.memory_space<vmem>>, %arg4: memref<1x2048xf32, #tpu.memory_space<vmem>>, %arg5: memref<2048x128xbf16, #tpu.memory_space<vmem>>, %arg6: memref<1x128xf32, #tpu.memory_space<vmem>>, %arg7: memref<1x1x128xf32, #tpu.memory_space<vmem>>, %arg8: memref<1x2048xf32, #tpu.memory_space<vmem>>) attributes {dimension_semantics = [#tpu.dimension_semantics<parallel>, #tpu.dimension_semantics<arbitrary>], iteration_bounds = array<i64: 2, 2>, scalar_prefetch = 0 : i64, scratch_operands = 1 : i64, tpu.core_type = #tpu.core_type<tc>, window_params = [{transform_indices = @transform_0, window_bounds = array<i64: 1, 512, 3>}, {pipeline_mode = #tpu.pipeline_mode<synchronous>, transform_indices = @transform_1, window_bounds = array<i64: 3, 2048>}, {pipeline_mode = #tpu.pipeline_mode<synchronous>, transform_indices = @transform_2, window_bounds = array<i64: 1, 2048>}, {pipeline_mode = #tpu.pipeline_mode<synchronous>, transform_indices = @transform_3, window_bounds = array<i64: 2048, 128>}, {pipeline_mode = #tpu.pipeline_mode<synchronous>, transform_indices = @transform_4, window_bounds = array<i64: 1, 128>}, {transform_indices = @transform_5, window_bounds = array<i64: 1, 1, 128>}]} {
    %c0_i32 = arith.constant 0 : i32
    %0 = arith.cmpi eq, %arg1, %c0_i32 : i32
    %1 = arith.extui %0 : i1 to i32
    %c0_i32_0 = arith.constant 0 : i32
    %2 = arith.cmpi ne, %1, %c0_i32_0 : i32
    scf.if %2 {
      %cst_15 = arith.constant 0.000000e+00 : f32
      %20 = vector.broadcast %cst_15 : f32 to vector<1x2048xf32>
      %c0_16 = arith.constant 0 : index
      %c0_17 = arith.constant 0 : index
      %21 = vector.load %arg8[%c0_16, %c0_17] : memref<1x2048xf32, #tpu.memory_space<vmem>>, vector<1x2048xf32>
      tpu.vector_store %arg8[%c0_16, %c0_17], %20 {strides = array<i32>} : memref<1x2048xf32, #tpu.memory_space<vmem>>, vector<1x2048xf32>,
    } else {
    }
    %c0 = arith.constant 0 : index
    %c0_1 = arith.constant 0 : index
    %c0_2 = arith.constant 0 : index
    %3 = vector.load %arg2[%c0, %c0_1, %c0_2] : memref<1x512x3xbf16, #tpu.memory_space<vmem>>, vector<1x512x3xbf16>
    %4 = vector.shape_cast %3 : vector<1x512x3xbf16> to vector<512x3xbf16>
    %c0_3 = arith.constant 0 : index
    %c0_4 = arith.constant 0 : index
    %5 = vector.load %arg3[%c0_3, %c0_4] : memref<3x2048xbf16, #tpu.memory_space<vmem>>, vector<3x2048xbf16>
    %cst = arith.constant dense<0.000000e+00> : vector<512x2048xf32>
    %6 = tpu.matmul %4, %5, %cst {dimension_numbers = #tpu.dot_dimension_numbers<[1], [0], [0], [1], [0, 0, 1, 1], [], []>} : vector<512x3xbf16>, vector<3x2048xbf16>, vector<512x2048xf32> -> vector<512x2048xf32>
    %c0_5 = arith.constant 0 : index
    %c0_6 = arith.constant 0 : index
    %7 = vector.load %arg4[%c0_5, %c0_6] : memref<1x2048xf32, #tpu.memory_space<vmem>>, vector<1x2048xf32>
    %8 = vector.broadcast %7 : vector<1x2048xf32> to vector<512x2048xf32>
    %9 = arith.addf %6, %8 : vector<512x2048xf32>
    %cst_7 = arith.constant 0.000000e+00 : f32
    %10 = vector.broadcast %cst_7 : f32 to vector<512x2048xf32>
    %11 = arith.maximumf %9, %10 : vector<512x2048xf32>
    %cst_8 = arith.constant 9.765625E-4 : f32
    %12 = vector.broadcast %cst_8 : f32 to vector<1x512xf32>
    %c0_9 = arith.constant 0 : index
    %c0_10 = arith.constant 0 : index
    %13 = vector.load %arg8[%c0_9, %c0_10] : memref<1x2048xf32, #tpu.memory_space<vmem>>, vector<1x2048xf32>
    %cst_11 = arith.constant dense<0.000000e+00> : vector<1x2048xf32>
    %14 = tpu.matmul %12, %11, %cst_11 {dimension_numbers = #tpu.dot_dimension_numbers<[1], [0], [0], [1], [0, 0, 1, 1], [], []>} : vector<1x512xf32>, vector<512x2048xf32>, vector<1x2048xf32> -> vector<1x2048xf32>
    %15 = arith.addf %13, %14 : vector<1x2048xf32>
    %c0_12 = arith.constant 0 : index
    %c0_13 = arith.constant 0 : index
    %16 = vector.load %arg8[%c0_12, %c0_13] : memref<1x2048xf32, #tpu.memory_space<vmem>>, vector<1x2048xf32>
    tpu.vector_store %arg8[%c0_12, %c0_13], %15 {strides = array<i32>} : memref<1x2048xf32, #tpu.memory_space<vmem>>, vector<1x2048xf32>,
    %c1_i32 = arith.constant 1 : i32
    %17 = arith.cmpi eq, %arg1, %c1_i32 : i32
    %18 = arith.extui %17 : i1 to i32
    %c0_i32_14 = arith.constant 0 : i32
    %19 = arith.cmpi ne, %18, %c0_i32_14 : i32
    scf.if %19 {
      %c0_15 = arith.constant 0 : index
      %c0_16 = arith.constant 0 : index
      %20 = vector.load %arg8[%c0_15, %c0_16] : memref<1x2048xf32, #tpu.memory_space<vmem>>, vector<1x2048xf32>
      %c0_17 = arith.constant 0 : index
      %c0_18 = arith.constant 0 : index
      %21 = vector.load %arg5[%c0_17, %c0_18] : memref<2048x128xbf16, #tpu.memory_space<vmem>>, vector<2048x128xbf16>
      %22 = arith.extf %21 : vector<2048x128xbf16> to vector<2048x128xf32>
      %cst_19 = arith.constant dense<0.000000e+00> : vector<1x128xf32>
      %23 = tpu.matmul %20, %22, %cst_19 {dimension_numbers = #tpu.dot_dimension_numbers<[1], [0], [0], [1], [0, 0, 1, 1], [], []>} : vector<1x2048xf32>, vector<2048x128xf32>, vector<1x128xf32> -> vector<1x128xf32>
      %c0_20 = arith.constant 0 : index
      %c0_21 = arith.constant 0 : index
      %24 = vector.load %arg6[%c0_20, %c0_21] : memref<1x128xf32, #tpu.memory_space<vmem>>, vector<1x128xf32>
      %25 = arith.addf %23, %24 : vector<1x128xf32>
      %c0_22 = arith.constant 0 : index
      %c0_23 = arith.constant 0 : index
      %c0_24 = arith.constant 0 : index
      %26 = vector.load %arg7[%c0_22, %c0_23, %c0_24] : memref<1x1x128xf32, #tpu.memory_space<vmem>>, vector<1x1x128xf32>
      %27 = vector.shape_cast %26 : vector<1x1x128xf32> to vector<1x128xf32>
      %28 = vector.shape_cast %25 : vector<1x128xf32> to vector<1x1x128xf32>
      tpu.vector_store %arg7[%c0_22, %c0_23, %c0_24], %28 {strides = array<i32>} : memref<1x1x128xf32, #tpu.memory_space<vmem>>, vector<1x1x128xf32>,
    } else {
    }
    return
  }
  func.func @transform_0(%arg0: i32, %arg1: i32) -> (i32, i32, i32) {
    %c0_i32 = arith.constant 0 : i32
    %c0_i32_0 = arith.constant 0 : i32
    return %arg0, %arg1, %c0_i32 : i32, i32, i32
  }
  func.func @transform_1(%arg0: i32, %arg1: i32) -> (i32, i32) {
    %c0_i32 = arith.constant 0 : i32
    %c0_i32_0 = arith.constant 0 : i32
    %c0_i32_1 = arith.constant 0 : i32
    return %c0_i32, %c0_i32_0 : i32, i32
  }
  func.func @transform_2(%arg0: i32, %arg1: i32) -> (i32, i32) {
    %c0_i32 = arith.constant 0 : i32
    %c0_i32_0 = arith.constant 0 : i32
    %c0_i32_1 = arith.constant 0 : i32
    return %c0_i32, %c0_i32_0 : i32, i32
  }
  func.func @transform_3(%arg0: i32, %arg1: i32) -> (i32, i32) {
    %c0_i32 = arith.constant 0 : i32
    %c0_i32_0 = arith.constant 0 : i32
    %c0_i32_1 = arith.constant 0 : i32
    return %c0_i32, %c0_i32_0 : i32, i32
  }
  func.func @transform_4(%arg0: i32, %arg1: i32) -> (i32, i32) {
    %c0_i32 = arith.constant 0 : i32
    %c0_i32_0 = arith.constant 0 : i32
    %c0_i32_1 = arith.constant 0 : i32
    return %c0_i32, %c0_i32_0 : i32, i32
  }
  func.func @transform_5(%arg0: i32, %arg1: i32) -> (i32, i32, i32) {
    %c0_i32 = arith.constant 0 : i32
    %c0_i32_0 = arith.constant 0 : i32
    %c0_i32_1 = arith.constant 0 : i32
    return %arg0, %c0_i32, %c0_i32_0 : i32, i32, i32
  }
}

</mosaic_0001>

<bundles_post_ra>
// kernel: net_forward.1
= control target key start
LH: loop header
LB: loop body
LE: loop exit
PB: predicated region body
PF: predicated region fallthrough
CT: control target
= control target key end

     0   :  { %10 = vsyncpa [#allocation4], 0  ;;  %s14348_s0 = inlined_call_operand.vmem [shape: bf16[2,1024,3], index: 0, kind: input, shape index: {}]   ;;  %s14349_s1 = inlined_call_operand.vmem [shape: bf16[3,2048], index: 1, kind: input, shape index: {}]   ;;  %s14350_s2 = inlined_call_operand.vmem [shape: f32[1,2048], index: 2, kind: input, shape index: {}]   ;;  %s14351_s3 = inlined_call_operand.vmem [shape: bf16[2048,128], index: 3, kind: input, shape index: {}]   ;;  %s14352_s4 = inlined_call_operand.vmem [shape: f32[1,128], index: 4, kind: input, shape index: {}]   ;;  %s14353_s5 = inlined_call_operand.hbm [shape: f32[2,1,128], index: 5, kind: output, shape index: {}]  }
   0x1   :  { %12 = vsyncpa [#allocation4 + $0x1], 0  ;;  %s8298_s18 = smov 0   ;;  %s8300_s19 = smov 0  }
   0x2   :  { %s8302_s20 = smov 0   ;;  %s8304_s21 = smov 0  }
   0x3   :  { %s8306_s22 = smov 0   ;;  %s8308_s23 = smov 0  }
   0x4   :  { %s8310_s24 = smov 0   ;;  %s8312_s25 = smov 0  }
   0x5 LB: > { %s6703_s26 = sadd.s32 4294967295, %s8263_s25   ;;  %s6704_s27 = sadd.s32 4294967294, %s8263_s25   ;;  %s8263_s25 = sphi %s8312_s25, %s18_s25   ;;  %s8259_s24 = sphi %s8310_s24, %s16323_s24   ;;  %s8255_s23 = sphi %s8308_s23, %s16322_s23   ;;  %s8251_s22 = sphi %s8306_s22, %s16321_s22   ;;  %s8247_s21 = sphi %s8304_s21, %s16320_s21   ;;  %s8243_s20 = sphi %s8302_s20, %s16319_s20   ;;  %s8239_s19 = sphi %s8300_s19, %s16318_s19   ;;  %s8235_s18 = sphi %s8298_s18, %s16317_s18  }
   0x6   : > { %s27_s28 = sadd.s32 1, %s8255_s23  ;;  %s30_s29 = sadd.s32 1, %s8259_s24 }
   0x7   : > { %p28_p0 = scmp.ge.s32.totalorder %s27_s28, 2  ;;  %p159_p1 = scmp.ne.s32.totalorder %s8243_s20, %s8239_s19 }
   0x8   : > { %p160_p2 = scmp.eq.s32.totalorder %s6703_s26, 3  ;;  %p165_p4 = scmp.ne.s32.totalorder %s8239_s19, %s8235_s18 }
   0x9   : > { %s16325_s28 = smov (%p28_p0, %s27_s28), 0  ;;  %s16327_s29 = smov (!%p28_p0, %s30_s29), %s8259_s24 }
   0xa   : > { %p8347_p3 = por %p160_p2, %p159_p1  ;;  %p32_p5 = scmp.ge.s32.totalorder %s16327_s29, 2 }
   0xb   : > { %p166_p6 = scmp.eq.s32.totalorder %s6704_s27, 3  ;;  %p6707_p7 = scmp.ge.s32.totalorder %s8263_s25, 1 }
   0xc   : > { %p209_p8 = scmp.lt.s32.totalorder %s8263_s25, 5  ;;  %s16329_s29 = smov (%p32_p5, %s16327_s29), 0 }
   0xd   : > { %p8357_p9 = por %p166_p6, %p165_p4  ;;  %s146_s7 = ssub.s32 %s8259_s24, %s16329_s29 }
   0xe   : > { %p210_p10 = pnand %p6707_p7, %p209_p8  ;;  %s149_s8 = sadd.s32 1, %s8243_s20 }
   0xf   : > { %p147_p11 = scmp.eq.s32.totalorder %s146_s7, 0 }
  0x10   : > { %213 = sbr.rel (%p210_p10) target bundleno = 3068 (0xbfc), region = 40 }
  0x11   : > { %s8365_s9 = scalar_select %p147_p11, %s8243_s20, %s149_s8  }
  0x15   : > { %s238_s10 = sand.u32 1, %s8239_s19   ;;  %s6708_s11 = sshll.u32 %s8247_s21, 6 }
  0x16   : > { %p241_p12 = scmp.lt.s32.totalorder %s8251_s22, 1  ;;  %p243_p13 = scmp.lt.s32.totalorder %s6708_s11, 127 }
  0x17   : > { %s8378_s27 = scalar_lea.vmem [#allocation3], %s238_s10  ;;  %p6711_p0 = scmp.ne.s32.totalorder %s8247_s21, 0 }
  0x18   : > { %s242_s12 = scalar_select %p241_p12, %s8251_s22, 1 }
  0x19   : > { %s16331_s11 = smov (!%p243_p13, %s6708_s11), 127  ;;  %254 = sbr.rel (%p6711_p0) target bundleno = 33 (0x21), region = 44 }
  0x1a   : > { %s6709_s13 = sshll.u32 %s242_s12, 7 }
  0x1b   : > { %s246_s14 = sadd.s32 %s6709_s13, %s16331_s11 }
  0x1c   : > { %s6710_s15 = sshll.u32 %s246_s14, 2 }
  0x1d   : > { %s8374_s26 = scalar_lea.vmem %s14348_s0, %s6710_s15 }
  0x1e   : > { %v8265_v0 = vmov 0.0  }
  0x1f   : > { %255 = vst [vmem:[#allocation2] sm:$0xff] %v8265_v0 }
  0x20   : > { %256 = vst [vmem:[#allocation2 + $0x8] sm:$0xff] %v8265_v0 }
  0x21 PF: > { %v321_v1 = vld [vmem:[%s14349_s1] sm:$0xff]  ;;  %vm643_vm0 = vcmask 1040384   ;;  %vm644_vm1 = vcmask 1041408   ;;  %v8266_v2 = vmov 65535   ;;  %v323_v5 = vld [vmem:[%s14349_s1 + $0x10] sm:$0xff]  ;;  %vm546_vm2 = vcmask 23552  }
  0x22   : > { %522 = vst [vmem:[#allocation1] ss:$4 sm:$0xff] %v321_v1  ;;  %v645_v3 = vsel %vm643_vm0, 4294967295, %v8266_v2  ;;  %v8396_v14 = vld [vmem:[%s8374_s26] sm:$0xff]  ;;  %v8407_v15 = vld [vmem:[%s8374_s26 + $0x8] sm:$0xff]  ;;  %v8418_v16 = vld [vmem:[%s8374_s26 + $0x10] sm:$0xff] }
  0x23   : > { %v8386_v4 = vsel %vm644_vm1, %v645_v3, 0  ;;  %v8429_v17 = vld [vmem:[%s8374_s26 + $0x18] sm:$0xff]  ;;  %v8440_v18 = vld [vmem:[%s8374_s26 + $0x20] sm:$0xff]  ;;  %v8451_v19 = vld [vmem:[%s8374_s26 + $0x28] sm:$0xff]  ;;  %vm5720_vm3 = vcmask 1042434   ;;  %vm5723_vm4 = vcmask 1044484  }
  0x24   : > { %v8462_v20 = vld [vmem:[%s8374_s26 + $0x30] sm:$0xff]  ;;  %v8473_v21 = vld [vmem:[%s8374_s26 + $0x38] sm:$0xff]  ;;  %v8484_v22 = vld [vmem:[%s8374_s26 + $0x40] sm:$0xff]  ;;  %vm5725_vm5 = vcmask 1046534   ;;  %vm5727_vm6 = vcmask 1045508   ;;  %vm5729_vm7 = vcmask 1043456  }
  0x25   : > { %v8511_v31 = vld [vmem:[%s8374_s26 + $0x48] sm:$0xff]  ;;  %v8538_v40 = vld [vmem:[%s8374_s26 + $0x50] sm:$0xff]  ;;  %v8565_v49 = vld [vmem:[%s8374_s26 + $0x58] sm:$0xff]  ;;  %p7352_p1 = scmp.ne.s32.totalorder %s8247_s21, 1 }
  0x26   : > { %v322_v52 = vld [vmem:[%s14349_s1 + $0x8] sm:$0xff]  ;;  %v324_v58 = vld [vmem:[%s14349_s1 + $0x18] sm:$0xff] }
  0x27   : > { %525 = vst [vmem:[#allocation1 + $0x20] ss:$4 sm:$0xff] %v322_v52  ;;  %v8629_v52 = vld [vmem:[%s8374_s26 + $0x68] sm:$0xff] }
  0x29   : > { %v526_v6 = vld.sshfl [vmem:[#allocation1] sm:$0xff pattern:$0x73625140]  ;;  %v527_v7 = vld.sshfl [vmem:[#allocation1 + $0x8] sm:$0xff pattern:$0x73625140] }
  0x2a   : > { %v647_v8 = vand.u32 %v8386_v4, %v526_v6  ;;  %v649_v9 = vand.u32 %v8386_v4, %v527_v7  ;;  %v528_v10 = vld.sshfl [vmem:[#allocation1 + $0x10] sm:$0xff pattern:$0x73625140]  ;;  %v529_v11 = vld.sshfl [vmem:[#allocation1 + $0x18] sm:$0xff pattern:$0x73625140] }
  0x2b   : > { %v651_v12 = vand.u32 %v8386_v4, %v528_v10  ;;  %535 = vst [vmem:[#allocation1] ss:$4 sm:$0xff] %v323_v5  ;;  %v653_v13 = vand.u32 %v8386_v4, %v529_v11  ;;  %v8602_v5 = vld [vmem:[%s8374_s26 + $0x60] sm:$0xff] }
  0x2c   : > { %686 = vmatpush.bf16.msra.mxu0 %v647_v8  ;;  %855 = vmatpush.bf16.msra.mxu1 %v649_v9 }
  0x2d   : > { %1024 = vmatpush.bf16.msra.mxu2 %v651_v12  ;;  %1193 = vmatpush.bf16.msra.mxu3 %v653_v13 }
  0x2e   : > { %v532_v57 = vld.sshfl [vmem:[#allocation1 + $0x30] sm:$0xff pattern:$0x73625140]  ;;  %v533_v60 = vld.sshfl [vmem:[#allocation1 + $0x38] sm:$0xff pattern:$0x73625140] }
  0x2f   : > { %6840 = vmatmul.msk.bf16.vlgmr.msra.gmra.mxu0 %vm546_vm2, %v8396_v14  ;;  %6872 = vmatmul.msk.bf16.vlgmr.msra.gmra.mxu1 %vm546_vm2, %v8396_v14  ;;  %v659_v59 = vand.u32 %v8386_v4, %v532_v57  ;;  %v661_v61 = vand.u32 %v8386_v4, %v533_v60  ;;  %v530_v62 = vld.sshfl [vmem:[#allocation1 + $0x20] sm:$0xff pattern:$0x73625140]  ;;  %v531_v63 = vld.sshfl [vmem:[#allocation1 + $0x28] sm:$0xff pattern:$0x73625140] }
  0x30   : > { %6904 = vmatmul.msk.bf16.vlgmr.msra.gmra.mxu2 %vm546_vm2, %v8396_v14  ;;  %6936 = vmatmul.msk.bf16.vlgmr.msra.gmra.mxu3 %vm546_vm2, %v8396_v14  ;;  %v655_v0 = vand.u32 %v8386_v4, %v530_v62  ;;  %537 = vst [vmem:[#allocation1 + $0x20] ss:$4 sm:$0xff] %v324_v58  ;;  %v657_v1 = vand.u32 %v8386_v4, %v531_v63 }
  0x31   : > { %1700 = vmatpush.bf16.msrb.mxu2 %v659_v59  ;;  %1869 = vmatpush.bf16.msrb.mxu3 %v661_v61 }
  0x32   : > { %1362 = vmatpush.bf16.msrb.mxu0 %v655_v0  ;;  %1531 = vmatpush.bf16.msrb.mxu1 %v657_v1  ;;  %v8656_v1 = vld [vmem:[%s8374_s26 + $0x70] sm:$0xff] }
  0x3f   : > { %6841 = vmatmul.msk.bf16.gmra.mxu0 %vm546_vm2, %v8407_v15  ;;  %6873 = vmatmul.msk.bf16.gmra.mxu1 %vm546_vm2, %v8407_v15 }
  0x40   : > { %6905 = vmatmul.msk.bf16.gmra.mxu2 %vm546_vm2, %v8407_v15  ;;  %6937 = vmatmul.msk.bf16.gmra.mxu3 %vm546_vm2, %v8407_v15 }
  0x4f   : > { %6842 = vmatmul.msk.bf16.gmra.mxu0 %vm546_vm2, %v8418_v16  ;;  %6874 = vmatmul.msk.bf16.gmra.mxu1 %vm546_vm2, %v8418_v16 }
  0x50   : > { %6906 = vmatmul.msk.bf16.gmra.mxu2 %vm546_vm2, %v8418_v16  ;;  %6938 = vmatmul.msk.bf16.gmra.mxu3 %vm546_vm2, %v8418_v16 }
  0x5f   : > { %6843 = vmatmul.msk.bf16.gmra.mxu0 %vm546_vm2, %v8429_v17  ;;  %6875 = vmatmul.msk.bf16.gmra.mxu1 %vm546_vm2, %v8429_v17 }
  0x60   : > { %6907 = vmatmul.msk.bf16.gmra.mxu2 %vm546_vm2, %v8429_v17  ;;  %6939 = vmatmul.msk.bf16.gmra.mxu3 %vm546_vm2, %v8429_v17 }
  0x6f   : > { %6844 = vmatmul.msk.bf16.gmra.mxu0 %vm546_vm2, %v8440_v18  ;;  %6876 = vmatmul.msk.bf16.gmra.mxu1 %vm546_vm2, %v8440_v18 }
  0x70   : > { %6908 = vmatmul.msk.bf16.gmra.mxu2 %vm546_vm2, %v8440_v18  ;;  %6940 = vmatmul.msk.bf16.gmra.mxu3 %vm546_vm2, %v8440_v18 }
  0x7f   : > { %6845 = vmatmul.msk.bf16.gmra.mxu0 %vm546_vm2, %v8451_v19  ;;  %6877 = vmatmul.msk.bf16.gmra.mxu1 %vm546_vm2, %v8451_v19 }
  0x80   : > { %6909 = vmatmul.msk.bf16.gmra.mxu2 %vm546_vm2, %v8451_v19  ;;  %6941 = vmatmul.msk.bf16.gmra.mxu3 %vm546_vm2, %v8451_v19 }
  0x8f   : > { %6846 = vmatmul.msk.bf16.gmra.mxu0 %vm546_vm2, %v8462_v20  ;;  %6878 = vmatmul.msk.bf16.gmra.mxu1 %vm546_vm2, %v8462_v20 }
  0x90   : > { %6910 = vmatmul.msk.bf16.gmra.mxu2 %vm546_vm2, %v8462_v20  ;;  %6942 = vmatmul.msk.bf16.gmra.mxu3 %vm546_vm2, %v8462_v20 }
  0x9f   : > { %6847 = vmatmul.msk.bf16.gmra.mxu0 %vm546_vm2, %v8473_v21  ;;  %6879 = vmatmul.msk.bf16.gmra.mxu1 %vm546_vm2, %v8473_v21 }
  0xa0   : > { %6911 = vmatmul.msk.bf16.gmra.mxu2 %vm546_vm2, %v8473_v21  ;;  %6943 = vmatmul.msk.bf16.gmra.mxu3 %vm546_vm2, %v8473_v21 }
  0xac   : > { %v8486_v23 = vpop.f32.mrf.mxu0  ;;  %v8488_v24 = vpop.f32.mrf.mxu1 }
  0xad   : > { %14362 = vst [vmem:[#allocation6_spill] sm:$0xff] %v8486_v23 }
  0xae   : > { %14363 = vst [vmem:[#allocation7_spill] sm:$0xff] %v8488_v24 }
  0xaf   : > { %6848 = vmatmul.msk.bf16.gmra.mxu0 %vm546_vm2, %v8484_v22  ;;  %6880 = vmatmul.msk.bf16.gmra.mxu1 %vm546_vm2, %v8484_v22 }
  0xb0   : > { %6912 = vmatmul.msk.bf16.gmra.mxu2 %vm546_vm2, %v8484_v22  ;;  %6944 = vmatmul.msk.bf16.gmra.mxu3 %vm546_vm2, %v8484_v22 }
  0xb3   : > { %v8498_v25 = vpop.f32.mrf.mxu2  ;;  %v8500_v26 = vpop.f32.mrf.mxu3 }
  0xb4   : > { %14364 = vst [vmem:[#allocation8_spill] sm:$0xff] %v8498_v25  ;;  %v8502_v27 = vpop.f32.mrf.mxu0  ;;  %v8504_v28 = vpop.f32.mrf.mxu1 }
  0xb5   : > { %14365 = vst [vmem:[#allocation9_spill] sm:$0xff] %v8500_v26 }
  0xb6   : > { %14366 = vst [vmem:[#allocation10_spill] sm:$0xff] %v8502_v27 }
  0xb7   : > { %14367 = vst [vmem:[#allocation11_spill] sm:$0xff] %v8504_v28 }
  0xbb   : > { %v8506_v29 = vpop.f32.mrf.mxu2  ;;  %v8508_v30 = vpop.f32.mrf.mxu3 }
  0xbc   : > { %14368 = vst [vmem:[#allocation12_spill] sm:$0xff] %v8506_v29  ;;  %v8513_v32 = vpop.f32.mrf.mxu0  ;;  %v8515_v33 = vpop.f32.mrf.mxu1 }
  0xbd   : > { %14369 = vst [vmem:[#allocation13_spill] sm:$0xff] %v8508_v30 }
  0xbe   : > { %14370 = vst [vmem:[#allocation14_spill] sm:$0xff] %v8513_v32 }
  0xbf   : > { %14371 = vst [vmem:[#allocation15_spill] sm:$0xff] %v8515_v33  ;;  %6849 = vmatmul.msk.bf16.gmra.mxu0 %vm546_vm2, %v8511_v31  ;;  %6881 = vmatmul.msk.bf16.gmra.mxu1 %vm546_vm2, %v8511_v31 }
  0xc0   : > { %6913 = vmatmul.msk.bf16.gmra.mxu2 %vm546_vm2, %v8511_v31  ;;  %6945 = vmatmul.msk.bf16.gmra.mxu3 %vm546_vm2, %v8511_v31 }
  0xc3   : > { %v8525_v34 = vpop.f32.mrf.mxu2  ;;  %v8527_v35 = vpop.f32.mrf.mxu3 }
  0xc4   : > { %14372 = vst [vmem:[#allocation16_spill] sm:$0xff] %v8525_v34  ;;  %v8529_v36 = vpop.f32.mrf.mxu0  ;;  %v8531_v37 = vpop.f32.mrf.mxu1 }
  0xc5   : > { %14373 = vst [vmem:[#allocation17_spill] sm:$0xff] %v8527_v35 }
  0xc6   : > { %14374 = vst [vmem:[#allocation18_spill] sm:$0xff] %v8529_v36 }
  0xc7   : > { %14375 = vst [vmem:[#allocation19_spill] sm:$0xff] %v8531_v37 }
  0xcb   : > { %v8533_v38 = vpop.f32.mrf.mxu2  ;;  %v8535_v39 = vpop.f32.mrf.mxu3 }
  0xcc   : > { %14376 = vst [vmem:[#allocation20_spill] sm:$0xff] %v8533_v38  ;;  %v8540_v41 = vpop.f32.mrf.mxu0  ;;  %v8542_v42 = vpop.f32.mrf.mxu1  ;;  %v8710_v38 = vld [vmem:[%s8374_s26 + $0x80] sm:$0xff] }
  0xcd   : > { %14377 = vst [vmem:[#allocation21_spill] sm:$0xff] %v8535_v39 }
  0xce   : > { %14378 = vst [vmem:[#allocation22_spill] sm:$0xff] %v8540_v41 }
  0xcf   : > { %14379 = vst [vmem:[#allocation23_spill] sm:$0xff] %v8542_v42  ;;  %6850 = vmatmul.msk.bf16.gmra.mxu0 %vm546_vm2, %v8538_v40  ;;  %6882 = vmatmul.msk.bf16.gmra.mxu1 %vm546_vm2, %v8538_v40  ;;  %v8818_v42 = vld [vmem:[%s8374_s26 + $0xa0] sm:$0xff] }
  0xd0   : > { %6914 = vmatmul.msk.bf16.gmra.mxu2 %vm546_vm2, %v8538_v40  ;;  %6946 = vmatmul.msk.bf16.gmra.mxu3 %vm546_vm2, %v8538_v40 }
  0xd3   : > { %v8552_v43 = vpop.f32.mrf.mxu2  ;;  %v8554_v44 = vpop.f32.mrf.mxu3 }
  0xd4   : > { %14380 = vst [vmem:[#allocation24_spill] sm:$0xff] %v8552_v43  ;;  %v8556_v45 = vpop.f32.mrf.mxu0  ;;  %v8558_v46 = vpop.f32.mrf.mxu1 }
  0xd5   : > { %14381 = vst [vmem:[#allocation25_spill] sm:$0xff] %v8554_v44 }
  0xd6   : > { %14382 = vst [vmem:[#allocation26_spill] sm:$0xff] %v8556_v45 }
  0xd7   : > { %14383 = vst [vmem:[#allocation27_spill] sm:$0xff] %v8558_v46 }
  0xdb   : > { %v8560_v47 = vpop.f32.mrf.mxu2  ;;  %v8562_v48 = vpop.f32.mrf.mxu3 }
  0xdc   : > { %14384 = vst [vmem:[#allocation28_spill] sm:$0xff] %v8560_v47  ;;  %v8567_v50 = vpop.f32.mrf.mxu0  ;;  %v8569_v51 = vpop.f32.mrf.mxu1 }
  0xdd   : > { %14385 = vst [vmem:[#allocation29_spill] sm:$0xff] %v8562_v48 }
  0xde   : > { %14386 = vst [vmem:[#allocation30_spill] sm:$0xff] %v8567_v50 }
  0xdf   : > { %14387 = vst [vmem:[#allocation31_spill] sm:$0xff] %v8569_v51  ;;  %6851 = vmatmul.msk.bf16.gmra.mxu0 %vm546_vm2, %v8565_v49  ;;  %6883 = vmatmul.msk.bf16.gmra.mxu1 %vm546_vm2, %v8565_v49 }
  0xe0   : > { %6915 = vmatmul.msk.bf16.gmra.mxu2 %vm546_vm2, %v8565_v49  ;;  %6947 = vmatmul.msk.bf16.gmra.mxu3 %vm546_vm2, %v8565_v49 }
  0xe3   : > { %v8582_v53 = vpop.f32.mrf.mxu2  ;;  %v8584_v54 = vpop.f32.mrf.mxu3 }
  0xe4   : > { %14388 = vst [vmem:[#allocation32_spill] sm:$0xff] %v8582_v53  ;;  %v8586_v55 = vpop.f32.mrf.mxu0  ;;  %v8588_v56 = vpop.f32.mrf.mxu1 }
  0xe5   : > { %14389 = vst [vmem:[#allocation33_spill] sm:$0xff] %v8584_v54 }
  0xe6   : > { %14390 = vst [vmem:[#allocation34_spill] sm:$0xff] %v8586_v55 }
  0xe7   : > { %14391 = vst [vmem:[#allocation35_spill] sm:$0xff] %v8588_v56 }
  0xeb   : > { %v8597_v2 = vpop.f32.mrf.mxu2  ;;  %v8599_v3 = vpop.f32.mrf.mxu3 }
  0xec   : > { %14392 = vst [vmem:[#allocation36_spill] sm:$0xff] %v8597_v2  ;;  %v8604_v6 = vpop.f32.mrf.mxu0  ;;  %v8606_v7 = vpop.f32.mrf.mxu1 }
  0xed   : > { %14393 = vst [vmem:[#allocation37_spill] sm:$0xff] %v8599_v3 }
  0xee   : > { %14394 = vst [vmem:[#allocation38_spill] sm:$0xff] %v8606_v7 }
  0xef   : > { %6852 = vmatmul.msk.bf16.gmra.mxu0 %vm546_vm2, %v8602_v5  ;;  %6884 = vmatmul.msk.bf16.gmra.mxu1 %vm546_vm2, %v8602_v5 }
  0xf0   : > { %6916 = vmatmul.msk.bf16.gmra.mxu2 %vm546_vm2, %v8602_v5  ;;  %6948 = vmatmul.msk.bf16.gmra.mxu3 %vm546_vm2, %v8602_v5 }
  0xf3   : > { %v8616_v8 = vpop.f32.mrf.mxu2  ;;  %v8618_v9 = vpop.f32.mrf.mxu3 }
  0xf4   : > { %14395 = vst [vmem:[#allocation39_spill] sm:$0xff] %v8616_v8  ;;  %v8620_v10 = vpop.f32.mrf.mxu0  ;;  %v8622_v11 = vpop.f32.mrf.mxu1 }
  0xf5   : > { %14396 = vst [vmem:[#allocation40_spill] sm:$0xff] %v8618_v9  ;;  %v8683_v9 = vld [vmem:[%s8374_s26 + $0x78] sm:$0xff] }
  0xf6   : > { %14397 = vst [vmem:[#allocation41_spill] sm:$0xff] %v8622_v11  ;;  %v8872_v11 = vld [vmem:[%s8374_s26 + $0xb0] sm:$0xff] }
  0xfb   : > { %v8624_v12 = vpop.f32.mrf.mxu2  ;;  %v8626_v13 = vpop.f32.mrf.mxu3 }
  0xfc   : > { %14398 = vst [vmem:[#allocation42_spill] sm:$0xff] %v8624_v12  ;;  %v8631_v57 = vpop.f32.mrf.mxu0  ;;  %v8633_v58 = vpop.f32.mrf.mxu1 }
  0xfd   : > { %14399 = vst [vmem:[#allocation43_spill] sm:$0xff] %v8626_v13 }
  0xfe   : > { %14400 = vst [vmem:[#allocation44_spill] sm:$0xff] %v8633_v58 }
  0xff   : > { %6853 = vmatmul.msk.bf16.gmra.mxu0 %vm546_vm2, %v8629_v52  ;;  %6885 = vmatmul.msk.bf16.gmra.mxu1 %vm546_vm2, %v8629_v52 }
 0x100   : > { %6917 = vmatmul.msk.bf16.gmra.mxu2 %vm546_vm2, %v8629_v52  ;;  %6949 = vmatmul.msk.bf16.gmra.mxu3 %vm546_vm2, %v8629_v52 }
 0x103   : > { %v8643_v59 = vpop.f32.mrf.mxu2  ;;  %v8645_v60 = vpop.f32.mrf.mxu3 }
 0x104   : > { %14401 = vst [vmem:[#allocation45_spill] sm:$0xff] %v8643_v59  ;;  %v8647_v61 = vpop.f32.mrf.mxu0  ;;  %v8649_v62 = vpop.f32.mrf.mxu1  ;;  %v8737_v59 = vld [vmem:[%s8374_s26 + $0x88] sm:$0xff] }
 0x105   : > { %14402 = vst [vmem:[#allocation46_spill] sm:$0xff] %v8645_v60 }
 0x106   : > { %14403 = vst [vmem:[#allocation47_spill] sm:$0xff] %v8649_v62 }
 0x10b   : > { %v8651_v63 = vpop.f32.mrf.mxu2  ;;  %v8653_v0 = vpop.f32.mrf.mxu3 }
 0x10c   : > { %14404 = vst [vmem:[#allocation48_spill] sm:$0xff] %v8651_v63  ;;  %v8658_v26 = vpop.f32.mrf.mxu0  ;;  %v8660_v30 = vpop.f32.mrf.mxu1 }
 0x10d   : > { %14405 = vst [vmem:[#allocation49_spill] sm:$0xff] %v8653_v0 }
 0x10e   : > { %14406 = vst [vmem:[#allocation50_spill] sm:$0xff] %v8660_v30 }
 0x10f   : > { %6854 = vmatmul.msk.bf16.gmra.mxu0 %vm546_vm2, %v8656_v1  ;;  %6886 = vmatmul.msk.bf16.gmra.mxu1 %vm546_vm2, %v8656_v1 }
 0x110   : > { %6918 = vmatmul.msk.bf16.gmra.mxu2 %vm546_vm2, %v8656_v1  ;;  %6950 = vmatmul.msk.bf16.gmra.mxu3 %vm546_vm2, %v8656_v1 }
 0x113   : > { %v8670_v35 = vpop.f32.mrf.mxu2  ;;  %v8672_v39 = vpop.f32.mrf.mxu3 }
 0x114   : > { %14407 = vst [vmem:[#allocation51_spill] sm:$0xff] %v8670_v35  ;;  %v8674_v44 = vpop.f32.mrf.mxu0  ;;  %v8676_v48 = vpop.f32.mrf.mxu1 }
 0x115   : > { %14408 = vst [vmem:[#allocation52_spill] sm:$0xff] %v8672_v39 }
 0x116   : > { %14409 = vst [vmem:[#allocation53_spill] sm:$0xff] %v8676_v48 }
 0x11b   : > { %v8678_v54 = vpop.f32.mrf.mxu2  ;;  %v8680_v3 = vpop.f32.mrf.mxu3 }
 0x11c   : > { %14410 = vst [vmem:[#allocation54_spill] sm:$0xff] %v8678_v54  ;;  %v8685_v13 = vpop.f32.mrf.mxu0  ;;  %v8687_v60 = vpop.f32.mrf.mxu1 }
 0x11d   : > { %14411 = vst [vmem:[#allocation55_spill] sm:$0xff] %v8680_v3 }
 0x11e   : > { %14412 = vst [vmem:[#allocation56_spill] sm:$0xff] %v8687_v60  ;;  %v8926_v60 = vld [vmem:[%s8374_s26 + $0xc0] sm:$0xff] }
 0x11f   : > { %6855 = vmatmul.msk.bf16.gmra.mxu0 %vm546_vm2, %v8683_v9  ;;  %6887 = vmatmul.msk.bf16.gmra.mxu1 %vm546_vm2, %v8683_v9 }
 0x120   : > { %6919 = vmatmul.msk.bf16.gmra.mxu2 %vm546_vm2, %v8683_v9  ;;  %6951 = vmatmul.msk.bf16.gmra.mxu3 %vm546_vm2, %v8683_v9 }
 0x123   : > { %v8697_v0 = vpop.f32.mrf.mxu2  ;;  %v8699_v39 = vpop.f32.mrf.mxu3 }
 0x124   : > { %14413 = vst [vmem:[#allocation57_spill] sm:$0xff] %v8697_v0  ;;  %v8701_v3 = vpop.f32.mrf.mxu0  ;;  %v8703_v25 = vpop.f32.mrf.mxu1 }
 0x125   : > { %14414 = vst [vmem:[#allocation58_spill] sm:$0xff] %v8699_v39 }
 0x126   : > { %14415 = vst [vmem:[#allocation59_spill] sm:$0xff] %v8703_v25 }
 0x12b   : > { %v8705_v29 = vpop.f32.mrf.mxu2  ;;  %v8707_v34 = vpop.f32.mrf.mxu3 }
 0x12c   : > { %14416 = vst [vmem:[#allocation60_spill] sm:$0xff] %v8705_v29  ;;  %v8712_v43 = vpop.f32.mrf.mxu0  ;;  %v8714_v47 = vpop.f32.mrf.mxu1  ;;  %v8764_v29 = vld [vmem:[%s8374_s26 + $0x90] sm:$0xff] }
 0x12d   : > { %14417 = vst [vmem:[#allocation61_spill] sm:$0xff] %v8707_v34 }
 0x12e   : > { %14418 = vst [vmem:[#allocation62_spill] sm:$0xff] %v8712_v43 }
 0x12f   : > { %14419 = vst [vmem:[#allocation63_spill] sm:$0xff] %v8714_v47  ;;  %6856 = vmatmul.msk.bf16.gmra.mxu0 %vm546_vm2, %v8710_v38  ;;  %6888 = vmatmul.msk.bf16.gmra.mxu1 %vm546_vm2, %v8710_v38 }
 0x130   : > { %6920 = vmatmul.msk.bf16.gmra.mxu2 %vm546_vm2, %v8710_v38  ;;  %6952 = vmatmul.msk.bf16.gmra.mxu3 %vm546_vm2, %v8710_v38 }
 0x133   : > { %v8724_v39 = vpop.f32.mrf.mxu2  ;;  %v8726_v34 = vpop.f32.mrf.mxu3 }
 0x134   : > { %14420 = vst [vmem:[#allocation64_spill] sm:$0xff] %v8724_v39  ;;  %v8728_v53 = vpop.f32.mrf.mxu0  ;;  %v8730_v2 = vpop.f32.mrf.mxu1 }
 0x135   : > { %14421 = vst [vmem:[#allocation65_spill] sm:$0xff] %v8726_v34 }
 0x136   : > { %14422 = vst [vmem:[#allocation66_spill] sm:$0xff] %v8728_v53 }
 0x137   : > { %14423 = vst [vmem:[#allocation67_spill] sm:$0xff] %v8730_v2 }
 0x13b   : > { %v8732_v8 = vpop.f32.mrf.mxu2  ;;  %v8734_v12 = vpop.f32.mrf.mxu3 }
 0x13c   : > { %14424 = vst [vmem:[#allocation68_spill] sm:$0xff] %v8732_v8  ;;  %v8739_v63 = vpop.f32.mrf.mxu0  ;;  %v8741_v35 = vpop.f32.mrf.mxu1 }
 0x13d   : > { %14425 = vst [vmem:[#allocation69_spill] sm:$0xff] %v8734_v12 }
 0x13e   : > { %14426 = vst [vmem:[#allocation70_spill] sm:$0xff] %v8739_v63  ;;  %v9007_v63 = vld [vmem:[%s8374_s26 + $0xd8] sm:$0xff] }
 0x13f   : > { %14427 = vst [vmem:[#allocation71_spill] sm:$0xff] %v8741_v35  ;;  %6857 = vmatmul.msk.bf16.gmra.mxu0 %vm546_vm2, %v8737_v59  ;;  %6889 = vmatmul.msk.bf16.gmra.mxu1 %vm546_vm2, %v8737_v59  ;;  %v8791_v35 = vld [vmem:[%s8374_s26 + $0x98] sm:$0xff] }
 0x140   : > { %6921 = vmatmul.msk.bf16.gmra.mxu2 %vm546_vm2, %v8737_v59  ;;  %6953 = vmatmul.msk.bf16.gmra.mxu3 %vm546_vm2, %v8737_v59 }
 0x143   : > { %v8751_v34 = vpop.f32.mrf.mxu2  ;;  %v8753_v12 = vpop.f32.mrf.mxu3 }
 0x144   : > { %14428 = vst [vmem:[#allocation72_spill] sm:$0xff] %v8751_v34  ;;  %v8755_v39 = vpop.f32.mrf.mxu0  ;;  %v8757_v8 = vpop.f32.mrf.mxu1 }
 0x145   : > { %14429 = vst [vmem:[#allocation73_spill] sm:$0xff] %v8753_v12 }
 0x146   : > { %14430 = vst [vmem:[#allocation74_spill] sm:$0xff] %v8755_v39  ;;  %v9034_v39 = vld [vmem:[%s8374_s26 + $0xe0] sm:$0xff] }
 0x147   : > { %14431 = vst [vmem:[#allocation75_spill] sm:$0xff] %v8757_v8 }
 0x14b   : > { %v8759_v54 = vpop.f32.mrf.mxu2  ;;  %v8761_v0 = vpop.f32.mrf.mxu3 }
 0x14c   : > { %14432 = vst [vmem:[#allocation76_spill] sm:$0xff] %v8759_v54  ;;  %v8766_v47 = vpop.f32.mrf.mxu0  ;;  %v8768_v24 = vpop.f32.mrf.mxu1 }
 0x14d   : > { %14433 = vst [vmem:[#allocation77_spill] sm:$0xff] %v8761_v0 }
 0x14e   : > { %14434 = vst [vmem:[#allocation78_spill] sm:$0xff] %v8766_v47  ;;  %v9061_v47 = vld [vmem:[%s8374_s26 + $0xe8] sm:$0xff] }
 0x14f   : > { %14435 = vst [vmem:[#allocation79_spill] sm:$0xff] %v8768_v24  ;;  %6858 = vmatmul.msk.bf16.gmra.mxu0 %vm546_vm2, %v8764_v29  ;;  %6890 = vmatmul.msk.bf16.gmra.mxu1 %vm546_vm2, %v8764_v29 }
 0x150   : > { %6922 = vmatmul.msk.bf16.gmra.mxu2 %vm546_vm2, %v8764_v29  ;;  %6954 = vmatmul.msk.bf16.gmra.mxu3 %vm546_vm2, %v8764_v29 }
 0x153   : > { %v8778_v12 = vpop.f32.mrf.mxu2  ;;  %v8780_v0 = vpop.f32.mrf.mxu3 }
 0x154   : > { %14436 = vst [vmem:[#allocation80_spill] sm:$0xff] %v8778_v12  ;;  %v8782_v34 = vpop.f32.mrf.mxu0  ;;  %v8784_v54 = vpop.f32.mrf.mxu1 }
 0x155   : > { %14437 = vst [vmem:[#allocation81_spill] sm:$0xff] %v8780_v0 }
 0x156   : > { %14438 = vst [vmem:[#allocation82_spill] sm:$0xff] %v8782_v34  ;;  %v9088_v34 = vld [vmem:[%s8374_s26 + $0xf0] sm:$0xff] }
 0x157   : > { %14439 = vst [vmem:[#allocation83_spill] sm:$0xff] %v8784_v54 }
 0x15b   : > { %v8786_v2 = vpop.f32.mrf.mxu2  ;;  %v8788_v28 = vpop.f32.mrf.mxu3 }
 0x15c   : > { %14440 = vst [vmem:[#allocation84_spill] sm:$0xff] %v8786_v2  ;;  %v8793_v33 = vpop.f32.mrf.mxu0  ;;  %v8795_v8 = vpop.f32.mrf.mxu1 }
 0x15d   : > { %14441 = vst [vmem:[#allocation85_spill] sm:$0xff] %v8788_v28 }
 0x15e   : > { %14442 = vst [vmem:[#allocation86_spill] sm:$0xff] %v8793_v33  ;;  %v9115_v33 = vld [vmem:[%s8374_s26 + $0xf8] sm:$0xff] }
 0x15f   : > { %14443 = vst [vmem:[#allocation87_spill] sm:$0xff] %v8795_v8  ;;  %6859 = vmatmul.msk.bf16.gmra.mxu0 %vm546_vm2, %v8791_v35  ;;  %6891 = vmatmul.msk.bf16.gmra.mxu1 %vm546_vm2, %v8791_v35 }
 0x160   : > { %6923 = vmatmul.msk.bf16.gmra.mxu2 %vm546_vm2, %v8791_v35  ;;  %6955 = vmatmul.msk.bf16.gmra.mxu3 %vm546_vm2, %v8791_v35 }
 0x163   : > { %v8805_v0 = vpop.f32.mrf.mxu2  ;;  %v8807_v28 = vpop.f32.mrf.mxu3 }
 0x164   : > { %14444 = vst [vmem:[#allocation88_spill] sm:$0xff] %v8805_v0  ;;  %v8809_v12 = vpop.f32.mrf.mxu0  ;;  %v8811_v2 = vpop.f32.mrf.mxu1 }
 0x165   : > { %14445 = vst [vmem:[#allocation89_spill] sm:$0xff] %v8807_v28 }
 0x166   : > { %14446 = vst [vmem:[#allocation90_spill] sm:$0xff] %v8809_v12 }
 0x167   : > { %14447 = vst [vmem:[#allocation91_spill] sm:$0xff] %v8811_v2  ;;  %v8845_v2 = vld [vmem:[%s8374_s26 + $0xa8] sm:$0xff] }
 0x16b   : > { %v8813_v37 = vpop.f32.mrf.mxu2  ;;  %v8815_v24 = vpop.f32.mrf.mxu3 }
 0x16c   : > { %14448 = vst [vmem:[#allocation92_spill] sm:$0xff] %v8813_v37  ;;  %v8820_v54 = vpop.f32.mrf.mxu0  ;;  %v8822_v46 = vpop.f32.mrf.mxu1 }
 0x16d   : > { %14449 = vst [vmem:[#allocation93_spill] sm:$0xff] %v8815_v24 }
 0x16e   : > { %14450 = vst [vmem:[#allocation94_spill] sm:$0xff] %v8822_v46 }
 0x16f   : > { %6860 = vmatmul.msk.bf16.gmra.mxu0 %vm546_vm2, %v8818_v42  ;;  %6892 = vmatmul.msk.bf16.gmra.mxu1 %vm546_vm2, %v8818_v42 }
 0x170   : > { %6924 = vmatmul.msk.bf16.gmra.mxu2 %vm546_vm2, %v8818_v42  ;;  %6956 = vmatmul.msk.bf16.gmra.mxu3 %vm546_vm2, %v8818_v42 }
 0x173   : > { %v8832_v28 = vpop.f32.mrf.mxu2  ;;  %v8834_v24 = vpop.f32.mrf.mxu3 }
 0x174   : > { %14451 = vst [vmem:[#allocation95_spill] sm:$0xff] %v8832_v28  ;;  %v8836_v0 = vpop.f32.mrf.mxu0  ;;  %v8838_v37 = vpop.f32.mrf.mxu1 }
 0x175   : > { %14452 = vst [vmem:[#allocation96_spill] sm:$0xff] %v8834_v24 }
 0x176   : > { %14453 = vst [vmem:[#allocation97_spill] sm:$0xff] %v8838_v37 }
 0x17b   : > { %v8840_v8 = vpop.f32.mrf.mxu2  ;;  %v8842_v51 = vpop.f32.mrf.mxu3 }
 0x17c   : > { %14454 = vst [vmem:[#allocation98_spill] sm:$0xff] %v8840_v8  ;;  %v8847_v56 = vpop.f32.mrf.mxu0  ;;  %v8849_v46 = vpop.f32.mrf.mxu1 }
 0x17d   : > { %14455 = vst [vmem:[#allocation99_spill] sm:$0xff] %v8842_v51 }
 0x17e   : > { %14456 = vst [vmem:[#allocation100_spill] sm:$0xff] %v8849_v46 }
 0x17f   : > { %6861 = vmatmul.msk.bf16.gmra.mxu0 %vm546_vm2, %v8845_v2  ;;  %6893 = vmatmul.msk.bf16.gmra.mxu1 %vm546_vm2, %v8845_v2 }
 0x180   : > { %6925 = vmatmul.msk.bf16.gmra.mxu2 %vm546_vm2, %v8845_v2  ;;  %6957 = vmatmul.msk.bf16.gmra.mxu3 %vm546_vm2, %v8845_v2 }
 0x183   : > { %v8859_v24 = vpop.f32.mrf.mxu2  ;;  %v8861_v51 = vpop.f32.mrf.mxu3 }
 0x184   : > { %14457 = vst [vmem:[#allocation101_spill] sm:$0xff] %v8859_v24  ;;  %v8863_v28 = vpop.f32.mrf.mxu0  ;;  %v8865_v8 = vpop.f32.mrf.mxu1 }
 0x185   : > { %14458 = vst [vmem:[#allocation102_spill] sm:$0xff] %v8861_v51 }
 0x186   : > { %14459 = vst [vmem:[#allocation103_spill] sm:$0xff] %v8865_v8 }
 0x18b   : > { %v8867_v7 = vpop.f32.mrf.mxu2  ;;  %v8869_v37 = vpop.f32.mrf.mxu3 }
 0x18c   : > { %14460 = vst [vmem:[#allocation104_spill] sm:$0xff] %v8867_v7  ;;  %v8874_v46 = vpop.f32.mrf.mxu0  ;;  %v8876_v58 = vpop.f32.mrf.mxu1 }
 0x18d   : > { %14461 = vst [vmem:[#allocation105_spill] sm:$0xff] %v8869_v37 }
 0x18e   : > { %14462 = vst [vmem:[#allocation106_spill] sm:$0xff] %v8876_v58  ;;  %v8899_v58 = vld [vmem:[%s8374_s26 + $0xb8] sm:$0xff] }
 0x18f   : > { %6862 = vmatmul.msk.bf16.gmra.mxu0 %vm546_vm2, %v8872_v11  ;;  %6894 = vmatmul.msk.bf16.gmra.mxu1 %vm546_vm2, %v8872_v11 }
 0x190   : > { %6926 = vmatmul.msk.bf16.gmra.mxu2 %vm546_vm2, %v8872_v11  ;;  %6958 = vmatmul.msk.bf16.gmra.mxu3 %vm546_vm2, %v8872_v11 }
 0x193   : > { %v8886_v51 = vpop.f32.mrf.mxu2  ;;  %v8888_v37 = vpop.f32.mrf.mxu3 }
 0x194   : > { %14463 = vst [vmem:[#allocation107_spill] sm:$0xff] %v8886_v51  ;;  %v8890_v24 = vpop.f32.mrf.mxu0  ;;  %v8892_v7 = vpop.f32.mrf.mxu1 }
 0x195   : > { %14464 = vst [vmem:[#allocation108_spill] sm:$0xff] %v8888_v37 }
 0x196   : > { %14465 = vst [vmem:[#allocation109_spill] sm:$0xff] %v8892_v7 }
 0x19b   : > { %v8894_v8 = vpop.f32.mrf.mxu2  ;;  %v8896_v62 = vpop.f32.mrf.mxu3 }
 0x19c   : > { %14466 = vst [vmem:[#allocation110_spill] sm:$0xff] %v8894_v8  ;;  %v8901_v30 = vpop.f32.mrf.mxu0  ;;  %v8903_v48 = vpop.f32.mrf.mxu1 }
 0x19d   : > { %14467 = vst [vmem:[#allocation111_spill] sm:$0xff] %v8896_v62 }
 0x19e   : > { %14468 = vst [vmem:[#allocation112_spill] sm:$0xff] %v8903_v48 }
 0x19f   : > { %6863 = vmatmul.msk.bf16.gmra.mxu0 %vm546_vm2, %v8899_v58  ;;  %6895 = vmatmul.msk.bf16.gmra.mxu1 %vm546_vm2, %v8899_v58 }
 0x1a0   : > { %6927 = vmatmul.msk.bf16.gmra.mxu2 %vm546_vm2, %v8899_v58  ;;  %6959 = vmatmul.msk.bf16.gmra.mxu3 %vm546_vm2, %v8899_v58 }
 0x1a3   : > { %v8913_v37 = vpop.f32.mrf.mxu2  ;;  %v8915_v62 = vpop.f32.mrf.mxu3 }
 0x1a4   : > { %14469 = vst [vmem:[#allocation113_spill] sm:$0xff] %v8913_v37  ;;  %v8917_v51 = vpop.f32.mrf.mxu0  ;;  %v8919_v8 = vpop.f32.mrf.mxu1 }
 0x1a5   : > { %14470 = vst [vmem:[#allocation114_spill] sm:$0xff] %v8915_v62 }
 0x1a6   : > { %14471 = vst [vmem:[#allocation115_spill] sm:$0xff] %v8919_v8 }
 0x1ab   : > { %v8921_v7 = vpop.f32.mrf.mxu2  ;;  %v8923_v48 = vpop.f32.mrf.mxu3 }
 0x1ac   : > { %14472 = vst [vmem:[#allocation116_spill] sm:$0xff] %v8921_v7  ;;  %v8928_v25 = vpop.f32.mrf.mxu0  ;;  %v8930_v43 = vpop.f32.mrf.mxu1 }
 0x1ad   : > { %14473 = vst [vmem:[#allocation117_spill] sm:$0xff] %v8923_v48 }
 0x1ae   : > { %14474 = vst [vmem:[#allocation118_spill] sm:$0xff] %v8928_v25  ;;  %v8953_v25 = vld [vmem:[%s8374_s26 + $0xc8] sm:$0xff] }
 0x1af   : > { %14475 = vst [vmem:[#allocation119_spill] sm:$0xff] %v8930_v43  ;;  %6864 = vmatmul.msk.bf16.gmra.mxu0 %vm546_vm2, %v8926_v60  ;;  %6896 = vmatmul.msk.bf16.gmra.mxu1 %vm546_vm2, %v8926_v60 }
 0x1b0   : > { %6928 = vmatmul.msk.bf16.gmra.mxu2 %vm546_vm2, %v8926_v60  ;;  %6960 = vmatmul.msk.bf16.gmra.mxu3 %vm546_vm2, %v8926_v60 }
 0x1b3   : > { %v8940_v62 = vpop.f32.mrf.mxu2  ;;  %v8942_v48 = vpop.f32.mrf.mxu3 }
 0x1b4   : > { %14476 = vst [vmem:[#allocation120_spill] sm:$0xff] %v8940_v62  ;;  %v8944_v37 = vpop.f32.mrf.mxu0  ;;  %v8946_v7 = vpop.f32.mrf.mxu1 }
 0x1b5   : > { %14477 = vst [vmem:[#allocation121_spill] sm:$0xff] %v8942_v48 }
 0x1b6   : > { %14478 = vst [vmem:[#allocation122_spill] sm:$0xff] %v8944_v37  ;;  %v8980_v37 = vld [vmem:[%s8374_s26 + $0xd0] sm:$0xff] }
 0x1b7   : > { %14479 = vst [vmem:[#allocation123_spill] sm:$0xff] %v8946_v7 }
 0x1bb   : > { %v8948_v43 = vpop.f32.mrf.mxu2  ;;  %v8950_v8 = vpop.f32.mrf.mxu3 }
 0x1bc   : > { %14480 = vst [vmem:[#allocation124_spill] sm:$0xff] %v8948_v43  ;;  %v8955_v23 = vpop.f32.mrf.mxu0  ;;  %v8957_v53 = vpop.f32.mrf.mxu1 }
 0x1bd   : > { %14481 = vst [vmem:[#allocation125_spill] sm:$0xff] %v8950_v8 }
 0x1be   : > { %14482 = vst [vmem:[#allocation126_spill] sm:$0xff] %v8955_v23 }
 0x1bf   : > { %14483 = vst [vmem:[#allocation127_spill] sm:$0xff] %v8957_v53  ;;  %6865 = vmatmul.msk.bf16.gmra.mxu0 %vm546_vm2, %v8953_v25  ;;  %6897 = vmatmul.msk.bf16.gmra.mxu1 %vm546_vm2, %v8953_v25 }
 0x1c0   : > { %6929 = vmatmul.msk.bf16.gmra.mxu2 %vm546_vm2, %v8953_v25  ;;  %6961 = vmatmul.msk.bf16.gmra.mxu3 %vm546_vm2, %v8953_v25 }
 0x1c3   : > { %v8967_v48 = vpop.f32.mrf.mxu2  ;;  %v8969_v8 = vpop.f32.mrf.mxu3 }
 0x1c4   : > { %14484 = vst [vmem:[#allocation128_spill] sm:$0xff] %v8967_v48  ;;  %v8971_v62 = vpop.f32.mrf.mxu0  ;;  %v8973_v43 = vpop.f32.mrf.mxu1 }
 0x1c5   : > { %14485 = vst [vmem:[#allocation129_spill] sm:$0xff] %v8969_v8 }
 0x1c6   : > { %14486 = vst [vmem:[#allocation130_spill] sm:$0xff] %v8971_v62 }
 0x1c7   : > { %14487 = vst [vmem:[#allocation131_spill] sm:$0xff] %v8973_v43 }
 0x1cb   : > { %v8975_v7 = vpop.f32.mrf.mxu2  ;;  %v8977_v53 = vpop.f32.mrf.mxu3 }
 0x1cc   : > { %14488 = vst [vmem:[#allocation132_spill] sm:$0xff] %v8975_v7  ;;  %v8982_v27 = vpop.f32.mrf.mxu0  ;;  %v8984_v23 = vpop.f32.mrf.mxu1 }
 0x1cd   : > { %14489 = vst [vmem:[#allocation133_spill] sm:$0xff] %v8977_v53 }
 0x1ce   : > { %14490 = vst [vmem:[#allocation134_spill] sm:$0xff] %v8982_v27 }
 0x1cf   : > { %14491 = vst [vmem:[#allocation135_spill] sm:$0xff] %v8984_v23  ;;  %6866 = vmatmul.msk.bf16.gmra.mxu0 %vm546_vm2, %v8980_v37  ;;  %6898 = vmatmul.msk.bf16.gmra.mxu1 %vm546_vm2, %v8980_v37 }
 0x1d0   : > { %6930 = vmatmul.msk.bf16.gmra.mxu2 %vm546_vm2, %v8980_v37  ;;  %6962 = vmatmul.msk.bf16.gmra.mxu3 %vm546_vm2, %v8980_v37 }
 0x1d3   : > { %v8994_v8 = vpop.f32.mrf.mxu2  ;;  %v8996_v53 = vpop.f32.mrf.mxu3 }
 0x1d4   : > { %14492 = vst [vmem:[#allocation136_spill] sm:$0xff] %v8994_v8  ;;  %v8998_v48 = vpop.f32.mrf.mxu0  ;;  %v9000_v7 = vpop.f32.mrf.mxu1 }
 0x1d5   : > { %14493 = vst [vmem:[#allocation137_spill] sm:$0xff] %v8996_v53 }
 0x1d6   : > { %14494 = vst [vmem:[#allocation138_spill] sm:$0xff] %v8998_v48 }
 0x1d7   : > { %14495 = vst [vmem:[#allocation139_spill] sm:$0xff] %v9000_v7 }
 0x1db   : > { %v9002_v43 = vpop.f32.mrf.mxu2  ;;  %v9004_v23 = vpop.f32.mrf.mxu3 }
 0x1dc   : > { %14496 = vst [vmem:[#allocation140_spill] sm:$0xff] %v9002_v43  ;;  %v9009_v32 = vpop.f32.mrf.mxu0  ;;  %v9011_v62 = vpop.f32.mrf.mxu1 }
 0x1dd   : > { %14497 = vst [vmem:[#allocation141_spill] sm:$0xff] %v9004_v23 }
 0x1de   : > { %14498 = vst [vmem:[#allocation142_spill] sm:$0xff] %v9009_v32 }
 0x1df   : > { %14499 = vst [vmem:[#allocation143_spill] sm:$0xff] %v9011_v62  ;;  %6867 = vmatmul.msk.bf16.gmra.mxu0 %vm546_vm2, %v9007_v63  ;;  %6899 = vmatmul.msk.bf16.gmra.mxu1 %vm546_vm2, %v9007_v63 }
 0x1e0   : > { %6931 = vmatmul.msk.bf16.gmra.mxu2 %vm546_vm2, %v9007_v63  ;;  %6963 = vmatmul.msk.bf16.gmra.mxu3 %vm546_vm2, %v9007_v63 }
 0x1e3   : > { %v9021_v53 = vpop.f32.mrf.mxu2  ;;  %v9023_v23 = vpop.f32.mrf.mxu3 }
 0x1e4   : > { %14500 = vst [vmem:[#allocation144_spill] sm:$0xff] %v9021_v53  ;;  %v9025_v8 = vpop.f32.mrf.mxu0  ;;  %v9027_v43 = vpop.f32.mrf.mxu1 }
 0x1e5   : > { %14501 = vst [vmem:[#allocation145_spill] sm:$0xff] %v9023_v23 }
 0x1e6   : > { %14502 = vst [vmem:[#allocation146_spill] sm:$0xff] %v9025_v8 }
 0x1e7   : > { %14503 = vst [vmem:[#allocation147_spill] sm:$0xff] %v9027_v43 }
 0x1eb   : > { %v9029_v7 = vpop.f32.mrf.mxu2  ;;  %v9031_v62 = vpop.f32.mrf.mxu3 }
 0x1ec   : > { %14504 = vst [vmem:[#allocation148_spill] sm:$0xff] %v9029_v7  ;;  %v9036_v36 = vpop.f32.mrf.mxu0  ;;  %v9038_v27 = vpop.f32.mrf.mxu1 }
 0x1ed   : > { %14505 = vst [vmem:[#allocation149_spill] sm:$0xff] %v9031_v62 }
 0x1ee   : > { %14506 = vst [vmem:[#allocation150_spill] sm:$0xff] %v9036_v36 }
 0x1ef   : > { %14507 = vst [vmem:[#allocation151_spill] sm:$0xff] %v9038_v27  ;;  %6868 = vmatmul.msk.bf16.gmra.mxu0 %vm546_vm2, %v9034_v39  ;;  %6900 = vmatmul.msk.bf16.gmra.mxu1 %vm546_vm2, %v9034_v39 }
 0x1f0   : > { %6932 = vmatmul.msk.bf16.gmra.mxu2 %vm546_vm2, %v9034_v39  ;;  %6964 = vmatmul.msk.bf16.gmra.mxu3 %vm546_vm2, %v9034_v39 }
 0x1f3   : > { %v9048_v23 = vpop.f32.mrf.mxu2  ;;  %v9050_v62 = vpop.f32.mrf.mxu3 }
 0x1f4   : > { %14508 = vst [vmem:[#allocation152_spill] sm:$0xff] %v9048_v23  ;;  %v9052_v53 = vpop.f32.mrf.mxu0  ;;  %v9054_v7 = vpop.f32.mrf.mxu1 }
 0x1f5   : > { %14509 = vst [vmem:[#allocation153_spill] sm:$0xff] %v9050_v62 }
 0x1f6   : > { %14510 = vst [vmem:[#allocation154_spill] sm:$0xff] %v9054_v7 }
 0x1fb   : > { %v9056_v43 = vpop.f32.mrf.mxu2  ;;  %v9058_v27 = vpop.f32.mrf.mxu3 }
 0x1fc   : > { %14511 = vst [vmem:[#allocation155_spill] sm:$0xff] %v9056_v43  ;;  %v9063_v41 = vpop.f32.mrf.mxu0  ;;  %v9065_v48 = vpop.f32.mrf.mxu1 }
 0x1fd   : > { %14512 = vst [vmem:[#allocation156_spill] sm:$0xff] %v9058_v27 }
 0x1fe   : > { %14513 = vst [vmem:[#allocation157_spill] sm:$0xff] %v9065_v48 }
 0x1ff   : > { %6869 = vmatmul.msk.bf16.gmra.mxu0 %vm546_vm2, %v9061_v47  ;;  %6901 = vmatmul.msk.bf16.gmra.mxu1 %vm546_vm2, %v9061_v47 }
 0x200   : > { %6933 = vmatmul.msk.bf16.gmra.mxu2 %vm546_vm2, %v9061_v47  ;;  %6965 = vmatmul.msk.bf16.gmra.mxu3 %vm546_vm2, %v9061_v47 }
 0x203   : > { %v9075_v62 = vpop.f32.mrf.mxu2  ;;  %v9077_v27 = vpop.f32.mrf.mxu3 }
 0x204   : > { %14514 = vst [vmem:[#allocation158_spill] sm:$0xff] %v9075_v62  ;;  %v9079_v23 = vpop.f32.mrf.mxu0  ;;  %v9081_v43 = vpop.f32.mrf.mxu1 }
 0x205   : > { %14515 = vst [vmem:[#allocation159_spill] sm:$0xff] %v9077_v27 }
 0x206   : > { %14516 = vst [vmem:[#allocation160_spill] sm:$0xff] %v9081_v43 }
 0x20b   : > { %v9083_v7 = vpop.f32.mrf.mxu2  ;;  %v9085_v48 = vpop.f32.mrf.mxu3 }
 0x20c   : > { %14517 = vst [vmem:[#allocation161_spill] sm:$0xff] %v9083_v7  ;;  %v9090_v45 = vpop.f32.mrf.mxu0  ;;  %v9092_v32 = vpop.f32.mrf.mxu1 }
 0x20d   : > { %14518 = vst [vmem:[#allocation162_spill] sm:$0xff] %v9085_v48 }
 0x20e   : > { %14519 = vst [vmem:[#allocation163_spill] sm:$0xff] %v9092_v32 }
 0x20f   : > { %6870 = vmatmul.msk.bf16.gmra.mxu0 %vm546_vm2, %v9088_v34  ;;  %6902 = vmatmul.msk.bf16.gmra.mxu1 %vm546_vm2, %v9088_v34 }
 0x210   : > { %6934 = vmatmul.msk.bf16.gmra.mxu2 %vm546_vm2, %v9088_v34  ;;  %6966 = vmatmul.msk.bf16.gmra.mxu3 %vm546_vm2, %v9088_v34 }
 0x213   : > { %v9102_v27 = vpop.f32.mrf.mxu2  ;;  %v9104_v48 = vpop.f32.mrf.mxu3 }
 0x214   : > { %14520 = vst [vmem:[#allocation164_spill] sm:$0xff] %v9102_v27  ;;  %v9106_v62 = vpop.f32.mrf.mxu0  ;;  %v9108_v7 = vpop.f32.mrf.mxu1 }
 0x215   : > { %14521 = vst [vmem:[#allocation165_spill] sm:$0xff] %v9104_v48 }
 0x216   : > { %14522 = vst [vmem:[#allocation166_spill] sm:$0xff] %v9108_v7 }
 0x21b   : > { %v9110_v43 = vpop.f32.mrf.mxu2  ;;  %v9112_v32 = vpop.f32.mrf.mxu3 }
 0x21c   : > { %14523 = vst [vmem:[#allocation167_spill] sm:$0xff] %v9110_v43  ;;  %v9117_v50 = vpop.f32.mrf.mxu0  ;;  %v9119_v8 = vpop.f32.mrf.mxu1 }
 0x21d   : > { %14524 = vst [vmem:[#allocation168_spill] sm:$0xff] %v9112_v32 }
 0x21e   : > { %14525 = vst [vmem:[#allocation169_spill] sm:$0xff] %v9119_v8 }
 0x21f   : > { %6871 = vmatmul.msk.bf16.gmra.mxu0 %vm546_vm2, %v9115_v33  ;;  %6903 = vmatmul.msk.bf16.gmra.mxu1 %vm546_vm2, %v9115_v33 }
 0x220   : > { %6935 = vmatmul.msk.bf16.gmra.mxu2 %vm546_vm2, %v9115_v33  ;;  %6967 = vmatmul.msk.bf16.gmra.mxu3 %vm546_vm2, %v9115_v33 }
 0x223   : > { %v9129_v48 = vpop.f32.mrf.mxu2  ;;  %v9131_v32 = vpop.f32.mrf.mxu3 }
 0x224   : > { %14526 = vst [vmem:[#allocation170_spill] sm:$0xff] %v9129_v48  ;;  %v9133_v27 = vpop.f32.mrf.mxu0  ;;  %v9135_v43 = vpop.f32.mrf.mxu1 }
 0x225   : > { %14527 = vst [vmem:[#allocation171_spill] sm:$0xff] %v9131_v32 }
 0x226   : > { %14528 = vst [vmem:[#allocation172_spill] sm:$0xff] %v9135_v43 }
 0x22b   : > { %v9137_v7 = vpop.f32.mrf.mxu2  ;;  %v9139_v8 = vpop.f32.mrf.mxu3 }
 0x22c   : > { %14529 = vst [vmem:[#allocation173_spill] sm:$0xff] %v9137_v7  ;;  %v9141_v12 = vpop.f32.mrf.mxu0  ;;  %v9143_v55 = vpop.f32.mrf.mxu1 }
 0x22d   : > { %14530 = vst [vmem:[#allocation174_spill] sm:$0xff] %v9139_v8 }
 0x22e   : > { %14531 = vst [vmem:[#allocation175_spill] sm:$0xff] %v9141_v12 }
 0x22f   : > { %14532 = vst [vmem:[#allocation176_spill] sm:$0xff] %v9143_v55  ;;  %6968 = vmatmul.msk.bf16.vlgmr.msrb.gmra.mxu0 %vm546_vm2, %v8396_v14  ;;  %7000 = vmatmul.msk.bf16.vlgmr.msrb.gmra.mxu1 %vm546_vm2, %v8396_v14 }
 0x230   : > { %7032 = vmatmul.msk.bf16.vlgmr.msrb.gmra.mxu2 %vm546_vm2, %v8396_v14  ;;  %7064 = vmatmul.msk.bf16.vlgmr.msrb.gmra.mxu3 %vm546_vm2, %v8396_v14 }
 0x233   : > { %v9153_v32 = vpop.f32.mrf.mxu2  ;;  %v9155_v48 = vpop.f32.mrf.mxu3 }
 0x234   : > { %14533 = vst [vmem:[#allocation177_spill] sm:$0xff] %v9153_v32  ;;  %v9157_v8 = vpop.f32.mrf.mxu0  ;;  %v9159_v7 = vpop.f32.mrf.mxu1 }
 0x235   : > { %14534 = vst [vmem:[#allocation178_spill] sm:$0xff] %v9155_v48 }
 0x236   : > { %14535 = vst [vmem:[#allocation179_spill] sm:$0xff] %v9157_v8 }
 0x237   : > { %14536 = vst [vmem:[#allocation180_spill] sm:$0xff] %v9159_v7 }
 0x23b   : > { %v9161_v55 = vpop.f32.mrf.mxu2  ;;  %v9163_v43 = vpop.f32.mrf.mxu3 }
 0x23c   : > { %14537 = vst [vmem:[#allocation181_spill] sm:$0xff] %v9161_v55  ;;  %v9165_v12 = vpop.f32.mrf.mxu0  ;;  %v9167_v36 = vpop.f32.mrf.mxu1 }
 0x23d   : > { %14538 = vst [vmem:[#allocation182_spill] sm:$0xff] %v9163_v43 }
 0x23e   : > { %14539 = vst [vmem:[#allocation183_spill] sm:$0xff] %v9165_v12 }
 0x23f   : > { %14540 = vst [vmem:[#allocation184_spill] sm:$0xff] %v9167_v36  ;;  %6969 = vmatmul.msk.bf16.gmra.mxu0 %vm546_vm2, %v8407_v15  ;;  %7001 = vmatmul.msk.bf16.gmra.mxu1 %vm546_vm2, %v8407_v15 }
 0x240   : > { %7033 = vmatmul.msk.bf16.gmra.mxu2 %vm546_vm2, %v8407_v15  ;;  %7065 = vmatmul.msk.bf16.gmra.mxu3 %vm546_vm2, %v8407_v15 }
 0x243   : > { %v9177_v14 = vpop.f32.mrf.mxu2  ;;  %v9179_v48 = vpop.f32.mrf.mxu3 }
 0x244   : > { %14541 = vst [vmem:[#allocation185_spill] sm:$0xff] %v9177_v14  ;;  %v9181_v43 = vpop.f32.mrf.mxu0  ;;  %v9183_v32 = vpop.f32.mrf.mxu1 }
 0x245   : > { %14542 = vst [vmem:[#allocation186_spill] sm:$0xff] %v9179_v48 }
 0x246   : > { %14543 = vst [vmem:[#allocation187_spill] sm:$0xff] %v9181_v43 }
 0x247   : > { %14544 = vst [vmem:[#allocation188_spill] sm:$0xff] %v9183_v32 }
 0x24b   : > { %v9185_v55 = vpop.f32.mrf.mxu2  ;;  %v9187_v7 = vpop.f32.mrf.mxu3 }
 0x24c   : > { %14545 = vst [vmem:[#allocation189_spill] sm:$0xff] %v9185_v55  ;;  %v9189_v36 = vpop.f32.mrf.mxu0  ;;  %v9191_v8 = vpop.f32.mrf.mxu1 }
 0x24d   : > { %14546 = vst [vmem:[#allocation190_spill] sm:$0xff] %v9187_v7 }
 0x24e   : > { %14547 = vst [vmem:[#allocation191_spill] sm:$0xff] %v9189_v36 }
 0x24f   : > { %14548 = vst [vmem:[#allocation192_spill] sm:$0xff] %v9191_v8  ;;  %6970 = vmatmul.msk.bf16.gmra.mxu0 %vm546_vm2, %v8418_v16  ;;  %7002 = vmatmul.msk.bf16.gmra.mxu1 %vm546_vm2, %v8418_v16 }
 0x250   : > { %7034 = vmatmul.msk.bf16.gmra.mxu2 %vm546_vm2, %v8418_v16  ;;  %7066 = vmatmul.msk.bf16.gmra.mxu3 %vm546_vm2, %v8418_v16 }
 0x253   : > { %v9201_v15 = vpop.f32.mrf.mxu2  ;;  %v9203_v48 = vpop.f32.mrf.mxu3 }
 0x254   : > { %14549 = vst [vmem:[#allocation193_spill] sm:$0xff] %v9201_v15  ;;  %v9205_v7 = vpop.f32.mrf.mxu0  ;;  %v9207_v14 = vpop.f32.mrf.mxu1 }
 0x255   : > { %14550 = vst [vmem:[#allocation194_spill] sm:$0xff] %v9203_v48 }
 0x256   : > { %14551 = vst [vmem:[#allocation195_spill] sm:$0xff] %v9205_v7 }
 0x257   : > { %14552 = vst [vmem:[#allocation196_spill] sm:$0xff] %v9207_v14 }
 0x25b   : > { %v9209_v55 = vpop.f32.mrf.mxu2  ;;  %v9211_v32 = vpop.f32.mrf.mxu3 }
 0x25c   : > { %14553 = vst [vmem:[#allocation197_spill] sm:$0xff] %v9209_v55  ;;  %v9213_v8 = vpop.f32.mrf.mxu0  ;;  %v9215_v12 = vpop.f32.mrf.mxu1 }
 0x25d   : > { %14554 = vst [vmem:[#allocation198_spill] sm:$0xff] %v9211_v32 }
 0x25e   : > { %14555 = vst [vmem:[#allocation199_spill] sm:$0xff] %v9213_v8 }
 0x25f   : > { %14556 = vst [vmem:[#allocation200_spill] sm:$0xff] %v9215_v12  ;;  %6971 = vmatmul.msk.bf16.gmra.mxu0 %vm546_vm2, %v8429_v17  ;;  %7003 = vmatmul.msk.bf16.gmra.mxu1 %vm546_vm2, %v8429_v17 }
 0x260   : > { %7035 = vmatmul.msk.bf16.gmra.mxu2 %vm546_vm2, %v8429_v17  ;;  %7067 = vmatmul.msk.bf16.gmra.mxu3 %vm546_vm2, %v8429_v17 }
 0x263   : > { %v9225_v16 = vpop.f32.mrf.mxu2  ;;  %v9227_v48 = vpop.f32.mrf.mxu3 }
 0x264   : > { %14557 = vst [vmem:[#allocation201_spill] sm:$0xff] %v9225_v16  ;;  %v9229_v32 = vpop.f32.mrf.mxu0  ;;  %v9231_v15 = vpop.f32.mrf.mxu1 }
 0x265   : > { %14558 = vst [vmem:[#allocation202_spill] sm:$0xff] %v9227_v48 }
 0x266   : > { %14559 = vst [vmem:[#allocation203_spill] sm:$0xff] %v9229_v32 }
 0x267   : > { %14560 = vst [vmem:[#allocation204_spill] sm:$0xff] %v9231_v15 }
 0x26b   : > { %v9233_v55 = vpop.f32.mrf.mxu2  ;;  %v9235_v14 = vpop.f32.mrf.mxu3 }
 0x26c   : > { %14561 = vst [vmem:[#allocation205_spill] sm:$0xff] %v9233_v55  ;;  %v9237_v12 = vpop.f32.mrf.mxu0  ;;  %v9239_v43 = vpop.f32.mrf.mxu1 }
 0x26d   : > { %14562 = vst [vmem:[#allocation206_spill] sm:$0xff] %v9235_v14 }
 0x26e   : > { %14563 = vst [vmem:[#allocation207_spill] sm:$0xff] %v9239_v43 }
 0x26f   : > { %6972 = vmatmul.msk.bf16.gmra.mxu0 %vm546_vm2, %v8440_v18  ;;  %7004 = vmatmul.msk.bf16.gmra.mxu1 %vm546_vm2, %v8440_v18 }
 0x270   : > { %7036 = vmatmul.msk.bf16.gmra.mxu2 %vm546_vm2, %v8440_v18  ;;  %7068 = vmatmul.msk.bf16.gmra.mxu3 %vm546_vm2, %v8440_v18 }
 0x273   : > { %v9249_v17 = vpop.f32.mrf.mxu2  ;;  %v9251_v48 = vpop.f32.mrf.mxu3 }
 0x274   : > { %14564 = vst [vmem:[#allocation208_spill] sm:$0xff] %v9249_v17  ;;  %v9253_v14 = vpop.f32.mrf.mxu0  ;;  %v9255_v16 = vpop.f32.mrf.mxu1 }
 0x275   : > { %14565 = vst [vmem:[#allocation209_spill] sm:$0xff] %v9251_v48 }
 0x276   : > { %14566 = vst [vmem:[#allocation210_spill] sm:$0xff] %v9255_v16 }
 0x27b   : > { %v9257_v55 = vpop.f32.mrf.mxu2  ;;  %v9259_v15 = vpop.f32.mrf.mxu3 }
 0x27c   : > { %14567 = vst [vmem:[#allocation211_spill] sm:$0xff] %v9257_v55  ;;  %v9261_v43 = vpop.f32.mrf.mxu0  ;;  %v9263_v36 = vpop.f32.mrf.mxu1 }
 0x27d   : > { %14568 = vst [vmem:[#allocation212_spill] sm:$0xff] %v9259_v15 }
 0x27e   : > { %14569 = vst [vmem:[#allocation213_spill] sm:$0xff] %v9263_v36 }
 0x27f   : > { %6973 = vmatmul.msk.bf16.gmra.mxu0 %vm546_vm2, %v8451_v19  ;;  %7005 = vmatmul.msk.bf16.gmra.mxu1 %vm546_vm2, %v8451_v19 }
 0x280   : > { %7037 = vmatmul.msk.bf16.gmra.mxu2 %vm546_vm2, %v8451_v19  ;;  %7069 = vmatmul.msk.bf16.gmra.mxu3 %vm546_vm2, %v8451_v19 }
 0x283   : > { %v9273_v18 = vpop.f32.mrf.mxu2  ;;  %v9275_v48 = vpop.f32.mrf.mxu3 }
 0x284   : > { %14570 = vst [vmem:[#allocation214_spill] sm:$0xff] %v9273_v18  ;;  %v9277_v15 = vpop.f32.mrf.mxu0  ;;  %v9279_v17 = vpop.f32.mrf.mxu1 }
 0x285   : > { %14571 = vst [vmem:[#allocation215_spill] sm:$0xff] %v9275_v48 }
 0x286   : > { %14572 = vst [vmem:[#allocation216_spill] sm:$0xff] %v9279_v17 }
 0x28b   : > { %v9281_v55 = vpop.f32.mrf.mxu2  ;;  %v9283_v16 = vpop.f32.mrf.mxu3 }
 0x28c   : > { %14573 = vst [vmem:[#allocation217_spill] sm:$0xff] %v9281_v55  ;;  %v9285_v36 = vpop.f32.mrf.mxu0  ;;  %v9287_v7 = vpop.f32.mrf.mxu1 }
 0x28d   : > { %14574 = vst [vmem:[#allocation218_spill] sm:$0xff] %v9283_v16 }
 0x28e   : > { %14575 = vst [vmem:[#allocation219_spill] sm:$0xff] %v9287_v7 }
 0x28f   : > { %6974 = vmatmul.msk.bf16.gmra.mxu0 %vm546_vm2, %v8462_v20  ;;  %7006 = vmatmul.msk.bf16.gmra.mxu1 %vm546_vm2, %v8462_v20 }
 0x290   : > { %7038 = vmatmul.msk.bf16.gmra.mxu2 %vm546_vm2, %v8462_v20  ;;  %7070 = vmatmul.msk.bf16.gmra.mxu3 %vm546_vm2, %v8462_v20 }
 0x293   : > { %v9297_v19 = vpop.f32.mrf.mxu2  ;;  %v9299_v48 = vpop.f32.mrf.mxu3 }
 0x294   : > { %14576 = vst [vmem:[#allocation220_spill] sm:$0xff] %v9297_v19  ;;  %v9301_v16 = vpop.f32.mrf.mxu0  ;;  %v9303_v18 = vpop.f32.mrf.mxu1 }
 0x295   : > { %14577 = vst [vmem:[#allocation221_spill] sm:$0xff] %v9299_v48 }
 0x296   : > { %14578 = vst [vmem:[#allocation222_spill] sm:$0xff] %v9303_v18 }
 0x29b   : > { %v9305_v55 = vpop.f32.mrf.mxu2  ;;  %v9307_v17 = vpop.f32.mrf.mxu3 }
 0x29c   : > { %14579 = vst [vmem:[#allocation223_spill] sm:$0xff] %v9305_v55  ;;  %v9309_v7 = vpop.f32.mrf.mxu0  ;;  %v9311_v8 = vpop.f32.mrf.mxu1 }
 0x29d   : > { %14580 = vst [vmem:[#allocation224_spill] sm:$0xff] %v9307_v17 }
 0x29e   : > { %14581 = vst [vmem:[#allocation225_spill] sm:$0xff] %v9311_v8 }
 0x29f   : > { %6975 = vmatmul.msk.bf16.gmra.mxu0 %vm546_vm2, %v8473_v21  ;;  %7007 = vmatmul.msk.bf16.gmra.mxu1 %vm546_vm2, %v8473_v21 }
 0x2a0   : > { %7039 = vmatmul.msk.bf16.gmra.mxu2 %vm546_vm2, %v8473_v21  ;;  %7071 = vmatmul.msk.bf16.gmra.mxu3 %vm546_vm2, %v8473_v21 }
 0x2a3   : > { %v9321_v20 = vpop.f32.mrf.mxu2  ;;  %v9323_v48 = vpop.f32.mrf.mxu3 }
 0x2a4   : > { %14582 = vst [vmem:[#allocation226_spill] sm:$0xff] %v9321_v20  ;;  %v9325_v17 = vpop.f32.mrf.mxu0  ;;  %v9327_v19 = vpop.f32.mrf.mxu1 }
 0x2a5   : > { %14583 = vst [vmem:[#allocation227_spill] sm:$0xff] %v9323_v48 }
 0x2a6   : > { %14584 = vst [vmem:[#allocation228_spill] sm:$0xff] %v9327_v19 }
 0x2ab   : > { %v9329_v55 = vpop.f32.mrf.mxu2  ;;  %v9331_v18 = vpop.f32.mrf.mxu3 }
 0x2ac   : > { %14585 = vst [vmem:[#allocation229_spill] sm:$0xff] %v9329_v55  ;;  %v9333_v8 = vpop.f32.mrf.mxu0  ;;  %v9335_v32 = vpop.f32.mrf.mxu1 }
 0x2ad   : > { %14586 = vst [vmem:[#allocation230_spill] sm:$0xff] %v9331_v18 }
 0x2ae   : > { %14587 = vst [vmem:[#allocation231_spill] sm:$0xff] %v9333_v8 }
 0x2af   : > { %14588 = vst [vmem:[#allocation232_spill] sm:$0xff] %v9335_v32  ;;  %6976 = vmatmul.msk.bf16.gmra.mxu0 %vm546_vm2, %v8484_v22  ;;  %7008 = vmatmul.msk.bf16.gmra.mxu1 %vm546_vm2, %v8484_v22 }
 0x2b0   : > { %7040 = vmatmul.msk.bf16.gmra.mxu2 %vm546_vm2, %v8484_v22  ;;  %7072 = vmatmul.msk.bf16.gmra.mxu3 %vm546_vm2, %v8484_v22 }
 0x2b3   : > { %v9345_v21 = vpop.f32.mrf.mxu2  ;;  %v9347_v48 = vpop.f32.mrf.mxu3 }
 0x2b4   : > { %14589 = vst [vmem:[#allocation233_spill] sm:$0xff] %v9345_v21  ;;  %v9349_v18 = vpop.f32.mrf.mxu0  ;;  %v9351_v8 = vpop.f32.mrf.mxu1 }
 0x2b5   : > { %14590 = vst [vmem:[#allocation234_spill] sm:$0xff] %v9347_v48 }
 0x2b6   : > { %14591 = vst [vmem:[#allocation235_spill] sm:$0xff] %v9349_v18 }
 0x2b7   : > { %14592 = vst [vmem:[#allocation236_spill] sm:$0xff] %v9351_v8 }
 0x2bb   : > { %v9353_v32 = vpop.f32.mrf.mxu2  ;;  %v9355_v20 = vpop.f32.mrf.mxu3 }
 0x2bc   : > { %14593 = vst [vmem:[#allocation237_spill] sm:$0xff] %v9353_v32  ;;  %v9357_v55 = vpop.f32.mrf.mxu0  ;;  %v9359_v19 = vpop.f32.mrf.mxu1 }
 0x2bd   : > { %14594 = vst [vmem:[#allocation238_spill] sm:$0xff] %v9355_v20 }
 0x2be   : > { %14595 = vst [vmem:[#allocation239_spill] sm:$0xff] %v9357_v55 }
 0x2bf   : > { %14596 = vst [vmem:[#allocation240_spill] sm:$0xff] %v9359_v19  ;;  %6977 = vmatmul.msk.bf16.gmra.mxu0 %vm546_vm2, %v8511_v31  ;;  %7009 = vmatmul.msk.bf16.gmra.mxu1 %vm546_vm2, %v8511_v31 }
 0x2c0   : > { %7041 = vmatmul.msk.bf16.gmra.mxu2 %vm546_vm2, %v8511_v31  ;;  %7073 = vmatmul.msk.bf16.gmra.mxu3 %vm546_vm2, %v8511_v31 }
 0x2c3   : > { %v9369_v22 = vpop.f32.mrf.mxu2  ;;  %v9371_v32 = vpop.f32.mrf.mxu3 }
 0x2c4   : > { %14597 = vst [vmem:[#allocation241_spill] sm:$0xff] %v9369_v22  ;;  %v9373_v20 = vpop.f32.mrf.mxu0  ;;  %v9375_v48 = vpop.f32.mrf.mxu1 }
 0x2c5   : > { %14598 = vst [vmem:[#allocation242_spill] sm:$0xff] %v9371_v32 }
 0x2c6   : > { %14599 = vst [vmem:[#allocation243_spill] sm:$0xff] %v9373_v20  ;;  %v540_v20 = vld.sshfl [vmem:[#allocation1 + $0x10] sm:$0xff pattern:$0x73625140] }
 0x2c7   : > { %14600 = vst [vmem:[#allocation244_spill] sm:$0xff] %v9375_v48 }
 0x2cb   : > { %v9377_v21 = vpop.f32.mrf.mxu2  ;;  %v9379_v8 = vpop.f32.mrf.mxu3 }
 0x2cc   : > { %14601 = vst [vmem:[#allocation245_spill] sm:$0xff] %v9377_v21  ;;  %v9381_v19 = vpop.f32.mrf.mxu0  ;;  %v9383_v18 = vpop.f32.mrf.mxu1 }
 0x2cd   : > { %14602 = vst [vmem:[#allocation246_spill] sm:$0xff] %v9379_v8 }
 0x2ce   : > { %14603 = vst [vmem:[#allocation247_spill] sm:$0xff] %v9381_v19 }
 0x2cf   : > { %14604 = vst [vmem:[#allocation248_spill] sm:$0xff] %v9383_v18  ;;  %6978 = vmatmul.msk.bf16.gmra.mxu0 %vm546_vm2, %v8538_v40  ;;  %7010 = vmatmul.msk.bf16.gmra.mxu1 %vm546_vm2, %v8538_v40 }
 0x2d0   : > { %7042 = vmatmul.msk.bf16.gmra.mxu2 %vm546_vm2, %v8538_v40  ;;  %7074 = vmatmul.msk.bf16.gmra.mxu3 %vm546_vm2, %v8538_v40  ;;  %v667_v40 = vand.u32 %v8386_v4, %v540_v20 }
 0x2d2   : > { %2376 = vmatpush.bf16.msra.mxu2 %v667_v40 }
 0x2d3   : > { %v9393_v31 = vpop.f32.mrf.mxu2  ;;  %v9395_v32 = vpop.f32.mrf.mxu3 }
 0x2d4   : > { %14605 = vst [vmem:[#allocation249_spill] sm:$0xff] %v9393_v31  ;;  %v9397_v8 = vpop.f32.mrf.mxu0  ;;  %v9399_v22 = vpop.f32.mrf.mxu1  ;;  %v538_v31 = vld.sshfl [vmem:[#allocation1] sm:$0xff pattern:$0x73625140] }
 0x2d5   : > { %14606 = vst [vmem:[#allocation250_spill] sm:$0xff] %v9395_v32  ;;  %v541_v32 = vld.sshfl [vmem:[#allocation1 + $0x18] sm:$0xff pattern:$0x73625140] }
 0x2d6   : > { %14607 = vst [vmem:[#allocation251_spill] sm:$0xff] %v9397_v8 }
 0x2d7   : > { %14608 = vst [vmem:[#allocation252_spill] sm:$0xff] %v9399_v22  ;;  %v663_v22 = vand.u32 %v8386_v4, %v538_v31 }
 0x2d9   : > { %2038 = vmatpush.bf16.msra.mxu0 %v663_v22 }
 0x2db   : > { %v9401_v21 = vpop.f32.mrf.mxu2  ;;  %v9403_v48 = vpop.f32.mrf.mxu3 }
 0x2dc   : > { %14609 = vst [vmem:[#allocation253_spill] sm:$0xff] %v9401_v21  ;;  %v9405_v18 = vpop.f32.mrf.mxu0  ;;  %v9407_v55 = vpop.f32.mrf.mxu1  ;;  %v539_v21 = vld.sshfl [vmem:[#allocation1 + $0x8] sm:$0xff pattern:$0x73625140] }
 0x2dd   : > { %14610 = vst [vmem:[#allocation254_spill] sm:$0xff] %v9403_v48  ;;  %v669_v48 = vand.u32 %v8386_v4, %v541_v32 }
 0x2de   : > { %14611 = vst [vmem:[#allocation255_spill] sm:$0xff] %v9405_v18 }
 0x2df   : > { %14612 = vst [vmem:[#allocation256_spill] sm:$0xff] %v9407_v55  ;;  %6979 = vmatmul.msk.bf16.gmra.mxu0 %vm546_vm2, %v8565_v49  ;;  %7011 = vmatmul.msk.bf16.gmra.mxu1 %vm546_vm2, %v8565_v49  ;;  %v665_v55 = vand.u32 %v8386_v4, %v539_v21 }
 0x2e0   : > { %7043 = vmatmul.msk.bf16.gmra.mxu2 %vm546_vm2, %v8565_v49  ;;  %7075 = vmatmul.msk.bf16.gmra.mxu3 %vm546_vm2, %v8565_v49 }
 0x2e1   : > { %2545 = vmatpush.bf16.msra.mxu3 %v669_v48  ;;  %2207 = vmatpush.bf16.msra.mxu1 %v665_v55 }
 0x2e3   : > { %v9421_v19 = vpop.f32.mrf.mxu2  ;;  %v9423_v20 = vpop.f32.mrf.mxu3 }
 0x2e4   : > { %14613 = vst [vmem:[#allocation257_spill] sm:$0xff] %v9421_v19  ;;  %v9425_v8 = vpop.f32.mrf.mxu0  ;;  %v9427_v18 = vpop.f32.mrf.mxu1 }
 0x2e5   : > { %14614 = vst [vmem:[#allocation258_spill] sm:$0xff] %v9423_v20 }
 0x2e6   : > { %14615 = vst [vmem:[#allocation259_spill] sm:$0xff] %v9425_v8 }
 0x2e7   : > { %14616 = vst [vmem:[#allocation260_spill] sm:$0xff] %v9427_v18 }
 0x2eb   : > { %v9429_v49 = vpop.f32.mrf.mxu2  ;;  %v9431_v32 = vpop.f32.mrf.mxu3 }
 0x2ec   : > { %14617 = vst [vmem:[#allocation261_spill] sm:$0xff] %v9429_v49  ;;  %v9433_v40 = vpop.f32.mrf.mxu0  ;;  %v9435_v31 = vpop.f32.mrf.mxu1 }
 0x2ed   : > { %14618 = vst [vmem:[#allocation262_spill] sm:$0xff] %v9431_v32 }
 0x2ee   : > { %14619 = vst [vmem:[#allocation263_spill] sm:$0xff] %v9435_v31 }
 0x2ef   : > { %6980 = vmatmul.msk.bf16.gmra.mxu0 %vm546_vm2, %v8602_v5  ;;  %7012 = vmatmul.msk.bf16.gmra.mxu1 %vm546_vm2, %v8602_v5 }
 0x2f0   : > { %7044 = vmatmul.msk.bf16.gmra.mxu2 %vm546_vm2, %v8602_v5  ;;  %7076 = vmatmul.msk.bf16.gmra.mxu3 %vm546_vm2, %v8602_v5 }
 0x2f3   : > { %v9445_v48 = vpop.f32.mrf.mxu2  ;;  %v9447_v55 = vpop.f32.mrf.mxu3 }
 0x2f4   : > { %14620 = vst [vmem:[#allocation264_spill] sm:$0xff] %v9445_v48  ;;  %v9449_v21 = vpop.f32.mrf.mxu0  ;;  %v9451_v22 = vpop.f32.mrf.mxu1 }
 0x2f5   : > { %14621 = vst [vmem:[#allocation265_spill] sm:$0xff] %v9447_v55 }
 0x2f6   : > { %14622 = vst [vmem:[#allocation266_spill] sm:$0xff] %v9451_v22 }
 0x2fb   : > { %v9453_v20 = vpop.f32.mrf.mxu2  ;;  %v9455_v32 = vpop.f32.mrf.mxu3 }
 0x2fc   : > { %14623 = vst [vmem:[#allocation267_spill] sm:$0xff] %v9453_v20  ;;  %v9457_v19 = vpop.f32.mrf.mxu0  ;;  %v9459_v49 = vpop.f32.mrf.mxu1 }
 0x2fd   : > { %14624 = vst [vmem:[#allocation268_spill] sm:$0xff] %v9455_v32 }
 0x2fe   : > { %14625 = vst [vmem:[#allocation269_spill] sm:$0xff] %v9459_v49 }
 0x2ff   : > { %6981 = vmatmul.msk.bf16.gmra.mxu0 %vm546_vm2, %v8629_v52  ;;  %7013 = vmatmul.msk.bf16.gmra.mxu1 %vm546_vm2, %v8629_v52 }
 0x300   : > { %7045 = vmatmul.msk.bf16.gmra.mxu2 %vm546_vm2, %v8629_v52  ;;  %7077 = vmatmul.msk.bf16.gmra.mxu3 %vm546_vm2, %v8629_v52 }
 0x303   : > { %v9469_v5 = vpop.f32.mrf.mxu2  ;;  %v9471_v55 = vpop.f32.mrf.mxu3 }
 0x304   : > { %14626 = vst [vmem:[#allocation270_spill] sm:$0xff] %v9469_v5  ;;  %v9473_v32 = vpop.f32.mrf.mxu0  ;;  %v9475_v48 = vpop.f32.mrf.mxu1 }
 0x305   : > { %14627 = vst [vmem:[#allocation271_spill] sm:$0xff] %v9471_v55 }
 0x306   : > { %14628 = vst [vmem:[#allocation272_spill] sm:$0xff] %v9475_v48 }
 0x30b   : > { %v9477_v20 = vpop.f32.mrf.mxu2  ;;  %v9479_v18 = vpop.f32.mrf.mxu3 }
 0x30c   : > { %14629 = vst [vmem:[#allocation273_spill] sm:$0xff] %v9477_v20  ;;  %v9481_v31 = vpop.f32.mrf.mxu0  ;;  %v9483_v22 = vpop.f32.mrf.mxu1 }
 0x30d   : > { %14630 = vst [vmem:[#allocation274_spill] sm:$0xff] %v9479_v18 }
 0x30e   : > { %14631 = vst [vmem:[#allocation275_spill] sm:$0xff] %v9483_v22 }
 0x30f   : > { %6982 = vmatmul.msk.bf16.gmra.mxu0 %vm546_vm2, %v8656_v1  ;;  %7014 = vmatmul.msk.bf16.gmra.mxu1 %vm546_vm2, %v8656_v1 }
 0x310   : > { %7046 = vmatmul.msk.bf16.gmra.mxu2 %vm546_vm2, %v8656_v1  ;;  %7078 = vmatmul.msk.bf16.gmra.mxu3 %vm546_vm2, %v8656_v1 }
 0x313   : > { %v9493_v52 = vpop.f32.mrf.mxu2  ;;  %v9495_v55 = vpop.f32.mrf.mxu3 }
 0x314   : > { %14632 = vst [vmem:[#allocation276_spill] sm:$0xff] %v9493_v52  ;;  %v9497_v18 = vpop.f32.mrf.mxu0  ;;  %v9499_v5 = vpop.f32.mrf.mxu1 }
 0x315   : > { %14633 = vst [vmem:[#allocation277_spill] sm:$0xff] %v9495_v55 }
 0x316   : > { %14634 = vst [vmem:[#allocation278_spill] sm:$0xff] %v9499_v5 }
 0x31b   : > { %v9501_v20 = vpop.f32.mrf.mxu2  ;;  %v9503_v49 = vpop.f32.mrf.mxu3 }
 0x31c   : > { %14635 = vst [vmem:[#allocation279_spill] sm:$0xff] %v9501_v20  ;;  %v9505_v48 = vpop.f32.mrf.mxu0  ;;  %v9507_v22 = vpop.f32.mrf.mxu1 }
 0x31d   : > { %14636 = vst [vmem:[#allocation280_spill] sm:$0xff] %v9503_v49 }
 0x31e   : > { %14637 = vst [vmem:[#allocation281_spill] sm:$0xff] %v9507_v22 }
 0x31f   : > { %6983 = vmatmul.msk.bf16.gmra.mxu0 %vm546_vm2, %v8683_v9  ;;  %7015 = vmatmul.msk.bf16.gmra.mxu1 %vm546_vm2, %v8683_v9 }
 0x320   : > { %7047 = vmatmul.msk.bf16.gmra.mxu2 %vm546_vm2, %v8683_v9  ;;  %7079 = vmatmul.msk.bf16.gmra.mxu3 %vm546_vm2, %v8683_v9 }
 0x323   : > { %v9517_v1 = vpop.f32.mrf.mxu2  ;;  %v9519_v55 = vpop.f32.mrf.mxu3 }
 0x324   : > { %14638 = vst [vmem:[#allocation282_spill] sm:$0xff] %v9517_v1  ;;  %v9521_v49 = vpop.f32.mrf.mxu0  ;;  %v9523_v52 = vpop.f32.mrf.mxu1 }
 0x325   : > { %14639 = vst [vmem:[#allocation283_spill] sm:$0xff] %v9519_v55 }
 0x326   : > { %14640 = vst [vmem:[#allocation284_spill] sm:$0xff] %v9523_v52 }
 0x32b   : > { %v9525_v20 = vpop.f32.mrf.mxu2  ;;  %v9527_v5 = vpop.f32.mrf.mxu3 }
 0x32c   : > { %14641 = vst [vmem:[#allocation285_spill] sm:$0xff] %v9525_v20  ;;  %v9529_v22 = vpop.f32.mrf.mxu0  ;;  %v9531_v8 = vpop.f32.mrf.mxu1 }
 0x32d   : > { %14642 = vst [vmem:[#allocation286_spill] sm:$0xff] %v9527_v5 }
 0x32e   : > { %14643 = vst [vmem:[#allocation287_spill] sm:$0xff] %v9529_v22 }
 0x32f   : > { %14644 = vst [vmem:[#allocation288_spill] sm:$0xff] %v9531_v8  ;;  %6984 = vmatmul.msk.bf16.gmra.mxu0 %vm546_vm2, %v8710_v38  ;;  %7016 = vmatmul.msk.bf16.gmra.mxu1 %vm546_vm2, %v8710_v38 }
 0x330   : > { %7048 = vmatmul.msk.bf16.gmra.mxu2 %vm546_vm2, %v8710_v38  ;;  %7080 = vmatmul.msk.bf16.gmra.mxu3 %vm546_vm2, %v8710_v38 }
 0x333   : > { %v9541_v9 = vpop.f32.mrf.mxu2  ;;  %v9543_v55 = vpop.f32.mrf.mxu3 }
 0x334   : > { %14645 = vst [vmem:[#allocation289_spill] sm:$0xff] %v9541_v9  ;;  %v9545_v5 = vpop.f32.mrf.mxu0  ;;  %v9547_v1 = vpop.f32.mrf.mxu1 }
 0x335   : > { %14646 = vst [vmem:[#allocation290_spill] sm:$0xff] %v9543_v55 }
 0x336   : > { %14647 = vst [vmem:[#allocation291_spill] sm:$0xff] %v9545_v5 }
 0x337   : > { %14648 = vst [vmem:[#allocation292_spill] sm:$0xff] %v9547_v1 }
 0x33b   : > { %v9549_v20 = vpop.f32.mrf.mxu2  ;;  %v9551_v8 = vpop.f32.mrf.mxu3 }
 0x33c   : > { %14649 = vst [vmem:[#allocation293_spill] sm:$0xff] %v9549_v20  ;;  %v9553_v52 = vpop.f32.mrf.mxu0  ;;  %v9555_v22 = vpop.f32.mrf.mxu1 }
 0x33d   : > { %14650 = vst [vmem:[#allocation294_spill] sm:$0xff] %v9551_v8 }
 0x33e   : > { %14651 = vst [vmem:[#allocation295_spill] sm:$0xff] %v9553_v52 }
 0x33f   : > { %14652 = vst [vmem:[#allocation296_spill] sm:$0xff] %v9555_v22  ;;  %6985 = vmatmul.msk.bf16.gmra.mxu0 %vm546_vm2, %v8737_v59  ;;  %7017 = vmatmul.msk.bf16.gmra.mxu1 %vm546_vm2, %v8737_v59 }
 0x340   : > { %7049 = vmatmul.msk.bf16.gmra.mxu2 %vm546_vm2, %v8737_v59  ;;  %7081 = vmatmul.msk.bf16.gmra.mxu3 %vm546_vm2, %v8737_v59 }
 0x343   : > { %v9565_v38 = vpop.f32.mrf.mxu2  ;;  %v9567_v55 = vpop.f32.mrf.mxu3 }
 0x344   : > { %14653 = vst [vmem:[#allocation297_spill] sm:$0xff] %v9565_v38  ;;  %v9569_v8 = vpop.f32.mrf.mxu0  ;;  %v9571_v9 = vpop.f32.mrf.mxu1 }
 0x345   : > { %14654 = vst [vmem:[#allocation298_spill] sm:$0xff] %v9567_v55 }
 0x346   : > { %14655 = vst [vmem:[#allocation299_spill] sm:$0xff] %v9569_v8 }
 0x347   : > { %14656 = vst [vmem:[#allocation300_spill] sm:$0xff] %v9571_v9 }
 0x34b   : > { %v9573_v20 = vpop.f32.mrf.mxu2  ;;  %v9575_v1 = vpop.f32.mrf.mxu3 }
 0x34c   : > { %14657 = vst [vmem:[#allocation301_spill] sm:$0xff] %v9573_v20  ;;  %v9577_v22 = vpop.f32.mrf.mxu0  ;;  %v9579_v5 = vpop.f32.mrf.mxu1 }
 0x34d   : > { %14658 = vst [vmem:[#allocation302_spill] sm:$0xff] %v9575_v1 }
 0x34e   : > { %14659 = vst [vmem:[#allocation303_spill] sm:$0xff] %v9577_v22 }
 0x34f   : > { %14660 = vst [vmem:[#allocation304_spill] sm:$0xff] %v9579_v5  ;;  %6986 = vmatmul.msk.bf16.gmra.mxu0 %vm546_vm2, %v8764_v29  ;;  %7018 = vmatmul.msk.bf16.gmra.mxu1 %vm546_vm2, %v8764_v29 }
 0x350   : > { %7050 = vmatmul.msk.bf16.gmra.mxu2 %vm546_vm2, %v8764_v29  ;;  %7082 = vmatmul.msk.bf16.gmra.mxu3 %vm546_vm2, %v8764_v29 }
 0x353   : > { %v9589_v59 = vpop.f32.mrf.mxu2  ;;  %v9591_v55 = vpop.f32.mrf.mxu3 }
 0x354   : > { %14661 = vst [vmem:[#allocation305_spill] sm:$0xff] %v9589_v59  ;;  %v9593_v1 = vpop.f32.mrf.mxu0  ;;  %v9595_v38 = vpop.f32.mrf.mxu1 }
 0x355   : > { %14662 = vst [vmem:[#allocation306_spill] sm:$0xff] %v9591_v55 }
 0x356   : > { %14663 = vst [vmem:[#allocation307_spill] sm:$0xff] %v9593_v1 }
 0x357   : > { %14664 = vst [vmem:[#allocation308_spill] sm:$0xff] %v9595_v38 }
 0x35b   : > { %v9597_v20 = vpop.f32.mrf.mxu2  ;;  %v9599_v9 = vpop.f32.mrf.mxu3 }
 0x35c   : > { %14665 = vst [vmem:[#allocation309_spill] sm:$0xff] %v9597_v20  ;;  %v9601_v5 = vpop.f32.mrf.mxu0  ;;  %v9603_v52 = vpop.f32.mrf.mxu1 }
 0x35d   : > { %14666 = vst [vmem:[#allocation310_spill] sm:$0xff] %v9599_v9 }
 0x35e   : > { %14667 = vst [vmem:[#allocation311_spill] sm:$0xff] %v9601_v5 }
 0x35f   : > { %14668 = vst [vmem:[#allocation312_spill] sm:$0xff] %v9603_v52  ;;  %6987 = vmatmul.msk.bf16.gmra.mxu0 %vm546_vm2, %v8791_v35  ;;  %7019 = vmatmul.msk.bf16.gmra.mxu1 %vm546_vm2, %v8791_v35 }
 0x360   : > { %7051 = vmatmul.msk.bf16.gmra.mxu2 %vm546_vm2, %v8791_v35  ;;  %7083 = vmatmul.msk.bf16.gmra.mxu3 %vm546_vm2, %v8791_v35 }
 0x363   : > { %v9613_v29 = vpop.f32.mrf.mxu2  ;;  %v9615_v55 = vpop.f32.mrf.mxu3 }
 0x364   : > { %14669 = vst [vmem:[#allocation313_spill] sm:$0xff] %v9613_v29  ;;  %v9617_v9 = vpop.f32.mrf.mxu0  ;;  %v9619_v59 = vpop.f32.mrf.mxu1 }
 0x365   : > { %14670 = vst [vmem:[#allocation314_spill] sm:$0xff] %v9615_v55 }
 0x366   : > { %14671 = vst [vmem:[#allocation315_spill] sm:$0xff] %v9617_v9 }
 0x367   : > { %14672 = vst [vmem:[#allocation316_spill] sm:$0xff] %v9619_v59 }
 0x36b   : > { %v9621_v20 = vpop.f32.mrf.mxu2  ;;  %v9623_v38 = vpop.f32.mrf.mxu3 }
 0x36c   : > { %14673 = vst [vmem:[#allocation317_spill] sm:$0xff] %v9621_v20  ;;  %v9625_v52 = vpop.f32.mrf.mxu0  ;;  %v9627_v8 = vpop.f32.mrf.mxu1 }
 0x36d   : > { %14674 = vst [vmem:[#allocation318_spill] sm:$0xff] %v9623_v38 }
 0x36e   : > { %14675 = vst [vmem:[#allocation319_spill] sm:$0xff] %v9625_v52 }
 0x36f   : > { %14676 = vst [vmem:[#allocation320_spill] sm:$0xff] %v9627_v8  ;;  %6988 = vmatmul.msk.bf16.gmra.mxu0 %vm546_vm2, %v8818_v42  ;;  %7020 = vmatmul.msk.bf16.gmra.mxu1 %vm546_vm2, %v8818_v42 }
 0x370   : > { %7052 = vmatmul.msk.bf16.gmra.mxu2 %vm546_vm2, %v8818_v42  ;;  %7084 = vmatmul.msk.bf16.gmra.mxu3 %vm546_vm2, %v8818_v42 }
 0x373   : > { %v9637_v35 = vpop.f32.mrf.mxu2  ;;  %v9639_v55 = vpop.f32.mrf.mxu3 }
 0x374   : > { %14677 = vst [vmem:[#allocation321_spill] sm:$0xff] %v9637_v35  ;;  %v9641_v38 = vpop.f32.mrf.mxu0  ;;  %v9643_v29 = vpop.f32.mrf.mxu1 }
 0x375   : > { %14678 = vst [vmem:[#allocation322_spill] sm:$0xff] %v9639_v55 }
 0x376   : > { %14679 = vst [vmem:[#allocation323_spill] sm:$0xff] %v9643_v29 }
 0x37b   : > { %v9645_v20 = vpop.f32.mrf.mxu2  ;;  %v9647_v59 = vpop.f32.mrf.mxu3 }
 0x37c   : > { %14680 = vst [vmem:[#allocation324_spill] sm:$0xff] %v9645_v20  ;;  %v9649_v8 = vpop.f32.mrf.mxu0  ;;  %v9651_v22 = vpop.f32.mrf.mxu1 }
 0x37d   : > { %14681 = vst [vmem:[#allocation325_spill] sm:$0xff] %v9647_v59 }
 0x37e   : > { %14682 = vst [vmem:[#allocation326_spill] sm:$0xff] %v9651_v22 }
 0x37f   : > { %6989 = vmatmul.msk.bf16.gmra.mxu0 %vm546_vm2, %v8845_v2  ;;  %7021 = vmatmul.msk.bf16.gmra.mxu1 %vm546_vm2, %v8845_v2 }
 0x380   : > { %7053 = vmatmul.msk.bf16.gmra.mxu2 %vm546_vm2, %v8845_v2  ;;  %7085 = vmatmul.msk.bf16.gmra.mxu3 %vm546_vm2, %v8845_v2 }
 0x383   : > { %v9661_v42 = vpop.f32.mrf.mxu2  ;;  %v9663_v55 = vpop.f32.mrf.mxu3 }
 0x384   : > { %14683 = vst [vmem:[#allocation327_spill] sm:$0xff] %v9661_v42  ;;  %v9665_v59 = vpop.f32.mrf.mxu0  ;;  %v9667_v35 = vpop.f32.mrf.mxu1 }
 0x385   : > { %14684 = vst [vmem:[#allocation328_spill] sm:$0xff] %v9663_v55 }
 0x386   : > { %14685 = vst [vmem:[#allocation329_spill] sm:$0xff] %v9667_v35 }
 0x38b   : > { %v9669_v20 = vpop.f32.mrf.mxu2  ;;  %v9671_v29 = vpop.f32.mrf.mxu3 }
 0x38c   : > { %14686 = vst [vmem:[#allocation330_spill] sm:$0xff] %v9669_v20  ;;  %v9673_v22 = vpop.f32.mrf.mxu0  ;;  %v9675_v1 = vpop.f32.mrf.mxu1 }
 0x38d   : > { %14687 = vst [vmem:[#allocation331_spill] sm:$0xff] %v9671_v29 }
 0x38e   : > { %14688 = vst [vmem:[#allocation332_spill] sm:$0xff] %v9675_v1 }
 0x38f   : > { %6990 = vmatmul.msk.bf16.gmra.mxu0 %vm546_vm2, %v8872_v11  ;;  %7022 = vmatmul.msk.bf16.gmra.mxu1 %vm546_vm2, %v8872_v11 }
 0x390   : > { %7054 = vmatmul.msk.bf16.gmra.mxu2 %vm546_vm2, %v8872_v11  ;;  %7086 = vmatmul.msk.bf16.gmra.mxu3 %vm546_vm2, %v8872_v11 }
 0x393   : > { %v9685_v2 = vpop.f32.mrf.mxu2  ;;  %v9687_v55 = vpop.f32.mrf.mxu3 }
 0x394   : > { %14689 = vst [vmem:[#allocation333_spill] sm:$0xff] %v9685_v2  ;;  %v9689_v29 = vpop.f32.mrf.mxu0  ;;  %v9691_v42 = vpop.f32.mrf.mxu1 }
 0x395   : > { %14690 = vst [vmem:[#allocation334_spill] sm:$0xff] %v9687_v55 }
 0x396   : > { %14691 = vst [vmem:[#allocation335_spill] sm:$0xff] %v9691_v42 }
 0x39b   : > { %v9693_v20 = vpop.f32.mrf.mxu2  ;;  %v9695_v35 = vpop.f32.mrf.mxu3 }
 0x39c   : > { %14692 = vst [vmem:[#allocation336_spill] sm:$0xff] %v9693_v20  ;;  %v9697_v1 = vpop.f32.mrf.mxu0  ;;  %v9699_v5 = vpop.f32.mrf.mxu1 }
 0x39d   : > { %14693 = vst [vmem:[#allocation337_spill] sm:$0xff] %v9695_v35 }
 0x39e   : > { %14694 = vst [vmem:[#allocation338_spill] sm:$0xff] %v9699_v5 }
 0x39f   : > { %6991 = vmatmul.msk.bf16.gmra.mxu0 %vm546_vm2, %v8899_v58  ;;  %7023 = vmatmul.msk.bf16.gmra.mxu1 %vm546_vm2, %v8899_v58 }
 0x3a0   : > { %7055 = vmatmul.msk.bf16.gmra.mxu2 %vm546_vm2, %v8899_v58  ;;  %7087 = vmatmul.msk.bf16.gmra.mxu3 %vm546_vm2, %v8899_v58 }
 0x3a3   : > { %v9709_v11 = vpop.f32.mrf.mxu2  ;;  %v9711_v55 = vpop.f32.mrf.mxu3 }
 0x3a4   : > { %14695 = vst [vmem:[#allocation339_spill] sm:$0xff] %v9709_v11  ;;  %v9713_v35 = vpop.f32.mrf.mxu0  ;;  %v9715_v2 = vpop.f32.mrf.mxu1 }
 0x3a5   : > { %14696 = vst [vmem:[#allocation340_spill] sm:$0xff] %v9711_v55 }
 0x3a6   : > { %14697 = vst [vmem:[#allocation341_spill] sm:$0xff] %v9715_v2 }
 0x3ab   : > { %v9717_v20 = vpop.f32.mrf.mxu2  ;;  %v9719_v42 = vpop.f32.mrf.mxu3 }
 0x3ac   : > { %14698 = vst [vmem:[#allocation342_spill] sm:$0xff] %v9717_v20  ;;  %v9721_v5 = vpop.f32.mrf.mxu0  ;;  %v9723_v9 = vpop.f32.mrf.mxu1 }
 0x3ad   : > { %14699 = vst [vmem:[#allocation343_spill] sm:$0xff] %v9719_v42 }
 0x3ae   : > { %14700 = vst [vmem:[#allocation344_spill] sm:$0xff] %v9721_v5 }
 0x3af   : > { %14701 = vst [vmem:[#allocation345_spill] sm:$0xff] %v9723_v9  ;;  %6992 = vmatmul.msk.bf16.gmra.mxu0 %vm546_vm2, %v8926_v60  ;;  %7024 = vmatmul.msk.bf16.gmra.mxu1 %vm546_vm2, %v8926_v60 }
 0x3b0   : > { %7056 = vmatmul.msk.bf16.gmra.mxu2 %vm546_vm2, %v8926_v60  ;;  %7088 = vmatmul.msk.bf16.gmra.mxu3 %vm546_vm2, %v8926_v60 }
 0x3b3   : > { %v9733_v58 = vpop.f32.mrf.mxu2  ;;  %v9735_v55 = vpop.f32.mrf.mxu3 }
 0x3b4   : > { %14702 = vst [vmem:[#allocation346_spill] sm:$0xff] %v9733_v58  ;;  %v9737_v42 = vpop.f32.mrf.mxu0  ;;  %v9739_v11 = vpop.f32.mrf.mxu1 }
 0x3b5   : > { %14703 = vst [vmem:[#allocation347_spill] sm:$0xff] %v9735_v55 }
 0x3b6   : > { %14704 = vst [vmem:[#allocation348_spill] sm:$0xff] %v9737_v42 }
 0x3b7   : > { %14705 = vst [vmem:[#allocation349_spill] sm:$0xff] %v9739_v11 }
 0x3bb   : > { %v9741_v20 = vpop.f32.mrf.mxu2  ;;  %v9743_v9 = vpop.f32.mrf.mxu3 }
 0x3bc   : > { %14706 = vst [vmem:[#allocation350_spill] sm:$0xff] %v9741_v20  ;;  %v9745_v2 = vpop.f32.mrf.mxu0  ;;  %v9747_v5 = vpop.f32.mrf.mxu1 }
 0x3bd   : > { %14707 = vst [vmem:[#allocation351_spill] sm:$0xff] %v9743_v9 }
 0x3be   : > { %14708 = vst [vmem:[#allocation352_spill] sm:$0xff] %v9745_v2 }
 0x3bf   : > { %14709 = vst [vmem:[#allocation353_spill] sm:$0xff] %v9747_v5  ;;  %6993 = vmatmul.msk.bf16.gmra.mxu0 %vm546_vm2, %v8953_v25  ;;  %7025 = vmatmul.msk.bf16.gmra.mxu1 %vm546_vm2, %v8953_v25 }
 0x3c0   : > { %7057 = vmatmul.msk.bf16.gmra.mxu2 %vm546_vm2, %v8953_v25  ;;  %7089 = vmatmul.msk.bf16.gmra.mxu3 %vm546_vm2, %v8953_v25 }
 0x3c3   : > { %v9757_v60 = vpop.f32.mrf.mxu2  ;;  %v9759_v55 = vpop.f32.mrf.mxu3 }
 0x3c4   : > { %14710 = vst [vmem:[#allocation354_spill] sm:$0xff] %v9757_v60  ;;  %v9761_v9 = vpop.f32.mrf.mxu0  ;;  %v9763_v58 = vpop.f32.mrf.mxu1 }
 0x3c5   : > { %14711 = vst [vmem:[#allocation355_spill] sm:$0xff] %v9759_v55 }
 0x3c6   : > { %14712 = vst [vmem:[#allocation356_spill] sm:$0xff] %v9761_v9 }
 0x3c7   : > { %14713 = vst [vmem:[#allocation357_spill] sm:$0xff] %v9763_v58 }
 0x3cb   : > { %v9765_v20 = vpop.f32.mrf.mxu2  ;;  %v9767_v11 = vpop.f32.mrf.mxu3 }
 0x3cc   : > { %14714 = vst [vmem:[#allocation358_spill] sm:$0xff] %v9765_v20  ;;  %v9769_v5 = vpop.f32.mrf.mxu0  ;;  %v9771_v42 = vpop.f32.mrf.mxu1 }
 0x3cd   : > { %14715 = vst [vmem:[#allocation359_spill] sm:$0xff] %v9767_v11 }
 0x3ce   : > { %14716 = vst [vmem:[#allocation360_spill] sm:$0xff] %v9769_v5 }
 0x3cf   : > { %14717 = vst [vmem:[#allocation361_spill] sm:$0xff] %v9771_v42  ;;  %6994 = vmatmul.msk.bf16.gmra.mxu0 %vm546_vm2, %v8980_v37  ;;  %7026 = vmatmul.msk.bf16.gmra.mxu1 %vm546_vm2, %v8980_v37 }
 0x3d0   : > { %7058 = vmatmul.msk.bf16.gmra.mxu2 %vm546_vm2, %v8980_v37  ;;  %7090 = vmatmul.msk.bf16.gmra.mxu3 %vm546_vm2, %v8980_v37 }
 0x3d3   : > { %v9781_v25 = vpop.f32.mrf.mxu2  ;;  %v9783_v55 = vpop.f32.mrf.mxu3 }
 0x3d4   : > { %14718 = vst [vmem:[#allocation362_spill] sm:$0xff] %v9781_v25  ;;  %v9785_v11 = vpop.f32.mrf.mxu0  ;;  %v9787_v60 = vpop.f32.mrf.mxu1 }
 0x3d5   : > { %14719 = vst [vmem:[#allocation363_spill] sm:$0xff] %v9783_v55 }
 0x3d6   : > { %14720 = vst [vmem:[#allocation364_spill] sm:$0xff] %v9785_v11 }
 0x3d7   : > { %14721 = vst [vmem:[#allocation365_spill] sm:$0xff] %v9787_v60 }
 0x3db   : > { %v9789_v20 = vpop.f32.mrf.mxu2  ;;  %v9791_v58 = vpop.f32.mrf.mxu3 }
 0x3dc   : > { %14722 = vst [vmem:[#allocation366_spill] sm:$0xff] %v9789_v20  ;;  %v9793_v42 = vpop.f32.mrf.mxu0  ;;  %v9795_v2 = vpop.f32.mrf.mxu1 }
 0x3dd   : > { %14723 = vst [vmem:[#allocation367_spill] sm:$0xff] %v9791_v58 }
 0x3de   : > { %14724 = vst [vmem:[#allocation368_spill] sm:$0xff] %v9793_v42  ;;  %v542_v42 = vld.sshfl [vmem:[#allocation1 + $0x20] sm:$0xff pattern:$0x73625140] }
 0x3df   : > { %14725 = vst [vmem:[#allocation369_spill] sm:$0xff] %v9795_v2  ;;  %6995 = vmatmul.msk.bf16.gmra.mxu0 %vm546_vm2, %v9007_v63  ;;  %7027 = vmatmul.msk.bf16.gmra.mxu1 %vm546_vm2, %v9007_v63 }
 0x3e0   : > { %7059 = vmatmul.msk.bf16.gmra.mxu2 %vm546_vm2, %v9007_v63  ;;  %7091 = vmatmul.msk.bf16.gmra.mxu3 %vm546_vm2, %v9007_v63 }
 0x3e3   : > { %v9805_v37 = vpop.f32.mrf.mxu2  ;;  %v9807_v55 = vpop.f32.mrf.mxu3 }
 0x3e4   : > { %14726 = vst [vmem:[#allocation370_spill] sm:$0xff] %v9805_v37  ;;  %v9809_v58 = vpop.f32.mrf.mxu0  ;;  %v9811_v25 = vpop.f32.mrf.mxu1 }
 0x3e5   : > { %14727 = vst [vmem:[#allocation371_spill] sm:$0xff] %v9807_v55 }
 0x3e6   : > { %14728 = vst [vmem:[#allocation372_spill] sm:$0xff] %v9809_v58  ;;  %v543_v58 = vld.sshfl [vmem:[#allocation1 + $0x28] sm:$0xff pattern:$0x73625140] }
 0x3e7   : > { %14729 = vst [vmem:[#allocation373_spill] sm:$0xff] %v9811_v25 }
 0x3eb   : > { %v9813_v20 = vpop.f32.mrf.mxu2  ;;  %v9815_v60 = vpop.f32.mrf.mxu3 }
 0x3ec   : > { %14730 = vst [vmem:[#allocation374_spill] sm:$0xff] %v9813_v20  ;;  %v9817_v2 = vpop.f32.mrf.mxu0  ;;  %v9819_v9 = vpop.f32.mrf.mxu1 }
 0x3ed   : > { %14731 = vst [vmem:[#allocation375_spill] sm:$0xff] %v9815_v60 }
 0x3ee   : > { %14732 = vst [vmem:[#allocation376_spill] sm:$0xff] %v9817_v2  ;;  %v544_v2 = vld.sshfl [vmem:[#allocation1 + $0x30] sm:$0xff pattern:$0x73625140] }
 0x3ef   : > { %14733 = vst [vmem:[#allocation377_spill] sm:$0xff] %v9819_v9  ;;  %6996 = vmatmul.msk.bf16.gmra.mxu0 %vm546_vm2, %v9034_v39  ;;  %7028 = vmatmul.msk.bf16.gmra.mxu1 %vm546_vm2, %v9034_v39  ;;  %v675_v52 = vand.u32 %v8386_v4, %v544_v2 }
 0x3f0   : > { %7060 = vmatmul.msk.bf16.gmra.mxu2 %vm546_vm2, %v9034_v39  ;;  %7092 = vmatmul.msk.bf16.gmra.mxu3 %vm546_vm2, %v9034_v39 }
 0x3f1   : > { %3052 = vmatpush.bf16.msrb.mxu2 %v675_v52 }
 0x3f3   : > { %v9829_v63 = vpop.f32.mrf.mxu2  ;;  %v9831_v55 = vpop.f32.mrf.mxu3 }
 0x3f4   : > { %14734 = vst [vmem:[#allocation378_spill] sm:$0xff] %v9829_v63  ;;  %v9833_v60 = vpop.f32.mrf.mxu0  ;;  %v9835_v37 = vpop.f32.mrf.mxu1 }
 0x3f5   : > { %14735 = vst [vmem:[#allocation379_spill] sm:$0xff] %v9831_v55 }
 0x3f6   : > { %14736 = vst [vmem:[#allocation380_spill] sm:$0xff] %v9835_v37 }
 0x3fb   : > { %v9837_v20 = vpop.f32.mrf.mxu2  ;;  %v9839_v25 = vpop.f32.mrf.mxu3 }
 0x3fc   : > { %14737 = vst [vmem:[#allocation381_spill] sm:$0xff] %v9837_v20  ;;  %v9841_v9 = vpop.f32.mrf.mxu0  ;;  %v9843_v5 = vpop.f32.mrf.mxu1 }
 0x3fd   : > { %14738 = vst [vmem:[#allocation382_spill] sm:$0xff] %v9839_v25 }
 0x3fe   : > { %14739 = vst [vmem:[#allocation383_spill] sm:$0xff] %v9843_v5 }
 0x3ff   : > { %6997 = vmatmul.msk.bf16.gmra.mxu0 %vm546_vm2, %v9061_v47  ;;  %7029 = vmatmul.msk.bf16.gmra.mxu1 %vm546_vm2, %v9061_v47 }
 0x400   : > { %7061 = vmatmul.msk.bf16.gmra.mxu2 %vm546_vm2, %v9061_v47  ;;  %7093 = vmatmul.msk.bf16.gmra.mxu3 %vm546_vm2, %v9061_v47  ;;  %v671_v47 = vand.u32 %v8386_v4, %v542_v42 }
 0x402   : > { %2714 = vmatpush.bf16.msrb.mxu0 %v671_v47  ;;  %v325_v47 = vld [vmem:[%s14350_s2] sm:$0xff] }
 0x403   : > { %v9853_v39 = vpop.f32.mrf.mxu2  ;;  %v9855_v55 = vpop.f32.mrf.mxu3 }
 0x404   : > { %14740 = vst [vmem:[#allocation384_spill] sm:$0xff] %v9853_v39  ;;  %v9857_v25 = vpop.f32.mrf.mxu0  ;;  %v9859_v63 = vpop.f32.mrf.mxu1  ;;  %v673_v39 = vand.u32 %v8386_v4, %v543_v58 }
 0x405   : > { %14741 = vst [vmem:[#allocation385_spill] sm:$0xff] %v9855_v55  ;;  %v545_v55 = vld.sshfl [vmem:[#allocation1 + $0x38] sm:$0xff pattern:$0x73625140] }
 0x406   : > { %14742 = vst [vmem:[#allocation386_spill] sm:$0xff] %v9859_v63  ;;  %v677_v63 = vand.u32 %v8386_v4, %v545_v55  ;;  %2883 = vmatpush.bf16.msrb.mxu1 %v673_v39 }
 0x408   : > { %3221 = vmatpush.bf16.msrb.mxu3 %v677_v63 }
 0x40b   : > { %v9861_v20 = vpop.f32.mrf.mxu2  ;;  %v9863_v37 = vpop.f32.mrf.mxu3 }
 0x40c   : > { %14743 = vst [vmem:[#allocation387_spill] sm:$0xff] %v9861_v20  ;;  %v9865_v5 = vpop.f32.mrf.mxu0  ;;  %v9867_v11 = vpop.f32.mrf.mxu1 }
 0x40d   : > { %14744 = vst [vmem:[#allocation388_spill] sm:$0xff] %v9863_v37 }
 0x40e   : > { %14745 = vst [vmem:[#allocation389_spill] sm:$0xff] %v9867_v11 }
 0x40f   : > { %6998 = vmatmul.msk.bf16.gmra.mxu0 %vm546_vm2, %v9088_v34  ;;  %7030 = vmatmul.msk.bf16.gmra.mxu1 %vm546_vm2, %v9088_v34 }
 0x410   : > { %7062 = vmatmul.msk.bf16.gmra.mxu2 %vm546_vm2, %v9088_v34  ;;  %7094 = vmatmul.msk.bf16.gmra.mxu3 %vm546_vm2, %v9088_v34 }
 0x413   : > { %v9881_v42 = vpop.f32.mrf.mxu2  ;;  %v9883_v2 = vpop.f32.mrf.mxu3 }
 0x414   : > { %14746 = vst [vmem:[#allocation390_spill] sm:$0xff] %v9881_v42  ;;  %v9885_v4 = vpop.f32.mrf.mxu0  ;;  %v9887_v55 = vpop.f32.mrf.mxu1 }
 0x415   : > { %14747 = vst [vmem:[#allocation391_spill] sm:$0xff] %v9883_v2  ;;  %v9916_v2 = vperm.slane %v325_v47, 0 }
 0x416   : > { %14748 = vst [vmem:[#allocation392_spill] sm:$0xff] %v9887_v55 }
 0x41b   : > { %v9889_v58 = vpop.f32.mrf.mxu2  ;;  %v9891_v37 = vpop.f32.mrf.mxu3 }
 0x41c   : > { %14749 = vst [vmem:[#allocation393_spill] sm:$0xff] %v9889_v58  ;;  %v9893_v20 = vpop.f32.mrf.mxu0  ;;  %v9895_v11 = vpop.f32.mrf.mxu1  ;;  %v806_v58 = vadd.f32 %v9133_v27, %v9916_v2  ;;  %v721_v27 = vadd.f32 %v8674_v44, %v9916_v2 }
 0x41d   : > { %14750 = vst [vmem:[#allocation394_spill] sm:$0xff] %v9891_v37  ;;  %v726_v37 = vadd.f32 %v8701_v3, %v9916_v2  ;;  %v724_v3 = vadd.f32 %v8685_v13, %v9916_v2 }
 0x41e   : > { %14751 = vst [vmem:[#allocation395_spill] sm:$0xff] %v9895_v11  ;;  %v761_v11 = vadd.f32 %v8890_v24, %v9916_v2  ;;  %v719_v24 = vadd.f32 %v8658_v26, %v9916_v2  ;;  %v716_v26 = vadd.f32 %v8647_v61, %v9916_v2 }
 0x41f   : > { %6999 = vmatmul.msk.bf16.gmra.mxu0 %vm546_vm2, %v9115_v33  ;;  %7031 = vmatmul.msk.bf16.gmra.mxu1 %vm546_vm2, %v9115_v33  ;;  %v3607_v44 = vmax.f32 %v724_v3, 0.0 }
 0x420   : > { %7063 = vmatmul.msk.bf16.gmra.mxu2 %vm546_vm2, %v9115_v33  ;;  %7095 = vmatmul.msk.bf16.gmra.mxu3 %vm546_vm2, %v9115_v33  ;;  %v766_v33 = vadd.f32 %v8917_v51, %v9916_v2  ;;  %v764_v51 = vadd.f32 %v8901_v30, %v9916_v2  ;;  %v801_v30 = vadd.f32 %v9106_v62, %v9916_v2  ;;  %v3847_v3 = vmax.f32 %v761_v11, 0.0 }
 0x421   : > { %v799_v62 = vadd.f32 %v9090_v45, %v9916_v2  ;;  %v714_v11 = vadd.f32 %v8631_v57, %v9916_v2  ;;  %v711_v57 = vadd.f32 %v8620_v10, %v9916_v2  ;;  %v709_v10 = vadd.f32 %v8604_v6, %v9916_v2 }
 0x423   : > { %v9905_v34 = vpop.f32.mrf.mxu2  ;;  %v9907_v52 = vpop.f32.mrf.mxu3 }
 0x424   : > { %14752 = vst [vmem:[#allocation396_spill] sm:$0xff] %v9905_v34  ;;  %v9909_v63 = vpop.f32.mrf.mxu0  ;;  %v9911_v39 = vpop.f32.mrf.mxu1  ;;  %v846_v34 = vadd.f32 %v9325_v17, %v9916_v2  ;;  %v3623_v17 = vmax.f32 %v726_v37, 0.0  ;;  %v759_v37 = vadd.f32 %v8874_v46, %v9916_v2  ;;  %v756_v46 = vadd.f32 %v8863_v28, %v9916_v2 }
 0x425   : > { %14753 = vst [vmem:[#allocation397_spill] sm:$0xff] %v9907_v52 }
 0x426   : > { %14754 = vst [vmem:[#allocation398_spill] sm:$0xff] %v9911_v39  ;;  %v8100_v39 = vld [vmem:[%s8374_s26] sm:$0xff]  ;;  %v4391_v13 = vmax.f32 %v846_v34, 0.0 }
 0x42b   : > { %v9922_v42 = vpop.f32.mrf.mxu2  ;;  %v9924_v52 = vpop.f32.mrf.mxu3 }
 0x42c   : > { %14755 = vst [vmem:[#allocation399_spill] sm:$0xff] %v9922_v42  ;;  %v9930_v55 = vpop.f32.mrf.mxu0  ;;  %v9932_v47 = vpop.f32.mrf.mxu1  ;;  %v804_v42 = vadd.f32 %v9117_v50, %v9916_v2  ;;  %v4135_v50 = vmax.f32 %v806_v58, 0.0 }
 0x42d   : > { %14756 = vst [vmem:[#allocation400_spill] sm:$0xff] %v9924_v52  ;;  %v844_v52 = vadd.f32 %v9309_v7, %v9916_v2  ;;  %v841_v7 = vadd.f32 %v9301_v16, %v9916_v2  ;;  %v839_v16 = vadd.f32 %v9285_v36, %v9916_v2  ;;  %v796_v36 = vadd.f32 %v9079_v23, %v9916_v2 }
 0x42e   : > { %14757 = vst [vmem:[#allocation401_spill] sm:$0xff] %v9930_v55  ;;  %v4119_v58 = vmax.f32 %v804_v42, 0.0  ;;  %v4103_v42 = vmax.f32 %v801_v30, 0.0  ;;  %v794_v23 = vadd.f32 %v9063_v41, %v9916_v2  ;;  %v834_v30 = vadd.f32 %v9261_v43, %v9916_v2  ;;  %v15053_v55 = vld [vmem:[#allocation103_spill] sm:$0xff] }
 0x42f   : > { %14758 = vst [vmem:[#allocation402_spill] sm:$0xff] %v9932_v47  ;;  %v3879_v47 = vmax.f32 %v766_v33, 0.0  ;;  %7096 = vmatmul.msk.bf16.vlgmr.msra.gmra.mxu0 %vm546_vm2, %v8100_v39  ;;  %7128 = vmatmul.msk.bf16.vlgmr.msra.gmra.mxu1 %vm546_vm2, %v8100_v39  ;;  %v3863_v33 = vmax.f32 %v764_v51, 0.0  ;;  %v4375_v34 = vmax.f32 %v844_v52, 0.0  ;;  %v836_v52 = vadd.f32 %v9277_v15, %v9916_v2 }
 0x430   : > { %7160 = vmatmul.msk.bf16.vlgmr.msra.gmra.mxu2 %vm546_vm2, %v8100_v39  ;;  %7192 = vmatmul.msk.bf16.vlgmr.msra.gmra.mxu3 %vm546_vm2, %v8100_v39  ;;  %v3591_v39 = vmax.f32 %v721_v27, 0.0  ;;  %v4359_v51 = vmax.f32 %v841_v7, 0.0  ;;  %v3575_v27 = vmax.f32 %v719_v24, 0.0  ;;  %v4087_v15 = vmax.f32 %v799_v62, 0.0 }
 0x431   : > { %4409 = vmatpush.msra.mxu0 %v3623_v17  ;;  %4429 = vmatpush.msra.mxu1 %v3879_v47  ;;  %v754_v17 = vadd.f32 %v8847_v56, %v9916_v2  ;;  %v4343_v7 = vmax.f32 %v839_v16, 0.0  ;;  %v751_v56 = vadd.f32 %v8836_v0, %v9916_v2  ;;  %v3815_v24 = vmax.f32 %v756_v46, 0.0 }
 0x432   : > { %4449 = vmatpush.msra.mxu2 %v4135_v50  ;;  %4469 = vmatpush.msra.mxu3 %v4391_v13  ;;  %v3831_v50 = vmax.f32 %v759_v37, 0.0  ;;  %v3559_v13 = vmax.f32 %v716_v26, 0.0  ;;  %v791_v41 = vadd.f32 %v9052_v53, %v9916_v2  ;;  %v831_v43 = vadd.f32 %v9253_v14, %v9916_v2 }
 0x433   : > { %4410 = vmatpush.msra.mxu0 %v3607_v44  ;;  %4430 = vmatpush.msra.mxu1 %v3863_v33  ;;  %v9967_v47 = vpop.f32.mrf.mxu2  ;;  %v9969_v45 = vpop.f32.mrf.mxu3  ;;  %v4071_v44 = vmax.f32 %v796_v36, 0.0  ;;  %v4327_v37 = vmax.f32 %v836_v52, 0.0  ;;  %v3543_v33 = vmax.f32 %v714_v11, 0.0  ;;  %v749_v0 = vadd.f32 %v8820_v54, %v9916_v2  ;;  %v14769_v11 = vld [vmem:[#allocation90_spill] sm:$0xff] }
 0x434   : > { %14759 = vst [vmem:[#allocation403_spill] sm:$0xff] %v9967_v47  ;;  %4450 = vmatpush.msra.mxu2 %v4119_v58  ;;  %4470 = vmatpush.msra.mxu3 %v4375_v34  ;;  %v9975_v61 = vpop.f32.mrf.mxu0  ;;  %v9977_v28 = vpop.f32.mrf.mxu1  ;;  %v3799_v62 = vmax.f32 %v754_v17, 0.0  ;;  %v14763_v58 = vld [vmem:[#allocation150_spill] sm:$0xff]  ;;  %v4055_v16 = vmax.f32 %v794_v23, 0.0  ;;  %v829_v14 = vadd.f32 %v9237_v12, %v9916_v2  ;;  %v4311_v34 = vmax.f32 %v834_v30, 0.0  ;;  %v14771_v30 = vld [vmem:[#allocation203_spill] sm:$0xff] }
 0x435   : > { %14760 = vst [vmem:[#allocation404_spill] sm:$0xff] %v9969_v45  ;;  %4411 = vmatpush.msra.mxu0 %v3591_v39  ;;  %4431 = vmatpush.msra.mxu1 %v3847_v3  ;;  %v789_v53 = vadd.f32 %v14763_v58, %v9916_v2  ;;  %v3527_v26 = vmax.f32 %v711_v57, 0.0  ;;  %v3783_v39 = vmax.f32 %v751_v56, 0.0  ;;  %v4039_v46 = vmax.f32 %v791_v41, 0.0  ;;  %v14768_v12 = vld [vmem:[#allocation34_spill] sm:$0xff]  ;;  %v8105_v45 = vld [vmem:[%s8374_s26 + $0x28] sm:$0xff] }
 0x436   : > { %14761 = vst [vmem:[#allocation405_spill] sm:$0xff] %v9975_v61  ;;  %4451 = vmatpush.msra.mxu2 %v4103_v42  ;;  %4471 = vmatpush.msra.mxu3 %v4359_v51  ;;  %v4295_v3 = vmax.f32 %v831_v43, 0.0  ;;  %v706_v52 = vadd.f32 %v14768_v12, %v9916_v2  ;;  %v3511_v51 = vmax.f32 %v709_v10, 0.0  ;;  %v3767_v17 = vmax.f32 %v749_v0, 0.0  ;;  %v14777_v58 = vld [vmem:[#allocation82_spill] sm:$0xff] }
 0x437   : > { %14762 = vst [vmem:[#allocation406_spill] sm:$0xff] %v9977_v28  ;;  %4412 = vmatpush.msra.mxu0 %v3575_v27  ;;  %4432 = vmatpush.msra.mxu1 %v3831_v50  ;;  %v746_v27 = vadd.f32 %v14769_v11, %v9916_v2  ;;  %v14770_v50 = vld [vmem:[#allocation146_spill] sm:$0xff]  ;;  %v4279_v57 = vmax.f32 %v829_v14, 0.0  ;;  %v8101_v14 = vld [vmem:[%s8374_s26 + $0x8] sm:$0xff] }
 0x438   : > { %4452 = vmatpush.msra.mxu2 %v4087_v15  ;;  %4472 = vmatpush.msra.mxu3 %v4343_v7  ;;  %v786_v23 = vadd.f32 %v14770_v50, %v9916_v2  ;;  %v4023_v15 = vmax.f32 %v789_v53, 0.0  ;;  %v826_v7 = vadd.f32 %v14771_v30, %v9916_v2  ;;  %v741_v53 = vadd.f32 %v14777_v58, %v9916_v2  ;;  %v14784_v30 = vld [vmem:[#allocation134_spill] sm:$0xff] }
 0x439   : > { %4413 = vmatpush.msra.mxu0 %v3559_v13  ;;  %4433 = vmatpush.msra.mxu1 %v3815_v24  ;;  %v14772_v13 = vld [vmem:[#allocation30_spill] sm:$0xff] }
 0x43a   : > { %4453 = vmatpush.msra.mxu2 %v4071_v44  ;;  %4473 = vmatpush.msra.mxu3 %v4327_v37  ;;  %v704_v56 = vadd.f32 %v14772_v13, %v9916_v2  ;;  %v14773_v24 = vld [vmem:[#allocation86_spill] sm:$0xff]  ;;  %v14775_v37 = vld [vmem:[#allocation199_spill] sm:$0xff]  ;;  %v4263_v12 = vmax.f32 %v826_v7, 0.0  ;;  %v779_v7 = vadd.f32 %v14784_v30, %v9916_v2 }
 0x43b   : > { %4414 = vmatpush.msra.mxu0 %v3543_v33  ;;  %4434 = vmatpush.msra.mxu1 %v3799_v62  ;;  %v10003_v6 = vpop.f32.mrf.mxu2  ;;  %v10005_v54 = vpop.f32.mrf.mxu3  ;;  %v744_v41 = vadd.f32 %v14773_v24, %v9916_v2  ;;  %v14774_v44 = vld [vmem:[#allocation142_spill] sm:$0xff]  ;;  %v824_v10 = vadd.f32 %v14775_v37, %v9916_v2  ;;  %v3495_v62 = vmax.f32 %v706_v52, 0.0  ;;  %v14785_v13 = vld [vmem:[#allocation191_spill] sm:$0xff] }
 0x43c   : > { %14764 = vst [vmem:[#allocation150_spill] sm:$0xff] %v10003_v6  ;;  %4454 = vmatpush.msra.mxu2 %v4055_v16  ;;  %4474 = vmatpush.msra.mxu3 %v4311_v34  ;;  %v10007_v36 = vpop.f32.mrf.mxu0  ;;  %v10009_v42 = vpop.f32.mrf.mxu1  ;;  %v784_v43 = vadd.f32 %v14774_v44, %v9916_v2  ;;  %v14776_v33 = vld [vmem:[#allocation26_spill] sm:$0xff]  ;;  %v3751_v16 = vmax.f32 %v746_v27, 0.0  ;;  %v3479_v11 = vmax.f32 %v704_v56, 0.0  ;;  %v819_v24 = vadd.f32 %v14785_v13, %v9916_v2 }
 0x43d   : > { %14765 = vst [vmem:[#allocation407_spill] sm:$0xff] %v10005_v54  ;;  %4415 = vmatpush.msra.mxu0 %v3527_v26  ;;  %4435 = vmatpush.msra.mxu1 %v3783_v39  ;;  %v701_v0 = vadd.f32 %v14776_v33, %v9916_v2  ;;  %v14778_v34 = vld [vmem:[#allocation138_spill] sm:$0xff]  ;;  %v4007_v39 = vmax.f32 %v786_v23, 0.0  ;;  %v3735_v50 = vmax.f32 %v744_v41, 0.0  ;;  %v4247_v44 = vmax.f32 %v824_v10, 0.0 }
 0x43e   : > { %14766 = vst [vmem:[#allocation408_spill] sm:$0xff] %v10007_v36  ;;  %4455 = vmatpush.msra.mxu2 %v4039_v46  ;;  %4475 = vmatpush.msra.mxu3 %v4295_v3  ;;  %v781_v26 = vadd.f32 %v14778_v34, %v9916_v2  ;;  %v14779_v46 = vld [vmem:[#allocation195_spill] sm:$0xff]  ;;  %v14780_v52 = vld [vmem:[#allocation22_spill] sm:$0xff]  ;;  %v15371_v36 = vld [vmem:[#allocation28_spill] sm:$0xff] }
 0x43f   : > { %14767 = vst [vmem:[#allocation409_spill] sm:$0xff] %v10009_v42  ;;  %4416 = vmatpush.msra.mxu0 %v3511_v51  ;;  %4436 = vmatpush.msra.mxu1 %v3767_v17  ;;  %v821_v3 = vadd.f32 %v14779_v46, %v9916_v2  ;;  %v699_v51 = vadd.f32 %v14780_v52, %v9916_v2  ;;  %v14781_v27 = vld [vmem:[#allocation78_spill] sm:$0xff] }
 0x440   : > { %4456 = vmatpush.msra.mxu2 %v4023_v15  ;;  %4476 = vmatpush.msra.mxu3 %v4279_v57  ;;  %v739_v17 = vadd.f32 %v14781_v27, %v9916_v2  ;;  %v3991_v57 = vmax.f32 %v784_v43, 0.0  ;;  %v14788_v41 = vld [vmem:[#allocation18_spill] sm:$0xff]  ;;  %v3975_v10 = vmax.f32 %v781_v26, 0.0  ;;  %v3959_v26 = vmax.f32 %v779_v7, 0.0 }
 0x441   : > { %7097 = vmatmul.msk.bf16.gmra.mxu0 %vm546_vm2, %v8101_v14  ;;  %7129 = vmatmul.msk.bf16.gmra.mxu1 %vm546_vm2, %v8101_v14  ;;  %v696_v33 = vadd.f32 %v14788_v41, %v9916_v2  ;;  %v14789_v58 = vld [vmem:[#allocation74_spill] sm:$0xff]  ;;  %v14795_v41 = vld [vmem:[#allocation183_spill] sm:$0xff] }
 0x442   : > { %7161 = vmatmul.msk.bf16.gmra.mxu2 %vm546_vm2, %v8101_v14  ;;  %7193 = vmatmul.msk.bf16.gmra.mxu3 %vm546_vm2, %v8101_v14  ;;  %v3719_v14 = vmax.f32 %v741_v53, 0.0  ;;  %v14790_v43 = vld [vmem:[#allocation130_spill] sm:$0xff]  ;;  %v3703_v53 = vmax.f32 %v739_v17, 0.0 }
 0x443   : > { %4417 = vmatpush.msra.mxu0 %v3495_v62  ;;  %4437 = vmatpush.msra.mxu1 %v3751_v16  ;;  %v10044_v15 = vpop.f32.mrf.mxu2  ;;  %v10046_v23 = vpop.f32.mrf.mxu3  ;;  %v3463_v62 = vmax.f32 %v701_v0, 0.0  ;;  %v736_v16 = vadd.f32 %v14789_v58, %v9916_v2  ;;  %v776_v34 = vadd.f32 %v14790_v43, %v9916_v2  ;;  %v14792_v52 = vld [vmem:[#allocation14_spill] sm:$0xff]  ;;  %v3447_v0 = vmax.f32 %v699_v51, 0.0 }
 0x444   : > { %14782 = vst [vmem:[#allocation34_spill] sm:$0xff] %v10044_v15  ;;  %4457 = vmatpush.msra.mxu2 %v4007_v39  ;;  %4477 = vmatpush.msra.mxu3 %v4263_v12  ;;  %v10052_v56 = vpop.f32.mrf.mxu0  ;;  %v10054_v37 = vpop.f32.mrf.mxu1  ;;  %v14791_v39 = vld [vmem:[#allocation187_spill] sm:$0xff]  ;;  %v4231_v12 = vmax.f32 %v821_v3, 0.0  ;;  %v694_v27 = vadd.f32 %v14792_v52, %v9916_v2  ;;  %v14793_v30 = vld [vmem:[#allocation70_spill] sm:$0xff]  ;;  %v814_v58 = vadd.f32 %v14795_v41, %v9916_v2  ;;  %v4215_v3 = vmax.f32 %v819_v24, 0.0 }
 0x445   : > { %14783 = vst [vmem:[#allocation90_spill] sm:$0xff] %v10046_v23  ;;  %4418 = vmatpush.msra.mxu0 %v3479_v11  ;;  %4438 = vmatpush.msra.mxu1 %v3735_v50  ;;  %v816_v46 = vadd.f32 %v14791_v39, %v9916_v2  ;;  %v734_v13 = vadd.f32 %v14793_v30, %v9916_v2  ;;  %v14794_v11 = vld [vmem:[#allocation126_spill] sm:$0xff]  ;;  %v3431_v51 = vmax.f32 %v696_v33, 0.0  ;;  %v3687_v17 = vmax.f32 %v736_v16, 0.0  ;;  %v14799_v52 = vld [vmem:[#allocation179_spill] sm:$0xff] }
 0x446   : > { %14786 = vst [vmem:[#allocation146_spill] sm:$0xff] %v10052_v56  ;;  %4458 = vmatpush.msra.mxu2 %v3991_v57  ;;  %4478 = vmatpush.msra.mxu3 %v4247_v44  ;;  %v774_v50 = vadd.f32 %v14794_v11, %v9916_v2  ;;  %v14796_v57 = vld [vmem:[#allocation10_spill] sm:$0xff]  ;;  %v3943_v7 = vmax.f32 %v776_v34, 0.0  ;;  %v811_v30 = vadd.f32 %v14799_v52, %v9916_v2  ;;  %v3415_v33 = vmax.f32 %v694_v27, 0.0  ;;  %v15372_v56 = vld [vmem:[#allocation84_spill] sm:$0xff] }
 0x447   : > { %14787 = vst [vmem:[#allocation203_spill] sm:$0xff] %v10054_v37  ;;  %4419 = vmatpush.msra.mxu0 %v3463_v62  ;;  %4439 = vmatpush.msra.mxu1 %v3719_v14  ;;  %v691_v44 = vadd.f32 %v14796_v57, %v9916_v2  ;;  %v14797_v43 = vld [vmem:[#allocation66_spill] sm:$0xff]  ;;  %v4199_v24 = vmax.f32 %v816_v46, 0.0  ;;  %v3671_v16 = vmax.f32 %v734_v13, 0.0 }
 0x448   : > { %4459 = vmatpush.msra.mxu2 %v3975_v10  ;;  %4479 = vmatpush.msra.mxu3 %v4231_v12  ;;  %v731_v39 = vadd.f32 %v14797_v43, %v9916_v2  ;;  %v14798_v62 = vld [vmem:[#allocation122_spill] sm:$0xff]  ;;  %v3927_v46 = vmax.f32 %v774_v50, 0.0  ;;  %v4183_v43 = vmax.f32 %v814_v58, 0.0  ;;  %v4167_v52 = vmax.f32 %v811_v30, 0.0 }
 0x449   : > { %4420 = vmatpush.msra.mxu0 %v3447_v0  ;;  %4440 = vmatpush.msra.mxu1 %v3703_v53  ;;  %v771_v14 = vadd.f32 %v14798_v62, %v9916_v2  ;;  %v14800_v10 = vld [vmem:[#allocation6_spill] sm:$0xff]  ;;  %v3399_v13 = vmax.f32 %v691_v44, 0.0  ;;  %v8102_v44 = vld [vmem:[%s8374_s26 + $0x10] sm:$0xff] }
 0x44a   : > { %4460 = vmatpush.msra.mxu2 %v3959_v26  ;;  %4480 = vmatpush.msra.mxu3 %v4215_v3  ;;  %v689_v12 = vadd.f32 %v14800_v10, %v9916_v2  ;;  %v14801_v11 = vld [vmem:[#allocation62_spill] sm:$0xff]  ;;  %v14805_v26 = vld [vmem:[#allocation175_spill] sm:$0xff] }
 0x44b   : > { %v729_v41 = vadd.f32 %v14801_v11, %v9916_v2  ;;  %4421 = vmatpush.msra.mxu0 %v3431_v51  ;;  %4441 = vmatpush.msra.mxu1 %v3687_v17  ;;  %v10084_v0 = vpop.f32.mrf.mxu2  ;;  %v10086_v53 = vpop.f32.mrf.mxu3  ;;  %v14804_v34 = vld [vmem:[#allocation118_spill] sm:$0xff]  ;;  %v809_v3 = vadd.f32 %v14805_v26, %v9916_v2  ;;  %v3655_v51 = vmax.f32 %v731_v39, 0.0  ;;  %v3911_v17 = vmax.f32 %v771_v14, 0.0 }
 0x44c   : > { %14802 = vst [vmem:[#allocation30_spill] sm:$0xff] %v10084_v0  ;;  %v769_v57 = vadd.f32 %v14804_v34, %v9916_v2  ;;  %4461 = vmatpush.msra.mxu2 %v3943_v7  ;;  %4481 = vmatpush.msra.mxu3 %v4199_v24  ;;  %v10092_v27 = vpop.f32.mrf.mxu0  ;;  %v10094_v62 = vpop.f32.mrf.mxu1  ;;  %v3383_v50 = vmax.f32 %v689_v12, 0.0 }
 0x44d   : > { %14803 = vst [vmem:[#allocation86_spill] sm:$0xff] %v10086_v53  ;;  %4422 = vmatpush.msra.mxu0 %v3415_v33  ;;  %4442 = vmatpush.msra.mxu1 %v3671_v16  ;;  %v3639_v10 = vmax.f32 %v729_v41, 0.0  ;;  %v4151_v58 = vmax.f32 %v809_v3, 0.0  ;;  %v8103_v41 = vld [vmem:[%s8374_s26 + $0x18] sm:$0xff] }
 0x44e   : > { %14806 = vst [vmem:[#allocation142_spill] sm:$0xff] %v10094_v62  ;;  %4462 = vmatpush.msra.mxu2 %v3927_v46  ;;  %4482 = vmatpush.msra.mxu3 %v4183_v43  ;;  %v3895_v2 = vmax.f32 %v769_v57, 0.0  ;;  %v15041_v62 = vld [vmem:[#allocation112_spill] sm:$0xff] }
 0x44f   : > { %4423 = vmatpush.msra.mxu0 %v3399_v13  ;;  %4443 = vmatpush.msra.mxu1 %v3655_v51  ;;  %v8104_v51 = vld [vmem:[%s8374_s26 + $0x20] sm:$0xff] }
 0x450   : > { %4463 = vmatpush.msra.mxu2 %v3911_v17  ;;  %4483 = vmatpush.msra.mxu3 %v4167_v52 }
 0x451   : > { %4424 = vmatpush.msra.mxu0 %v3383_v50  ;;  %4444 = vmatpush.msra.mxu1 %v3639_v10 }
 0x452   : > { %4464 = vmatpush.msra.mxu2 %v3895_v2  ;;  %4484 = vmatpush.msra.mxu3 %v4151_v58 }
 0x453   : > { %7098 = vmatmul.msk.bf16.gmra.mxu0 %vm546_vm2, %v8102_v44  ;;  %7130 = vmatmul.msk.bf16.gmra.mxu1 %vm546_vm2, %v8102_v44  ;;  %v10099_v39 = vpop.f32.mrf.mxu2  ;;  %v10101_v14 = vpop.f32.mrf.mxu3 }
 0x454   : > { %14807 = vst [vmem:[#allocation199_spill] sm:$0xff] %v10099_v39  ;;  %7162 = vmatmul.msk.bf16.gmra.mxu2 %vm546_vm2, %v8102_v44  ;;  %7194 = vmatmul.msk.bf16.gmra.mxu3 %vm546_vm2, %v8102_v44  ;;  %v10105_v7 = vpop.f32.mrf.mxu0  ;;  %v10107_v30 = vpop.f32.mrf.mxu1  ;;  %v8107_v39 = vld [vmem:[%s8374_s26 + $0x38] sm:$0xff] }
 0x455   : > { %14808 = vst [vmem:[#allocation26_spill] sm:$0xff] %v10101_v14 }
 0x456   : > { %14809 = vst [vmem:[#allocation82_spill] sm:$0xff] %v10107_v30 }
 0x45b   : > { %v10109_v24 = vpop.f32.mrf.mxu2  ;;  %v10111_v12 = vpop.f32.mrf.mxu3 }
 0x45c   : > { %14810 = vst [vmem:[#allocation138_spill] sm:$0xff] %v10109_v24  ;;  %v10113_v33 = vpop.f32.mrf.mxu0  ;;  %v10115_v11 = vpop.f32.mrf.mxu1 }
 0x45d   : > { %14811 = vst [vmem:[#allocation195_spill] sm:$0xff] %v10111_v12 }
 0x45e   : > { %14812 = vst [vmem:[#allocation22_spill] sm:$0xff] %v10115_v11 }
 0x463   : > { %7099 = vmatmul.msk.bf16.gmra.mxu0 %vm546_vm2, %v8103_v41  ;;  %7131 = vmatmul.msk.bf16.gmra.mxu1 %vm546_vm2, %v8103_v41  ;;  %v10120_v16 = vpop.f32.mrf.mxu2  ;;  %v10122_v34 = vpop.f32.mrf.mxu3 }
 0x464   : > { %14813 = vst [vmem:[#allocation78_spill] sm:$0xff] %v10120_v16  ;;  %7163 = vmatmul.msk.bf16.gmra.mxu2 %vm546_vm2, %v8103_v41  ;;  %7195 = vmatmul.msk.bf16.gmra.mxu3 %vm546_vm2, %v8103_v41  ;;  %v10126_v57 = vpop.f32.mrf.mxu0  ;;  %v10128_v46 = vpop.f32.mrf.mxu1 }
 0x465   : > { %14814 = vst [vmem:[#allocation134_spill] sm:$0xff] %v10122_v34 }
 0x466   : > { %14815 = vst [vmem:[#allocation191_spill] sm:$0xff] %v10128_v46 }
 0x46b   : > { %v10130_v26 = vpop.f32.mrf.mxu2  ;;  %v10132_v3 = vpop.f32.mrf.mxu3 }
 0x46c   : > { %14816 = vst [vmem:[#allocation18_spill] sm:$0xff] %v10130_v26  ;;  %v10134_v43 = vpop.f32.mrf.mxu0  ;;  %v10136_v13 = vpop.f32.mrf.mxu1 }
 0x46d   : > { %14817 = vst [vmem:[#allocation74_spill] sm:$0xff] %v10132_v3 }
 0x46e   : > { %14818 = vst [vmem:[#allocation130_spill] sm:$0xff] %v10136_v13 }
 0x473   : > { %7100 = vmatmul.msk.bf16.gmra.mxu0 %vm546_vm2, %v8104_v51  ;;  %7132 = vmatmul.msk.bf16.gmra.mxu1 %vm546_vm2, %v8104_v51  ;;  %v10141_v17 = vpop.f32.mrf.mxu2  ;;  %v10143_v52 = vpop.f32.mrf.mxu3 }
 0x474   : > { %14819 = vst [vmem:[#allocation187_spill] sm:$0xff] %v10141_v17  ;;  %7164 = vmatmul.msk.bf16.gmra.mxu2 %vm546_vm2, %v8104_v51  ;;  %7196 = vmatmul.msk.bf16.gmra.mxu3 %vm546_vm2, %v8104_v51  ;;  %v10147_v50 = vpop.f32.mrf.mxu0  ;;  %v10149_v10 = vpop.f32.mrf.mxu1 }
 0x475   : > { %14820 = vst [vmem:[#allocation14_spill] sm:$0xff] %v10143_v52  ;;  %v8106_v52 = vld [vmem:[%s8374_s26 + $0x30] sm:$0xff] }
 0x476   : > { %14821 = vst [vmem:[#allocation70_spill] sm:$0xff] %v10149_v10  ;;  %v8133_v10 = vld [vmem:[%s8374_s26] sm:$0xff] }
 0x47b   : > { %v10151_v2 = vpop.f32.mrf.mxu2  ;;  %v10153_v58 = vpop.f32.mrf.mxu3 }
 0x47c   : > { %14822 = vst [vmem:[#allocation126_spill] sm:$0xff] %v10151_v2  ;;  %v10155_v44 = vpop.f32.mrf.mxu0  ;;  %v10157_v41 = vpop.f32.mrf.mxu1 }
 0x47d   : > { %14823 = vst [vmem:[#allocation183_spill] sm:$0xff] %v10153_v58 }
 0x47e   : > { %14824 = vst [vmem:[#allocation10_spill] sm:$0xff] %v10157_v41  ;;  %v15047_v41 = vld [vmem:[#allocation222_spill] sm:$0xff] }
 0x483   : > { %7101 = vmatmul.msk.bf16.gmra.mxu0 %vm546_vm2, %v8105_v45  ;;  %7133 = vmatmul.msk.bf16.gmra.mxu1 %vm546_vm2, %v8105_v45  ;;  %v10162_v54 = vpop.f32.mrf.mxu2  ;;  %v10164_v51 = vpop.f32.mrf.mxu3 }
 0x484   : > { %14825 = vst [vmem:[#allocation66_spill] sm:$0xff] %v10162_v54  ;;  %7165 = vmatmul.msk.bf16.gmra.mxu2 %vm546_vm2, %v8105_v45  ;;  %7197 = vmatmul.msk.bf16.gmra.mxu3 %vm546_vm2, %v8105_v45  ;;  %v10168_v23 = vpop.f32.mrf.mxu0  ;;  %v10170_v53 = vpop.f32.mrf.mxu1  ;;  %v8108_v54 = vld [vmem:[%s8374_s26 + $0x40] sm:$0xff] }
 0x485   : > { %14826 = vst [vmem:[#allocation122_spill] sm:$0xff] %v10164_v51 }
 0x486   : > { %14827 = vst [vmem:[#allocation179_spill] sm:$0xff] %v10170_v53 }
 0x48b   : > { %v10172_v14 = vpop.f32.mrf.mxu2  ;;  %v10174_v12 = vpop.f32.mrf.mxu3 }
 0x48c   : > { %14828 = vst [vmem:[#allocation6_spill] sm:$0xff] %v10172_v14  ;;  %v10176_v34 = vpop.f32.mrf.mxu0  ;;  %v10178_v3 = vpop.f32.mrf.mxu1 }
 0x48d   : > { %14829 = vst [vmem:[#allocation62_spill] sm:$0xff] %v10174_v12 }
 0x48e   : > { %14830 = vst [vmem:[#allocation118_spill] sm:$0xff] %v10178_v3 }
 0x493   : > { %7102 = vmatmul.msk.bf16.gmra.mxu0 %vm546_vm2, %v8106_v52  ;;  %7134 = vmatmul.msk.bf16.gmra.mxu1 %vm546_vm2, %v8106_v52  ;;  %v10183_v58 = vpop.f32.mrf.mxu2  ;;  %v10185_v45 = vpop.f32.mrf.mxu3 }
 0x494   : > { %14831 = vst [vmem:[#allocation175_spill] sm:$0xff] %v10183_v58  ;;  %7166 = vmatmul.msk.bf16.gmra.mxu2 %vm546_vm2, %v8106_v52  ;;  %7198 = vmatmul.msk.bf16.gmra.mxu3 %vm546_vm2, %v8106_v52  ;;  %v10189_v51 = vpop.f32.mrf.mxu0  ;;  %v10191_v12 = vpop.f32.mrf.mxu1 }
 0x495   : > { %14832 = vst [vmem:[#allocation410_spill] sm:$0xff] %v10185_v45 }
 0x496   : > { %14833 = vst [vmem:[#allocation411_spill] sm:$0xff] %v10191_v12 }
 0x49b   : > { %v10193_v47 = vpop.f32.mrf.mxu2  ;;  %v10195_v6 = vpop.f32.mrf.mxu3 }
 0x49c   : > { %14834 = vst [vmem:[#allocation412_spill] sm:$0xff] %v10193_v47  ;;  %v10197_v15 = vpop.f32.mrf.mxu0  ;;  %v10199_v0 = vpop.f32.mrf.mxu1 }
 0x49d   : > { %14835 = vst [vmem:[#allocation413_spill] sm:$0xff] %v10195_v6 }
 0x49e   : > { %14836 = vst [vmem:[#allocation414_spill] sm:$0xff] %v10199_v0 }
 0x4a3   : > { %7103 = vmatmul.msk.bf16.gmra.mxu0 %vm546_vm2, %v8107_v39  ;;  %7135 = vmatmul.msk.bf16.gmra.mxu1 %vm546_vm2, %v8107_v39  ;;  %v10204_v45 = vpop.f32.mrf.mxu2  ;;  %v10206_v52 = vpop.f32.mrf.mxu3 }
 0x4a4   : > { %14837 = vst [vmem:[#allocation415_spill] sm:$0xff] %v10204_v45  ;;  %7167 = vmatmul.msk.bf16.gmra.mxu2 %vm546_vm2, %v8107_v39  ;;  %7199 = vmatmul.msk.bf16.gmra.mxu3 %vm546_vm2, %v8107_v39  ;;  %v10210_v24 = vpop.f32.mrf.mxu0  ;;  %v10212_v6 = vpop.f32.mrf.mxu1  ;;  %v8110_v45 = vld [vmem:[%s8374_s26 + $0x50] sm:$0xff] }
 0x4a5   : > { %14838 = vst [vmem:[#allocation416_spill] sm:$0xff] %v10206_v52 }
 0x4a6   : > { %14839 = vst [vmem:[#allocation417_spill] sm:$0xff] %v10212_v6 }
 0x4ab   : > { %v10214_v16 = vpop.f32.mrf.mxu2  ;;  %v10216_v26 = vpop.f32.mrf.mxu3 }
 0x4ac   : > { %14840 = vst [vmem:[#allocation418_spill] sm:$0xff] %v10214_v16  ;;  %v10218_v17 = vpop.f32.mrf.mxu0  ;;  %v10220_v2 = vpop.f32.mrf.mxu1  ;;  %v15037_v16 = vld [vmem:[#allocation228_spill] sm:$0xff] }
 0x4ad   : > { %14841 = vst [vmem:[#allocation419_spill] sm:$0xff] %v10216_v26 }
 0x4ae   : > { %14842 = vst [vmem:[#allocation420_spill] sm:$0xff] %v10218_v17 }
 0x4af   : > { %14843 = vst [vmem:[#allocation421_spill] sm:$0xff] %v10220_v2 }
 0x4b3   : > { %7104 = vmatmul.msk.bf16.gmra.mxu0 %vm546_vm2, %v8108_v54  ;;  %7136 = vmatmul.msk.bf16.gmra.mxu1 %vm546_vm2, %v8108_v54  ;;  %v10225_v52 = vpop.f32.mrf.mxu2  ;;  %v10227_v39 = vpop.f32.mrf.mxu3 }
 0x4b4   : > { %14844 = vst [vmem:[#allocation422_spill] sm:$0xff] %v10225_v52  ;;  %7168 = vmatmul.msk.bf16.gmra.mxu2 %vm546_vm2, %v8108_v54  ;;  %7200 = vmatmul.msk.bf16.gmra.mxu3 %vm546_vm2, %v8108_v54  ;;  %v10231_v14 = vpop.f32.mrf.mxu0  ;;  %v10233_v26 = vpop.f32.mrf.mxu1  ;;  %v8109_v52 = vld [vmem:[%s8374_s26 + $0x48] sm:$0xff] }
 0x4b5   : > { %14845 = vst [vmem:[#allocation423_spill] sm:$0xff] %v10227_v39 }
 0x4b6   : > { %14846 = vst [vmem:[#allocation424_spill] sm:$0xff] %v10231_v14 }
 0x4b7   : > { %14847 = vst [vmem:[#allocation425_spill] sm:$0xff] %v10233_v26 }
 0x4bb   : > { %v10235_v17 = vpop.f32.mrf.mxu2  ;;  %v10237_v2 = vpop.f32.mrf.mxu3 }
 0x4bc   : > { %14848 = vst [vmem:[#allocation426_spill] sm:$0xff] %v10235_v17 }
 0x4bd   : > { %14849 = vst [vmem:[#allocation427_spill] sm:$0xff] %v10237_v2 }
 0x4be   : > { %v10239_v58 = vpop.f32.mrf.mxu0  ;;  %v10241_v47 = vpop.f32.mrf.mxu1 }
 0x4bf   : > { %14850 = vst [vmem:[#allocation428_spill] sm:$0xff] %v10239_v58 }
 0x4c0   : > { %14851 = vst [vmem:[#allocation429_spill] sm:$0xff] %v10241_v47 }
 0x4c3   : > { %7105 = vmatmul.msk.bf16.gmra.mxu0 %vm546_vm2, %v8109_v52  ;;  %7137 = vmatmul.msk.bf16.gmra.mxu1 %vm546_vm2, %v8109_v52 }
 0x4c4   : > { %7169 = vmatmul.msk.bf16.gmra.mxu2 %vm546_vm2, %v8109_v52  ;;  %7201 = vmatmul.msk.bf16.gmra.mxu3 %vm546_vm2, %v8109_v52 }
 0x4c5   : > { %v10248_v54 = vpop.f32.mrf.mxu2  ;;  %v10250_v26 = vpop.f32.mrf.mxu3 }
 0x4c6   : > { %14852 = vst [vmem:[#allocation430_spill] sm:$0xff] %v10248_v54  ;;  %v10252_v17 = vpop.f32.mrf.mxu0  ;;  %v10254_v2 = vpop.f32.mrf.mxu1 }
 0x4c7   : > { %14853 = vst [vmem:[#allocation431_spill] sm:$0xff] %v10250_v26 }
 0x4c8   : > { %14854 = vst [vmem:[#allocation432_spill] sm:$0xff] %v10252_v17 }
 0x4c9   : > { %14855 = vst [vmem:[#allocation433_spill] sm:$0xff] %v10254_v2 }
 0x4cd   : > { %v10256_v58 = vpop.f32.mrf.mxu2  ;;  %v10258_v47 = vpop.f32.mrf.mxu3 }
 0x4ce   : > { %14856 = vst [vmem:[#allocation434_spill] sm:$0xff] %v10256_v58 }
 0x4cf   : > { %14857 = vst [vmem:[#allocation435_spill] sm:$0xff] %v10258_v47 }
 0x4d0   : > { %v10260_v14 = vpop.f32.mrf.mxu0  ;;  %v10262_v39 = vpop.f32.mrf.mxu1 }
 0x4d1   : > { %14858 = vst [vmem:[#allocation436_spill] sm:$0xff] %v10260_v14  ;;  %v8111_v14 = vld [vmem:[%s8374_s26 + $0x58] sm:$0xff] }
 0x4d2   : > { %14859 = vst [vmem:[#allocation437_spill] sm:$0xff] %v10262_v39 }
 0x4d3   : > { %7106 = vmatmul.msk.bf16.gmra.mxu0 %vm546_vm2, %v8110_v45  ;;  %7138 = vmatmul.msk.bf16.gmra.mxu1 %vm546_vm2, %v8110_v45 }
 0x4d4   : > { %7170 = vmatmul.msk.bf16.gmra.mxu2 %vm546_vm2, %v8110_v45  ;;  %7202 = vmatmul.msk.bf16.gmra.mxu3 %vm546_vm2, %v8110_v45 }
 0x4d7   : > { %v10269_v52 = vpop.f32.mrf.mxu2  ;;  %v10271_v2 = vpop.f32.mrf.mxu3 }
 0x4d8   : > { %14860 = vst [vmem:[#allocation438_spill] sm:$0xff] %v10269_v52  ;;  %v10273_v58 = vpop.f32.mrf.mxu0  ;;  %v10275_v47 = vpop.f32.mrf.mxu1 }
 0x4d9   : > { %14861 = vst [vmem:[#allocation439_spill] sm:$0xff] %v10271_v2 }
 0x4da   : > { %14862 = vst [vmem:[#allocation440_spill] sm:$0xff] %v10273_v58 }
 0x4db   : > { %14863 = vst [vmem:[#allocation441_spill] sm:$0xff] %v10275_v47 }
 0x4df   : > { %v10277_v26 = vpop.f32.mrf.mxu2  ;;  %v10279_v39 = vpop.f32.mrf.mxu3 }
 0x4e0   : > { %14864 = vst [vmem:[#allocation442_spill] sm:$0xff] %v10277_v26  ;;  %v10281_v54 = vpop.f32.mrf.mxu0  ;;  %v10283_v17 = vpop.f32.mrf.mxu1 }
 0x4e1   : > { %14865 = vst [vmem:[#allocation443_spill] sm:$0xff] %v10279_v39 }
 0x4e2   : > { %14866 = vst [vmem:[#allocation444_spill] sm:$0xff] %v10281_v54  ;;  %v8112_v54 = vld [vmem:[%s8374_s26 + $0x60] sm:$0xff] }
 0x4e3   : > { %14867 = vst [vmem:[#allocation445_spill] sm:$0xff] %v10283_v17  ;;  %7107 = vmatmul.msk.bf16.gmra.mxu0 %vm546_vm2, %v8111_v14  ;;  %7139 = vmatmul.msk.bf16.gmra.mxu1 %vm546_vm2, %v8111_v14 }
 0x4e4   : > { %7171 = vmatmul.msk.bf16.gmra.mxu2 %vm546_vm2, %v8111_v14  ;;  %7203 = vmatmul.msk.bf16.gmra.mxu3 %vm546_vm2, %v8111_v14 }
 0x4e7   : > { %v10290_v45 = vpop.f32.mrf.mxu2  ;;  %v10292_v2 = vpop.f32.mrf.mxu3 }
 0x4e8   : > { %14868 = vst [vmem:[#allocation446_spill] sm:$0xff] %v10290_v45  ;;  %v10294_v26 = vpop.f32.mrf.mxu0  ;;  %v10296_v39 = vpop.f32.mrf.mxu1 }
 0x4e9   : > { %14869 = vst [vmem:[#allocation447_spill] sm:$0xff] %v10292_v2 }
 0x4ea   : > { %14870 = vst [vmem:[#allocation448_spill] sm:$0xff] %v10294_v26 }
 0x4eb   : > { %14871 = vst [vmem:[#allocation449_spill] sm:$0xff] %v10296_v39 }
 0x4ef   : > { %v10298_v52 = vpop.f32.mrf.mxu2  ;;  %v10300_v47 = vpop.f32.mrf.mxu3 }
 0x4f0   : > { %14872 = vst [vmem:[#allocation450_spill] sm:$0xff] %v10298_v52  ;;  %v10302_v17 = vpop.f32.mrf.mxu0  ;;  %v10304_v58 = vpop.f32.mrf.mxu1 }
 0x4f1   : > { %14873 = vst [vmem:[#allocation451_spill] sm:$0xff] %v10300_v47 }
 0x4f2   : > { %14874 = vst [vmem:[#allocation452_spill] sm:$0xff] %v10302_v17  ;;  %v8113_v17 = vld [vmem:[%s8374_s26 + $0x68] sm:$0xff] }
 0x4f3   : > { %14875 = vst [vmem:[#allocation453_spill] sm:$0xff] %v10304_v58  ;;  %7108 = vmatmul.msk.bf16.gmra.mxu0 %vm546_vm2, %v8112_v54  ;;  %7140 = vmatmul.msk.bf16.gmra.mxu1 %vm546_vm2, %v8112_v54 }
 0x4f4   : > { %7172 = vmatmul.msk.bf16.gmra.mxu2 %vm546_vm2, %v8112_v54  ;;  %7204 = vmatmul.msk.bf16.gmra.mxu3 %vm546_vm2, %v8112_v54 }
 0x4f7   : > { %v10311_v14 = vpop.f32.mrf.mxu2  ;;  %v10313_v2 = vpop.f32.mrf.mxu3 }
 0x4f8   : > { %14876 = vst [vmem:[#allocation454_spill] sm:$0xff] %v10311_v14  ;;  %v10315_v52 = vpop.f32.mrf.mxu0  ;;  %v10317_v47 = vpop.f32.mrf.mxu1 }
 0x4f9   : > { %14877 = vst [vmem:[#allocation455_spill] sm:$0xff] %v10313_v2 }
 0x4fa   : > { %14878 = vst [vmem:[#allocation456_spill] sm:$0xff] %v10315_v52 }
 0x4fb   : > { %14879 = vst [vmem:[#allocation457_spill] sm:$0xff] %v10317_v47 }
 0x4ff   : > { %v10319_v45 = vpop.f32.mrf.mxu2  ;;  %v10321_v39 = vpop.f32.mrf.mxu3 }
 0x500   : > { %14880 = vst [vmem:[#allocation458_spill] sm:$0xff] %v10319_v45  ;;  %v10323_v58 = vpop.f32.mrf.mxu0  ;;  %v10325_v26 = vpop.f32.mrf.mxu1 }
 0x501   : > { %14881 = vst [vmem:[#allocation459_spill] sm:$0xff] %v10321_v39 }
 0x502   : > { %14882 = vst [vmem:[#allocation460_spill] sm:$0xff] %v10323_v58  ;;  %v8114_v58 = vld [vmem:[%s8374_s26 + $0x70] sm:$0xff] }
 0x503   : > { %14883 = vst [vmem:[#allocation461_spill] sm:$0xff] %v10325_v26  ;;  %7109 = vmatmul.msk.bf16.gmra.mxu0 %vm546_vm2, %v8113_v17  ;;  %7141 = vmatmul.msk.bf16.gmra.mxu1 %vm546_vm2, %v8113_v17 }
 0x504   : > { %7173 = vmatmul.msk.bf16.gmra.mxu2 %vm546_vm2, %v8113_v17  ;;  %7205 = vmatmul.msk.bf16.gmra.mxu3 %vm546_vm2, %v8113_v17 }
 0x507   : > { %v10332_v54 = vpop.f32.mrf.mxu2  ;;  %v10334_v2 = vpop.f32.mrf.mxu3 }
 0x508   : > { %14884 = vst [vmem:[#allocation462_spill] sm:$0xff] %v10332_v54  ;;  %v10336_v14 = vpop.f32.mrf.mxu0  ;;  %v10338_v39 = vpop.f32.mrf.mxu1 }
 0x509   : > { %14885 = vst [vmem:[#allocation463_spill] sm:$0xff] %v10334_v2 }
 0x50a   : > { %14886 = vst [vmem:[#allocation464_spill] sm:$0xff] %v10336_v14 }
 0x50b   : > { %14887 = vst [vmem:[#allocation465_spill] sm:$0xff] %v10338_v39 }
 0x50f   : > { %v10340_v45 = vpop.f32.mrf.mxu2  ;;  %v10342_v47 = vpop.f32.mrf.mxu3 }
 0x510   : > { %14888 = vst [vmem:[#allocation466_spill] sm:$0xff] %v10340_v45  ;;  %v10344_v26 = vpop.f32.mrf.mxu0  ;;  %v10346_v52 = vpop.f32.mrf.mxu1 }
 0x511   : > { %14889 = vst [vmem:[#allocation467_spill] sm:$0xff] %v10342_v47 }
 0x512   : > { %14890 = vst [vmem:[#allocation468_spill] sm:$0xff] %v10344_v26  ;;  %v8115_v26 = vld [vmem:[%s8374_s26 + $0x78] sm:$0xff] }
 0x513   : > { %14891 = vst [vmem:[#allocation469_spill] sm:$0xff] %v10346_v52  ;;  %7110 = vmatmul.msk.bf16.gmra.mxu0 %vm546_vm2, %v8114_v58  ;;  %7142 = vmatmul.msk.bf16.gmra.mxu1 %vm546_vm2, %v8114_v58 }
 0x514   : > { %7174 = vmatmul.msk.bf16.gmra.mxu2 %vm546_vm2, %v8114_v58  ;;  %7206 = vmatmul.msk.bf16.gmra.mxu3 %vm546_vm2, %v8114_v58 }
 0x517   : > { %v10353_v17 = vpop.f32.mrf.mxu2  ;;  %v10355_v2 = vpop.f32.mrf.mxu3 }
 0x518   : > { %14892 = vst [vmem:[#allocation470_spill] sm:$0xff] %v10353_v17  ;;  %v10357_v54 = vpop.f32.mrf.mxu0  ;;  %v10359_v47 = vpop.f32.mrf.mxu1 }
 0x519   : > { %14893 = vst [vmem:[#allocation471_spill] sm:$0xff] %v10355_v2 }
 0x51a   : > { %14894 = vst [vmem:[#allocation472_spill] sm:$0xff] %v10357_v54 }
 0x51b   : > { %14895 = vst [vmem:[#allocation473_spill] sm:$0xff] %v10359_v47 }
 0x51f   : > { %v10361_v45 = vpop.f32.mrf.mxu2  ;;  %v10363_v39 = vpop.f32.mrf.mxu3 }
 0x520   : > { %14896 = vst [vmem:[#allocation474_spill] sm:$0xff] %v10361_v45  ;;  %v10365_v52 = vpop.f32.mrf.mxu0  ;;  %v10367_v14 = vpop.f32.mrf.mxu1 }
 0x521   : > { %14897 = vst [vmem:[#allocation475_spill] sm:$0xff] %v10363_v39 }
 0x522   : > { %14898 = vst [vmem:[#allocation476_spill] sm:$0xff] %v10365_v52  ;;  %v8116_v52 = vld [vmem:[%s8374_s26 + $0x80] sm:$0xff] }
 0x523   : > { %14899 = vst [vmem:[#allocation477_spill] sm:$0xff] %v10367_v14  ;;  %7111 = vmatmul.msk.bf16.gmra.mxu0 %vm546_vm2, %v8115_v26  ;;  %7143 = vmatmul.msk.bf16.gmra.mxu1 %vm546_vm2, %v8115_v26 }
 0x524   : > { %7175 = vmatmul.msk.bf16.gmra.mxu2 %vm546_vm2, %v8115_v26  ;;  %7207 = vmatmul.msk.bf16.gmra.mxu3 %vm546_vm2, %v8115_v26 }
 0x527   : > { %v10374_v58 = vpop.f32.mrf.mxu2  ;;  %v10376_v2 = vpop.f32.mrf.mxu3 }
 0x528   : > { %14900 = vst [vmem:[#allocation478_spill] sm:$0xff] %v10374_v58  ;;  %v10378_v17 = vpop.f32.mrf.mxu0  ;;  %v10380_v39 = vpop.f32.mrf.mxu1 }
 0x529   : > { %14901 = vst [vmem:[#allocation479_spill] sm:$0xff] %v10376_v2 }
 0x52a   : > { %14902 = vst [vmem:[#allocation480_spill] sm:$0xff] %v10378_v17  ;;  %v8117_v17 = vld [vmem:[%s8374_s26 + $0x88] sm:$0xff] }
 0x52b   : > { %14903 = vst [vmem:[#allocation481_spill] sm:$0xff] %v10380_v39 }
 0x52f   : > { %v10382_v45 = vpop.f32.mrf.mxu2  ;;  %v10384_v47 = vpop.f32.mrf.mxu3 }
 0x530   : > { %14904 = vst [vmem:[#allocation482_spill] sm:$0xff] %v10382_v45  ;;  %v10386_v14 = vpop.f32.mrf.mxu0  ;;  %v10388_v54 = vpop.f32.mrf.mxu1 }
 0x531   : > { %14905 = vst [vmem:[#allocation483_spill] sm:$0xff] %v10384_v47 }
 0x532   : > { %14906 = vst [vmem:[#allocation484_spill] sm:$0xff] %v10386_v14 }
 0x533   : > { %14907 = vst [vmem:[#allocation485_spill] sm:$0xff] %v10388_v54  ;;  %7112 = vmatmul.msk.bf16.gmra.mxu0 %vm546_vm2, %v8116_v52  ;;  %7144 = vmatmul.msk.bf16.gmra.mxu1 %vm546_vm2, %v8116_v52 }
 0x534   : > { %7176 = vmatmul.msk.bf16.gmra.mxu2 %vm546_vm2, %v8116_v52  ;;  %7208 = vmatmul.msk.bf16.gmra.mxu3 %vm546_vm2, %v8116_v52 }
 0x537   : > { %v10395_v26 = vpop.f32.mrf.mxu2  ;;  %v10397_v2 = vpop.f32.mrf.mxu3 }
 0x538   : > { %14908 = vst [vmem:[#allocation486_spill] sm:$0xff] %v10395_v26  ;;  %v10399_v58 = vpop.f32.mrf.mxu0  ;;  %v10401_v47 = vpop.f32.mrf.mxu1 }
 0x539   : > { %14909 = vst [vmem:[#allocation487_spill] sm:$0xff] %v10397_v2 }
 0x53a   : > { %14910 = vst [vmem:[#allocation488_spill] sm:$0xff] %v10399_v58 }
 0x53b   : > { %14911 = vst [vmem:[#allocation489_spill] sm:$0xff] %v10401_v47 }
 0x53f   : > { %v10403_v45 = vpop.f32.mrf.mxu2  ;;  %v10405_v54 = vpop.f32.mrf.mxu3 }
 0x540   : > { %14912 = vst [vmem:[#allocation490_spill] sm:$0xff] %v10403_v45  ;;  %v10407_v39 = vpop.f32.mrf.mxu0  ;;  %v10409_v14 = vpop.f32.mrf.mxu1 }
 0x541   : > { %14913 = vst [vmem:[#allocation491_spill] sm:$0xff] %v10405_v54 }
 0x542   : > { %14914 = vst [vmem:[#allocation492_spill] sm:$0xff] %v10407_v39  ;;  %v8118_v39 = vld [vmem:[%s8374_s26 + $0x90] sm:$0xff] }
 0x543   : > { %14915 = vst [vmem:[#allocation493_spill] sm:$0xff] %v10409_v14  ;;  %7113 = vmatmul.msk.bf16.gmra.mxu0 %vm546_vm2, %v8117_v17  ;;  %7145 = vmatmul.msk.bf16.gmra.mxu1 %vm546_vm2, %v8117_v17 }
 0x544   : > { %7177 = vmatmul.msk.bf16.gmra.mxu2 %vm546_vm2, %v8117_v17  ;;  %7209 = vmatmul.msk.bf16.gmra.mxu3 %vm546_vm2, %v8117_v17 }
 0x547   : > { %v10416_v52 = vpop.f32.mrf.mxu2  ;;  %v10418_v2 = vpop.f32.mrf.mxu3 }
 0x548   : > { %14916 = vst [vmem:[#allocation494_spill] sm:$0xff] %v10416_v52  ;;  %v10420_v26 = vpop.f32.mrf.mxu0  ;;  %v10422_v54 = vpop.f32.mrf.mxu1 }
 0x549   : > { %14917 = vst [vmem:[#allocation495_spill] sm:$0xff] %v10418_v2 }
 0x54a   : > { %14918 = vst [vmem:[#allocation496_spill] sm:$0xff] %v10420_v26 }
 0x54b   : > { %14919 = vst [vmem:[#allocation497_spill] sm:$0xff] %v10422_v54 }
 0x54f   : > { %v10424_v45 = vpop.f32.mrf.mxu2  ;;  %v10426_v47 = vpop.f32.mrf.mxu3 }
 0x550   : > { %14920 = vst [vmem:[#allocation498_spill] sm:$0xff] %v10424_v45  ;;  %v10428_v14 = vpop.f32.mrf.mxu0  ;;  %v10430_v58 = vpop.f32.mrf.mxu1 }
 0x551   : > { %14921 = vst [vmem:[#allocation499_spill] sm:$0xff] %v10426_v47 }
 0x552   : > { %14922 = vst [vmem:[#allocation500_spill] sm:$0xff] %v10428_v14  ;;  %v8119_v14 = vld [vmem:[%s8374_s26 + $0x98] sm:$0xff] }
 0x553   : > { %14923 = vst [vmem:[#allocation501_spill] sm:$0xff] %v10430_v58  ;;  %7114 = vmatmul.msk.bf16.gmra.mxu0 %vm546_vm2, %v8118_v39  ;;  %7146 = vmatmul.msk.bf16.gmra.mxu1 %vm546_vm2, %v8118_v39 }
 0x554   : > { %7178 = vmatmul.msk.bf16.gmra.mxu2 %vm546_vm2, %v8118_v39  ;;  %7210 = vmatmul.msk.bf16.gmra.mxu3 %vm546_vm2, %v8118_v39 }
 0x557   : > { %v10437_v17 = vpop.f32.mrf.mxu2  ;;  %v10439_v2 = vpop.f32.mrf.mxu3 }
 0x558   : > { %14924 = vst [vmem:[#allocation502_spill] sm:$0xff] %v10437_v17  ;;  %v10441_v52 = vpop.f32.mrf.mxu0  ;;  %v10443_v47 = vpop.f32.mrf.mxu1 }
 0x559   : > { %14925 = vst [vmem:[#allocation503_spill] sm:$0xff] %v10439_v2 }
 0x55a   : > { %14926 = vst [vmem:[#allocation504_spill] sm:$0xff] %v10441_v52 }
 0x55b   : > { %14927 = vst [vmem:[#allocation505_spill] sm:$0xff] %v10443_v47 }
 0x55f   : > { %v10445_v45 = vpop.f32.mrf.mxu2  ;;  %v10447_v54 = vpop.f32.mrf.mxu3 }
 0x560   : > { %14928 = vst [vmem:[#allocation506_spill] sm:$0xff] %v10445_v45  ;;  %v10449_v58 = vpop.f32.mrf.mxu0  ;;  %v10451_v26 = vpop.f32.mrf.mxu1 }
 0x561   : > { %14929 = vst [vmem:[#allocation507_spill] sm:$0xff] %v10447_v54 }
 0x562   : > { %14930 = vst [vmem:[#allocation508_spill] sm:$0xff] %v10449_v58  ;;  %v8120_v58 = vld [vmem:[%s8374_s26 + $0xa0] sm:$0xff] }
 0x563   : > { %14931 = vst [vmem:[#allocation509_spill] sm:$0xff] %v10451_v26  ;;  %7115 = vmatmul.msk.bf16.gmra.mxu0 %vm546_vm2, %v8119_v14  ;;  %7147 = vmatmul.msk.bf16.gmra.mxu1 %vm546_vm2, %v8119_v14 }
 0x564   : > { %7179 = vmatmul.msk.bf16.gmra.mxu2 %vm546_vm2, %v8119_v14  ;;  %7211 = vmatmul.msk.bf16.gmra.mxu3 %vm546_vm2, %v8119_v14 }
 0x567   : > { %v10458_v39 = vpop.f32.mrf.mxu2  ;;  %v10460_v2 = vpop.f32.mrf.mxu3 }
 0x568   : > { %14932 = vst [vmem:[#allocation510_spill] sm:$0xff] %v10458_v39  ;;  %v10462_v17 = vpop.f32.mrf.mxu0  ;;  %v10464_v54 = vpop.f32.mrf.mxu1 }
 0x569   : > { %14933 = vst [vmem:[#allocation511_spill] sm:$0xff] %v10460_v2 }
 0x56a   : > { %14934 = vst [vmem:[#allocation512_spill] sm:$0xff] %v10462_v17 }
 0x56b   : > { %14935 = vst [vmem:[#allocation513_spill] sm:$0xff] %v10464_v54 }
 0x56f   : > { %v10466_v45 = vpop.f32.mrf.mxu2  ;;  %v10468_v47 = vpop.f32.mrf.mxu3 }
 0x570   : > { %14936 = vst [vmem:[#allocation514_spill] sm:$0xff] %v10466_v45  ;;  %v10470_v26 = vpop.f32.mrf.mxu0  ;;  %v10472_v52 = vpop.f32.mrf.mxu1 }
 0x571   : > { %14937 = vst [vmem:[#allocation515_spill] sm:$0xff] %v10468_v47 }
 0x572   : > { %14938 = vst [vmem:[#allocation516_spill] sm:$0xff] %v10470_v26  ;;  %v8121_v26 = vld [vmem:[%s8374_s26 + $0xa8] sm:$0xff] }
 0x573   : > { %14939 = vst [vmem:[#allocation517_spill] sm:$0xff] %v10472_v52  ;;  %7116 = vmatmul.msk.bf16.gmra.mxu0 %vm546_vm2, %v8120_v58  ;;  %7148 = vmatmul.msk.bf16.gmra.mxu1 %vm546_vm2, %v8120_v58 }
 0x574   : > { %7180 = vmatmul.msk.bf16.gmra.mxu2 %vm546_vm2, %v8120_v58  ;;  %7212 = vmatmul.msk.bf16.gmra.mxu3 %vm546_vm2, %v8120_v58 }
 0x577   : > { %v10479_v14 = vpop.f32.mrf.mxu2  ;;  %v10481_v2 = vpop.f32.mrf.mxu3 }
 0x578   : > { %14940 = vst [vmem:[#allocation518_spill] sm:$0xff] %v10479_v14  ;;  %v10483_v39 = vpop.f32.mrf.mxu0  ;;  %v10485_v47 = vpop.f32.mrf.mxu1 }
 0x579   : > { %14941 = vst [vmem:[#allocation519_spill] sm:$0xff] %v10481_v2 }
 0x57a   : > { %14942 = vst [vmem:[#allocation520_spill] sm:$0xff] %v10483_v39 }
 0x57b   : > { %14943 = vst [vmem:[#allocation521_spill] sm:$0xff] %v10485_v47 }
 0x57f   : > { %v10487_v45 = vpop.f32.mrf.mxu2  ;;  %v10489_v54 = vpop.f32.mrf.mxu3 }
 0x580   : > { %14944 = vst [vmem:[#allocation522_spill] sm:$0xff] %v10487_v45  ;;  %v10491_v52 = vpop.f32.mrf.mxu0  ;;  %v10493_v17 = vpop.f32.mrf.mxu1 }
 0x581   : > { %14945 = vst [vmem:[#allocation523_spill] sm:$0xff] %v10489_v54 }
 0x582   : > { %14946 = vst [vmem:[#allocation524_spill] sm:$0xff] %v10491_v52  ;;  %v8122_v52 = vld [vmem:[%s8374_s26 + $0xb0] sm:$0xff] }
 0x583   : > { %14947 = vst [vmem:[#allocation525_spill] sm:$0xff] %v10493_v17  ;;  %7117 = vmatmul.msk.bf16.gmra.mxu0 %vm546_vm2, %v8121_v26  ;;  %7149 = vmatmul.msk.bf16.gmra.mxu1 %vm546_vm2, %v8121_v26 }
 0x584   : > { %7181 = vmatmul.msk.bf16.gmra.mxu2 %vm546_vm2, %v8121_v26  ;;  %7213 = vmatmul.msk.bf16.gmra.mxu3 %vm546_vm2, %v8121_v26 }
 0x587   : > { %v10500_v58 = vpop.f32.mrf.mxu2  ;;  %v10502_v2 = vpop.f32.mrf.mxu3 }
 0x588   : > { %14948 = vst [vmem:[#allocation526_spill] sm:$0xff] %v10500_v58  ;;  %v10504_v14 = vpop.f32.mrf.mxu0  ;;  %v10506_v54 = vpop.f32.mrf.mxu1 }
 0x589   : > { %14949 = vst [vmem:[#allocation527_spill] sm:$0xff] %v10502_v2 }
 0x58a   : > { %14950 = vst [vmem:[#allocation528_spill] sm:$0xff] %v10504_v14 }
 0x58b   : > { %14951 = vst [vmem:[#allocation529_spill] sm:$0xff] %v10506_v54 }
 0x58f   : > { %v10508_v45 = vpop.f32.mrf.mxu2  ;;  %v10510_v47 = vpop.f32.mrf.mxu3 }
 0x590   : > { %14952 = vst [vmem:[#allocation530_spill] sm:$0xff] %v10508_v45  ;;  %v10512_v17 = vpop.f32.mrf.mxu0  ;;  %v10514_v39 = vpop.f32.mrf.mxu1 }
 0x591   : > { %14953 = vst [vmem:[#allocation531_spill] sm:$0xff] %v10510_v47 }
 0x592   : > { %14954 = vst [vmem:[#allocation532_spill] sm:$0xff] %v10512_v17  ;;  %v8123_v17 = vld [vmem:[%s8374_s26 + $0xb8] sm:$0xff] }
 0x593   : > { %14955 = vst [vmem:[#allocation533_spill] sm:$0xff] %v10514_v39  ;;  %7118 = vmatmul.msk.bf16.gmra.mxu0 %vm546_vm2, %v8122_v52  ;;  %7150 = vmatmul.msk.bf16.gmra.mxu1 %vm546_vm2, %v8122_v52 }
 0x594   : > { %7182 = vmatmul.msk.bf16.gmra.mxu2 %vm546_vm2, %v8122_v52  ;;  %7214 = vmatmul.msk.bf16.gmra.mxu3 %vm546_vm2, %v8122_v52 }
 0x597   : > { %v10521_v26 = vpop.f32.mrf.mxu2  ;;  %v10523_v2 = vpop.f32.mrf.mxu3 }
 0x598   : > { %14956 = vst [vmem:[#allocation534_spill] sm:$0xff] %v10521_v26  ;;  %v10525_v58 = vpop.f32.mrf.mxu0  ;;  %v10527_v47 = vpop.f32.mrf.mxu1 }
 0x599   : > { %14957 = vst [vmem:[#allocation535_spill] sm:$0xff] %v10523_v2 }
 0x59a   : > { %14958 = vst [vmem:[#allocation536_spill] sm:$0xff] %v10525_v58 }
 0x59b   : > { %14959 = vst [vmem:[#allocation537_spill] sm:$0xff] %v10527_v47 }
 0x59f   : > { %v10529_v45 = vpop.f32.mrf.mxu2  ;;  %v10531_v54 = vpop.f32.mrf.mxu3 }
 0x5a0   : > { %14960 = vst [vmem:[#allocation538_spill] sm:$0xff] %v10529_v45  ;;  %v10533_v39 = vpop.f32.mrf.mxu0  ;;  %v10535_v14 = vpop.f32.mrf.mxu1 }
 0x5a1   : > { %14961 = vst [vmem:[#allocation539_spill] sm:$0xff] %v10531_v54 }
 0x5a2   : > { %14962 = vst [vmem:[#allocation540_spill] sm:$0xff] %v10533_v39  ;;  %v8124_v39 = vld [vmem:[%s8374_s26 + $0xc0] sm:$0xff] }
 0x5a3   : > { %14963 = vst [vmem:[#allocation541_spill] sm:$0xff] %v10535_v14  ;;  %7119 = vmatmul.msk.bf16.gmra.mxu0 %vm546_vm2, %v8123_v17  ;;  %7151 = vmatmul.msk.bf16.gmra.mxu1 %vm546_vm2, %v8123_v17 }
 0x5a4   : > { %7183 = vmatmul.msk.bf16.gmra.mxu2 %vm546_vm2, %v8123_v17  ;;  %7215 = vmatmul.msk.bf16.gmra.mxu3 %vm546_vm2, %v8123_v17 }
 0x5a7   : > { %v10542_v52 = vpop.f32.mrf.mxu2  ;;  %v10544_v2 = vpop.f32.mrf.mxu3 }
 0x5a8   : > { %14964 = vst [vmem:[#allocation542_spill] sm:$0xff] %v10542_v52  ;;  %v10546_v26 = vpop.f32.mrf.mxu0  ;;  %v10548_v54 = vpop.f32.mrf.mxu1 }
 0x5a9   : > { %14965 = vst [vmem:[#allocation543_spill] sm:$0xff] %v10544_v2 }
 0x5aa   : > { %14966 = vst [vmem:[#allocation544_spill] sm:$0xff] %v10546_v26  ;;  %v8125_v26 = vld [vmem:[%s8374_s26 + $0xc8] sm:$0xff] }
 0x5ab   : > { %14967 = vst [vmem:[#allocation545_spill] sm:$0xff] %v10548_v54 }
 0x5af   : > { %v10550_v45 = vpop.f32.mrf.mxu2  ;;  %v10552_v47 = vpop.f32.mrf.mxu3 }
 0x5b0   : > { %14968 = vst [vmem:[#allocation546_spill] sm:$0xff] %v10550_v45  ;;  %v10554_v14 = vpop.f32.mrf.mxu0  ;;  %v10556_v58 = vpop.f32.mrf.mxu1 }
 0x5b1   : > { %14969 = vst [vmem:[#allocation547_spill] sm:$0xff] %v10552_v47 }
 0x5b2   : > { %14970 = vst [vmem:[#allocation548_spill] sm:$0xff] %v10554_v14 }
 0x5b3   : > { %14971 = vst [vmem:[#allocation549_spill] sm:$0xff] %v10556_v58  ;;  %7120 = vmatmul.msk.bf16.gmra.mxu0 %vm546_vm2, %v8124_v39  ;;  %7152 = vmatmul.msk.bf16.gmra.mxu1 %vm546_vm2, %v8124_v39 }
 0x5b4   : > { %7184 = vmatmul.msk.bf16.gmra.mxu2 %vm546_vm2, %v8124_v39  ;;  %7216 = vmatmul.msk.bf16.gmra.mxu3 %vm546_vm2, %v8124_v39 }
 0x5b7   : > { %v10563_v17 = vpop.f32.mrf.mxu2  ;;  %v10565_v2 = vpop.f32.mrf.mxu3 }
 0x5b8   : > { %14972 = vst [vmem:[#allocation550_spill] sm:$0xff] %v10563_v17  ;;  %v10567_v52 = vpop.f32.mrf.mxu0  ;;  %v10569_v47 = vpop.f32.mrf.mxu1 }
 0x5b9   : > { %14973 = vst [vmem:[#allocation551_spill] sm:$0xff] %v10565_v2 }
 0x5ba   : > { %14974 = vst [vmem:[#allocation552_spill] sm:$0xff] %v10567_v52 }
 0x5bb   : > { %14975 = vst [vmem:[#allocation553_spill] sm:$0xff] %v10569_v47 }
 0x5bf   : > { %v10571_v45 = vpop.f32.mrf.mxu2  ;;  %v10573_v58 = vpop.f32.mrf.mxu3 }
 0x5c0   : > { %14976 = vst [vmem:[#allocation554_spill] sm:$0xff] %v10571_v45  ;;  %v10575_v54 = vpop.f32.mrf.mxu0  ;;  %v10577_v14 = vpop.f32.mrf.mxu1 }
 0x5c1   : > { %14977 = vst [vmem:[#allocation555_spill] sm:$0xff] %v10573_v58 }
 0x5c2   : > { %14978 = vst [vmem:[#allocation556_spill] sm:$0xff] %v10575_v54  ;;  %v8126_v54 = vld [vmem:[%s8374_s26 + $0xd0] sm:$0xff] }
 0x5c3   : > { %14979 = vst [vmem:[#allocation557_spill] sm:$0xff] %v10577_v14  ;;  %7121 = vmatmul.msk.bf16.gmra.mxu0 %vm546_vm2, %v8125_v26  ;;  %7153 = vmatmul.msk.bf16.gmra.mxu1 %vm546_vm2, %v8125_v26 }
 0x5c4   : > { %7185 = vmatmul.msk.bf16.gmra.mxu2 %vm546_vm2, %v8125_v26  ;;  %7217 = vmatmul.msk.bf16.gmra.mxu3 %vm546_vm2, %v8125_v26 }
 0x5c7   : > { %v10584_v39 = vpop.f32.mrf.mxu2  ;;  %v10586_v2 = vpop.f32.mrf.mxu3 }
 0x5c8   : > { %14980 = vst [vmem:[#allocation558_spill] sm:$0xff] %v10584_v39  ;;  %v10588_v17 = vpop.f32.mrf.mxu0  ;;  %v10590_v58 = vpop.f32.mrf.mxu1 }
 0x5c9   : > { %14981 = vst [vmem:[#allocation559_spill] sm:$0xff] %v10586_v2 }
 0x5ca   : > { %14982 = vst [vmem:[#allocation560_spill] sm:$0xff] %v10588_v17 }
 0x5cb   : > { %14983 = vst [vmem:[#allocation561_spill] sm:$0xff] %v10590_v58 }
 0x5cf   : > { %v10592_v45 = vpop.f32.mrf.mxu2  ;;  %v10594_v47 = vpop.f32.mrf.mxu3 }
 0x5d0   : > { %14984 = vst [vmem:[#allocation562_spill] sm:$0xff] %v10592_v45  ;;  %v10596_v14 = vpop.f32.mrf.mxu0  ;;  %v10598_v52 = vpop.f32.mrf.mxu1 }
 0x5d1   : > { %14985 = vst [vmem:[#allocation563_spill] sm:$0xff] %v10594_v47 }
 0x5d2   : > { %14986 = vst [vmem:[#allocation564_spill] sm:$0xff] %v10596_v14  ;;  %v8127_v14 = vld [vmem:[%s8374_s26 + $0xd8] sm:$0xff] }
 0x5d3   : > { %14987 = vst [vmem:[#allocation565_spill] sm:$0xff] %v10598_v52  ;;  %7122 = vmatmul.msk.bf16.gmra.mxu0 %vm546_vm2, %v8126_v54  ;;  %7154 = vmatmul.msk.bf16.gmra.mxu1 %vm546_vm2, %v8126_v54 }
 0x5d4   : > { %7186 = vmatmul.msk.bf16.gmra.mxu2 %vm546_vm2, %v8126_v54  ;;  %7218 = vmatmul.msk.bf16.gmra.mxu3 %vm546_vm2, %v8126_v54 }
 0x5d7   : > { %v10605_v26 = vpop.f32.mrf.mxu2  ;;  %v10607_v2 = vpop.f32.mrf.mxu3 }
 0x5d8   : > { %14988 = vst [vmem:[#allocation566_spill] sm:$0xff] %v10605_v26  ;;  %v10609_v39 = vpop.f32.mrf.mxu0  ;;  %v10611_v47 = vpop.f32.mrf.mxu1 }
 0x5d9   : > { %14989 = vst [vmem:[#allocation567_spill] sm:$0xff] %v10607_v2 }
 0x5da   : > { %14990 = vst [vmem:[#allocation568_spill] sm:$0xff] %v10609_v39 }
 0x5db   : > { %14991 = vst [vmem:[#allocation569_spill] sm:$0xff] %v10611_v47 }
 0x5df   : > { %v10613_v45 = vpop.f32.mrf.mxu2  ;;  %v10615_v58 = vpop.f32.mrf.mxu3 }
 0x5e0   : > { %14992 = vst [vmem:[#allocation570_spill] sm:$0xff] %v10613_v45  ;;  %v10617_v52 = vpop.f32.mrf.mxu0  ;;  %v10619_v17 = vpop.f32.mrf.mxu1 }
 0x5e1   : > { %14993 = vst [vmem:[#allocation571_spill] sm:$0xff] %v10615_v58 }
 0x5e2   : > { %14994 = vst [vmem:[#allocation572_spill] sm:$0xff] %v10617_v52  ;;  %v8128_v52 = vld [vmem:[%s8374_s26 + $0xe0] sm:$0xff] }
 0x5e3   : > { %14995 = vst [vmem:[#allocation573_spill] sm:$0xff] %v10619_v17  ;;  %7123 = vmatmul.msk.bf16.gmra.mxu0 %vm546_vm2, %v8127_v14  ;;  %7155 = vmatmul.msk.bf16.gmra.mxu1 %vm546_vm2, %v8127_v14 }
 0x5e4   : > { %7187 = vmatmul.msk.bf16.gmra.mxu2 %vm546_vm2, %v8127_v14  ;;  %7219 = vmatmul.msk.bf16.gmra.mxu3 %vm546_vm2, %v8127_v14 }
 0x5e7   : > { %v10626_v54 = vpop.f32.mrf.mxu2  ;;  %v10628_v2 = vpop.f32.mrf.mxu3 }
 0x5e8   : > { %14996 = vst [vmem:[#allocation574_spill] sm:$0xff] %v10626_v54  ;;  %v10630_v26 = vpop.f32.mrf.mxu0  ;;  %v10632_v58 = vpop.f32.mrf.mxu1 }
 0x5e9   : > { %14997 = vst [vmem:[#allocation575_spill] sm:$0xff] %v10628_v2 }
 0x5ea   : > { %14998 = vst [vmem:[#allocation576_spill] sm:$0xff] %v10630_v26 }
 0x5eb   : > { %14999 = vst [vmem:[#allocation577_spill] sm:$0xff] %v10632_v58 }
 0x5ef   : > { %v10634_v45 = vpop.f32.mrf.mxu2  ;;  %v10636_v47 = vpop.f32.mrf.mxu3 }
 0x5f0   : > { %15000 = vst [vmem:[#allocation578_spill] sm:$0xff] %v10634_v45  ;;  %v10638_v17 = vpop.f32.mrf.mxu0  ;;  %v10640_v39 = vpop.f32.mrf.mxu1 }
 0x5f1   : > { %15001 = vst [vmem:[#allocation579_spill] sm:$0xff] %v10636_v47 }
 0x5f2   : > { %15002 = vst [vmem:[#allocation580_spill] sm:$0xff] %v10638_v17  ;;  %v8129_v17 = vld [vmem:[%s8374_s26 + $0xe8] sm:$0xff] }
 0x5f3   : > { %15003 = vst [vmem:[#allocation581_spill] sm:$0xff] %v10640_v39  ;;  %7124 = vmatmul.msk.bf16.gmra.mxu0 %vm546_vm2, %v8128_v52  ;;  %7156 = vmatmul.msk.bf16.gmra.mxu1 %vm546_vm2, %v8128_v52 }
 0x5f4   : > { %7188 = vmatmul.msk.bf16.gmra.mxu2 %vm546_vm2, %v8128_v52  ;;  %7220 = vmatmul.msk.bf16.gmra.mxu3 %vm546_vm2, %v8128_v52 }
 0x5f7   : > { %v10647_v14 = vpop.f32.mrf.mxu2  ;;  %v10649_v2 = vpop.f32.mrf.mxu3 }
 0x5f8   : > { %15004 = vst [vmem:[#allocation582_spill] sm:$0xff] %v10647_v14  ;;  %v10651_v54 = vpop.f32.mrf.mxu0  ;;  %v10653_v47 = vpop.f32.mrf.mxu1 }
 0x5f9   : > { %15005 = vst [vmem:[#allocation583_spill] sm:$0xff] %v10649_v2 }
 0x5fa   : > { %15006 = vst [vmem:[#allocation584_spill] sm:$0xff] %v10651_v54 }
 0x5fb   : > { %15007 = vst [vmem:[#allocation585_spill] sm:$0xff] %v10653_v47 }
 0x5ff   : > { %v10655_v45 = vpop.f32.mrf.mxu2  ;;  %v10657_v58 = vpop.f32.mrf.mxu3 }
 0x600   : > { %15008 = vst [vmem:[#allocation586_spill] sm:$0xff] %v10655_v45  ;;  %v10659_v39 = vpop.f32.mrf.mxu0  ;;  %v10661_v26 = vpop.f32.mrf.mxu1 }
 0x601   : > { %15009 = vst [vmem:[#allocation587_spill] sm:$0xff] %v10657_v58 }
 0x602   : > { %15010 = vst [vmem:[#allocation588_spill] sm:$0xff] %v10659_v39  ;;  %v8130_v39 = vld [vmem:[%s8374_s26 + $0xf0] sm:$0xff] }
 0x603   : > { %15011 = vst [vmem:[#allocation589_spill] sm:$0xff] %v10661_v26  ;;  %7125 = vmatmul.msk.bf16.gmra.mxu0 %vm546_vm2, %v8129_v17  ;;  %7157 = vmatmul.msk.bf16.gmra.mxu1 %vm546_vm2, %v8129_v17 }
 0x604   : > { %7189 = vmatmul.msk.bf16.gmra.mxu2 %vm546_vm2, %v8129_v17  ;;  %7221 = vmatmul.msk.bf16.gmra.mxu3 %vm546_vm2, %v8129_v17 }
 0x607   : > { %v10668_v52 = vpop.f32.mrf.mxu2  ;;  %v10670_v2 = vpop.f32.mrf.mxu3 }
 0x608   : > { %15012 = vst [vmem:[#allocation590_spill] sm:$0xff] %v10668_v52  ;;  %v10672_v14 = vpop.f32.mrf.mxu0  ;;  %v10674_v58 = vpop.f32.mrf.mxu1 }
 0x609   : > { %15013 = vst [vmem:[#allocation591_spill] sm:$0xff] %v10670_v2 }
 0x60a   : > { %15014 = vst [vmem:[#allocation592_spill] sm:$0xff] %v10672_v14 }
 0x60b   : > { %15015 = vst [vmem:[#allocation593_spill] sm:$0xff] %v10674_v58 }
 0x60f   : > { %v10676_v45 = vpop.f32.mrf.mxu2  ;;  %v10678_v47 = vpop.f32.mrf.mxu3 }
 0x610   : > { %15016 = vst [vmem:[#allocation594_spill] sm:$0xff] %v10676_v45  ;;  %v10680_v26 = vpop.f32.mrf.mxu0  ;;  %v10682_v54 = vpop.f32.mrf.mxu1 }
 0x611   : > { %15017 = vst [vmem:[#allocation595_spill] sm:$0xff] %v10678_v47 }
 0x612   : > { %15018 = vst [vmem:[#allocation596_spill] sm:$0xff] %v10680_v26  ;;  %v8131_v26 = vld [vmem:[%s8374_s26 + $0xf8] sm:$0xff] }
 0x613   : > { %15019 = vst [vmem:[#allocation597_spill] sm:$0xff] %v10682_v54  ;;  %7126 = vmatmul.msk.bf16.gmra.mxu0 %vm546_vm2, %v8130_v39  ;;  %7158 = vmatmul.msk.bf16.gmra.mxu1 %vm546_vm2, %v8130_v39 }
 0x614   : > { %7190 = vmatmul.msk.bf16.gmra.mxu2 %vm546_vm2, %v8130_v39  ;;  %7222 = vmatmul.msk.bf16.gmra.mxu3 %vm546_vm2, %v8130_v39 }
 0x617   : > { %v10689_v17 = vpop.f32.mrf.mxu2  ;;  %v10691_v2 = vpop.f32.mrf.mxu3 }
 0x618   : > { %15020 = vst [vmem:[#allocation598_spill] sm:$0xff] %v10689_v17  ;;  %v10693_v52 = vpop.f32.mrf.mxu0  ;;  %v10695_v47 = vpop.f32.mrf.mxu1 }
 0x619   : > { %15021 = vst [vmem:[#allocation599_spill] sm:$0xff] %v10691_v2 }
 0x61a   : > { %15022 = vst [vmem:[#allocation600_spill] sm:$0xff] %v10693_v52 }
 0x61b   : > { %15023 = vst [vmem:[#allocation601_spill] sm:$0xff] %v10695_v47 }
 0x61f   : > { %v10697_v45 = vpop.f32.mrf.mxu2  ;;  %v10699_v58 = vpop.f32.mrf.mxu3 }
 0x620   : > { %15024 = vst [vmem:[#allocation602_spill] sm:$0xff] %v10697_v45  ;;  %v10701_v54 = vpop.f32.mrf.mxu0  ;;  %v10703_v14 = vpop.f32.mrf.mxu1  ;;  %v8132_v45 = vld [vmem:[%s14350_s2] sm:$0xff] }
 0x621   : > { %15025 = vst [vmem:[#allocation603_spill] sm:$0xff] %v10699_v58  ;;  %v10721_v47 = vperm.slane %v8132_v45, 1 }
 0x622   : > { %15026 = vst [vmem:[#allocation604_spill] sm:$0xff] %v10701_v54  ;;  %v15033_v54 = vld [vmem:[#allocation115_spill] sm:$0xff] }
 0x623   : > { %15027 = vst [vmem:[#allocation605_spill] sm:$0xff] %v10703_v14  ;;  %7127 = vmatmul.msk.bf16.gmra.mxu0 %vm546_vm2, %v8131_v26  ;;  %7159 = vmatmul.msk.bf16.gmra.mxu1 %vm546_vm2, %v8131_v26  ;;  %v15032_v14 = vld [vmem:[#allocation59_spill] sm:$0xff]  ;;  %v1015_v28 = vadd.f32 %v15037_v16, %v10721_v47 }
 0x624   : > { %7191 = vmatmul.msk.bf16.gmra.mxu2 %vm546_vm2, %v8131_v26  ;;  %7223 = vmatmul.msk.bf16.gmra.mxu3 %vm546_vm2, %v8131_v26  ;;  %v895_v52 = vadd.f32 %v15032_v14, %v10721_v47  ;;  %v935_v26 = vadd.f32 %v15033_v54, %v10721_v47  ;;  %v15040_v14 = vld [vmem:[#allocation56_spill] sm:$0xff]  ;;  %v933_v54 = vadd.f32 %v15041_v62, %v10721_v47  ;;  %v15046_v62 = vld [vmem:[#allocation166_spill] sm:$0xff] }
 0x625   : > { %v893_v37 = vadd.f32 %v15040_v14, %v10721_v47  ;;  %v970_v14 = vadd.f32 %v15046_v62, %v10721_v47  ;;  %v4392_v53 = vmax.f32 %v1015_v28, 0.0  ;;  %v15051_v28 = vld [vmem:[#allocation219_spill] sm:$0xff] }
 0x626   : > { %v3624_v16 = vmax.f32 %v895_v52, 0.0  ;;  %v3864_v12 = vmax.f32 %v933_v54, 0.0 }
 0x627   : > { %v10710_v39 = vpop.f32.mrf.mxu2  ;;  %v10712_v2 = vpop.f32.mrf.mxu3 }
 0x628   : > { %15028 = vst [vmem:[#allocation606_spill] sm:$0xff] %v10710_v39  ;;  %v10714_v17 = vpop.f32.mrf.mxu0  ;;  %v10716_v58 = vpop.f32.mrf.mxu1 }
 0x629   : > { %15029 = vst [vmem:[#allocation607_spill] sm:$0xff] %v10712_v2 }
 0x62a   : > { %15030 = vst [vmem:[#allocation608_spill] sm:$0xff] %v10714_v17  ;;  %v15036_v17 = vld [vmem:[#allocation172_spill] sm:$0xff] }
 0x62b   : > { %15031 = vst [vmem:[#allocation609_spill] sm:$0xff] %v10716_v58  ;;  %v975_v58 = vadd.f32 %v15036_v17, %v10721_v47  ;;  %v15044_v17 = vld [vmem:[#allocation53_spill] sm:$0xff] }
 0x62c   : > { %v890_v46 = vadd.f32 %v15044_v17, %v10721_v47  ;;  %v15049_v17 = vld [vmem:[#allocation106_spill] sm:$0xff] }
 0x62d   : > { %v928_v3 = vadd.f32 %v15049_v17, %v10721_v47  ;;  %v925_v17 = vadd.f32 %v15053_v55, %v10721_v47 }
 0x62f   : > { %v10727_v39 = vpop.f32.mrf.mxu2  ;;  %v10729_v2 = vpop.f32.mrf.mxu3 }
 0x630   : > { %15034 = vst [vmem:[#allocation59_spill] sm:$0xff] %v10727_v39  ;;  %v10735_v42 = vpop.f32.mrf.mxu0  ;;  %v10737_v45 = vpop.f32.mrf.mxu1  ;;  %v15042_v39 = vld [vmem:[#allocation169_spill] sm:$0xff] }
 0x631   : > { %15035 = vst [vmem:[#allocation115_spill] sm:$0xff] %v10729_v2  ;;  %v973_v30 = vadd.f32 %v15042_v39, %v10721_v47  ;;  %v15043_v2 = vld [vmem:[#allocation225_spill] sm:$0xff]  ;;  %v4136_v39 = vmax.f32 %v975_v58, 0.0  ;;  %v15050_v58 = vld [vmem:[#allocation163_spill] sm:$0xff] }
 0x632   : > { %15038 = vst [vmem:[#allocation172_spill] sm:$0xff] %v10735_v42  ;;  %v1013_v11 = vadd.f32 %v15043_v2, %v10721_v47  ;;  %v15045_v42 = vld [vmem:[#allocation109_spill] sm:$0xff]  ;;  %v1010_v2 = vadd.f32 %v15047_v41, %v10721_v47  ;;  %v968_v62 = vadd.f32 %v15050_v58, %v10721_v47  ;;  %v1008_v41 = vadd.f32 %v15051_v28, %v10721_v47 }
 0x633   : > { %15039 = vst [vmem:[#allocation228_spill] sm:$0xff] %v10737_v45  ;;  %v930_v13 = vadd.f32 %v15045_v42, %v10721_v47  ;;  %v3880_v45 = vmax.f32 %v935_v26, 0.0  ;;  %7224 = vmatmul.msk.bf16.vlgmr.msrb.gmra.mxu0 %vm546_vm2, %v8133_v10  ;;  %7256 = vmatmul.msk.bf16.vlgmr.msrb.gmra.mxu1 %vm546_vm2, %v8133_v10  ;;  %v15048_v42 = vld [vmem:[#allocation50_spill] sm:$0xff]  ;;  %v3608_v26 = vmax.f32 %v893_v37, 0.0  ;;  %v4120_v0 = vmax.f32 %v973_v30, 0.0  ;;  %v15056_v30 = vld [vmem:[#allocation160_spill] sm:$0xff] }
 0x634   : > { %7288 = vmatmul.msk.bf16.vlgmr.msrb.gmra.mxu2 %vm546_vm2, %v8133_v10  ;;  %7320 = vmatmul.msk.bf16.vlgmr.msrb.gmra.mxu3 %vm546_vm2, %v8133_v10  ;;  %v888_v52 = vadd.f32 %v15048_v42, %v10721_v47  ;;  %v4376_v6 = vmax.f32 %v1013_v11, 0.0  ;;  %v15052_v10 = vld [vmem:[#allocation47_spill] sm:$0xff]  ;;  %v3592_v37 = vmax.f32 %v890_v46, 0.0  ;;  %v965_v58 = vadd.f32 %v15056_v30, %v10721_v47 }
 0x635   : > { %4489 = vmatpush.msrb.mxu0 %v3624_v16  ;;  %4509 = vmatpush.msrb.mxu1 %v3880_v45  ;;  %v885_v42 = vadd.f32 %v15052_v10, %v10721_v47  ;;  %v3848_v54 = vmax.f32 %v930_v13, 0.0  ;;  %v4104_v11 = vmax.f32 %v970_v14, 0.0  ;;  %v4360_v28 = vmax.f32 %v1010_v2, 0.0  ;;  %v15061_v10 = vld [vmem:[#allocation100_spill] sm:$0xff]  ;;  %v15062_v14 = vld [vmem:[#allocation157_spill] sm:$0xff] }
 0x636   : > { %4529 = vmatpush.msrb.mxu2 %v4136_v39  ;;  %4549 = vmatpush.msrb.mxu3 %v4392_v53  ;;  %v15057_v53 = vld [vmem:[#allocation216_spill] sm:$0xff]  ;;  %v963_v30 = vadd.f32 %v15062_v14, %v10721_v47  ;;  %v4088_v2 = vmax.f32 %v968_v62, 0.0  ;;  %v4072_v62 = vmax.f32 %v965_v58, 0.0  ;;  %v15067_v14 = vld [vmem:[#allocation210_spill] sm:$0xff] }
 0x637   : > { %4490 = vmatpush.msrb.mxu0 %v3608_v26  ;;  %4510 = vmatpush.msrb.mxu1 %v3864_v12  ;;  %v10772_v45 = vpop.f32.mrf.mxu2  ;;  %v10774_v16 = vpop.f32.mrf.mxu3  ;;  %v1005_v39 = vadd.f32 %v15057_v53, %v10721_v47  ;;  %v15060_v12 = vld [vmem:[#allocation44_spill] sm:$0xff]  ;;  %v3576_v26 = vmax.f32 %v888_v52, 0.0  ;;  %v4344_v53 = vmax.f32 %v1008_v41, 0.0  ;;  %v3560_v52 = vmax.f32 %v885_v42, 0.0 }
 0x638   : > { %15054 = vst [vmem:[#allocation56_spill] sm:$0xff] %v10772_v45  ;;  %4530 = vmatpush.msrb.mxu2 %v4120_v0  ;;  %4550 = vmatpush.msrb.mxu3 %v4376_v6  ;;  %v10780_v46 = vpop.f32.mrf.mxu0  ;;  %v10782_v55 = vpop.f32.mrf.mxu1  ;;  %v883_v13 = vadd.f32 %v15060_v12, %v10721_v47  ;;  %v3832_v45 = vmax.f32 %v928_v3, 0.0  ;;  %v15063_v6 = vld [vmem:[#allocation213_spill] sm:$0xff]  ;;  %v3816_v3 = vmax.f32 %v925_v17, 0.0  ;;  %v4056_v58 = vmax.f32 %v963_v30, 0.0 }
 0x639   : > { %15055 = vst [vmem:[#allocation112_spill] sm:$0xff] %v10774_v16  ;;  %v923_v16 = vadd.f32 %v15061_v10, %v10721_v47  ;;  %4491 = vmatpush.msrb.mxu0 %v3592_v37  ;;  %4511 = vmatpush.msrb.mxu1 %v3848_v54  ;;  %v1003_v0 = vadd.f32 %v15063_v6, %v10721_v47  ;;  %v15066_v37 = vld [vmem:[#allocation154_spill] sm:$0xff]  ;;  %v4328_v41 = vmax.f32 %v1005_v39, 0.0 }
 0x63a   : > { %15058 = vst [vmem:[#allocation169_spill] sm:$0xff] %v10780_v46  ;;  %4531 = vmatpush.msrb.mxu2 %v4104_v11  ;;  %4551 = vmatpush.msrb.mxu3 %v4360_v28  ;;  %v15065_v46 = vld [vmem:[#allocation97_spill] sm:$0xff]  ;;  %v960_v54 = vadd.f32 %v15066_v37, %v10721_v47  ;;  %v1000_v6 = vadd.f32 %v15067_v14, %v10721_v47  ;;  %v15068_v11 = vld [vmem:[#allocation38_spill] sm:$0xff]  ;;  %v3544_v42 = vmax.f32 %v883_v13, 0.0  ;;  %v15071_v37 = vld [vmem:[#allocation207_spill] sm:$0xff] }
 0x63b   : > { %15059 = vst [vmem:[#allocation225_spill] sm:$0xff] %v10782_v55  ;;  %v15064_v55 = vld [vmem:[#allocation41_spill] sm:$0xff]  ;;  %v920_v10 = vadd.f32 %v15065_v46, %v10721_v47  ;;  %4492 = vmatpush.msrb.mxu0 %v3576_v26  ;;  %4512 = vmatpush.msrb.mxu1 %v3832_v45  ;;  %v878_v28 = vadd.f32 %v15068_v11, %v10721_v47  ;;  %v3800_v17 = vmax.f32 %v923_v16, 0.0  ;;  %v15070_v45 = vld [vmem:[#allocation151_spill] sm:$0xff]  ;;  %v4312_v39 = vmax.f32 %v1003_v0, 0.0 }
 0x63c   : > { %v880_v12 = vadd.f32 %v15064_v55, %v10721_v47  ;;  %4532 = vmatpush.msrb.mxu2 %v4088_v2  ;;  %4552 = vmatpush.msrb.mxu3 %v4344_v53  ;;  %v15069_v55 = vld [vmem:[#allocation94_spill] sm:$0xff]  ;;  %v958_v26 = vadd.f32 %v15070_v45, %v10721_v47  ;;  %v998_v14 = vadd.f32 %v15071_v37, %v10721_v47  ;;  %v4040_v16 = vmax.f32 %v960_v54, 0.0  ;;  %v15076_v0 = vld [vmem:[#allocation35_spill] sm:$0xff] }
 0x63d   : > { %v918_v46 = vadd.f32 %v15069_v55, %v10721_v47  ;;  %4493 = vmatpush.msrb.mxu0 %v3560_v52  ;;  %4513 = vmatpush.msrb.mxu1 %v3816_v3  ;;  %v3784_v53 = vmax.f32 %v920_v10, 0.0  ;;  %v4296_v52 = vmax.f32 %v1000_v6, 0.0  ;;  %v15078_v55 = vld [vmem:[#allocation147_spill] sm:$0xff] }
 0x63e   : > { %4533 = vmatpush.msrb.mxu2 %v4072_v62  ;;  %4553 = vmatpush.msrb.mxu3 %v4328_v41  ;;  %v3528_v2 = vmax.f32 %v880_v12, 0.0  ;;  %v875_v62 = vadd.f32 %v15076_v0, %v10721_v47  ;;  %v3512_v41 = vmax.f32 %v878_v28, 0.0  ;;  %v15077_v12 = vld [vmem:[#allocation91_spill] sm:$0xff]  ;;  %v955_v54 = vadd.f32 %v15078_v55, %v10721_v47 }
 0x63f   : > { %4494 = vmatpush.msrb.mxu0 %v3544_v42  ;;  %4514 = vmatpush.msrb.mxu1 %v3800_v17  ;;  %v10808_v13 = vpop.f32.mrf.mxu2  ;;  %v10810_v11 = vpop.f32.mrf.mxu3  ;;  %v915_v10 = vadd.f32 %v15077_v12, %v10721_v47  ;;  %v3768_v42 = vmax.f32 %v918_v46, 0.0  ;;  %v4024_v6 = vmax.f32 %v958_v26, 0.0  ;;  %v15079_v17 = vld [vmem:[#allocation204_spill] sm:$0xff]  ;;  %v15080_v37 = vld [vmem:[#allocation31_spill] sm:$0xff] }
 0x640   : > { %15072 = vst [vmem:[#allocation53_spill] sm:$0xff] %v10808_v13  ;;  %4534 = vmatpush.msrb.mxu2 %v4056_v58  ;;  %4554 = vmatpush.msrb.mxu3 %v4312_v39  ;;  %v10812_v3 = vpop.f32.mrf.mxu0  ;;  %v10814_v30 = vpop.f32.mrf.mxu1  ;;  %v995_v45 = vadd.f32 %v15079_v17, %v10721_v47  ;;  %v4280_v58 = vmax.f32 %v998_v14, 0.0  ;;  %v873_v28 = vadd.f32 %v15080_v37, %v10721_v47  ;;  %v15081_v39 = vld [vmem:[#allocation87_spill] sm:$0xff]  ;;  %v15083_v26 = vld [vmem:[#allocation200_spill] sm:$0xff] }
 0x641   : > { %15073 = vst [vmem:[#allocation109_spill] sm:$0xff] %v10810_v11  ;;  %4495 = vmatpush.msrb.mxu0 %v3528_v2  ;;  %4515 = vmatpush.msrb.mxu1 %v3784_v53  ;;  %v913_v0 = vadd.f32 %v15081_v39, %v10721_v47  ;;  %v15082_v46 = vld [vmem:[#allocation143_spill] sm:$0xff]  ;;  %v993_v53 = vadd.f32 %v15083_v26, %v10721_v47  ;;  %v3752_v17 = vmax.f32 %v915_v10, 0.0  ;;  %v4008_v39 = vmax.f32 %v955_v54, 0.0 }
 0x642   : > { %15074 = vst [vmem:[#allocation166_spill] sm:$0xff] %v10812_v3  ;;  %4535 = vmatpush.msrb.mxu2 %v4040_v16  ;;  %4555 = vmatpush.msrb.mxu3 %v4296_v52  ;;  %v953_v2 = vadd.f32 %v15082_v46, %v10721_v47  ;;  %v15084_v14 = vld [vmem:[#allocation27_spill] sm:$0xff]  ;;  %v3496_v52 = vmax.f32 %v875_v62, 0.0  ;;  %v4264_v46 = vmax.f32 %v995_v45, 0.0  ;;  %v3480_v26 = vmax.f32 %v873_v28, 0.0 }
 0x643   : > { %15075 = vst [vmem:[#allocation222_spill] sm:$0xff] %v10814_v30  ;;  %4496 = vmatpush.msrb.mxu0 %v3512_v41  ;;  %4516 = vmatpush.msrb.mxu1 %v3768_v42  ;;  %v870_v16 = vadd.f32 %v15084_v14, %v10721_v47  ;;  %v15085_v12 = vld [vmem:[#allocation83_spill] sm:$0xff]  ;;  %v3736_v11 = vmax.f32 %v913_v0, 0.0  ;;  %v4248_v3 = vmax.f32 %v993_v53, 0.0 }
 0x644   : > { %4536 = vmatpush.msrb.mxu2 %v4024_v6  ;;  %4556 = vmatpush.msrb.mxu3 %v4280_v58  ;;  %v910_v55 = vadd.f32 %v15085_v12, %v10721_v47  ;;  %v8134_v37 = vld [vmem:[%s8374_s26 + $0x8] sm:$0xff]  ;;  %v3992_v13 = vmax.f32 %v953_v2, 0.0 }
 0x645   : > { %7225 = vmatmul.msk.bf16.gmra.mxu0 %vm546_vm2, %v8134_v37  ;;  %7257 = vmatmul.msk.bf16.gmra.mxu1 %vm546_vm2, %v8134_v37  ;;  %v15086_v41 = vld [vmem:[#allocation139_spill] sm:$0xff]  ;;  %v15087_v6 = vld [vmem:[#allocation196_spill] sm:$0xff] }
 0x646   : > { %v950_v42 = vadd.f32 %v15086_v41, %v10721_v47  ;;  %v990_v58 = vadd.f32 %v15087_v6, %v10721_v47  ;;  %7289 = vmatmul.msk.bf16.gmra.mxu2 %vm546_vm2, %v8134_v37  ;;  %7321 = vmatmul.msk.bf16.gmra.mxu3 %vm546_vm2, %v8134_v37  ;;  %v15088_v62 = vld [vmem:[#allocation23_spill] sm:$0xff]  ;;  %v15093_v37 = vld [vmem:[#allocation192_spill] sm:$0xff] }
 0x647   : > { %v868_v10 = vadd.f32 %v15088_v62, %v10721_v47  ;;  %v15089_v14 = vld [vmem:[#allocation79_spill] sm:$0xff]  ;;  %4497 = vmatpush.msrb.mxu0 %v3496_v52  ;;  %4517 = vmatpush.msrb.mxu1 %v3752_v17  ;;  %v10849_v41 = vpop.f32.mrf.mxu2  ;;  %v10851_v54 = vpop.f32.mrf.mxu3  ;;  %v988_v30 = vadd.f32 %v15093_v37, %v10721_v47  ;;  %v3464_v17 = vmax.f32 %v870_v16, 0.0 }
 0x648   : > { %v908_v12 = vadd.f32 %v15089_v14, %v10721_v47  ;;  %15090 = vst [vmem:[#allocation50_spill] sm:$0xff] %v10849_v41  ;;  %v15092_v45 = vld [vmem:[#allocation135_spill] sm:$0xff]  ;;  %4537 = vmatpush.msrb.mxu2 %v4008_v39  ;;  %4557 = vmatpush.msrb.mxu3 %v4264_v46  ;;  %v10857_v28 = vpop.f32.mrf.mxu0  ;;  %v10859_v62 = vpop.f32.mrf.mxu1  ;;  %v3720_v41 = vmax.f32 %v910_v55, 0.0  ;;  %v3976_v53 = vmax.f32 %v950_v42, 0.0  ;;  %v15099_v39 = vld [vmem:[#allocation188_spill] sm:$0xff]  ;;  %v4232_v37 = vmax.f32 %v990_v58, 0.0 }
 0x649   : > { %15091 = vst [vmem:[#allocation106_spill] sm:$0xff] %v10851_v54  ;;  %v948_v6 = vadd.f32 %v15092_v45, %v10721_v47  ;;  %v15096_v0 = vld [vmem:[#allocation19_spill] sm:$0xff]  ;;  %4498 = vmatpush.msrb.mxu0 %v3480_v26  ;;  %4518 = vmatpush.msrb.mxu1 %v3736_v11  ;;  %v985_v46 = vadd.f32 %v15099_v39, %v10721_v47  ;;  %v3448_v16 = vmax.f32 %v868_v10, 0.0  ;;  %v4216_v58 = vmax.f32 %v988_v30, 0.0 }
 0x64a   : > { %15094 = vst [vmem:[#allocation163_spill] sm:$0xff] %v10857_v28  ;;  %v865_v52 = vadd.f32 %v15096_v0, %v10721_v47  ;;  %v15097_v14 = vld [vmem:[#allocation75_spill] sm:$0xff]  ;;  %4538 = vmatpush.msrb.mxu2 %v3992_v13  ;;  %4558 = vmatpush.msrb.mxu3 %v4248_v3  ;;  %v3704_v55 = vmax.f32 %v908_v12, 0.0 }
 0x64b   : > { %15095 = vst [vmem:[#allocation219_spill] sm:$0xff] %v10859_v62  ;;  %v905_v54 = vadd.f32 %v15097_v14, %v10721_v47  ;;  %v15098_v2 = vld [vmem:[#allocation131_spill] sm:$0xff]  ;;  %4499 = vmatpush.msrb.mxu0 %v3464_v17  ;;  %4519 = vmatpush.msrb.mxu1 %v3720_v41  ;;  %v3960_v42 = vmax.f32 %v948_v6, 0.0  ;;  %v4200_v30 = vmax.f32 %v985_v46, 0.0 }
 0x64c   : > { %v945_v45 = vadd.f32 %v15098_v2, %v10721_v47  ;;  %v15100_v62 = vld [vmem:[#allocation15_spill] sm:$0xff]  ;;  %v15103_v2 = vld [vmem:[#allocation184_spill] sm:$0xff]  ;;  %4539 = vmatpush.msrb.mxu2 %v3976_v53  ;;  %4559 = vmatpush.msrb.mxu3 %v4232_v37  ;;  %v3432_v10 = vmax.f32 %v865_v52, 0.0 }
 0x64d   : > { %v863_v0 = vadd.f32 %v15100_v62, %v10721_v47  ;;  %v15101_v28 = vld [vmem:[#allocation71_spill] sm:$0xff]  ;;  %v983_v39 = vadd.f32 %v15103_v2, %v10721_v47  ;;  %v3688_v12 = vmax.f32 %v905_v54, 0.0  ;;  %4500 = vmatpush.msrb.mxu0 %v3448_v16  ;;  %4520 = vmatpush.msrb.mxu1 %v3704_v55 }
 0x64e   : > { %v903_v14 = vadd.f32 %v15101_v28, %v10721_v47  ;;  %v15102_v11 = vld [vmem:[#allocation127_spill] sm:$0xff]  ;;  %v3944_v6 = vmax.f32 %v945_v45, 0.0  ;;  %4540 = vmatpush.msrb.mxu2 %v3960_v42  ;;  %4560 = vmatpush.msrb.mxu3 %v4216_v58  ;;  %v15113_v42 = vld [vmem:[#allocation176_spill] sm:$0xff] }
 0x64f   : > { %v943_v26 = vadd.f32 %v15102_v11, %v10721_v47  ;;  %v15104_v13 = vld [vmem:[#allocation11_spill] sm:$0xff]  ;;  %v15107_v11 = vld [vmem:[#allocation180_spill] sm:$0xff]  ;;  %v3416_v52 = vmax.f32 %v863_v0, 0.0  ;;  %4501 = vmatpush.msrb.mxu0 %v3432_v10  ;;  %4521 = vmatpush.msrb.mxu1 %v3688_v12  ;;  %v10889_v16 = vpop.f32.mrf.mxu2  ;;  %v10891_v55 = vpop.f32.mrf.mxu3  ;;  %v978_v58 = vadd.f32 %v15113_v42, %v10721_v47 }
 0x650   : > { %v860_v3 = vadd.f32 %v15104_v13, %v10721_v47  ;;  %v15105_v62 = vld [vmem:[#allocation67_spill] sm:$0xff]  ;;  %v980_v2 = vadd.f32 %v15107_v11, %v10721_v47  ;;  %v3672_v54 = vmax.f32 %v903_v14, 0.0  ;;  %15110 = vst [vmem:[#allocation47_spill] sm:$0xff] %v10889_v16  ;;  %v4184_v11 = vmax.f32 %v983_v39, 0.0  ;;  %4541 = vmatpush.msrb.mxu2 %v3944_v6  ;;  %4561 = vmatpush.msrb.mxu3 %v4200_v30  ;;  %v10897_v0 = vpop.f32.mrf.mxu0 }
 0x651   : > { %v900_v28 = vadd.f32 %v15105_v62, %v10721_v47  ;;  %v15106_v41 = vld [vmem:[#allocation123_spill] sm:$0xff]  ;;  %15111 = vst [vmem:[#allocation103_spill] sm:$0xff] %v10891_v55  ;;  %v3928_v46 = vmax.f32 %v943_v26, 0.0  ;;  %4502 = vmatpush.msrb.mxu0 %v3416_v52  ;;  %v4152_v39 = vmax.f32 %v978_v58, 0.0 }
 0x652   : > { %v940_v17 = vadd.f32 %v15106_v41, %v10721_v47  ;;  %v15108_v53 = vld [vmem:[#allocation7_spill] sm:$0xff]  ;;  %15114 = vst [vmem:[#allocation160_spill] sm:$0xff] %v10897_v0  ;;  %v3400_v14 = vmax.f32 %v860_v3, 0.0  ;;  %4522 = vmatpush.msrb.mxu1 %v3672_v54  ;;  %4562 = vmatpush.msrb.mxu3 %v4184_v11  ;;  %v8135_v3 = vld [vmem:[%s8374_s26 + $0x10] sm:$0xff]  ;;  %v8136_v54 = vld [vmem:[%s8374_s26 + $0x18] sm:$0xff] }
 0x653   : > { %v858_v37 = vadd.f32 %v15108_v53, %v10721_v47  ;;  %v15109_v13 = vld [vmem:[#allocation63_spill] sm:$0xff]  ;;  %v10899_v53 = vpop.f32.mrf.mxu1  ;;  %v3656_v10 = vmax.f32 %v900_v28, 0.0  ;;  %4542 = vmatpush.msrb.mxu2 %v3928_v46 }
 0x654   : > { %v898_v62 = vadd.f32 %v15109_v13, %v10721_v47  ;;  %v15112_v45 = vld [vmem:[#allocation119_spill] sm:$0xff]  ;;  %15115 = vst [vmem:[#allocation216_spill] sm:$0xff] %v10899_v53  ;;  %v3912_v12 = vmax.f32 %v940_v17, 0.0  ;;  %v4168_v13 = vmax.f32 %v980_v2, 0.0  ;;  %4503 = vmatpush.msrb.mxu0 %v3400_v14 }
 0x655   : > { %v938_v41 = vadd.f32 %v15112_v45, %v10721_v47  ;;  %v3384_v26 = vmax.f32 %v858_v37, 0.0  ;;  %4523 = vmatpush.msrb.mxu1 %v3656_v10  ;;  %7226 = vmatmul.msk.bf16.gmra.mxu0 %vm546_vm2, %v8135_v3 }
 0x656   : > { %v3640_v45 = vmax.f32 %v898_v62, 0.0  ;;  %4543 = vmatpush.msrb.mxu2 %v3912_v12  ;;  %4563 = vmatpush.msrb.mxu3 %v4168_v13  ;;  %v8137_v13 = vld [vmem:[%s8374_s26 + $0x20] sm:$0xff] }
 0x657   : > { %v3896_v47 = vmax.f32 %v938_v41, 0.0  ;;  %4504 = vmatpush.msrb.mxu0 %v3384_v26  ;;  %7258 = vmatmul.msk.bf16.gmra.mxu1 %vm546_vm2, %v8135_v3  ;;  %v10904_v28 = vpop.f32.mrf.mxu2  ;;  %v10906_v17 = vpop.f32.mrf.mxu3 }
 0x658   : > { %4524 = vmatpush.msrb.mxu1 %v3640_v45  ;;  %4564 = vmatpush.msrb.mxu3 %v4152_v39  ;;  %15116 = vst [vmem:[#allocation44_spill] sm:$0xff] %v10904_v28  ;;  %v10910_v6 = vpop.f32.mrf.mxu0 }
 0x659   : > { %4544 = vmatpush.msrb.mxu2 %v3896_v47  ;;  %15117 = vst [vmem:[#allocation100_spill] sm:$0xff] %v10906_v17  ;;  %7322 = vmatmul.msk.bf16.gmra.mxu3 %vm546_vm2, %v8135_v3 }
 0x65a   : > { %7290 = vmatmul.msk.bf16.gmra.mxu2 %vm546_vm2, %v8135_v3  ;;  %15118 = vst [vmem:[#allocation157_spill] sm:$0xff] %v10910_v6 }
 0x65b   : > { %v10912_v2 = vpop.f32.mrf.mxu1 }
 0x65c   : > { %15119 = vst [vmem:[#allocation213_spill] sm:$0xff] %v10912_v2 }
 0x65f   : > { %v10914_v30 = vpop.f32.mrf.mxu2  ;;  %v10916_v37 = vpop.f32.mrf.mxu3 }
 0x660   : > { %15120 = vst [vmem:[#allocation41_spill] sm:$0xff] %v10914_v30  ;;  %v10918_v52 = vpop.f32.mrf.mxu0 }
 0x661   : > { %15121 = vst [vmem:[#allocation97_spill] sm:$0xff] %v10916_v37  ;;  %v8138_v37 = vld [vmem:[%s8374_s26 + $0x28] sm:$0xff] }
 0x662   : > { %15122 = vst [vmem:[#allocation154_spill] sm:$0xff] %v10918_v52 }
 0x663   : > { %v10920_v62 = vpop.f32.mrf.mxu1 }
 0x664   : > { %15123 = vst [vmem:[#allocation210_spill] sm:$0xff] %v10920_v62 }
 0x665   : > { %7227 = vmatmul.msk.bf16.gmra.mxu0 %vm546_vm2, %v8136_v54 }
 0x667   : > { %7259 = vmatmul.msk.bf16.gmra.mxu1 %vm546_vm2, %v8136_v54  ;;  %v10925_v41 = vpop.f32.mrf.mxu2  ;;  %v10927_v46 = vpop.f32.mrf.mxu3 }
 0x668   : > { %15124 = vst [vmem:[#allocation38_spill] sm:$0xff] %v10925_v41  ;;  %v10931_v42 = vpop.f32.mrf.mxu0  ;;  %v8139_v41 = vld [vmem:[%s8374_s26 + $0x30] sm:$0xff] }
 0x669   : > { %15125 = vst [vmem:[#allocation94_spill] sm:$0xff] %v10927_v46  ;;  %7323 = vmatmul.msk.bf16.gmra.mxu3 %vm546_vm2, %v8136_v54 }
 0x66a   : > { %7291 = vmatmul.msk.bf16.gmra.mxu2 %vm546_vm2, %v8136_v54  ;;  %15126 = vst [vmem:[#allocation151_spill] sm:$0xff] %v10931_v42 }
 0x66b   : > { %v10933_v58 = vpop.f32.mrf.mxu1 }
 0x66c   : > { %15127 = vst [vmem:[#allocation207_spill] sm:$0xff] %v10933_v58 }
 0x66f   : > { %v10935_v11 = vpop.f32.mrf.mxu2  ;;  %v10937_v14 = vpop.f32.mrf.mxu3 }
 0x670   : > { %15128 = vst [vmem:[#allocation35_spill] sm:$0xff] %v10935_v11  ;;  %v10939_v10 = vpop.f32.mrf.mxu0 }
 0x671   : > { %15129 = vst [vmem:[#allocation91_spill] sm:$0xff] %v10937_v14 }
 0x672   : > { %15130 = vst [vmem:[#allocation147_spill] sm:$0xff] %v10939_v10 }
 0x673   : > { %v10941_v12 = vpop.f32.mrf.mxu1 }
 0x674   : > { %15131 = vst [vmem:[#allocation204_spill] sm:$0xff] %v10941_v12 }
 0x675   : > { %7228 = vmatmul.msk.bf16.gmra.mxu0 %vm546_vm2, %v8137_v13 }
 0x677   : > { %7260 = vmatmul.msk.bf16.gmra.mxu1 %vm546_vm2, %v8137_v13  ;;  %v10946_v26 = vpop.f32.mrf.mxu2  ;;  %v10948_v45 = vpop.f32.mrf.mxu3 }
 0x678   : > { %15132 = vst [vmem:[#allocation31_spill] sm:$0xff] %v10946_v26  ;;  %v10952_v47 = vpop.f32.mrf.mxu0 }
 0x679   : > { %15133 = vst [vmem:[#allocation87_spill] sm:$0xff] %v10948_v45  ;;  %7324 = vmatmul.msk.bf16.gmra.mxu3 %vm546_vm2, %v8137_v13 }
 0x67a   : > { %7292 = vmatmul.msk.bf16.gmra.mxu2 %vm546_vm2, %v8137_v13  ;;  %15134 = vst [vmem:[#allocation143_spill] sm:$0xff] %v10952_v47 }
 0x67b   : > { %v10954_v39 = vpop.f32.mrf.mxu1 }
 0x67c   : > { %15135 = vst [vmem:[#allocation200_spill] sm:$0xff] %v10954_v39 }
 0x67f   : > { %v10956_v3 = vpop.f32.mrf.mxu2  ;;  %v10958_v54 = vpop.f32.mrf.mxu3 }
 0x680   : > { %15136 = vst [vmem:[#allocation27_spill] sm:$0xff] %v10956_v3  ;;  %v10960_v55 = vpop.f32.mrf.mxu0 }
 0x681   : > { %15137 = vst [vmem:[#allocation83_spill] sm:$0xff] %v10958_v54 }
 0x682   : > { %15138 = vst [vmem:[#allocation139_spill] sm:$0xff] %v10960_v55 }
 0x683   : > { %v10962_v17 = vpop.f32.mrf.mxu1 }
 0x684   : > { %15139 = vst [vmem:[#allocation196_spill] sm:$0xff] %v10962_v17  ;;  %v8143_v17 = vld [vmem:[%s8374_s26 + $0x50] sm:$0xff] }
 0x685   : > { %7229 = vmatmul.msk.bf16.gmra.mxu0 %vm546_vm2, %v8138_v37 }
 0x687   : > { %7261 = vmatmul.msk.bf16.gmra.mxu1 %vm546_vm2, %v8138_v37  ;;  %v10967_v46 = vpop.f32.mrf.mxu2  ;;  %v10969_v13 = vpop.f32.mrf.mxu3 }
 0x688   : > { %15140 = vst [vmem:[#allocation23_spill] sm:$0xff] %v10967_v46  ;;  %v10973_v14 = vpop.f32.mrf.mxu0 }
 0x689   : > { %15141 = vst [vmem:[#allocation79_spill] sm:$0xff] %v10969_v13  ;;  %7325 = vmatmul.msk.bf16.gmra.mxu3 %vm546_vm2, %v8138_v37 }
 0x68a   : > { %7293 = vmatmul.msk.bf16.gmra.mxu2 %vm546_vm2, %v8138_v37  ;;  %15142 = vst [vmem:[#allocation135_spill] sm:$0xff] %v10973_v14 }
 0x68b   : > { %v10975_v45 = vpop.f32.mrf.mxu1 }
 0x68c   : > { %15143 = vst [vmem:[#allocation192_spill] sm:$0xff] %v10975_v45  ;;  %v15326_v45 = vld [vmem:[#allocation57_spill] sm:$0xff] }
 0x68f   : > { %v10977_v54 = vpop.f32.mrf.mxu2  ;;  %v10979_v16 = vpop.f32.mrf.mxu3 }
 0x690   : > { %15144 = vst [vmem:[#allocation19_spill] sm:$0xff] %v10977_v54  ;;  %v10981_v28 = vpop.f32.mrf.mxu0 }
 0x691   : > { %15145 = vst [vmem:[#allocation75_spill] sm:$0xff] %v10979_v16 }
 0x692   : > { %15146 = vst [vmem:[#allocation131_spill] sm:$0xff] %v10981_v28 }
 0x693   : > { %v10983_v30 = vpop.f32.mrf.mxu1 }
 0x694   : > { %15147 = vst [vmem:[#allocation188_spill] sm:$0xff] %v10983_v30 }
 0x695   : > { %7230 = vmatmul.msk.bf16.gmra.mxu0 %vm546_vm2, %v8139_v41 }
 0x697   : > { %7262 = vmatmul.msk.bf16.gmra.mxu1 %vm546_vm2, %v8139_v41  ;;  %v10988_v13 = vpop.f32.mrf.mxu2  ;;  %v10990_v37 = vpop.f32.mrf.mxu3 }
 0x698   : > { %15148 = vst [vmem:[#allocation15_spill] sm:$0xff] %v10988_v13  ;;  %v10994_v11 = vpop.f32.mrf.mxu0  ;;  %v8140_v13 = vld [vmem:[%s8374_s26 + $0x38] sm:$0xff] }
 0x699   : > { %15149 = vst [vmem:[#allocation71_spill] sm:$0xff] %v10990_v37  ;;  %7326 = vmatmul.msk.bf16.gmra.mxu3 %vm546_vm2, %v8139_v41 }
 0x69a   : > { %7294 = vmatmul.msk.bf16.gmra.mxu2 %vm546_vm2, %v8139_v41  ;;  %15150 = vst [vmem:[#allocation127_spill] sm:$0xff] %v10994_v11 }
 0x69b   : > { %v10996_v16 = vpop.f32.mrf.mxu1 }
 0x69c   : > { %15151 = vst [vmem:[#allocation184_spill] sm:$0xff] %v10996_v16  ;;  %v15327_v16 = vld [vmem:[#allocation113_spill] sm:$0xff] }
 0x69f   : > { %v10998_v26 = vpop.f32.mrf.mxu2  ;;  %v11000_v3 = vpop.f32.mrf.mxu3 }
 0x6a0   : > { %15152 = vst [vmem:[#allocation11_spill] sm:$0xff] %v10998_v26  ;;  %v11002_v46 = vpop.f32.mrf.mxu0 }
 0x6a1   : > { %15153 = vst [vmem:[#allocation67_spill] sm:$0xff] %v11000_v3 }
 0x6a2   : > { %15154 = vst [vmem:[#allocation123_spill] sm:$0xff] %v11002_v46 }
 0x6a3   : > { %v11004_v54 = vpop.f32.mrf.mxu1 }
 0x6a4   : > { %15155 = vst [vmem:[#allocation180_spill] sm:$0xff] %v11004_v54 }
 0x6a5   : > { %7231 = vmatmul.msk.bf16.gmra.mxu0 %vm546_vm2, %v8140_v13 }
 0x6a7   : > { %7263 = vmatmul.msk.bf16.gmra.mxu1 %vm546_vm2, %v8140_v13  ;;  %v11009_v37 = vpop.f32.mrf.mxu2  ;;  %v11011_v41 = vpop.f32.mrf.mxu3 }
 0x6a8   : > { %15156 = vst [vmem:[#allocation7_spill] sm:$0xff] %v11009_v37  ;;  %v11015_v26 = vpop.f32.mrf.mxu0  ;;  %v8141_v37 = vld [vmem:[%s8374_s26 + $0x40] sm:$0xff] }
 0x6a9   : > { %15157 = vst [vmem:[#allocation63_spill] sm:$0xff] %v11011_v41  ;;  %7327 = vmatmul.msk.bf16.gmra.mxu3 %vm546_vm2, %v8140_v13 }
 0x6aa   : > { %7295 = vmatmul.msk.bf16.gmra.mxu2 %vm546_vm2, %v8140_v13  ;;  %15158 = vst [vmem:[#allocation119_spill] sm:$0xff] %v11015_v26 }
 0x6ab   : > { %v11017_v3 = vpop.f32.mrf.mxu1 }
 0x6ac   : > { %15159 = vst [vmem:[#allocation176_spill] sm:$0xff] %v11017_v3  ;;  %v15328_v3 = vld [vmem:[#allocation170_spill] sm:$0xff] }
 0x6af   : > { %v11019_v53 = vpop.f32.mrf.mxu2  ;;  %v11021_v2 = vpop.f32.mrf.mxu3 }
 0x6b0   : > { %15160 = vst [vmem:[#allocation610_spill] sm:$0xff] %v11019_v53  ;;  %v11023_v62 = vpop.f32.mrf.mxu0 }
 0x6b1   : > { %15161 = vst [vmem:[#allocation611_spill] sm:$0xff] %v11021_v2 }
 0x6b2   : > { %15162 = vst [vmem:[#allocation612_spill] sm:$0xff] %v11023_v62 }
 0x6b3   : > { %v11025_v58 = vpop.f32.mrf.mxu1 }
 0x6b4   : > { %15163 = vst [vmem:[#allocation613_spill] sm:$0xff] %v11025_v58 }
 0x6b5   : > { %7232 = vmatmul.msk.bf16.gmra.mxu0 %vm546_vm2, %v8141_v37 }
 0x6b7   : > { %7264 = vmatmul.msk.bf16.gmra.mxu1 %vm546_vm2, %v8141_v37  ;;  %v11030_v41 = vpop.f32.mrf.mxu2  ;;  %v11032_v13 = vpop.f32.mrf.mxu3 }
 0x6b8   : > { %15164 = vst [vmem:[#allocation614_spill] sm:$0xff] %v11030_v41  ;;  %v11036_v53 = vpop.f32.mrf.mxu0  ;;  %v8142_v41 = vld [vmem:[%s8374_s26 + $0x48] sm:$0xff] }
 0x6b9   : > { %15165 = vst [vmem:[#allocation615_spill] sm:$0xff] %v11032_v13  ;;  %7328 = vmatmul.msk.bf16.gmra.mxu3 %vm546_vm2, %v8141_v37 }
 0x6ba   : > { %7296 = vmatmul.msk.bf16.gmra.mxu2 %vm546_vm2, %v8141_v37  ;;  %15166 = vst [vmem:[#allocation616_spill] sm:$0xff] %v11036_v53 }
 0x6bb   : > { %v11038_v2 = vpop.f32.mrf.mxu1 }
 0x6bc   : > { %15167 = vst [vmem:[#allocation617_spill] sm:$0xff] %v11038_v2 }
 0x6bf   : > { %v11040_v62 = vpop.f32.mrf.mxu2  ;;  %v11042_v58 = vpop.f32.mrf.mxu3 }
 0x6c0   : > { %15168 = vst [vmem:[#allocation618_spill] sm:$0xff] %v11040_v62 }
 0x6c1   : > { %15169 = vst [vmem:[#allocation619_spill] sm:$0xff] %v11042_v58 }
 0x6c2   : > { %v11044_v12 = vpop.f32.mrf.mxu0 }
 0x6c3   : > { %15170 = vst [vmem:[#allocation620_spill] sm:$0xff] %v11044_v12  ;;  %v11046_v39 = vpop.f32.mrf.mxu1 }
 0x6c4   : > { %15171 = vst [vmem:[#allocation621_spill] sm:$0xff] %v11046_v39 }
 0x6c5   : > { %7233 = vmatmul.msk.bf16.gmra.mxu0 %vm546_vm2, %v8142_v41 }
 0x6c7   : > { %7265 = vmatmul.msk.bf16.gmra.mxu1 %vm546_vm2, %v8142_v41 }
 0x6c9   : > { %7329 = vmatmul.msk.bf16.gmra.mxu3 %vm546_vm2, %v8142_v41  ;;  %v11053_v37 = vpop.f32.mrf.mxu2  ;;  %v11055_v13 = vpop.f32.mrf.mxu3 }
 0x6ca   : > { %7297 = vmatmul.msk.bf16.gmra.mxu2 %vm546_vm2, %v8142_v41  ;;  %15172 = vst [vmem:[#allocation622_spill] sm:$0xff] %v11053_v37  ;;  %v11057_v62 = vpop.f32.mrf.mxu0 }
 0x6cb   : > { %15173 = vst [vmem:[#allocation623_spill] sm:$0xff] %v11055_v13  ;;  %v11059_v58 = vpop.f32.mrf.mxu1 }
 0x6cc   : > { %15174 = vst [vmem:[#allocation624_spill] sm:$0xff] %v11057_v62 }
 0x6cd   : > { %15175 = vst [vmem:[#allocation625_spill] sm:$0xff] %v11059_v58 }
 0x6d1   : > { %v11061_v2 = vpop.f32.mrf.mxu2  ;;  %v11063_v39 = vpop.f32.mrf.mxu3 }
 0x6d2   : > { %15176 = vst [vmem:[#allocation626_spill] sm:$0xff] %v11061_v2  ;;  %v11065_v53 = vpop.f32.mrf.mxu0 }
 0x6d3   : > { %15177 = vst [vmem:[#allocation627_spill] sm:$0xff] %v11063_v39 }
 0x6d4   : > { %15178 = vst [vmem:[#allocation628_spill] sm:$0xff] %v11065_v53  ;;  %v11067_v12 = vpop.f32.mrf.mxu1  ;;  %v8144_v53 = vld [vmem:[%s8374_s26 + $0x58] sm:$0xff] }
 0x6d5   : > { %15179 = vst [vmem:[#allocation629_spill] sm:$0xff] %v11067_v12  ;;  %7234 = vmatmul.msk.bf16.gmra.mxu0 %vm546_vm2, %v8143_v17 }
 0x6d7   : > { %7266 = vmatmul.msk.bf16.gmra.mxu1 %vm546_vm2, %v8143_v17 }
 0x6d9   : > { %7330 = vmatmul.msk.bf16.gmra.mxu3 %vm546_vm2, %v8143_v17 }
 0x6da   : > { %7298 = vmatmul.msk.bf16.gmra.mxu2 %vm546_vm2, %v8143_v17  ;;  %v11078_v37 = vpop.f32.mrf.mxu0 }
 0x6db   : > { %15182 = vst [vmem:[#allocation632_spill] sm:$0xff] %v11078_v37 }
 0x6dc   : > { %v11076_v13 = vpop.f32.mrf.mxu3  ;;  %v11080_v39 = vpop.f32.mrf.mxu1 }
 0x6dd   : > { %v11074_v41 = vpop.f32.mrf.mxu2  ;;  %15181 = vst [vmem:[#allocation631_spill] sm:$0xff] %v11076_v13 }
 0x6de   : > { %15180 = vst [vmem:[#allocation630_spill] sm:$0xff] %v11074_v41 }
 0x6df   : > { %15183 = vst [vmem:[#allocation633_spill] sm:$0xff] %v11080_v39 }
 0x6e2   : > { %v11086_v12 = vpop.f32.mrf.mxu0 }
 0x6e3   : > { %15186 = vst [vmem:[#allocation636_spill] sm:$0xff] %v11086_v12  ;;  %v8145_v12 = vld [vmem:[%s8374_s26 + $0x60] sm:$0xff] }
 0x6e4   : > { %v11084_v58 = vpop.f32.mrf.mxu3  ;;  %v11088_v62 = vpop.f32.mrf.mxu1 }
 0x6e5   : > { %v11082_v2 = vpop.f32.mrf.mxu2  ;;  %15185 = vst [vmem:[#allocation635_spill] sm:$0xff] %v11084_v58  ;;  %7235 = vmatmul.msk.bf16.gmra.mxu0 %vm546_vm2, %v8144_v53 }
 0x6e6   : > { %15184 = vst [vmem:[#allocation634_spill] sm:$0xff] %v11082_v2 }
 0x6e7   : > { %15187 = vst [vmem:[#allocation637_spill] sm:$0xff] %v11088_v62  ;;  %7267 = vmatmul.msk.bf16.gmra.mxu1 %vm546_vm2, %v8144_v53 }
 0x6e9   : > { %7331 = vmatmul.msk.bf16.gmra.mxu3 %vm546_vm2, %v8144_v53 }
 0x6ea   : > { %7299 = vmatmul.msk.bf16.gmra.mxu2 %vm546_vm2, %v8144_v53  ;;  %v11099_v41 = vpop.f32.mrf.mxu0 }
 0x6eb   : > { %15190 = vst [vmem:[#allocation640_spill] sm:$0xff] %v11099_v41 }
 0x6ec   : > { %v11097_v13 = vpop.f32.mrf.mxu3  ;;  %v11101_v58 = vpop.f32.mrf.mxu1 }
 0x6ed   : > { %v11095_v17 = vpop.f32.mrf.mxu2  ;;  %15189 = vst [vmem:[#allocation639_spill] sm:$0xff] %v11097_v13 }
 0x6ee   : > { %15188 = vst [vmem:[#allocation638_spill] sm:$0xff] %v11095_v17 }
 0x6ef   : > { %15191 = vst [vmem:[#allocation641_spill] sm:$0xff] %v11101_v58 }
 0x6f2   : > { %v11107_v62 = vpop.f32.mrf.mxu0 }
 0x6f3   : > { %15194 = vst [vmem:[#allocation644_spill] sm:$0xff] %v11107_v62  ;;  %v8146_v62 = vld [vmem:[%s8374_s26 + $0x68] sm:$0xff] }
 0x6f4   : > { %v11105_v39 = vpop.f32.mrf.mxu3  ;;  %v11109_v37 = vpop.f32.mrf.mxu1 }
 0x6f5   : > { %v11103_v2 = vpop.f32.mrf.mxu2  ;;  %15193 = vst [vmem:[#allocation643_spill] sm:$0xff] %v11105_v39  ;;  %7236 = vmatmul.msk.bf16.gmra.mxu0 %vm546_vm2, %v8145_v12 }
 0x6f6   : > { %15192 = vst [vmem:[#allocation642_spill] sm:$0xff] %v11103_v2 }
 0x6f7   : > { %15195 = vst [vmem:[#allocation645_spill] sm:$0xff] %v11109_v37  ;;  %7268 = vmatmul.msk.bf16.gmra.mxu1 %vm546_vm2, %v8145_v12 }
 0x6f9   : > { %7332 = vmatmul.msk.bf16.gmra.mxu3 %vm546_vm2, %v8145_v12 }
 0x6fa   : > { %7300 = vmatmul.msk.bf16.gmra.mxu2 %vm546_vm2, %v8145_v12  ;;  %v11120_v17 = vpop.f32.mrf.mxu0 }
 0x6fb   : > { %15198 = vst [vmem:[#allocation648_spill] sm:$0xff] %v11120_v17 }
 0x6fc   : > { %v11118_v13 = vpop.f32.mrf.mxu3  ;;  %v11122_v39 = vpop.f32.mrf.mxu1 }
 0x6fd   : > { %v11116_v53 = vpop.f32.mrf.mxu2  ;;  %15197 = vst [vmem:[#allocation647_spill] sm:$0xff] %v11118_v13 }
 0x6fe   : > { %15196 = vst [vmem:[#allocation646_spill] sm:$0xff] %v11116_v53 }
 0x6ff   : > { %15199 = vst [vmem:[#allocation649_spill] sm:$0xff] %v11122_v39 }
 0x702   : > { %v11128_v37 = vpop.f32.mrf.mxu0 }
 0x703   : > { %15202 = vst [vmem:[#allocation652_spill] sm:$0xff] %v11128_v37  ;;  %v8148_v37 = vld [vmem:[%s8374_s26 + $0x78] sm:$0xff] }
 0x704   : > { %v11126_v58 = vpop.f32.mrf.mxu3  ;;  %v11130_v41 = vpop.f32.mrf.mxu1 }
 0x705   : > { %v11124_v2 = vpop.f32.mrf.mxu2  ;;  %15201 = vst [vmem:[#allocation651_spill] sm:$0xff] %v11126_v58  ;;  %7237 = vmatmul.msk.bf16.gmra.mxu0 %vm546_vm2, %v8146_v62 }
 0x706   : > { %15200 = vst [vmem:[#allocation650_spill] sm:$0xff] %v11124_v2 }
 0x707   : > { %15203 = vst [vmem:[#allocation653_spill] sm:$0xff] %v11130_v41  ;;  %7269 = vmatmul.msk.bf16.gmra.mxu1 %vm546_vm2, %v8146_v62  ;;  %v8147_v41 = vld [vmem:[%s8374_s26 + $0x70] sm:$0xff] }
 0x709   : > { %7333 = vmatmul.msk.bf16.gmra.mxu3 %vm546_vm2, %v8146_v62 }
 0x70a   : > { %7301 = vmatmul.msk.bf16.gmra.mxu2 %vm546_vm2, %v8146_v62  ;;  %v11141_v53 = vpop.f32.mrf.mxu0 }
 0x70b   : > { %15206 = vst [vmem:[#allocation656_spill] sm:$0xff] %v11141_v53 }
 0x70c   : > { %v11139_v13 = vpop.f32.mrf.mxu3  ;;  %v11143_v58 = vpop.f32.mrf.mxu1 }
 0x70d   : > { %v11137_v12 = vpop.f32.mrf.mxu2  ;;  %15205 = vst [vmem:[#allocation655_spill] sm:$0xff] %v11139_v13 }
 0x70e   : > { %15204 = vst [vmem:[#allocation654_spill] sm:$0xff] %v11137_v12 }
 0x70f   : > { %15207 = vst [vmem:[#allocation657_spill] sm:$0xff] %v11143_v58 }
 0x712   : > { %v11154_v62 = vpop.f32.mrf.mxu0 }
 0x713   : > { %15210 = vst [vmem:[#allocation660_spill] sm:$0xff] %v11154_v62  ;;  %v8151_v62 = vld [vmem:[%s8374_s26 + $0x90] sm:$0xff] }
 0x714   : > { %v11147_v39 = vpop.f32.mrf.mxu3  ;;  %v11156_v13 = vpop.f32.mrf.mxu1 }
 0x715   : > { %v11145_v2 = vpop.f32.mrf.mxu2  ;;  %15209 = vst [vmem:[#allocation659_spill] sm:$0xff] %v11147_v39  ;;  %7238 = vmatmul.msk.bf16.gmra.mxu0 %vm546_vm2, %v8147_v41 }
 0x716   : > { %15208 = vst [vmem:[#allocation658_spill] sm:$0xff] %v11145_v2 }
 0x717   : > { %7270 = vmatmul.msk.bf16.gmra.mxu1 %vm546_vm2, %v8147_v41  ;;  %15211 = vst [vmem:[#allocation661_spill] sm:$0xff] %v11156_v13 }
 0x719   : > { %7334 = vmatmul.msk.bf16.gmra.mxu3 %vm546_vm2, %v8147_v41 }
 0x71a   : > { %7302 = vmatmul.msk.bf16.gmra.mxu2 %vm546_vm2, %v8147_v41  ;;  %v11162_v2 = vpop.f32.mrf.mxu0 }
 0x71b   : > { %15214 = vst [vmem:[#allocation664_spill] sm:$0xff] %v11162_v2 }
 0x71c   : > { %v11160_v58 = vpop.f32.mrf.mxu3  ;;  %v11164_v39 = vpop.f32.mrf.mxu1 }
 0x71d   : > { %v11158_v12 = vpop.f32.mrf.mxu2  ;;  %15213 = vst [vmem:[#allocation663_spill] sm:$0xff] %v11160_v58 }
 0x71e   : > { %15212 = vst [vmem:[#allocation662_spill] sm:$0xff] %v11158_v12 }
 0x71f   : > { %15215 = vst [vmem:[#allocation665_spill] sm:$0xff] %v11164_v39  ;;  %v8149_v39 = vld [vmem:[%s8374_s26 + $0x80] sm:$0xff] }
 0x722   : > { %v11175_v41 = vpop.f32.mrf.mxu0 }
 0x723   : > { %15218 = vst [vmem:[#allocation668_spill] sm:$0xff] %v11175_v41 }
 0x724   : > { %v11168_v53 = vpop.f32.mrf.mxu3  ;;  %v11177_v58 = vpop.f32.mrf.mxu1 }
 0x725   : > { %v11166_v17 = vpop.f32.mrf.mxu2  ;;  %15217 = vst [vmem:[#allocation667_spill] sm:$0xff] %v11168_v53  ;;  %7239 = vmatmul.msk.bf16.gmra.mxu0 %vm546_vm2, %v8148_v37 }
 0x726   : > { %15216 = vst [vmem:[#allocation666_spill] sm:$0xff] %v11166_v17 }
 0x727   : > { %7271 = vmatmul.msk.bf16.gmra.mxu1 %vm546_vm2, %v8148_v37  ;;  %15219 = vst [vmem:[#allocation669_spill] sm:$0xff] %v11177_v58 }
 0x729   : > { %7335 = vmatmul.msk.bf16.gmra.mxu3 %vm546_vm2, %v8148_v37 }
 0x72a   : > { %7303 = vmatmul.msk.bf16.gmra.mxu2 %vm546_vm2, %v8148_v37  ;;  %v11183_v17 = vpop.f32.mrf.mxu0 }
 0x72b   : > { %15222 = vst [vmem:[#allocation672_spill] sm:$0xff] %v11183_v17  ;;  %v8150_v17 = vld [vmem:[%s8374_s26 + $0x88] sm:$0xff] }
 0x72c   : > { %v11181_v13 = vpop.f32.mrf.mxu3  ;;  %v11185_v53 = vpop.f32.mrf.mxu1 }
 0x72d   : > { %v11179_v12 = vpop.f32.mrf.mxu2  ;;  %15221 = vst [vmem:[#allocation671_spill] sm:$0xff] %v11181_v13 }
 0x72e   : > { %15220 = vst [vmem:[#allocation670_spill] sm:$0xff] %v11179_v12 }
 0x72f   : > { %15223 = vst [vmem:[#allocation673_spill] sm:$0xff] %v11185_v53 }
 0x732   : > { %v11196_v12 = vpop.f32.mrf.mxu0 }
 0x733   : > { %15226 = vst [vmem:[#allocation676_spill] sm:$0xff] %v11196_v12 }
 0x734   : > { %v11192_v37 = vpop.f32.mrf.mxu3  ;;  %v11198_v13 = vpop.f32.mrf.mxu1 }
 0x735   : > { %7240 = vmatmul.msk.bf16.gmra.mxu0 %vm546_vm2, %v8149_v39  ;;  %v11190_v2 = vpop.f32.mrf.mxu2  ;;  %15225 = vst [vmem:[#allocation675_spill] sm:$0xff] %v11192_v37 }
 0x736   : > { %15224 = vst [vmem:[#allocation674_spill] sm:$0xff] %v11190_v2 }
 0x737   : > { %7272 = vmatmul.msk.bf16.gmra.mxu1 %vm546_vm2, %v8149_v39  ;;  %15227 = vst [vmem:[#allocation677_spill] sm:$0xff] %v11198_v13 }
 0x739   : > { %7336 = vmatmul.msk.bf16.gmra.mxu3 %vm546_vm2, %v8149_v39 }
 0x73a   : > { %7304 = vmatmul.msk.bf16.gmra.mxu2 %vm546_vm2, %v8149_v39  ;;  %v11209_v37 = vpop.f32.mrf.mxu0 }
 0x73b   : > { %15230 = vst [vmem:[#allocation680_spill] sm:$0xff] %v11209_v37 }
 0x73c   : > { %v11202_v53 = vpop.f32.mrf.mxu3  ;;  %v11211_v39 = vpop.f32.mrf.mxu1 }
 0x73d   : > { %v11200_v58 = vpop.f32.mrf.mxu2  ;;  %15229 = vst [vmem:[#allocation679_spill] sm:$0xff] %v11202_v53 }
 0x73e   : > { %15228 = vst [vmem:[#allocation678_spill] sm:$0xff] %v11200_v58 }
 0x73f   : > { %15231 = vst [vmem:[#allocation681_spill] sm:$0xff] %v11211_v39 }
 0x742   : > { %v11217_v58 = vpop.f32.mrf.mxu0 }
 0x743   : > { %15234 = vst [vmem:[#allocation684_spill] sm:$0xff] %v11217_v58 }
 0x744   : > { %v11215_v13 = vpop.f32.mrf.mxu3  ;;  %v11219_v53 = vpop.f32.mrf.mxu1 }
 0x745   : > { %7241 = vmatmul.msk.bf16.gmra.mxu0 %vm546_vm2, %v8150_v17  ;;  %v11213_v2 = vpop.f32.mrf.mxu2  ;;  %15233 = vst [vmem:[#allocation683_spill] sm:$0xff] %v11215_v13 }
 0x746   : > { %15232 = vst [vmem:[#allocation682_spill] sm:$0xff] %v11213_v2 }
 0x747   : > { %7273 = vmatmul.msk.bf16.gmra.mxu1 %vm546_vm2, %v8150_v17  ;;  %15235 = vst [vmem:[#allocation685_spill] sm:$0xff] %v11219_v53 }
 0x749   : > { %7337 = vmatmul.msk.bf16.gmra.mxu3 %vm546_vm2, %v8150_v17 }
 0x74a   : > { %7305 = vmatmul.msk.bf16.gmra.mxu2 %vm546_vm2, %v8150_v17  ;;  %v11230_v17 = vpop.f32.mrf.mxu0 }
 0x74b   : > { %15238 = vst [vmem:[#allocation688_spill] sm:$0xff] %v11230_v17  ;;  %v8153_v17 = vld [vmem:[%s8374_s26 + $0xa0] sm:$0xff] }
 0x74c   : > { %v11223_v41 = vpop.f32.mrf.mxu3  ;;  %v11232_v13 = vpop.f32.mrf.mxu1 }
 0x74d   : > { %v11221_v12 = vpop.f32.mrf.mxu2  ;;  %15237 = vst [vmem:[#allocation687_spill] sm:$0xff] %v11223_v41 }
 0x74e   : > { %15236 = vst [vmem:[#allocation686_spill] sm:$0xff] %v11221_v12  ;;  %v8152_v12 = vld [vmem:[%s8374_s26 + $0x98] sm:$0xff] }
 0x74f   : > { %15239 = vst [vmem:[#allocation689_spill] sm:$0xff] %v11232_v13 }
 0x752   : > { %v11243_v41 = vpop.f32.mrf.mxu0 }
 0x753   : > { %15242 = vst [vmem:[#allocation692_spill] sm:$0xff] %v11243_v41 }
 0x754   : > { %v11236_v39 = vpop.f32.mrf.mxu3 }
 0x755   : > { %7242 = vmatmul.msk.bf16.gmra.mxu0 %vm546_vm2, %v8151_v62  ;;  %v11234_v2 = vpop.f32.mrf.mxu2  ;;  %15241 = vst [vmem:[#allocation691_spill] sm:$0xff] %v11236_v39 }
 0x756   : > { %15240 = vst [vmem:[#allocation690_spill] sm:$0xff] %v11234_v2 }
 0x757   : > { %7274 = vmatmul.msk.bf16.gmra.mxu1 %vm546_vm2, %v8151_v62 }
 0x759   : > { %7338 = vmatmul.msk.bf16.gmra.mxu3 %vm546_vm2, %v8151_v62 }
 0x75a   : > { %7306 = vmatmul.msk.bf16.gmra.mxu2 %vm546_vm2, %v8151_v62  ;;  %v11245_v62 = vpop.f32.mrf.mxu1  ;;  %v11251_v2 = vpop.f32.mrf.mxu0 }
 0x75b   : > { %15243 = vst [vmem:[#allocation693_spill] sm:$0xff] %v11245_v62 }
 0x75c   : > { %v11249_v13 = vpop.f32.mrf.mxu3  ;;  %15246 = vst [vmem:[#allocation696_spill] sm:$0xff] %v11251_v2  ;;  %v8155_v2 = vld [vmem:[%s8374_s26 + $0xb0] sm:$0xff] }
 0x75d   : > { %v11247_v53 = vpop.f32.mrf.mxu2  ;;  %15245 = vst [vmem:[#allocation695_spill] sm:$0xff] %v11249_v13 }
 0x75e   : > { %15244 = vst [vmem:[#allocation694_spill] sm:$0xff] %v11247_v53 }
 0x762   : > { %v11253_v39 = vpop.f32.mrf.mxu1 }
 0x763   : > { %15247 = vst [vmem:[#allocation697_spill] sm:$0xff] %v11253_v39  ;;  %v8154_v39 = vld [vmem:[%s8374_s26 + $0xa8] sm:$0xff] }
 0x764   : > { %v11257_v58 = vpop.f32.mrf.mxu3 }
 0x765   : > { %7243 = vmatmul.msk.bf16.gmra.mxu0 %vm546_vm2, %v8152_v12  ;;  %v11255_v37 = vpop.f32.mrf.mxu2  ;;  %15249 = vst [vmem:[#allocation699_spill] sm:$0xff] %v11257_v58 }
 0x766   : > { %15248 = vst [vmem:[#allocation698_spill] sm:$0xff] %v11255_v37 }
 0x767   : > { %7275 = vmatmul.msk.bf16.gmra.mxu1 %vm546_vm2, %v8152_v12 }
 0x769   : > { %7339 = vmatmul.msk.bf16.gmra.mxu3 %vm546_vm2, %v8152_v12 }
 0x76a   : > { %7307 = vmatmul.msk.bf16.gmra.mxu2 %vm546_vm2, %v8152_v12  ;;  %v11264_v12 = vpop.f32.mrf.mxu0  ;;  %v11266_v13 = vpop.f32.mrf.mxu1 }
 0x76b   : > { %15250 = vst [vmem:[#allocation700_spill] sm:$0xff] %v11264_v12 }
 0x76c   : > { %15251 = vst [vmem:[#allocation701_spill] sm:$0xff] %v11266_v13  ;;  %v11270_v62 = vpop.f32.mrf.mxu3 }
 0x76d   : > { %v11268_v53 = vpop.f32.mrf.mxu2  ;;  %15253 = vst [vmem:[#allocation703_spill] sm:$0xff] %v11270_v62 }
 0x76e   : > { %15252 = vst [vmem:[#allocation702_spill] sm:$0xff] %v11268_v53 }
 0x772   : > { %v11272_v37 = vpop.f32.mrf.mxu0  ;;  %v11274_v58 = vpop.f32.mrf.mxu1 }
 0x773   : > { %15254 = vst [vmem:[#allocation704_spill] sm:$0xff] %v11272_v37 }
 0x774   : > { %15255 = vst [vmem:[#allocation705_spill] sm:$0xff] %v11274_v58 }
 0x775   : > { %7244 = vmatmul.msk.bf16.gmra.mxu0 %vm546_vm2, %v8153_v17  ;;  %v11279_v41 = vpop.f32.mrf.mxu2 }
 0x776   : > { %15256 = vst [vmem:[#allocation706_spill] sm:$0xff] %v11279_v41 }
 0x777   : > { %7276 = vmatmul.msk.bf16.gmra.mxu1 %vm546_vm2, %v8153_v17 }
 0x779   : > { %7340 = vmatmul.msk.bf16.gmra.mxu3 %vm546_vm2, %v8153_v17 }
 0x77a   : > { %7308 = vmatmul.msk.bf16.gmra.mxu2 %vm546_vm2, %v8153_v17  ;;  %v11281_v17 = vpop.f32.mrf.mxu3  ;;  %v11285_v53 = vpop.f32.mrf.mxu0 }
 0x77b   : > { %15257 = vst [vmem:[#allocation707_spill] sm:$0xff] %v11281_v17  ;;  %v11287_v62 = vpop.f32.mrf.mxu1 }
 0x77c   : > { %15258 = vst [vmem:[#allocation708_spill] sm:$0xff] %v11285_v53  ;;  %v8156_v53 = vld [vmem:[%s8374_s26 + $0xb8] sm:$0xff] }
 0x77d   : > { %15259 = vst [vmem:[#allocation709_spill] sm:$0xff] %v11287_v62  ;;  %v11289_v13 = vpop.f32.mrf.mxu2 }
 0x77e   : > { %15260 = vst [vmem:[#allocation710_spill] sm:$0xff] %v11289_v13 }
 0x782   : > { %v11291_v58 = vpop.f32.mrf.mxu3  ;;  %v11298_v17 = vpop.f32.mrf.mxu0 }
 0x783   : > { %15261 = vst [vmem:[#allocation711_spill] sm:$0xff] %v11291_v58 }
 0x784   : > { %15262 = vst [vmem:[#allocation712_spill] sm:$0xff] %v11298_v17 }
 0x785   : > { %7245 = vmatmul.msk.bf16.gmra.mxu0 %vm546_vm2, %v8154_v39  ;;  %v11302_v41 = vpop.f32.mrf.mxu2 }
 0x786   : > { %15264 = vst [vmem:[#allocation714_spill] sm:$0xff] %v11302_v41 }
 0x787   : > { %7277 = vmatmul.msk.bf16.gmra.mxu1 %vm546_vm2, %v8154_v39 }
 0x789   : > { %7341 = vmatmul.msk.bf16.gmra.mxu3 %vm546_vm2, %v8154_v39 }
 0x78a   : > { %7309 = vmatmul.msk.bf16.gmra.mxu2 %vm546_vm2, %v8154_v39  ;;  %v11300_v39 = vpop.f32.mrf.mxu1  ;;  %v11304_v62 = vpop.f32.mrf.mxu3 }
 0x78b   : > { %15263 = vst [vmem:[#allocation713_spill] sm:$0xff] %v11300_v39  ;;  %v11306_v13 = vpop.f32.mrf.mxu0 }
 0x78c   : > { %15265 = vst [vmem:[#allocation715_spill] sm:$0xff] %v11304_v62 }
 0x78d   : > { %15266 = vst [vmem:[#allocation716_spill] sm:$0xff] %v11306_v13  ;;  %v11310_v12 = vpop.f32.mrf.mxu2 }
 0x78e   : > { %15268 = vst [vmem:[#allocation718_spill] sm:$0xff] %v11310_v12  ;;  %v8157_v12 = vld [vmem:[%s8374_s26 + $0xc0] sm:$0xff] }
 0x792   : > { %v11308_v58 = vpop.f32.mrf.mxu1  ;;  %v11312_v37 = vpop.f32.mrf.mxu3 }
 0x793   : > { %15267 = vst [vmem:[#allocation717_spill] sm:$0xff] %v11308_v58 }
 0x794   : > { %15269 = vst [vmem:[#allocation719_spill] sm:$0xff] %v11312_v37 }
 0x795   : > { %7246 = vmatmul.msk.bf16.gmra.mxu0 %vm546_vm2, %v8155_v2  ;;  %v11323_v41 = vpop.f32.mrf.mxu2 }
 0x796   : > { %15272 = vst [vmem:[#allocation722_spill] sm:$0xff] %v11323_v41 }
 0x797   : > { %7278 = vmatmul.msk.bf16.gmra.mxu1 %vm546_vm2, %v8155_v2 }
 0x799   : > { %7342 = vmatmul.msk.bf16.gmra.mxu3 %vm546_vm2, %v8155_v2 }
 0x79a   : > { %7310 = vmatmul.msk.bf16.gmra.mxu2 %vm546_vm2, %v8155_v2  ;;  %v11319_v2 = vpop.f32.mrf.mxu0  ;;  %v11321_v62 = vpop.f32.mrf.mxu1 }
 0x79b   : > { %15270 = vst [vmem:[#allocation720_spill] sm:$0xff] %v11319_v2  ;;  %v11325_v39 = vpop.f32.mrf.mxu3  ;;  %v8158_v2 = vld [vmem:[%s8374_s26 + $0xc8] sm:$0xff] }
 0x79c   : > { %15271 = vst [vmem:[#allocation721_spill] sm:$0xff] %v11321_v62 }
 0x79d   : > { %15273 = vst [vmem:[#allocation723_spill] sm:$0xff] %v11325_v39  ;;  %v11336_v58 = vpop.f32.mrf.mxu2 }
 0x79e   : > { %15276 = vst [vmem:[#allocation726_spill] sm:$0xff] %v11336_v58 }
 0x7a2   : > { %v11332_v37 = vpop.f32.mrf.mxu0 }
 0x7a3   : > { %15274 = vst [vmem:[#allocation724_spill] sm:$0xff] %v11332_v37  ;;  %v11338_v62 = vpop.f32.mrf.mxu3  ;;  %v8161_v37 = vld [vmem:[%s8374_s26 + $0xe0] sm:$0xff] }
 0x7a4   : > { %15277 = vst [vmem:[#allocation727_spill] sm:$0xff] %v11338_v62 }
 0x7a5   : > { %7247 = vmatmul.msk.bf16.gmra.mxu0 %vm546_vm2, %v8156_v53  ;;  %v11344_v17 = vpop.f32.mrf.mxu2 }
 0x7a6   : > { %15280 = vst [vmem:[#allocation730_spill] sm:$0xff] %v11344_v17 }
 0x7a7   : > { %7279 = vmatmul.msk.bf16.gmra.mxu1 %vm546_vm2, %v8156_v53 }
 0x7a9   : > { %7343 = vmatmul.msk.bf16.gmra.mxu3 %vm546_vm2, %v8156_v53 }
 0x7aa   : > { %7311 = vmatmul.msk.bf16.gmra.mxu2 %vm546_vm2, %v8156_v53  ;;  %v11334_v53 = vpop.f32.mrf.mxu1  ;;  %v11340_v41 = vpop.f32.mrf.mxu0 }
 0x7ab   : > { %15275 = vst [vmem:[#allocation725_spill] sm:$0xff] %v11334_v53  ;;  %v11346_v13 = vpop.f32.mrf.mxu3 }
 0x7ac   : > { %15278 = vst [vmem:[#allocation728_spill] sm:$0xff] %v11340_v41 }
 0x7ad   : > { %15281 = vst [vmem:[#allocation731_spill] sm:$0xff] %v11346_v13  ;;  %v11357_v58 = vpop.f32.mrf.mxu2 }
 0x7ae   : > { %15284 = vst [vmem:[#allocation734_spill] sm:$0xff] %v11357_v58 }
 0x7b2   : > { %v11342_v39 = vpop.f32.mrf.mxu1 }
 0x7b3   : > { %15279 = vst [vmem:[#allocation729_spill] sm:$0xff] %v11342_v39  ;;  %v11359_v53 = vpop.f32.mrf.mxu3  ;;  %v8159_v39 = vld [vmem:[%s8374_s26 + $0xd0] sm:$0xff] }
 0x7b4   : > { %15285 = vst [vmem:[#allocation735_spill] sm:$0xff] %v11359_v53 }
 0x7b5   : > { %7248 = vmatmul.msk.bf16.gmra.mxu0 %vm546_vm2, %v8157_v12  ;;  %v11368_v41 = vpop.f32.mrf.mxu2 }
 0x7b6   : > { %15288 = vst [vmem:[#allocation738_spill] sm:$0xff] %v11368_v41 }
 0x7b7   : > { %7280 = vmatmul.msk.bf16.gmra.mxu1 %vm546_vm2, %v8157_v12 }
 0x7b9   : > { %7344 = vmatmul.msk.bf16.gmra.mxu3 %vm546_vm2, %v8157_v12 }
 0x7ba   : > { %7312 = vmatmul.msk.bf16.gmra.mxu2 %vm546_vm2, %v8157_v12  ;;  %v11353_v12 = vpop.f32.mrf.mxu0  ;;  %v11355_v62 = vpop.f32.mrf.mxu1 }
 0x7bb   : > { %15282 = vst [vmem:[#allocation732_spill] sm:$0xff] %v11353_v12 }
 0x7bc   : > { %15283 = vst [vmem:[#allocation733_spill] sm:$0xff] %v11355_v62 }
 0x7bd   : > { %v11378_v62 = vpop.f32.mrf.mxu2 }
 0x7be   : > { %15292 = vst [vmem:[#allocation742_spill] sm:$0xff] %v11378_v62 }
 0x7c2   : > { %v11361_v17 = vpop.f32.mrf.mxu0  ;;  %v11363_v13 = vpop.f32.mrf.mxu1 }
 0x7c3   : > { %15286 = vst [vmem:[#allocation736_spill] sm:$0xff] %v11361_v17  ;;  %v8160_v17 = vld [vmem:[%s8374_s26 + $0xd8] sm:$0xff] }
 0x7c4   : > { %15287 = vst [vmem:[#allocation737_spill] sm:$0xff] %v11363_v13 }
 0x7c5   : > { %7249 = vmatmul.msk.bf16.gmra.mxu0 %vm546_vm2, %v8158_v2  ;;  %v11391_v41 = vpop.f32.mrf.mxu2 }
 0x7c6   : > { %15296 = vst [vmem:[#allocation746_spill] sm:$0xff] %v11391_v41 }
 0x7c7   : > { %7281 = vmatmul.msk.bf16.gmra.mxu1 %vm546_vm2, %v8158_v2 }
 0x7c9   : > { %7345 = vmatmul.msk.bf16.gmra.mxu3 %vm546_vm2, %v8158_v2 }
 0x7ca   : > { %7313 = vmatmul.msk.bf16.gmra.mxu2 %vm546_vm2, %v8158_v2  ;;  %v11370_v2 = vpop.f32.mrf.mxu3  ;;  %v11374_v58 = vpop.f32.mrf.mxu0 }
 0x7cb   : > { %15289 = vst [vmem:[#allocation739_spill] sm:$0xff] %v11370_v2  ;;  %v11376_v53 = vpop.f32.mrf.mxu1 }
 0x7cc   : > { %15290 = vst [vmem:[#allocation740_spill] sm:$0xff] %v11374_v58 }
 0x7cd   : > { %15291 = vst [vmem:[#allocation741_spill] sm:$0xff] %v11376_v53  ;;  %v11399_v58 = vpop.f32.mrf.mxu2 }
 0x7ce   : > { %15300 = vst [vmem:[#allocation750_spill] sm:$0xff] %v11399_v58  ;;  %v8162_v58 = vld [vmem:[%s8374_s26 + $0xe8] sm:$0xff] }
 0x7d2   : > { %v11380_v13 = vpop.f32.mrf.mxu3  ;;  %v11387_v2 = vpop.f32.mrf.mxu0 }
 0x7d3   : > { %15293 = vst [vmem:[#allocation743_spill] sm:$0xff] %v11380_v13 }
 0x7d4   : > { %15294 = vst [vmem:[#allocation744_spill] sm:$0xff] %v11387_v2 }
 0x7d5   : > { %7250 = vmatmul.msk.bf16.gmra.mxu0 %vm546_vm2, %v8159_v39  ;;  %v11412_v41 = vpop.f32.mrf.mxu2 }
 0x7d6   : > { %15304 = vst [vmem:[#allocation754_spill] sm:$0xff] %v11412_v41 }
 0x7d7   : > { %7282 = vmatmul.msk.bf16.gmra.mxu1 %vm546_vm2, %v8159_v39 }
 0x7d9   : > { %7346 = vmatmul.msk.bf16.gmra.mxu3 %vm546_vm2, %v8159_v39 }
 0x7da   : > { %7314 = vmatmul.msk.bf16.gmra.mxu2 %vm546_vm2, %v8159_v39  ;;  %v11389_v39 = vpop.f32.mrf.mxu1  ;;  %v11393_v53 = vpop.f32.mrf.mxu3 }
 0x7db   : > { %15295 = vst [vmem:[#allocation745_spill] sm:$0xff] %v11389_v39  ;;  %v11395_v62 = vpop.f32.mrf.mxu0 }
 0x7dc   : > { %15297 = vst [vmem:[#allocation747_spill] sm:$0xff] %v11393_v53 }
 0x7dd   : > { %15298 = vst [vmem:[#allocation748_spill] sm:$0xff] %v11395_v62 }
 0x7e2   : > { %v11397_v13 = vpop.f32.mrf.mxu1  ;;  %v11401_v12 = vpop.f32.mrf.mxu3 }
 0x7e3   : > { %15299 = vst [vmem:[#allocation749_spill] sm:$0xff] %v11397_v13  ;;  %v11425_v13 = vpop.f32.mrf.mxu2 }
 0x7e4   : > { %15301 = vst [vmem:[#allocation751_spill] sm:$0xff] %v11401_v12 }
 0x7e5   : > { %7251 = vmatmul.msk.bf16.gmra.mxu0 %vm546_vm2, %v8160_v17  ;;  %15308 = vst [vmem:[#allocation758_spill] sm:$0xff] %v11425_v13 }
 0x7e7   : > { %7283 = vmatmul.msk.bf16.gmra.mxu1 %vm546_vm2, %v8160_v17 }
 0x7e9   : > { %7347 = vmatmul.msk.bf16.gmra.mxu3 %vm546_vm2, %v8160_v17 }
 0x7ea   : > { %7315 = vmatmul.msk.bf16.gmra.mxu2 %vm546_vm2, %v8160_v17  ;;  %v11408_v17 = vpop.f32.mrf.mxu0  ;;  %v11410_v53 = vpop.f32.mrf.mxu1 }
 0x7eb   : > { %15302 = vst [vmem:[#allocation752_spill] sm:$0xff] %v11408_v17  ;;  %v11414_v39 = vpop.f32.mrf.mxu3  ;;  %v11433_v2 = vpop.f32.mrf.mxu2  ;;  %v8163_v17 = vld [vmem:[%s8374_s26 + $0xf0] sm:$0xff] }
 0x7ec   : > { %15303 = vst [vmem:[#allocation753_spill] sm:$0xff] %v11410_v53 }
 0x7ed   : > { %15305 = vst [vmem:[#allocation755_spill] sm:$0xff] %v11414_v39 }
 0x7ee   : > { %15312 = vst [vmem:[#allocation762_spill] sm:$0xff] %v11433_v2 }
 0x7f2   : > { %v11421_v12 = vpop.f32.mrf.mxu0 }
 0x7f3   : > { %15306 = vst [vmem:[#allocation756_spill] sm:$0xff] %v11421_v12  ;;  %v11427_v53 = vpop.f32.mrf.mxu3  ;;  %v11446_v13 = vpop.f32.mrf.mxu2 }
 0x7f4   : > { %15309 = vst [vmem:[#allocation759_spill] sm:$0xff] %v11427_v53 }
 0x7f5   : > { %7252 = vmatmul.msk.bf16.gmra.mxu0 %vm546_vm2, %v8161_v37  ;;  %15316 = vst [vmem:[#allocation766_spill] sm:$0xff] %v11446_v13 }
 0x7f7   : > { %7284 = vmatmul.msk.bf16.gmra.mxu1 %vm546_vm2, %v8161_v37 }
 0x7f9   : > { %7348 = vmatmul.msk.bf16.gmra.mxu3 %vm546_vm2, %v8161_v37 }
 0x7fa   : > { %7316 = vmatmul.msk.bf16.gmra.mxu2 %vm546_vm2, %v8161_v37  ;;  %v11423_v37 = vpop.f32.mrf.mxu1  ;;  %v11429_v41 = vpop.f32.mrf.mxu0 }
 0x7fb   : > { %15307 = vst [vmem:[#allocation757_spill] sm:$0xff] %v11423_v37  ;;  %v11435_v62 = vpop.f32.mrf.mxu3  ;;  %v11457_v12 = vpop.f32.mrf.mxu2 }
 0x7fc   : > { %15310 = vst [vmem:[#allocation760_spill] sm:$0xff] %v11429_v41  ;;  %v15323_v41 = vld [vmem:[#allocation116_spill] sm:$0xff] }
 0x7fd   : > { %15313 = vst [vmem:[#allocation763_spill] sm:$0xff] %v11435_v62 }
 0x7fe   : > { %15320 = vst [vmem:[#allocation770_spill] sm:$0xff] %v11457_v12 }
 0x802   : > { %v11431_v39 = vpop.f32.mrf.mxu1 }
 0x803   : > { %15311 = vst [vmem:[#allocation761_spill] sm:$0xff] %v11431_v39  ;;  %v11448_v37 = vpop.f32.mrf.mxu3  ;;  %v8164_v39 = vld [vmem:[%s8374_s26 + $0xf8] sm:$0xff]  ;;  %v11495_v55 = vpop.f32.mrf.mxu2 }
 0x804   : > { %15317 = vst [vmem:[#allocation767_spill] sm:$0xff] %v11448_v37  ;;  %v11466_v37 = vld [vmem:[%s14350_s2] sm:$0xff] }
 0x805   : > { %7253 = vmatmul.msk.bf16.gmra.mxu0 %vm546_vm2, %v8162_v58  ;;  %v11469_v13 = vperm.slane %v11466_v37, 2 }
 0x807   : > { %7285 = vmatmul.msk.bf16.gmra.mxu1 %vm546_vm2, %v8162_v58  ;;  %v1104_v12 = vadd.f32 %v15323_v41, %v11469_v13  ;;  %v1062_v30 = vadd.f32 %v15326_v45, %v11469_v13  ;;  %v1102_v54 = vadd.f32 %v15327_v16, %v11469_v13  ;;  %v1142_v0 = vadd.f32 %v15328_v3, %v11469_v13  ;;  %v15331_v41 = vld [vmem:[#allocation54_spill] sm:$0xff]  ;;  %v15335_v3 = vld [vmem:[#allocation167_spill] sm:$0xff] }
 0x808   : > { %v14354_v16 = vmov 0.0009765625  }
 0x809   : > { %7349 = vmatmul.msk.bf16.gmra.mxu3 %vm546_vm2, %v8162_v58  ;;  %v3881_v47 = vmax.f32 %v1104_v12, 0.0  ;;  %v15338_v12 = vld [vmem:[#allocation51_spill] sm:$0xff]  ;;  %v3865_v46 = vmax.f32 %v1102_v54, 0.0  ;;  %v15344_v54 = vld [vmem:[#allocation161_spill] sm:$0xff] }
 0x80a   : > { %7317 = vmatmul.msk.bf16.gmra.mxu2 %vm546_vm2, %v8162_v58  ;;  %v11442_v58 = vpop.f32.mrf.mxu0  ;;  %v11444_v53 = vpop.f32.mrf.mxu1 }
 0x80b   : > { %15314 = vst [vmem:[#allocation764_spill] sm:$0xff] %v11442_v58 }
 0x80c   : > { %15315 = vst [vmem:[#allocation765_spill] sm:$0xff] %v11444_v53  ;;  %v15322_v53 = vld [vmem:[#allocation60_spill] sm:$0xff] }
 0x812   : > { %v11450_v2 = vpop.f32.mrf.mxu0  ;;  %v11452_v62 = vpop.f32.mrf.mxu1 }
 0x813   : > { %15318 = vst [vmem:[#allocation768_spill] sm:$0xff] %v11450_v2  ;;  %v15325_v2 = vld [vmem:[#allocation229_spill] sm:$0xff] }
 0x814   : > { %15319 = vst [vmem:[#allocation769_spill] sm:$0xff] %v11452_v62  ;;  %v1064_v62 = vadd.f32 %v15322_v53, %v11469_v13  ;;  %v15329_v53 = vld [vmem:[#allocation226_spill] sm:$0xff] }
 0x815   : > { %7254 = vmatmul.msk.bf16.gmra.mxu0 %vm546_vm2, %v8163_v17  ;;  %v1182_v6 = vadd.f32 %v15329_v53, %v11469_v13  ;;  %v1139_v53 = vadd.f32 %v15335_v3, %v11469_v13 }
 0x816   : > { %v3625_v42 = vmax.f32 %v1064_v62, 0.0 }
 0x817   : > { %7286 = vmatmul.msk.bf16.gmra.mxu1 %vm546_vm2, %v8163_v17  ;;  %v4377_v26 = vmax.f32 %v1182_v6, 0.0  ;;  %v15345_v6 = vld [vmem:[#allocation45_spill] sm:$0xff] }
 0x819   : > { %7350 = vmatmul.msk.bf16.gmra.mxu3 %vm546_vm2, %v8163_v17 }
 0x81a   : > { %7318 = vmatmul.msk.bf16.gmra.mxu2 %vm546_vm2, %v8163_v17  ;;  %v11459_v17 = vpop.f32.mrf.mxu3  ;;  %v11487_v52 = vpop.f32.mrf.mxu0 }
 0x81b   : > { %15321 = vst [vmem:[#allocation771_spill] sm:$0xff] %v11459_v17  ;;  %v15324_v17 = vld [vmem:[#allocation173_spill] sm:$0xff]  ;;  %v11493_v45 = vpop.f32.mrf.mxu1 }
 0x81c   : > { %v1144_v58 = vadd.f32 %v15324_v17, %v11469_v13  ;;  %15330 = vst [vmem:[#allocation60_spill] sm:$0xff] %v11487_v52  ;;  %v1059_v17 = vadd.f32 %v15331_v41, %v11469_v13  ;;  %v15336_v41 = vld [vmem:[#allocation223_spill] sm:$0xff] }
 0x81d   : > { %15333 = vst [vmem:[#allocation116_spill] sm:$0xff] %v11493_v45  ;;  %v1179_v62 = vadd.f32 %v15336_v41, %v11469_v13  ;;  %v15339_v45 = vld [vmem:[#allocation107_spill] sm:$0xff]  ;;  %v15341_v41 = vld [vmem:[#allocation220_spill] sm:$0xff] }
 0x81e   : > { %15334 = vst [vmem:[#allocation173_spill] sm:$0xff] %v11495_v55  ;;  %v4137_v52 = vmax.f32 %v1144_v58, 0.0  ;;  %v3609_v55 = vmax.f32 %v1062_v30, 0.0  ;;  %v1097_v11 = vadd.f32 %v15339_v45, %v11469_v13  ;;  %v15340_v58 = vld [vmem:[#allocation164_spill] sm:$0xff]  ;;  %v3593_v30 = vmax.f32 %v1059_v17, 0.0  ;;  %v15346_v17 = vld [vmem:[#allocation217_spill] sm:$0xff] }
 0x81f   : > { %v1137_v3 = vadd.f32 %v15340_v58, %v11469_v13  ;;  %v1134_v45 = vadd.f32 %v15344_v54, %v11469_v13  ;;  %v4361_v58 = vmax.f32 %v1179_v62, 0.0 }
 0x821   : > { %v4073_v54 = vmax.f32 %v1134_v45, 0.0  ;;  %v15355_v45 = vld [vmem:[#allocation211_spill] sm:$0xff] }
 0x822   : > { %v11503_v28 = vpop.f32.mrf.mxu3 }
 0x823   : > { %15337 = vst [vmem:[#allocation229_spill] sm:$0xff] %v11503_v28  ;;  %v1177_v28 = vadd.f32 %v15341_v41, %v11469_v13  ;;  %v3833_v41 = vmax.f32 %v1097_v11, 0.0 }
 0x825   : > { %7255 = vmatmul.msk.bf16.gmra.mxu0 %vm546_vm2, %v8164_v39 }
 0x827   : > { %7287 = vmatmul.msk.bf16.gmra.mxu1 %vm546_vm2, %v8164_v39 }
 0x829   : > { %7351 = vmatmul.msk.bf16.gmra.mxu3 %vm546_vm2, %v8164_v39 }
 0x82a   : > { %7319 = vmatmul.msk.bf16.gmra.mxu2 %vm546_vm2, %v8164_v39  ;;  %v1184_v39 = vadd.f32 %v15325_v2, %v11469_v13  ;;  %v15332_v2 = vld [vmem:[#allocation110_spill] sm:$0xff] }
 0x82b   : > { %v1099_v10 = vadd.f32 %v15332_v2, %v11469_v13  ;;  %v1057_v2 = vadd.f32 %v15338_v12, %v11469_v13 }
 0x82c   : > { %v4393_v14 = vmax.f32 %v1184_v39, 0.0  ;;  %v4121_v39 = vmax.f32 %v1142_v0, 0.0  ;;  %v4105_v0 = vmax.f32 %v1139_v53, 0.0 }
 0x82d   : > { %v3849_v61 = vmax.f32 %v1099_v10, 0.0  ;;  %v1174_v10 = vadd.f32 %v15346_v17, %v11469_v13 }
 0x835   : > { %4425 = vmatmul.f32.vlgmr.msra.gmra.mxu0 %v14354_v16 }
 0x836   : > { %4569 = vmatpush.msra.mxu0 %v3625_v42  ;;  %v15343_v42 = vld [vmem:[#allocation104_spill] sm:$0xff] }
 0x837   : > { %4445 = vmatmul.f32.vlgmr.msra.gmra.mxu1 %v14354_v16 }
 0x838   : > { %4589 = vmatpush.msra.mxu1 %v3881_v47  ;;  %4570 = vmatpush.msra.mxu0 %v3609_v55  ;;  %v1094_v47 = vadd.f32 %v15343_v42, %v11469_v13  ;;  %v15347_v55 = vld [vmem:[#allocation101_spill] sm:$0xff]  ;;  %v4345_v42 = vmax.f32 %v1177_v28, 0.0  ;;  %v15351_v28 = vld [vmem:[#allocation98_spill] sm:$0xff] }
 0x839   : > { %4485 = vmatmul.f32.vlgmr.msra.gmra.mxu3 %v14354_v16 }
 0x83a   : > { %4465 = vmatmul.f32.vlgmr.msra.gmra.mxu2 %v14354_v16  ;;  %4629 = vmatpush.msra.mxu3 %v4393_v14  ;;  %v15342_v16 = vld [vmem:[#allocation48_spill] sm:$0xff]  ;;  %v3577_v14 = vmax.f32 %v1057_v2, 0.0  ;;  %v3817_v11 = vmax.f32 %v1094_v47, 0.0 }
 0x83b   : > { %4609 = vmatpush.msra.mxu2 %v4137_v52  ;;  %v1054_v12 = vadd.f32 %v15342_v16, %v11469_v13  ;;  %4590 = vmatpush.msra.mxu1 %v3865_v46  ;;  %v1052_v52 = vadd.f32 %v15345_v6, %v11469_v13  ;;  %v1092_v46 = vadd.f32 %v15347_v55, %v11469_v13  ;;  %v4089_v16 = vmax.f32 %v1137_v3, 0.0 }
 0x83c   : > { %4630 = vmatpush.msra.mxu3 %v4377_v26  ;;  %4571 = vmatpush.msra.mxu0 %v3593_v30  ;;  %v15348_v26 = vld [vmem:[#allocation158_spill] sm:$0xff]  ;;  %v15353_v6 = vmov 0.0009765625  }
 0x83d   : > { %4610 = vmatpush.msra.mxu2 %v4121_v39  ;;  %4591 = vmatpush.msra.mxu1 %v3849_v61  ;;  %v3561_v53 = vmax.f32 %v1054_v12, 0.0  ;;  %v1132_v62 = vadd.f32 %v15348_v26, %v11469_v13  ;;  %v15349_v39 = vld [vmem:[#allocation214_spill] sm:$0xff]  ;;  %v3545_v3 = vmax.f32 %v1052_v52, 0.0  ;;  %v4329_v12 = vmax.f32 %v1174_v10, 0.0  ;;  %v15356_v52 = vld [vmem:[#allocation39_spill] sm:$0xff] }
 0x83e   : > { %4631 = vmatpush.msra.mxu3 %v4361_v58  ;;  %v1172_v2 = vadd.f32 %v15349_v39, %v11469_v13  ;;  %4572 = vmatpush.msra.mxu0 %v3577_v14  ;;  %v15350_v61 = vld [vmem:[#allocation42_spill] sm:$0xff]  ;;  %v11535_v58 = vpop.f32.mrf.mxu2  ;;  %v3801_v17 = vmax.f32 %v1092_v46, 0.0  ;;  %v15354_v14 = vld [vmem:[#allocation155_spill] sm:$0xff]  ;;  %v1047_v55 = vadd.f32 %v15356_v52, %v11469_v13  ;;  %v11547_v46 = vperm.slane %v11466_v37, 3 }
 0x83f   : > { %4611 = vmatpush.msra.mxu2 %v4105_v0  ;;  %4592 = vmatpush.msra.mxu1 %v3833_v41  ;;  %v1049_v30 = vadd.f32 %v15350_v61, %v11469_v13  ;;  %v1089_v0 = vadd.f32 %v15351_v28, %v11469_v13  ;;  %15352 = vst [vmem:[#allocation57_spill] sm:$0xff] %v11535_v58  ;;  %v15359_v61 = vld [vmem:[#allocation208_spill] sm:$0xff]  ;;  %v11564_v58 = vpop.f32.mrf.mxu0 }
 0x840   : > { %4632 = vmatpush.msra.mxu3 %v4345_v42  ;;  %4573 = vmatpush.msra.mxu0 %v3561_v53  ;;  %v1129_v47 = vadd.f32 %v15354_v14, %v11469_v13  ;;  %v1169_v41 = vadd.f32 %v15355_v45, %v11469_v13  ;;  %v4057_v42 = vmax.f32 %v1132_v62, 0.0  ;;  %v4313_v26 = vmax.f32 %v1172_v2, 0.0  ;;  %v15358_v53 = vld [vmem:[#allocation152_spill] sm:$0xff]  ;;  %15365 = vst [vmem:[#allocation170_spill] sm:$0xff] %v11564_v58 }
 0x841   : > { %4612 = vmatpush.msra.mxu2 %v4089_v16  ;;  %4593 = vmatpush.msra.mxu1 %v3817_v11  ;;  %v15357_v16 = vld [vmem:[#allocation95_spill] sm:$0xff]  ;;  %v1127_v39 = vadd.f32 %v15358_v53, %v11469_v13  ;;  %v1167_v11 = vadd.f32 %v15359_v61, %v11469_v13  ;;  %v15361_v28 = vld [vmem:[#allocation36_spill] sm:$0xff]  ;;  %v3529_v2 = vmax.f32 %v1049_v30, 0.0  ;;  %v3785_v14 = vmax.f32 %v1089_v0, 0.0  ;;  %v15364_v53 = vld [vmem:[#allocation205_spill] sm:$0xff] }
 0x842   : > { %4545 = vmatmul.f32.vlgmr.msrb.gmra.mxu2 %v15353_v6  ;;  %v1087_v10 = vadd.f32 %v15357_v16, %v11469_v13  ;;  %4633 = vmatpush.msra.mxu3 %v4329_v12  ;;  %v1044_v62 = vadd.f32 %v15361_v28, %v11469_v13  ;;  %v15363_v45 = vld [vmem:[#allocation148_spill] sm:$0xff]  ;;  %v4041_v16 = vmax.f32 %v1129_v47, 0.0  ;;  %v1164_v61 = vadd.f32 %v15364_v53, %v11469_v13  ;;  %v15370_v53 = vld [vmem:[#allocation201_spill] sm:$0xff] }
 0x843   : > { %4613 = vmatpush.msra.mxu2 %v4073_v54  ;;  %4574 = vmatpush.msra.mxu0 %v3545_v3  ;;  %v11553_v54 = vpop.f32.mrf.mxu3  ;;  %v15362_v3 = vld [vmem:[#allocation92_spill] sm:$0xff]  ;;  %v1124_v52 = vadd.f32 %v15363_v45, %v11469_v13  ;;  %v4025_v45 = vmax.f32 %v1127_v39, 0.0  ;;  %v4281_v58 = vmax.f32 %v1167_v11, 0.0 }
 0x844   : > { %15360 = vst [vmem:[#allocation113_spill] sm:$0xff] %v11553_v54  ;;  %4565 = vmatmul.f32.vlgmr.msrb.gmra.mxu3 %v15353_v6  ;;  %4594 = vmatpush.msra.mxu1 %v3801_v17  ;;  %v1084_v12 = vadd.f32 %v15362_v3, %v11469_v13  ;;  %v4297_v54 = vmax.f32 %v1169_v41, 0.0  ;;  %v11566_v17 = vpop.f32.mrf.mxu1  ;;  %v15367_v30 = vld [vmem:[#allocation32_spill] sm:$0xff]  ;;  %v3769_v47 = vmax.f32 %v1087_v10, 0.0  ;;  %v4265_v11 = vmax.f32 %v1164_v61, 0.0 }
 0x845   : > { %4614 = vmatpush.msra.mxu2 %v4057_v42  ;;  %4634 = vmatpush.msra.mxu3 %v4313_v26  ;;  %15366 = vst [vmem:[#allocation226_spill] sm:$0xff] %v11566_v17  ;;  %v1042_v0 = vadd.f32 %v15367_v30, %v11469_v13  ;;  %v3513_v42 = vmax.f32 %v1047_v55, 0.0  ;;  %v15368_v26 = vld [vmem:[#allocation88_spill] sm:$0xff]  ;;  %v1162_v17 = vadd.f32 %v15370_v53, %v11469_v13  ;;  %v3497_v55 = vmax.f32 %v1044_v62, 0.0 }
 0x846   : > { %4505 = vmatmul.f32.vlgmr.msrb.gmra.mxu0 %v15353_v6  ;;  %4525 = vmatmul.f32.vlgmr.msrb.gmra.mxu1 %v15353_v6  ;;  %v1082_v28 = vadd.f32 %v15368_v26, %v11469_v13  ;;  %v15369_v41 = vld [vmem:[#allocation144_spill] sm:$0xff]  ;;  %v1039_v30 = vadd.f32 %v15371_v36, %v11469_v13  ;;  %v1079_v26 = vadd.f32 %v15372_v56, %v11469_v13  ;;  %v3753_v10 = vmax.f32 %v1084_v12, 0.0 }
 0x847   : > { %4575 = vmatpush.msra.mxu0 %v3529_v2  ;;  %4595 = vmatpush.msra.mxu1 %v3785_v14  ;;  %v1122_v3 = vadd.f32 %v15369_v41, %v11469_v13  ;;  %v15373_v2 = vld [vmem:[#allocation140_spill] sm:$0xff]  ;;  %v4009_v39 = vmax.f32 %v1124_v52, 0.0  ;;  %v15374_v41 = vld [vmem:[#allocation197_spill] sm:$0xff]  ;;  %v3481_v62 = vmax.f32 %v1042_v0, 0.0  ;;  %v4249_v61 = vmax.f32 %v1162_v17, 0.0 }
 0x848   : > { %4615 = vmatpush.msra.mxu2 %v4041_v16  ;;  %4635 = vmatpush.msra.mxu3 %v4297_v54  ;;  %v1119_v14 = vadd.f32 %v15373_v2, %v11469_v13  ;;  %v1159_v53 = vadd.f32 %v15374_v41, %v11469_v13  ;;  %v15375_v54 = vld [vmem:[#allocation24_spill] sm:$0xff]  ;;  %v3737_v12 = vmax.f32 %v1082_v28, 0.0  ;;  %v15378_v2 = vld [vmem:[#allocation193_spill] sm:$0xff]  ;;  %v3465_v0 = vmax.f32 %v1039_v30, 0.0 }
 0x849   : > { %4576 = vmatpush.msra.mxu0 %v3513_v42  ;;  %4596 = vmatpush.msra.mxu1 %v3769_v47  ;;  %v1037_v36 = vadd.f32 %v15375_v54, %v11469_v13  ;;  %v15376_v16 = vld [vmem:[#allocation80_spill] sm:$0xff]  ;;  %v3993_v52 = vmax.f32 %v1122_v3, 0.0  ;;  %v1157_v41 = vadd.f32 %v15378_v2, %v11469_v13  ;;  %v3721_v28 = vmax.f32 %v1079_v26, 0.0 }
 0x84a   : > { %4616 = vmatpush.msra.mxu2 %v4025_v45  ;;  %4636 = vmatpush.msra.mxu3 %v4281_v58  ;;  %v1077_v56 = vadd.f32 %v15376_v16, %v11469_v13  ;;  %v15377_v42 = vld [vmem:[#allocation136_spill] sm:$0xff]  ;;  %v3977_v3 = vmax.f32 %v1119_v14, 0.0  ;;  %v4233_v17 = vmax.f32 %v1159_v53, 0.0 }
 0x84b   : > { %4577 = vmatpush.msra.mxu0 %v3497_v55  ;;  %4597 = vmatpush.msra.mxu1 %v3753_v10  ;;  %v1117_v47 = vadd.f32 %v15377_v42, %v11469_v13  ;;  %v15379_v58 = vld [vmem:[#allocation20_spill] sm:$0xff]  ;;  %v15382_v42 = vld [vmem:[#allocation189_spill] sm:$0xff]  ;;  %v3449_v30 = vmax.f32 %v1037_v36, 0.0  ;;  %v4217_v53 = vmax.f32 %v1157_v41, 0.0 }
 0x84c   : > { %4617 = vmatpush.msra.mxu2 %v4009_v39  ;;  %4637 = vmatpush.msra.mxu3 %v4265_v11  ;;  %v1034_v45 = vadd.f32 %v15379_v58, %v11469_v13  ;;  %v15380_v54 = vld [vmem:[#allocation76_spill] sm:$0xff]  ;;  %v1154_v2 = vadd.f32 %v15382_v42, %v11469_v13  ;;  %v3705_v26 = vmax.f32 %v1077_v56, 0.0 }
 0x84d   : > { %v1074_v16 = vadd.f32 %v15380_v54, %v11469_v13  ;;  %4578 = vmatpush.msra.mxu0 %v3481_v62  ;;  %4598 = vmatpush.msra.mxu1 %v3737_v12  ;;  %v15381_v55 = vld [vmem:[#allocation132_spill] sm:$0xff]  ;;  %v3961_v14 = vmax.f32 %v1117_v47, 0.0 }
 0x84e   : > { %v1114_v10 = vadd.f32 %v15381_v55, %v11469_v13  ;;  %4618 = vmatpush.msra.mxu2 %v3993_v52  ;;  %4638 = vmatpush.msra.mxu3 %v4249_v61  ;;  %v15383_v39 = vld [vmem:[#allocation16_spill] sm:$0xff]  ;;  %v15386_v55 = vld [vmem:[#allocation185_spill] sm:$0xff]  ;;  %v3433_v36 = vmax.f32 %v1034_v45, 0.0  ;;  %v4201_v41 = vmax.f32 %v1154_v2, 0.0 }
 0x84f   : > { %v1032_v11 = vadd.f32 %v15383_v39, %v11469_v13  ;;  %v15384_v58 = vld [vmem:[#allocation72_spill] sm:$0xff]  ;;  %4579 = vmatpush.msra.mxu0 %v3465_v0  ;;  %4599 = vmatpush.msra.mxu1 %v3721_v28  ;;  %v1152_v42 = vadd.f32 %v15386_v55, %v11469_v13  ;;  %v3689_v56 = vmax.f32 %v1074_v16, 0.0 }
 0x850   : > { %v1072_v54 = vadd.f32 %v15384_v58, %v11469_v13  ;;  %v15385_v62 = vld [vmem:[#allocation128_spill] sm:$0xff]  ;;  %4619 = vmatpush.msra.mxu2 %v3977_v3  ;;  %4639 = vmatpush.msra.mxu3 %v4233_v17  ;;  %v3945_v47 = vmax.f32 %v1114_v10, 0.0 }
 0x851   : > { %v1112_v12 = vadd.f32 %v15385_v62, %v11469_v13  ;;  %v15387_v52 = vld [vmem:[#allocation12_spill] sm:$0xff]  ;;  %4580 = vmatpush.msra.mxu0 %v3449_v30  ;;  %4600 = vmatpush.msra.mxu1 %v3705_v26  ;;  %v15390_v62 = vld [vmem:[#allocation181_spill] sm:$0xff]  ;;  %v3417_v45 = vmax.f32 %v1032_v11, 0.0  ;;  %v4185_v2 = vmax.f32 %v1152_v42, 0.0 }
 0x852   : > { %v1029_v61 = vadd.f32 %v15387_v52, %v11469_v13  ;;  %v15388_v39 = vld [vmem:[#allocation68_spill] sm:$0xff]  ;;  %v1149_v55 = vadd.f32 %v15390_v62, %v11469_v13  ;;  %4620 = vmatpush.msra.mxu2 %v3961_v14  ;;  %4640 = vmatpush.msra.mxu3 %v4217_v53  ;;  %v3673_v16 = vmax.f32 %v1072_v54, 0.0  ;;  %v15395_v53 = vld [vmem:[#allocation61_spill] sm:$0xff] }
 0x853   : > { %v1069_v58 = vadd.f32 %v15388_v39, %v11469_v13  ;;  %v15389_v0 = vld [vmem:[#allocation124_spill] sm:$0xff]  ;;  %4581 = vmatpush.msra.mxu0 %v3433_v36  ;;  %4601 = vmatpush.msra.mxu1 %v3689_v56  ;;  %v3929_v10 = vmax.f32 %v1112_v12, 0.0  ;;  %v1233_v11 = vadd.f32 %v15395_v53, %v11547_v46  ;;  %v15397_v56 = vld [vmem:[#allocation174_spill] sm:$0xff] }
 0x854   : > { %v1109_v28 = vadd.f32 %v15389_v0, %v11469_v13  ;;  %v15391_v3 = vld [vmem:[#allocation8_spill] sm:$0xff]  ;;  %v15394_v0 = vld [vmem:[#allocation177_spill] sm:$0xff]  ;;  %4621 = vmatpush.msra.mxu2 %v3945_v47  ;;  %4641 = vmatpush.msra.mxu3 %v4201_v41  ;;  %v3401_v14 = vmax.f32 %v1029_v61, 0.0  ;;  %v1313_v12 = vadd.f32 %v15397_v56, %v11547_v46  ;;  %v15399_v47 = vld [vmem:[#allocation58_spill] sm:$0xff] }
 0x855   : > { %v1027_v17 = vadd.f32 %v15391_v3, %v11469_v13  ;;  %v15392_v52 = vld [vmem:[#allocation64_spill] sm:$0xff]  ;;  %v1147_v62 = vadd.f32 %v15394_v0, %v11469_v13  ;;  %v3657_v3 = vmax.f32 %v1069_v58, 0.0  ;;  %4582 = vmatpush.msra.mxu0 %v3417_v45  ;;  %4602 = vmatpush.msra.mxu1 %v3673_v16  ;;  %v1231_v41 = vadd.f32 %v15399_v47, %v11547_v46  ;;  %v15400_v0 = vld [vmem:[#allocation114_spill] sm:$0xff]  ;;  %v15401_v45 = vld [vmem:[#allocation171_spill] sm:$0xff] }
 0x856   : > { %v1067_v39 = vadd.f32 %v15392_v52, %v11469_v13  ;;  %v15393_v30 = vld [vmem:[#allocation120_spill] sm:$0xff]  ;;  %v15396_v52 = vld [vmem:[#allocation117_spill] sm:$0xff]  ;;  %v3913_v36 = vmax.f32 %v1109_v28, 0.0  ;;  %4622 = vmatpush.msra.mxu2 %v3929_v10  ;;  %4642 = vmatpush.msra.mxu3 %v4185_v2  ;;  %v1271_v53 = vadd.f32 %v15400_v0, %v11547_v46  ;;  %v1311_v16 = vadd.f32 %v15401_v45, %v11547_v46 }
 0x857   : > { %v1107_v26 = vadd.f32 %v15393_v30, %v11469_v13  ;;  %v1273_v54 = vadd.f32 %v15396_v52, %v11547_v46  ;;  %v4169_v30 = vmax.f32 %v1149_v55, 0.0  ;;  %v15398_v13 = vld [vmem:[#allocation230_spill] sm:$0xff]  ;;  %v3385_v61 = vmax.f32 %v1027_v17, 0.0  ;;  %4583 = vmatpush.msra.mxu0 %v3401_v14  ;;  %4603 = vmatpush.msra.mxu1 %v3657_v3  ;;  %v15402_v52 = vld [vmem:[#allocation227_spill] sm:$0xff] }
 0x858   : > { %v1353_v42 = vadd.f32 %v15398_v13, %v11547_v46  ;;  %v3641_v58 = vmax.f32 %v1067_v39, 0.0  ;;  %v4153_v55 = vmax.f32 %v1147_v62, 0.0  ;;  %v1351_v56 = vadd.f32 %v15402_v52, %v11547_v46  ;;  %4623 = vmatpush.msra.mxu2 %v3913_v36  ;;  %v15403_v17 = vld [vmem:[#allocation55_spill] sm:$0xff]  ;;  %v15406_v62 = vld [vmem:[#allocation224_spill] sm:$0xff] }
 0x859   : > { %v3897_v28 = vmax.f32 %v1107_v26, 0.0  ;;  %4643 = vmatpush.msra.mxu3 %v4169_v30  ;;  %v1228_v10 = vadd.f32 %v15403_v17, %v11547_v46  ;;  %v3626_v2 = vmax.f32 %v1233_v11, 0.0  ;;  %v15404_v39 = vld [vmem:[#allocation111_spill] sm:$0xff]  ;;  %v3882_v47 = vmax.f32 %v1273_v54, 0.0  ;;  %4584 = vmatpush.msra.mxu0 %v3385_v61  ;;  %v15405_v26 = vld [vmem:[#allocation168_spill] sm:$0xff]  ;;  %v15409_v61 = vld [vmem:[#allocation165_spill] sm:$0xff] }
 0x85a   : > { %v1268_v13 = vadd.f32 %v15404_v39, %v11547_v46  ;;  %4604 = vmatpush.msra.mxu1 %v3641_v58  ;;  %v1308_v14 = vadd.f32 %v15405_v26, %v11547_v46  ;;  %v4138_v3 = vmax.f32 %v1313_v12, 0.0  ;;  %v1348_v0 = vadd.f32 %v15406_v62, %v11547_v46  ;;  %v15407_v36 = vld [vmem:[#allocation52_spill] sm:$0xff]  ;;  %v15410_v39 = vld [vmem:[#allocation221_spill] sm:$0xff] }
 0x85b   : > { %v4394_v45 = vmax.f32 %v1353_v42, 0.0  ;;  %4624 = vmatpush.msra.mxu2 %v3897_v28  ;;  %4644 = vmatpush.msra.mxu3 %v4153_v55  ;;  %v1226_v30 = vadd.f32 %v15407_v36, %v11547_v46  ;;  %v3610_v11 = vmax.f32 %v1231_v41, 0.0  ;;  %v15408_v52 = vld [vmem:[#allocation108_spill] sm:$0xff]  ;;  %v3866_v54 = vmax.f32 %v1271_v53, 0.0  ;;  %v15411_v28 = vld [vmem:[#allocation49_spill] sm:$0xff] }
 0x85c   : > { %v1266_v17 = vadd.f32 %v15408_v52, %v11547_v46  ;;  %4649 = vmatpush.msrb.mxu0 %v3626_v2  ;;  %4669 = vmatpush.msrb.mxu1 %v3882_v47  ;;  %v1306_v58 = vadd.f32 %v15409_v61, %v11547_v46  ;;  %v4122_v12 = vmax.f32 %v1311_v16, 0.0  ;;  %v1346_v26 = vadd.f32 %v15410_v39, %v11547_v46  ;;  %v15412_v62 = vld [vmem:[#allocation105_spill] sm:$0xff]  ;;  %v15413_v2 = vld [vmem:[#allocation162_spill] sm:$0xff] }
 0x85d   : > { %v4378_v42 = vmax.f32 %v1351_v56, 0.0  ;;  %4689 = vmatpush.msrb.mxu2 %v4138_v3  ;;  %4709 = vmatpush.msrb.mxu3 %v4394_v45  ;;  %v1223_v55 = vadd.f32 %v15411_v28, %v11547_v46  ;;  %v3594_v41 = vmax.f32 %v1228_v10, 0.0  ;;  %v1263_v36 = vadd.f32 %v15412_v62, %v11547_v46  ;;  %v15414_v52 = vld [vmem:[#allocation218_spill] sm:$0xff]  ;;  %v15418_v62 = vld [vmem:[#allocation215_spill] sm:$0xff] }
 0x85e   : > { %v3850_v53 = vmax.f32 %v1268_v13, 0.0  ;;  %4650 = vmatpush.msrb.mxu0 %v3610_v11  ;;  %4670 = vmatpush.msrb.mxu1 %v3866_v54  ;;  %v1303_v47 = vadd.f32 %v15413_v2, %v11547_v46  ;;  %v4106_v16 = vmax.f32 %v1308_v14, 0.0  ;;  %v1343_v61 = vadd.f32 %v15414_v52, %v11547_v46  ;;  %v15415_v3 = vld [vmem:[#allocation46_spill] sm:$0xff]  ;;  %v15417_v11 = vld [vmem:[#allocation159_spill] sm:$0xff] }
 0x85f   : > { %v4362_v56 = vmax.f32 %v1348_v0, 0.0  ;;  %4690 = vmatpush.msrb.mxu2 %v4122_v12  ;;  %4710 = vmatpush.msrb.mxu3 %v4378_v42  ;;  %v1221_v45 = vadd.f32 %v15415_v3, %v11547_v46  ;;  %v3578_v10 = vmax.f32 %v1226_v30, 0.0  ;;  %v15416_v39 = vld [vmem:[#allocation102_spill] sm:$0xff]  ;;  %v3834_v13 = vmax.f32 %v1266_v17, 0.0  ;;  %v15419_v12 = vld [vmem:[#allocation43_spill] sm:$0xff] }
 0x860   : > { %v1261_v28 = vadd.f32 %v15416_v39, %v11547_v46  ;;  %4651 = vmatpush.msrb.mxu0 %v3594_v41  ;;  %4671 = vmatpush.msrb.mxu1 %v3850_v53  ;;  %v1301_v54 = vadd.f32 %v15417_v11, %v11547_v46  ;;  %v4090_v14 = vmax.f32 %v1306_v58, 0.0  ;;  %v1341_v2 = vadd.f32 %v15418_v62, %v11547_v46  ;;  %v15420_v52 = vld [vmem:[#allocation99_spill] sm:$0xff]  ;;  %v15421_v41 = vld [vmem:[#allocation156_spill] sm:$0xff] }
 0x861   : > { %v4346_v0 = vmax.f32 %v1346_v26, 0.0  ;;  %4691 = vmatpush.msrb.mxu2 %v4106_v16  ;;  %4711 = vmatpush.msrb.mxu3 %v4362_v56  ;;  %v1218_v42 = vadd.f32 %v15419_v12, %v11547_v46  ;;  %v3562_v30 = vmax.f32 %v1223_v55, 0.0  ;;  %v1258_v3 = vadd.f32 %v15420_v52, %v11547_v46  ;;  %v15422_v39 = vld [vmem:[#allocation212_spill] sm:$0xff]  ;;  %v15426_v52 = vld [vmem:[#allocation209_spill] sm:$0xff] }
 0x862   : > { %v3818_v17 = vmax.f32 %v1263_v36, 0.0  ;;  %4652 = vmatpush.msrb.mxu0 %v3578_v10  ;;  %4672 = vmatpush.msrb.mxu1 %v3834_v13  ;;  %v1298_v53 = vadd.f32 %v15421_v41, %v11547_v46  ;;  %v4074_v58 = vmax.f32 %v1303_v47, 0.0  ;;  %v1338_v11 = vadd.f32 %v15422_v39, %v11547_v46  ;;  %v15423_v16 = vld [vmem:[#allocation40_spill] sm:$0xff]  ;;  %v15425_v10 = vld [vmem:[#allocation153_spill] sm:$0xff] }
 0x863   : > { %v4330_v26 = vmax.f32 %v1343_v61, 0.0  ;;  %4692 = vmatpush.msrb.mxu2 %v4090_v14  ;;  %4712 = vmatpush.msrb.mxu3 %v4346_v0  ;;  %v1216_v56 = vadd.f32 %v15423_v16, %v11547_v46  ;;  %v3546_v55 = vmax.f32 %v1221_v45, 0.0  ;;  %v15424_v62 = vld [vmem:[#allocation96_spill] sm:$0xff]  ;;  %v3802_v36 = vmax.f32 %v1261_v28, 0.0  ;;  %v15427_v14 = vld [vmem:[#allocation37_spill] sm:$0xff] }
 0x864   : > { %v1256_v12 = vadd.f32 %v15424_v62, %v11547_v46  ;;  %4653 = vmatpush.msrb.mxu0 %v3562_v30  ;;  %4673 = vmatpush.msrb.mxu1 %v3818_v17  ;;  %v1296_v13 = vadd.f32 %v15425_v10, %v11547_v46  ;;  %v4058_v47 = vmax.f32 %v1301_v54, 0.0  ;;  %v1336_v41 = vadd.f32 %v15426_v52, %v11547_v46  ;;  %v15428_v39 = vld [vmem:[#allocation93_spill] sm:$0xff]  ;;  %v15430_v62 = vld [vmem:[#allocation206_spill] sm:$0xff] }
 0x865   : > { %v4314_v61 = vmax.f32 %v1341_v2, 0.0  ;;  %4693 = vmatpush.msrb.mxu2 %v4074_v58  ;;  %4713 = vmatpush.msrb.mxu3 %v4330_v26  ;;  %v1213_v0 = vadd.f32 %v15427_v14, %v11547_v46  ;;  %v3530_v45 = vmax.f32 %v1218_v42, 0.0  ;;  %v1253_v16 = vadd.f32 %v15428_v39, %v11547_v46  ;;  %v15429_v30 = vld [vmem:[#allocation149_spill] sm:$0xff]  ;;  %v15434_v39 = vld [vmem:[#allocation202_spill] sm:$0xff] }
 0x866   : > { %v3786_v28 = vmax.f32 %v1258_v3, 0.0  ;;  %4654 = vmatpush.msrb.mxu0 %v3546_v55  ;;  %4674 = vmatpush.msrb.mxu1 %v3802_v36  ;;  %v1293_v17 = vadd.f32 %v15429_v30, %v11547_v46  ;;  %v4042_v54 = vmax.f32 %v1298_v53, 0.0  ;;  %v1333_v10 = vadd.f32 %v15430_v62, %v11547_v46  ;;  %v15431_v58 = vld [vmem:[#allocation33_spill] sm:$0xff] }
 0x867   : > { %v4298_v2 = vmax.f32 %v1338_v11, 0.0  ;;  %4694 = vmatpush.msrb.mxu2 %v4058_v47  ;;  %4714 = vmatpush.msrb.mxu3 %v4314_v61  ;;  %v1211_v26 = vadd.f32 %v15431_v58, %v11547_v46  ;;  %v3514_v42 = vmax.f32 %v1216_v56, 0.0  ;;  %v15432_v52 = vld [vmem:[#allocation89_spill] sm:$0xff]  ;;  %v3770_v3 = vmax.f32 %v1256_v12, 0.0 }
 0x868   : > { %v1251_v14 = vadd.f32 %v15432_v52, %v11547_v46  ;;  %4655 = vmatpush.msrb.mxu0 %v3530_v45  ;;  %4675 = vmatpush.msrb.mxu1 %v3786_v28  ;;  %v15433_v55 = vld [vmem:[#allocation145_spill] sm:$0xff]  ;;  %v4026_v53 = vmax.f32 %v1296_v13, 0.0  ;;  %v1331_v30 = vadd.f32 %v15434_v39, %v11547_v46  ;;  %v4282_v11 = vmax.f32 %v1336_v41, 0.0  ;;  %v15438_v52 = vld [vmem:[#allocation198_spill] sm:$0xff] }
 0x869   : > { %v1291_v36 = vadd.f32 %v15433_v55, %v11547_v46  ;;  %4695 = vmatpush.msrb.mxu2 %v4042_v54  ;;  %4715 = vmatpush.msrb.mxu3 %v4298_v2  ;;  %v15435_v47 = vld [vmem:[#allocation29_spill] sm:$0xff]  ;;  %v3498_v56 = vmax.f32 %v1213_v0, 0.0  ;;  %v3754_v12 = vmax.f32 %v1253_v16, 0.0  ;;  %v4010_v13 = vmax.f32 %v1293_v17, 0.0 }
 0x86a   : > { %v1208_v61 = vadd.f32 %v15435_v47, %v11547_v46  ;;  %v15436_v62 = vld [vmem:[#allocation85_spill] sm:$0xff]  ;;  %4656 = vmatpush.msrb.mxu0 %v3514_v42  ;;  %4676 = vmatpush.msrb.mxu1 %v3770_v3  ;;  %v1328_v55 = vadd.f32 %v15438_v52, %v11547_v46  ;;  %v4266_v41 = vmax.f32 %v1333_v10, 0.0  ;;  %v3482_v0 = vmax.f32 %v1211_v26, 0.0 }
 0x86b   : > { %v1248_v58 = vadd.f32 %v15436_v62, %v11547_v46  ;;  %v15437_v45 = vld [vmem:[#allocation141_spill] sm:$0xff]  ;;  %4696 = vmatpush.msrb.mxu2 %v4026_v53  ;;  %4716 = vmatpush.msrb.mxu3 %v4282_v11  ;;  %v3738_v16 = vmax.f32 %v1251_v14, 0.0  ;;  %v3994_v17 = vmax.f32 %v1291_v36, 0.0  ;;  %v15442_v62 = vld [vmem:[#allocation194_spill] sm:$0xff]  ;;  %v4250_v10 = vmax.f32 %v1331_v30, 0.0  ;;  %v11722_v53 = vpop.f32.mrf.mxu2  ;;  %v11726_v14 = vpop.f32.mrf.mxu0 }
 0x86c   : > { %v1288_v28 = vadd.f32 %v15437_v45, %v11547_v46  ;;  %v15439_v54 = vld [vmem:[#allocation25_spill] sm:$0xff]  ;;  %4657 = vmatpush.msrb.mxu0 %v3498_v56  ;;  %4677 = vmatpush.msrb.mxu1 %v3754_v12  ;;  %v1326_v45 = vadd.f32 %v15442_v62, %v11547_v46  ;;  %15443 = vst [vmem:[#allocation54_spill] sm:$0xff] %v11722_v53  ;;  %v3466_v52 = vmax.f32 %v1208_v61, 0.0  ;;  %v11728_v56 = vpop.f32.mrf.mxu1 }
 0x86d   : > { %v1206_v2 = vadd.f32 %v15439_v54, %v11547_v46  ;;  %v15440_v39 = vld [vmem:[#allocation81_spill] sm:$0xff]  ;;  %4697 = vmatpush.msrb.mxu2 %v4010_v13  ;;  %4717 = vmatpush.msrb.mxu3 %v4266_v41  ;;  %v3722_v54 = vmax.f32 %v1248_v58, 0.0  ;;  %15445 = vst [vmem:[#allocation110_spill] sm:$0xff] %v11726_v14  ;;  %v4234_v13 = vmax.f32 %v1328_v55, 0.0  ;;  %v15966_v14 = vld [vmem:[#allocation471_spill] sm:$0xff] }
 0x86e   : > { %v1246_v47 = vadd.f32 %v15440_v39, %v11547_v46  ;;  %v15441_v42 = vld [vmem:[#allocation137_spill] sm:$0xff]  ;;  %15446 = vst [vmem:[#allocation167_spill] sm:$0xff] %v11728_v56  ;;  %4658 = vmatpush.msrb.mxu0 %v3482_v0  ;;  %4678 = vmatpush.msrb.mxu1 %v3738_v16  ;;  %v4218_v56 = vmax.f32 %v1326_v45, 0.0 }
 0x86f   : > { %v1286_v3 = vadd.f32 %v15441_v42, %v11547_v46  ;;  %v15444_v26 = vld [vmem:[#allocation21_spill] sm:$0xff]  ;;  %v3978_v42 = vmax.f32 %v1288_v28, 0.0  ;;  %4698 = vmatpush.msrb.mxu2 %v3994_v17  ;;  %4718 = vmatpush.msrb.mxu3 %v4250_v10  ;;  %v3450_v58 = vmax.f32 %v1206_v2, 0.0  ;;  %v15453_v10 = vld [vmem:[#allocation186_spill] sm:$0xff] }
 0x870   : > { %v1203_v11 = vadd.f32 %v15444_v26, %v11547_v46  ;;  %v15447_v36 = vld [vmem:[#allocation77_spill] sm:$0xff]  ;;  %v3706_v62 = vmax.f32 %v1246_v47, 0.0  ;;  %v15450_v26 = vld [vmem:[#allocation190_spill] sm:$0xff]  ;;  %4659 = vmatpush.msrb.mxu0 %v3466_v52  ;;  %4679 = vmatpush.msrb.mxu1 %v3722_v54  ;;  %v1321_v2 = vadd.f32 %v15453_v10, %v11547_v46  ;;  %v11744_v47 = vpop.f32.mrf.mxu3 }
 0x871   : > { %v1243_v12 = vadd.f32 %v15447_v36, %v11547_v46  ;;  %v15448_v30 = vld [vmem:[#allocation133_spill] sm:$0xff]  ;;  %v1323_v53 = vadd.f32 %v15450_v26, %v11547_v46  ;;  %v3962_v36 = vmax.f32 %v1286_v3, 0.0  ;;  %4699 = vmatpush.msrb.mxu2 %v3978_v42  ;;  %4719 = vmatpush.msrb.mxu3 %v4234_v13  ;;  %15454 = vst [vmem:[#allocation223_spill] sm:$0xff] %v11744_v47  ;;  %v15462_v10 = vld [vmem:[#allocation178_spill] sm:$0xff] }
 0x872   : > { %v1283_v39 = vadd.f32 %v15448_v30, %v11547_v46  ;;  %v15449_v41 = vld [vmem:[#allocation17_spill] sm:$0xff]  ;;  %v3434_v28 = vmax.f32 %v1203_v11, 0.0  ;;  %4660 = vmatpush.msrb.mxu0 %v3450_v58  ;;  %4680 = vmatpush.msrb.mxu1 %v3706_v62 }
 0x873   : > { %v1201_v61 = vadd.f32 %v15449_v41, %v11547_v46  ;;  %v15451_v0 = vld [vmem:[#allocation73_spill] sm:$0xff]  ;;  %v3690_v52 = vmax.f32 %v1243_v12, 0.0  ;;  %4700 = vmatpush.msrb.mxu2 %v3962_v36  ;;  %4720 = vmatpush.msrb.mxu3 %v4218_v56  ;;  %v4202_v13 = vmax.f32 %v1323_v53, 0.0  ;;  %v15459_v56 = vld [vmem:[#allocation182_spill] sm:$0xff]  ;;  %v4186_v53 = vmax.f32 %v1321_v2, 0.0  ;;  %v11771_v2 = vpop.f32.mrf.mxu0 }
 0x874   : > { %v1241_v16 = vadd.f32 %v15451_v0, %v11547_v46  ;;  %v15452_v55 = vld [vmem:[#allocation129_spill] sm:$0xff]  ;;  %v3946_v54 = vmax.f32 %v1283_v39, 0.0  ;;  %4625 = vmatmul.f32.vlgmr.msra.gmra.mxu2 %v15353_v6  ;;  %4661 = vmatpush.msrb.mxu0 %v3434_v28  ;;  %v1318_v62 = vadd.f32 %v15459_v56, %v11547_v46  ;;  %15464 = vst [vmem:[#allocation107_spill] sm:$0xff] %v11771_v2 }
 0x875   : > { %v1281_v17 = vadd.f32 %v15452_v55, %v11547_v46  ;;  %v15455_v3 = vld [vmem:[#allocation13_spill] sm:$0xff]  ;;  %v3418_v30 = vmax.f32 %v1201_v61, 0.0  ;;  %4681 = vmatpush.msrb.mxu1 %v3690_v52  ;;  %v11760_v55 = vperm.slane %v11466_v37, 4  ;;  %4721 = vmatpush.msrb.mxu3 %v4202_v13  ;;  %v11773_v13 = vpop.f32.mrf.mxu1 }
 0x876   : > { %v1198_v45 = vadd.f32 %v15455_v3, %v11547_v46  ;;  %v15456_v11 = vld [vmem:[#allocation69_spill] sm:$0xff]  ;;  %v3674_v58 = vmax.f32 %v1241_v16, 0.0  ;;  %4701 = vmatpush.msrb.mxu2 %v3946_v54  ;;  %v1316_v3 = vadd.f32 %v15462_v10, %v11547_v46  ;;  %4645 = vmatmul.f32.vlgmr.msra.gmra.mxu3 %v15353_v6  ;;  %15465 = vst [vmem:[#allocation164_spill] sm:$0xff] %v11773_v13 }
 0x877   : > { %v1238_v42 = vadd.f32 %v15456_v11, %v11547_v46  ;;  %v15457_v41 = vld [vmem:[#allocation9_spill] sm:$0xff]  ;;  %v3930_v36 = vmax.f32 %v1281_v17, 0.0  ;;  %4662 = vmatpush.msrb.mxu0 %v3418_v30  ;;  %v11766_v11 = vpop.f32.mrf.mxu2  ;;  %v1402_v17 = vadd.f32 %v9521_v49, %v11760_v55  ;;  %4722 = vmatpush.msrb.mxu3 %v4186_v53 }
 0x878   : > { %v1196_v26 = vadd.f32 %v15457_v41, %v11547_v46  ;;  %v15458_v12 = vld [vmem:[#allocation125_spill] sm:$0xff]  ;;  %15463 = vst [vmem:[#allocation51_spill] sm:$0xff] %v11766_v11  ;;  %4682 = vmatpush.msrb.mxu1 %v3674_v58  ;;  %v3402_v52 = vmax.f32 %v1198_v45, 0.0  ;;  %v4170_v41 = vmax.f32 %v1318_v62, 0.0  ;;  %4585 = vmatmul.f32.vlgmr.msra.gmra.mxu0 %v15353_v6  ;;  %v1522_v58 = vadd.f32 %v10210_v24, %v11760_v55 }
 0x879   : > { %v1278_v39 = vadd.f32 %v15458_v12, %v11547_v46  ;;  %v15460_v61 = vld [vmem:[#allocation65_spill] sm:$0xff]  ;;  %v3658_v54 = vmax.f32 %v1238_v42, 0.0  ;;  %4702 = vmatpush.msrb.mxu2 %v3930_v36  ;;  %v1482_v12 = vadd.f32 %v9909_v63, %v11760_v55  ;;  %4605 = vmatmul.f32.vlgmr.msra.gmra.mxu1 %v15353_v6  ;;  %v1400_v42 = vadd.f32 %v9505_v48, %v11760_v55  ;;  %v11791_v48 = vpop.f32.mrf.mxu3 }
 0x87a   : > { %v1236_v0 = vadd.f32 %v15460_v61, %v11547_v46  ;;  %v15461_v16 = vld [vmem:[#allocation121_spill] sm:$0xff]  ;;  %v3386_v45 = vmax.f32 %v1196_v26, 0.0  ;;  %4663 = vmatpush.msrb.mxu0 %v3402_v52  ;;  %v4154_v56 = vmax.f32 %v1316_v3, 0.0  ;;  %4723 = vmatpush.msrb.mxu3 %v4170_v41  ;;  %v3627_v63 = vmax.f32 %v1402_v17, 0.0  ;;  %15466 = vst [vmem:[#allocation220_spill] sm:$0xff] %v11791_v48 }
 0x87b   : > { %v1276_v28 = vadd.f32 %v15461_v16, %v11547_v46  ;;  %v3914_v30 = vmax.f32 %v1278_v39, 0.0  ;;  %v1442_v46 = vadd.f32 %v9713_v35, %v11760_v55  ;;  %4683 = vmatpush.msrb.mxu1 %v3658_v54  ;;  %v1440_v35 = vadd.f32 %v9697_v1, %v11760_v55  ;;  %v11820_v17 = vpop.f32.mrf.mxu0 }
 0x87c   : > { %v3642_v49 = vmax.f32 %v1236_v0, 0.0  ;;  %v1480_v26 = vadd.f32 %v9893_v20, %v11760_v55  ;;  %v1520_v62 = vadd.f32 %v10197_v15, %v11760_v55  ;;  %4664 = vmatpush.msrb.mxu0 %v3386_v45  ;;  %v4139_v61 = vmax.f32 %v1482_v12, 0.0  ;;  %4724 = vmatpush.msrb.mxu3 %v4154_v56 }
 0x87d   : > { %v3898_v39 = vmax.f32 %v1276_v28, 0.0  ;;  %4703 = vmatpush.msrb.mxu2 %v3914_v30  ;;  %v3883_v24 = vmax.f32 %v1442_v46, 0.0  ;;  %v1397_v1 = vadd.f32 %v9497_v18, %v11760_v55  ;;  %v3611_v0 = vmax.f32 %v1400_v42, 0.0  ;;  %v11822_v30 = vpop.f32.mrf.mxu1 }
 0x87e   : > { %4684 = vmatpush.msrb.mxu1 %v3642_v49  ;;  %v1437_v36 = vadd.f32 %v9689_v29, %v11760_v55  ;;  %v4395_v53 = vmax.f32 %v1522_v58, 0.0  ;;  %4729 = vmatpush.msra.mxu0 %v3627_v63  ;;  %v3867_v20 = vmax.f32 %v1440_v35, 0.0  ;;  %v1477_v15 = vadd.f32 %v9885_v4, %v11760_v55  ;;  %15468 = vst [vmem:[#allocation104_spill] sm:$0xff] %v11822_v30 }
 0x87f   : > { %4704 = vmatpush.msrb.mxu2 %v3898_v39  ;;  %v1517_v16 = vadd.f32 %v10189_v51, %v11760_v55  ;;  %v1395_v18 = vadd.f32 %v9481_v31, %v11760_v55  ;;  %v1435_v28 = vadd.f32 %v9673_v22, %v11760_v55  ;;  %v4123_v29 = vmax.f32 %v1480_v26, 0.0  ;;  %v11813_v52 = vpop.f32.mrf.mxu2  ;;  %4725 = vmatmul.f32.vlgmr.msrb.gmra.mxu3 %v15353_v6 }
 0x880   : > { %4705 = vmatmul.f32.vlgmr.msrb.gmra.mxu2 %v15353_v6  ;;  %4749 = vmatpush.msra.mxu1 %v3883_v24  ;;  %v4379_v10 = vmax.f32 %v1520_v62, 0.0  ;;  %v11807_v3 = vperm.slane %v11466_v37, 5  ;;  %v1475_v4 = vadd.f32 %v9865_v5, %v11760_v55  ;;  %v1515_v51 = vadd.f32 %v10176_v34, %v11760_v55  ;;  %15467 = vst [vmem:[#allocation48_spill] sm:$0xff] %v11813_v52  ;;  %v15750_v52 = vld [vmem:[#allocation540_spill] sm:$0xff] }
 0x881   : > { %4769 = vmatpush.msra.mxu2 %v4139_v61  ;;  %4789 = vmatpush.msra.mxu3 %v4395_v53  ;;  %v1392_v31 = vadd.f32 %v9473_v32, %v11760_v55  ;;  %v3595_v22 = vmax.f32 %v1397_v1, 0.0  ;;  %v1432_v54 = vadd.f32 %v9665_v59, %v11760_v55  ;;  %v3851_v37 = vmax.f32 %v1437_v36, 0.0  ;;  %v11842_v56 = vpop.f32.mrf.mxu3  ;;  %v15471_v61 = vld [vmem:[#allocation376_spill] sm:$0xff]  ;;  %v15472_v36 = vld [vmem:[#allocation259_spill] sm:$0xff] }
 0x882   : > { %4730 = vmatpush.msra.mxu0 %v3611_v0  ;;  %4750 = vmatpush.msra.mxu1 %v3867_v20  ;;  %v1472_v5 = vadd.f32 %v9857_v25, %v11760_v55  ;;  %v4107_v34 = vmax.f32 %v1477_v15, 0.0  ;;  %v1512_v41 = vadd.f32 %v10168_v23, %v11760_v55  ;;  %v4363_v46 = vmax.f32 %v1517_v16, 0.0  ;;  %15469 = vst [vmem:[#allocation161_spill] sm:$0xff] %v11842_v56  ;;  %v15473_v20 = vld [vmem:[#allocation315_spill] sm:$0xff] }
 0x883   : > { %4770 = vmatpush.msra.mxu2 %v4123_v29  ;;  %4790 = vmatpush.msra.mxu3 %v4379_v10  ;;  %v1390_v32 = vadd.f32 %v9457_v19, %v11760_v55  ;;  %v3579_v59 = vmax.f32 %v1395_v18, 0.0  ;;  %v1430_v12 = vadd.f32 %v9649_v8, %v11760_v55  ;;  %v3835_v45 = vmax.f32 %v1435_v28, 0.0  ;;  %v15474_v18 = vld [vmem:[#allocation372_spill] sm:$0xff] }
 0x884   : > { %4665 = vmatmul.f32.vlgmr.msrb.gmra.mxu0 %v15353_v6  ;;  %4685 = vmatmul.f32.vlgmr.msrb.gmra.mxu1 %v15353_v6  ;;  %v1470_v25 = vadd.f32 %v9841_v9, %v11760_v55  ;;  %v4091_v49 = vmax.f32 %v1475_v4, 0.0  ;;  %v1510_v23 = vadd.f32 %v10155_v44, %v11760_v55  ;;  %v4347_v42 = vmax.f32 %v1515_v51, 0.0  ;;  %v15476_v51 = vld [vmem:[#allocation255_spill] sm:$0xff] }
 0x885   : > { %4731 = vmatpush.msra.mxu0 %v3595_v22  ;;  %4751 = vmatpush.msra.mxu1 %v3851_v37  ;;  %v1387_v19 = vadd.f32 %v9449_v21, %v11760_v55  ;;  %v3563_v58 = vmax.f32 %v1392_v31, 0.0  ;;  %v1427_v8 = vadd.f32 %v9641_v38, %v11760_v55  ;;  %v3819_v39 = vmax.f32 %v1432_v54, 0.0  ;;  %v15470_v38 = vld [vmem:[#allocation319_spill] sm:$0xff] }
 0x886   : > { %4771 = vmatpush.msra.mxu2 %v4107_v34  ;;  %4791 = vmatpush.msra.mxu3 %v4363_v46  ;;  %v1467_v9 = vadd.f32 %v9833_v60, %v11760_v55  ;;  %v4075_v35 = vmax.f32 %v1472_v5, 0.0  ;;  %v1507_v44 = vadd.f32 %v10147_v50, %v11760_v55  ;;  %v4331_v63 = vmax.f32 %v1512_v41, 0.0  ;;  %v15477_v54 = vld [vmem:[#allocation311_spill] sm:$0xff]  ;;  %v11870_v34 = vpop.f32.mrf.mxu0  ;;  %v11872_v41 = vpop.f32.mrf.mxu1 }
 0x887   : > { %4732 = vmatpush.msra.mxu0 %v3579_v59  ;;  %4752 = vmatpush.msra.mxu1 %v3835_v45  ;;  %v1385_v21 = vadd.f32 %v9433_v40, %v11760_v55  ;;  %v3547_v26 = vmax.f32 %v1390_v32, 0.0  ;;  %v1425_v62 = vadd.f32 %v15470_v38, %v11760_v55  ;;  %v3803_v24 = vmax.f32 %v1430_v12, 0.0  ;;  %v11864_v4 = vpop.f32.mrf.mxu2  ;;  %15478 = vst [vmem:[#allocation217_spill] sm:$0xff] %v11872_v41  ;;  %v15480_v45 = vld [vmem:[#allocation251_spill] sm:$0xff] }
 0x888   : > { %4772 = vmatpush.msra.mxu2 %v4091_v49  ;;  %4792 = vmatpush.msra.mxu3 %v4347_v42  ;;  %v1465_v60 = vadd.f32 %v15471_v61, %v11760_v55  ;;  %v4059_v1 = vmax.f32 %v1470_v25, 0.0  ;;  %v1505_v50 = vadd.f32 %v10134_v43, %v11760_v55  ;;  %v4315_v0 = vmax.f32 %v1510_v23, 0.0  ;;  %15475 = vst [vmem:[#allocation45_spill] sm:$0xff] %v11864_v4  ;;  %v15481_v23 = vld [vmem:[#allocation307_spill] sm:$0xff] }
 0x889   : > { %4733 = vmatpush.msra.mxu0 %v3563_v58  ;;  %4753 = vmatpush.msra.mxu1 %v3819_v39  ;;  %v1382_v40 = vadd.f32 %v15472_v36, %v11760_v55  ;;  %v3531_v53 = vmax.f32 %v1387_v19, 0.0  ;;  %v1422_v15 = vadd.f32 %v15473_v20, %v11760_v55  ;;  %v3787_v16 = vmax.f32 %v1427_v8, 0.0  ;;  %v15482_v58 = vld [vmem:[#allocation364_spill] sm:$0xff] }
 0x88a   : > { %4773 = vmatpush.msra.mxu2 %v4075_v35  ;;  %4793 = vmatpush.msra.mxu3 %v4331_v63  ;;  %v1462_v28 = vadd.f32 %v15474_v18, %v11760_v55  ;;  %v4043_v29 = vmax.f32 %v1467_v9, 0.0  ;;  %v1502_v43 = vadd.f32 %v10126_v57, %v11760_v55  ;;  %v4299_v10 = vmax.f32 %v1507_v44, 0.0  ;;  %v15479_v57 = vld [vmem:[#allocation368_spill] sm:$0xff]  ;;  %v15483_v35 = vld [vmem:[#allocation247_spill] sm:$0xff] }
 0x88b   : > { %4734 = vmatpush.msra.mxu0 %v3547_v26  ;;  %4754 = vmatpush.msra.mxu1 %v3803_v24  ;;  %v1380_v31 = vadd.f32 %v15476_v51, %v11760_v55  ;;  %v3515_v22 = vmax.f32 %v1385_v21, 0.0  ;;  %v1420_v37 = vadd.f32 %v15477_v54, %v11760_v55  ;;  %v3771_v5 = vmax.f32 %v1425_v62, 0.0  ;;  %v15484_v21 = vld [vmem:[#allocation303_spill] sm:$0xff]  ;;  %v11890_v62 = vpop.f32.mrf.mxu3  ;;  %v15486_v24 = vld [vmem:[#allocation360_spill] sm:$0xff] }
 0x88c   : > { %4774 = vmatpush.msra.mxu2 %v4059_v1  ;;  %4794 = vmatpush.msra.mxu3 %v4315_v0  ;;  %v1460_v46 = vadd.f32 %v15479_v57, %v11760_v55  ;;  %v4027_v32 = vmax.f32 %v1465_v60, 0.0  ;;  %v1500_v59 = vadd.f32 %v10113_v33, %v11760_v55  ;;  %v4283_v12 = vmax.f32 %v1505_v50, 0.0  ;;  %15485 = vst [vmem:[#allocation101_spill] sm:$0xff] %v11890_v62  ;;  %v15487_v50 = vld [vmem:[#allocation243_spill] sm:$0xff] }
 0x88d   : > { %4735 = vmatpush.msra.mxu0 %v3531_v53  ;;  %4755 = vmatpush.msra.mxu1 %v3787_v16  ;;  %v1377_v25 = vadd.f32 %v15480_v45, %v11760_v55  ;;  %v3499_v49 = vmax.f32 %v1382_v40, 0.0  ;;  %v1417_v42 = vadd.f32 %v15481_v23, %v11760_v55  ;;  %v3755_v19 = vmax.f32 %v1422_v15, 0.0  ;;  %v15488_v40 = vld [vmem:[#allocation299_spill] sm:$0xff]  ;;  %v15489_v15 = vld [vmem:[#allocation356_spill] sm:$0xff] }
 0x88e   : > { %4775 = vmatpush.msra.mxu2 %v4043_v29  ;;  %4795 = vmatpush.msra.mxu3 %v4299_v10  ;;  %v1457_v8 = vadd.f32 %v15482_v58, %v11760_v55  ;;  %v4011_v39 = vmax.f32 %v1462_v28, 0.0  ;;  %v1497_v33 = vadd.f32 %v10105_v7, %v11760_v55  ;;  %v4267_v9 = vmax.f32 %v1502_v43, 0.0  ;;  %v15490_v28 = vld [vmem:[#allocation146_spill] sm:$0xff]  ;;  %v15491_v43 = vld [vmem:[#allocation239_spill] sm:$0xff]  ;;  %v11918_v58 = vpop.f32.mrf.mxu0 }
 0x88f   : > { %4736 = vmatpush.msra.mxu0 %v3515_v22  ;;  %4756 = vmatpush.msra.mxu1 %v3771_v5  ;;  %v1375_v44 = vadd.f32 %v15483_v35, %v11760_v55  ;;  %v3483_v63 = vmax.f32 %v1380_v31, 0.0  ;;  %v1415_v26 = vadd.f32 %v15484_v21, %v11760_v55  ;;  %v3739_v38 = vmax.f32 %v1420_v37, 0.0  ;;  %v15492_v31 = vld [vmem:[#allocation295_spill] sm:$0xff]  ;;  %v15493_v37 = vld [vmem:[#allocation352_spill] sm:$0xff]  ;;  %15498 = vst [vmem:[#allocation214_spill] sm:$0xff] %v11918_v58  ;;  %v15501_v35 = vld [vmem:[#allocation405_spill] sm:$0xff] }
 0x890   : > { %4776 = vmatpush.msra.mxu2 %v4027_v32  ;;  %4796 = vmatpush.msra.mxu3 %v4283_v12  ;;  %v1455_v61 = vadd.f32 %v15486_v24, %v11760_v55  ;;  %v3995_v60 = vmax.f32 %v1460_v46, 0.0  ;;  %v1495_v7 = vadd.f32 %v10092_v27, %v11760_v55  ;;  %v4251_v1 = vmax.f32 %v1500_v59, 0.0  ;;  %v15494_v46 = vld [vmem:[#allocation408_spill] sm:$0xff]  ;;  %v11912_v12 = vpop.f32.mrf.mxu2  ;;  %v15496_v45 = vld [vmem:[#allocation235_spill] sm:$0xff] }
 0x891   : > { %4737 = vmatpush.msra.mxu0 %v3499_v49  ;;  %4757 = vmatpush.msra.mxu1 %v3755_v19  ;;  %v1372_v0 = vadd.f32 %v15487_v50, %v11760_v55  ;;  %v3467_v36 = vmax.f32 %v1377_v25, 0.0  ;;  %v1412_v53 = vadd.f32 %v15488_v40, %v11760_v55  ;;  %v3723_v20 = vmax.f32 %v1417_v42, 0.0  ;;  %15495 = vst [vmem:[#allocation158_spill] sm:$0xff] %v11912_v12  ;;  %v15497_v23 = vld [vmem:[#allocation291_spill] sm:$0xff] }
 0x892   : > { %4777 = vmatpush.msra.mxu2 %v4011_v39  ;;  %4797 = vmatpush.msra.mxu3 %v4267_v9  ;;  %v1452_v16 = vadd.f32 %v15489_v15, %v11760_v55  ;;  %v3979_v18 = vmax.f32 %v1457_v8, 0.0  ;;  %v1492_v27 = vadd.f32 %v15490_v28, %v11760_v55  ;;  %v4235_v29 = vmax.f32 %v1497_v33, 0.0  ;;  %v11920_v8 = vpop.f32.mrf.mxu1  ;;  %v15500_v39 = vld [vmem:[#allocation348_spill] sm:$0xff]  ;;  %v15502_v21 = vld [vmem:[#allocation231_spill] sm:$0xff] }
 0x893   : > { %4738 = vmatpush.msra.mxu0 %v3483_v63  ;;  %4758 = vmatpush.msra.mxu1 %v3739_v38  ;;  %v1370_v10 = vadd.f32 %v15491_v43, %v11760_v55  ;;  %v3451_v51 = vmax.f32 %v1375_v44, 0.0  ;;  %v1410_v22 = vadd.f32 %v15492_v31, %v11760_v55  ;;  %v3707_v54 = vmax.f32 %v1415_v26, 0.0  ;;  %15499 = vst [vmem:[#allocation42_spill] sm:$0xff] %v11920_v8  ;;  %v15503_v24 = vld [vmem:[#allocation287_spill] sm:$0xff]  ;;  %v15509_v43 = vld [vmem:[#allocation398_spill] sm:$0xff] }
 0x894   : > { %4778 = vmatpush.msra.mxu2 %v3995_v60  ;;  %4798 = vmatpush.msra.mxu3 %v4251_v1  ;;  %v1450_v5 = vadd.f32 %v15493_v37, %v11760_v55  ;;  %v3963_v57 = vmax.f32 %v1455_v61, 0.0  ;;  %v1490_v32 = vadd.f32 %v15494_v46, %v11760_v55  ;;  %v4219_v59 = vmax.f32 %v1495_v7, 0.0  ;;  %v15504_v7 = vld [vmem:[#allocation344_spill] sm:$0xff] }
 0x895   : > { %4739 = vmatpush.msra.mxu0 %v3467_v36  ;;  %4759 = vmatpush.msra.mxu1 %v3723_v20  ;;  %v1367_v25 = vadd.f32 %v15496_v45, %v11760_v55  ;;  %v3435_v49 = vmax.f32 %v1372_v0, 0.0  ;;  %v1407_v42 = vadd.f32 %v15497_v23, %v11760_v55  ;;  %v3691_v19 = vmax.f32 %v1412_v53, 0.0  ;;  %v15505_v0 = vld [vmem:[#allocation401_spill] sm:$0xff]  ;;  %v15506_v20 = vld [vmem:[#allocation284_spill] sm:$0xff] }
 0x896   : > { %4779 = vmatpush.msra.mxu2 %v3979_v18  ;;  %4799 = vmatpush.msra.mxu3 %v4235_v29  ;;  %v1447_v33 = vadd.f32 %v15500_v39, %v11760_v55  ;;  %v3947_v9 = vmax.f32 %v1452_v16, 0.0  ;;  %v1487_v44 = vadd.f32 %v15501_v35, %v11760_v55  ;;  %v4203_v63 = vmax.f32 %v1492_v27, 0.0  ;;  %v15507_v18 = vld [vmem:[#allocation341_spill] sm:$0xff]  ;;  %v11938_v27 = vpop.f32.mrf.mxu3 }
 0x897   : > { %4740 = vmatpush.msra.mxu0 %v3451_v51  ;;  %4760 = vmatpush.msra.mxu1 %v3707_v54  ;;  %v1365_v26 = vadd.f32 %v15502_v21, %v11760_v55  ;;  %v3419_v38 = vmax.f32 %v1370_v10, 0.0  ;;  %v1405_v61 = vadd.f32 %v15503_v24, %v11760_v55  ;;  %v3675_v60 = vmax.f32 %v1410_v22, 0.0  ;;  %15508 = vst [vmem:[#allocation98_spill] sm:$0xff] %v11938_v27  ;;  %v15510_v51 = vld [vmem:[#allocation417_spill] sm:$0xff]  ;;  %v15663_v27 = vld [vmem:[#allocation343_spill] sm:$0xff] }
 0x898   : > { %4780 = vmatpush.msra.mxu2 %v3963_v57  ;;  %4800 = vmatpush.msra.mxu3 %v4219_v59  ;;  %v1445_v1 = vadd.f32 %v15504_v7, %v11760_v55  ;;  %v3931_v50 = vmax.f32 %v1450_v5, 0.0  ;;  %v1485_v36 = vadd.f32 %v15505_v0, %v11760_v55  ;;  %v4187_v40 = vmax.f32 %v1490_v32, 0.0  ;;  %v15511_v54 = vld [vmem:[#allocation281_spill] sm:$0xff]  ;;  %v15512_v57 = vld [vmem:[#allocation338_spill] sm:$0xff]  ;;  %v15513_v59 = vld [vmem:[#allocation395_spill] sm:$0xff] }
 0x899   : > { %4741 = vmatpush.msra.mxu0 %v3435_v49  ;;  %4761 = vmatpush.msra.mxu1 %v3691_v19  ;;  %v3403_v53 = vmax.f32 %v1367_v25, 0.0  ;;  %v1571_v15 = vadd.f32 %v15506_v20, %v11807_v3  ;;  %v3659_v16 = vmax.f32 %v1407_v42, 0.0  ;;  %v1611_v28 = vadd.f32 %v15507_v18, %v11807_v3  ;;  %v15514_v49 = vld [vmem:[#allocation414_spill] sm:$0xff]  ;;  %v15523_v20 = vld [vmem:[#allocation389_spill] sm:$0xff] }
 0x89a   : > { %4781 = vmatpush.msra.mxu2 %v3947_v9  ;;  %4801 = vmatpush.msra.mxu3 %v4203_v63  ;;  %v3915_v29 = vmax.f32 %v1447_v33, 0.0  ;;  %v1651_v10 = vadd.f32 %v15509_v43, %v11807_v3  ;;  %v4171_v55 = vmax.f32 %v1487_v44, 0.0  ;;  %v1691_v31 = vadd.f32 %v15510_v51, %v11807_v3  ;;  %v15515_v42 = vld [vmem:[#allocation278_spill] sm:$0xff]  ;;  %v15516_v33 = vld [vmem:[#allocation335_spill] sm:$0xff]  ;;  %v15517_v44 = vld [vmem:[#allocation392_spill] sm:$0xff] }
 0x89b   : > { %4742 = vmatpush.msra.mxu0 %v3419_v38  ;;  %4762 = vmatpush.msra.mxu1 %v3675_v60  ;;  %v3387_v22 = vmax.f32 %v1365_v26, 0.0  ;;  %v1569_v37 = vadd.f32 %v15511_v54, %v11807_v3  ;;  %v3643_v5 = vmax.f32 %v1405_v61, 0.0  ;;  %v1609_v46 = vadd.f32 %v15512_v57, %v11807_v3  ;;  %v15518_v26 = vld [vmem:[#allocation411_spill] sm:$0xff]  ;;  %v11960_v61 = vpop.f32.mrf.mxu2  ;;  %v15524_v18 = vld [vmem:[#allocation118_spill] sm:$0xff]  ;;  %v15525_v43 = vld [vmem:[#allocation272_spill] sm:$0xff] }
 0x89c   : > { %4782 = vmatpush.msra.mxu2 %v3931_v50  ;;  %4802 = vmatpush.msra.mxu3 %v4187_v40  ;;  %v3899_v32 = vmax.f32 %v1445_v1, 0.0  ;;  %v1649_v45 = vadd.f32 %v15513_v59, %v11807_v3  ;;  %v4155_v25 = vmax.f32 %v1485_v36, 0.0  ;;  %v1689_v23 = vadd.f32 %v15514_v49, %v11807_v3  ;;  %15519 = vst [vmem:[#allocation155_spill] sm:$0xff] %v11960_v61  ;;  %v15520_v60 = vld [vmem:[#allocation275_spill] sm:$0xff]  ;;  %v15521_v50 = vld [vmem:[#allocation332_spill] sm:$0xff]  ;;  %v11966_v40 = vpop.f32.mrf.mxu0  ;;  %v15526_v51 = vld [vmem:[#allocation329_spill] sm:$0xff] }
 0x89d   : > { %4743 = vmatpush.msra.mxu0 %v3403_v53  ;;  %4763 = vmatpush.msra.mxu1 %v3659_v16  ;;  %v1566_v19 = vadd.f32 %v15515_v42, %v11807_v3  ;;  %v3628_v39 = vmax.f32 %v1571_v15, 0.0  ;;  %v1606_v9 = vadd.f32 %v15516_v33, %v11807_v3  ;;  %v3884_v35 = vmax.f32 %v1611_v28, 0.0  ;;  %v11968_v53 = vpop.f32.mrf.mxu1  ;;  %v15527_v54 = vld [vmem:[#allocation386_spill] sm:$0xff]  ;;  %v15528_v57 = vld [vmem:[#allocation179_spill] sm:$0xff]  ;;  %v15529_v59 = vld [vmem:[#allocation269_spill] sm:$0xff] }
 0x89e   : > { %4783 = vmatpush.msra.mxu2 %v3915_v29  ;;  %4803 = vmatpush.msra.mxu3 %v4171_v55  ;;  %v1646_v63 = vadd.f32 %v15517_v44, %v11807_v3  ;;  %v4140_v21 = vmax.f32 %v1651_v10, 0.0  ;;  %v1686_v38 = vadd.f32 %v15518_v26, %v11807_v3  ;;  %v4396_v24 = vmax.f32 %v1691_v31, 0.0  ;;  %15522 = vst [vmem:[#allocation211_spill] sm:$0xff] %v11968_v53  ;;  %v15530_v49 = vld [vmem:[#allocation326_spill] sm:$0xff] }
 0x89f   : > { %4744 = vmatpush.msra.mxu0 %v3387_v22  ;;  %4764 = vmatpush.msra.mxu1 %v3643_v5  ;;  %v1564_v7 = vadd.f32 %v15520_v60, %v11807_v3  ;;  %v3612_v1 = vmax.f32 %v1569_v37, 0.0  ;;  %v1604_v0 = vadd.f32 %v15521_v50, %v11807_v3  ;;  %v3868_v36 = vmax.f32 %v1609_v46, 0.0 }
 0x8a0   : > { %4784 = vmatpush.msra.mxu2 %v3899_v32  ;;  %4804 = vmatpush.msra.mxu3 %v4155_v25  ;;  %v1644_v15 = vadd.f32 %v15523_v20, %v11807_v3  ;;  %v4124_v16 = vmax.f32 %v1649_v45, 0.0  ;;  %v1684_v28 = vadd.f32 %v15524_v18, %v11807_v3  ;;  %v4380_v29 = vmax.f32 %v1689_v23, 0.0 }
 0x8a1   : > { %4809 = vmatpush.msrb.mxu0 %v3628_v39  ;;  %4829 = vmatpush.msrb.mxu1 %v3884_v35  ;;  %v1561_v10 = vadd.f32 %v15525_v43, %v11807_v3  ;;  %v3596_v55 = vmax.f32 %v1566_v19, 0.0  ;;  %v1601_v31 = vadd.f32 %v15526_v51, %v11807_v3  ;;  %v3852_v22 = vmax.f32 %v1606_v9, 0.0  ;;  %v11986_v19 = vpop.f32.mrf.mxu3  ;;  %v15532_v39 = vld [vmem:[#allocation383_spill] sm:$0xff]  ;;  %v15533_v35 = vld [vmem:[#allocation10_spill] sm:$0xff] }
 0x8a2   : > { %4849 = vmatpush.msrb.mxu2 %v4140_v21  ;;  %4869 = vmatpush.msrb.mxu3 %v4396_v24  ;;  %v1641_v37 = vadd.f32 %v15527_v54, %v11807_v3  ;;  %v4108_v5 = vmax.f32 %v1646_v63, 0.0  ;;  %v1681_v46 = vadd.f32 %v15528_v57, %v11807_v3  ;;  %v4364_v32 = vmax.f32 %v1686_v38, 0.0  ;;  %15531 = vst [vmem:[#allocation39_spill] sm:$0xff] %v11986_v19  ;;  %v15534_v21 = vld [vmem:[#allocation266_spill] sm:$0xff]  ;;  %v15535_v24 = vld [vmem:[#allocation323_spill] sm:$0xff]  ;;  %v15543_v57 = vld [vmem:[#allocation260_spill] sm:$0xff] }
 0x8a3   : > { %4810 = vmatpush.msrb.mxu0 %v3612_v1  ;;  %4830 = vmatpush.msrb.mxu1 %v3868_v36  ;;  %v1559_v45 = vadd.f32 %v15529_v59, %v11807_v3  ;;  %v3580_v25 = vmax.f32 %v1564_v7, 0.0  ;;  %v1599_v23 = vadd.f32 %v15530_v49, %v11807_v3  ;;  %v3836_v42 = vmax.f32 %v1604_v0, 0.0  ;;  %v15536_v1 = vld [vmem:[#allocation380_spill] sm:$0xff]  ;;  %v15537_v36 = vld [vmem:[#allocation70_spill] sm:$0xff] }
 0x8a4   : > { %4850 = vmatpush.msrb.mxu2 %v4124_v16  ;;  %4870 = vmatpush.msrb.mxu3 %v4380_v29  ;;  %v1639_v33 = vadd.f32 %v15532_v39, %v11807_v3  ;;  %v4092_v9 = vmax.f32 %v1644_v15, 0.0  ;;  %v1679_v44 = vadd.f32 %v15533_v35, %v11807_v3  ;;  %v4348_v63 = vmax.f32 %v1684_v28, 0.0  ;;  %v15538_v16 = vld [vmem:[#allocation263_spill] sm:$0xff]  ;;  %v15539_v29 = vld [vmem:[#allocation320_spill] sm:$0xff]  ;;  %v12014_v49 = vpop.f32.mrf.mxu0 }
 0x8a5   : > { %4811 = vmatpush.msrb.mxu0 %v3596_v55  ;;  %4831 = vmatpush.msrb.mxu1 %v3852_v22  ;;  %v1556_v26 = vadd.f32 %v15534_v21, %v11807_v3  ;;  %v3564_v38 = vmax.f32 %v1561_v10, 0.0  ;;  %v1596_v60 = vadd.f32 %v15535_v24, %v11807_v3  ;;  %v3820_v7 = vmax.f32 %v1601_v31, 0.0  ;;  %v15540_v55 = vld [vmem:[#allocation377_spill] sm:$0xff]  ;;  %v15541_v22 = vld [vmem:[#allocation130_spill] sm:$0xff]  ;;  %v15544_v59 = vld [vmem:[#allocation316_spill] sm:$0xff]  ;;  %15545 = vst [vmem:[#allocation152_spill] sm:$0xff] %v12014_v49 }
 0x8a6   : > { %4851 = vmatpush.msrb.mxu2 %v4108_v5  ;;  %4871 = vmatpush.msrb.mxu3 %v4364_v32  ;;  %v1636_v50 = vadd.f32 %v15536_v1, %v11807_v3  ;;  %v4076_v0 = vmax.f32 %v1641_v37, 0.0  ;;  %v1676_v20 = vadd.f32 %v15537_v36, %v11807_v3  ;;  %v4332_v15 = vmax.f32 %v1681_v46, 0.0  ;;  %v12008_v5 = vpop.f32.mrf.mxu2 }
 0x8a7   : > { %4812 = vmatpush.msrb.mxu0 %v3580_v25  ;;  %4832 = vmatpush.msrb.mxu1 %v3836_v42  ;;  %v1554_v18 = vadd.f32 %v15538_v16, %v11807_v3  ;;  %v3548_v28 = vmax.f32 %v1559_v45, 0.0  ;;  %v1594_v43 = vadd.f32 %v15539_v29, %v11807_v3  ;;  %v3804_v10 = vmax.f32 %v1599_v23, 0.0  ;;  %15542 = vst [vmem:[#allocation95_spill] sm:$0xff] %v12008_v5  ;;  %v12016_v23 = vpop.f32.mrf.mxu1  ;;  %v15547_v42 = vld [vmem:[#allocation373_spill] sm:$0xff] }
 0x8a8   : > { %4852 = vmatpush.msrb.mxu2 %v4092_v9  ;;  %4872 = vmatpush.msrb.mxu3 %v4348_v63  ;;  %v1634_v51 = vadd.f32 %v15540_v55, %v11807_v3  ;;  %v4060_v31 = vmax.f32 %v1639_v33, 0.0  ;;  %v1674_v54 = vadd.f32 %v15541_v22, %v11807_v3  ;;  %v4316_v37 = vmax.f32 %v1679_v44, 0.0  ;;  %15546 = vst [vmem:[#allocation208_spill] sm:$0xff] %v12016_v23  ;;  %v15548_v9 = vld [vmem:[#allocation191_spill] sm:$0xff]  ;;  %v15549_v63 = vld [vmem:[#allocation256_spill] sm:$0xff]  ;;  %v15556_v55 = vld [vmem:[#allocation365_spill] sm:$0xff] }
 0x8a9   : > { %4813 = vmatpush.msrb.mxu0 %v3564_v38  ;;  %4833 = vmatpush.msrb.mxu1 %v3820_v7  ;;  %v1551_v46 = vadd.f32 %v15543_v57, %v11807_v3  ;;  %v3532_v32 = vmax.f32 %v1556_v26, 0.0  ;;  %v1591_v45 = vadd.f32 %v15544_v59, %v11807_v3  ;;  %v3788_v25 = vmax.f32 %v1596_v60, 0.0  ;;  %v15550_v38 = vld [vmem:[#allocation312_spill] sm:$0xff]  ;;  %v15551_v7 = vld [vmem:[#allocation369_spill] sm:$0xff]  ;;  %v15557_v22 = vld [vmem:[#allocation82_spill] sm:$0xff] }
 0x8aa   : > { %4853 = vmatpush.msrb.mxu2 %v4076_v0  ;;  %4873 = vmatpush.msrb.mxu3 %v4332_v15  ;;  %v1631_v39 = vadd.f32 %v15547_v42, %v11807_v3  ;;  %v4044_v33 = vmax.f32 %v1636_v50, 0.0  ;;  %v1671_v35 = vadd.f32 %v15548_v9, %v11807_v3  ;;  %v4300_v44 = vmax.f32 %v1676_v20, 0.0  ;;  %v15552_v0 = vld [vmem:[#allocation22_spill] sm:$0xff]  ;;  %v15553_v15 = vld [vmem:[#allocation252_spill] sm:$0xff]  ;;  %v15560_v42 = vld [vmem:[#allocation361_spill] sm:$0xff] }
 0x8ab   : > { %4814 = vmatpush.msrb.mxu0 %v3548_v28  ;;  %4834 = vmatpush.msrb.mxu1 %v3804_v10  ;;  %v1549_v21 = vadd.f32 %v15549_v63, %v11807_v3  ;;  %v3516_v26 = vmax.f32 %v1554_v18, 0.0  ;;  %v1589_v24 = vadd.f32 %v15550_v38, %v11807_v3  ;;  %v3772_v60 = vmax.f32 %v1594_v43, 0.0  ;;  %v15554_v28 = vld [vmem:[#allocation308_spill] sm:$0xff]  ;;  %v12034_v10 = vpop.f32.mrf.mxu3  ;;  %v15561_v9 = vld [vmem:[#allocation142_spill] sm:$0xff] }
 0x8ac   : > { %4854 = vmatpush.msrb.mxu2 %v4060_v31  ;;  %4874 = vmatpush.msrb.mxu3 %v4316_v37  ;;  %v1629_v1 = vadd.f32 %v15551_v7, %v11807_v3  ;;  %v4028_v50 = vmax.f32 %v1634_v51, 0.0  ;;  %v1669_v36 = vadd.f32 %v15552_v0, %v11807_v3  ;;  %v4284_v20 = vmax.f32 %v1674_v54, 0.0  ;;  %15555 = vst [vmem:[#allocation36_spill] sm:$0xff] %v12034_v10  ;;  %v15558_v57 = vld [vmem:[#allocation248_spill] sm:$0xff]  ;;  %v15564_v7 = vld [vmem:[#allocation357_spill] sm:$0xff] }
 0x8ad   : > { %4815 = vmatpush.msrb.mxu0 %v3532_v32  ;;  %4835 = vmatpush.msrb.mxu1 %v3788_v25  ;;  %v1546_v16 = vadd.f32 %v15553_v15, %v11807_v3  ;;  %v3500_v18 = vmax.f32 %v1551_v46, 0.0  ;;  %v1586_v29 = vadd.f32 %v15554_v28, %v11807_v3  ;;  %v3756_v43 = vmax.f32 %v1591_v45, 0.0  ;;  %v15559_v59 = vld [vmem:[#allocation304_spill] sm:$0xff]  ;;  %v15567_v28 = vld [vmem:[#allocation203_spill] sm:$0xff] }
 0x8ae   : > { %4855 = vmatpush.msrb.mxu2 %v4044_v33  ;;  %4875 = vmatpush.msrb.mxu3 %v4300_v44  ;;  %v1626_v51 = vadd.f32 %v15556_v55, %v11807_v3  ;;  %v4012_v31 = vmax.f32 %v1631_v39, 0.0  ;;  %v1666_v54 = vadd.f32 %v15557_v22, %v11807_v3  ;;  %v4268_v37 = vmax.f32 %v1671_v35, 0.0  ;;  %v15562_v63 = vld [vmem:[#allocation244_spill] sm:$0xff] }
 0x8af   : > { %4816 = vmatpush.msrb.mxu0 %v3516_v26  ;;  %4836 = vmatpush.msrb.mxu1 %v3772_v60  ;;  %v1544_v46 = vadd.f32 %v15558_v57, %v11807_v3  ;;  %v3484_v32 = vmax.f32 %v1549_v21, 0.0  ;;  %v1584_v45 = vadd.f32 %v15559_v59, %v11807_v3  ;;  %v3740_v25 = vmax.f32 %v1589_v24, 0.0  ;;  %v15563_v24 = vld [vmem:[#allocation300_spill] sm:$0xff]  ;;  %v12062_v55 = vpop.f32.mrf.mxu1  ;;  %v15571_v57 = vld [vmem:[#allocation353_spill] sm:$0xff] }
 0x8b0   : > { %4856 = vmatpush.msrb.mxu2 %v4028_v50  ;;  %4876 = vmatpush.msrb.mxu3 %v4284_v20  ;;  %v1624_v33 = vadd.f32 %v15560_v42, %v11807_v3  ;;  %v3996_v39 = vmax.f32 %v1629_v1, 0.0  ;;  %v1664_v44 = vadd.f32 %v15561_v9, %v11807_v3  ;;  %v4252_v35 = vmax.f32 %v1669_v36, 0.0  ;;  %v12054_v20 = vpop.f32.mrf.mxu2  ;;  %v15566_v36 = vld [vmem:[#allocation240_spill] sm:$0xff]  ;;  %15569 = vst [vmem:[#allocation205_spill] sm:$0xff] %v12062_v55  ;;  %v15771_v55 = vld [vmem:[#allocation135_spill] sm:$0xff] }
 0x8b1   : > { %4817 = vmatpush.msrb.mxu0 %v3500_v18  ;;  %4837 = vmatpush.msrb.mxu1 %v3756_v43  ;;  %v1541_v26 = vadd.f32 %v15562_v63, %v11807_v3  ;;  %v3468_v21 = vmax.f32 %v1546_v16, 0.0  ;;  %v3724_v38 = vmax.f32 %v1586_v29, 0.0  ;;  %v1581_v60 = vadd.f32 %v15563_v24, %v11807_v3  ;;  %15565 = vst [vmem:[#allocation92_spill] sm:$0xff] %v12054_v20  ;;  %v12060_v43 = vpop.f32.mrf.mxu0  ;;  %v15573_v42 = vld [vmem:[#allocation236_spill] sm:$0xff]  ;;  %v15576_v24 = vld [vmem:[#allocation349_spill] sm:$0xff] }
 0x8b2   : > { %4857 = vmatpush.msrb.mxu2 %v4012_v31  ;;  %4877 = vmatpush.msrb.mxu3 %v4268_v37  ;;  %v1621_v50 = vadd.f32 %v15564_v7, %v11807_v3  ;;  %v3980_v1 = vmax.f32 %v1626_v51, 0.0  ;;  %v4236_v0 = vmax.f32 %v1666_v54, 0.0  ;;  %v1539_v15 = vadd.f32 %v15566_v36, %v11807_v3  ;;  %15568 = vst [vmem:[#allocation148_spill] sm:$0xff] %v12060_v43  ;;  %v15570_v51 = vld [vmem:[#allocation296_spill] sm:$0xff]  ;;  %v15577_v7 = vld [vmem:[#allocation406_spill] sm:$0xff] }
 0x8b3   : > { %4818 = vmatpush.msrb.mxu0 %v3484_v32  ;;  %4838 = vmatpush.msrb.mxu1 %v3740_v25  ;;  %v3452_v18 = vmax.f32 %v1544_v46, 0.0  ;;  %v3708_v16 = vmax.f32 %v1584_v45, 0.0  ;;  %v1661_v29 = vadd.f32 %v15567_v28, %v11807_v3  ;;  %v1579_v31 = vadd.f32 %v15570_v51, %v11807_v3  ;;  %v15572_v32 = vld [vmem:[#allocation409_spill] sm:$0xff]  ;;  %v15574_v9 = vld [vmem:[#allocation292_spill] sm:$0xff]  ;;  %v12074_v63 = vpop.f32.mrf.mxu3  ;;  %v15581_v51 = vld [vmem:[#allocation402_spill] sm:$0xff] }
 0x8b4   : > { %4858 = vmatpush.msrb.mxu2 %v3996_v39  ;;  %4878 = vmatpush.msrb.mxu3 %v4252_v35  ;;  %v3964_v22 = vmax.f32 %v1624_v33, 0.0  ;;  %v4220_v54 = vmax.f32 %v1664_v44, 0.0  ;;  %v3436_v37 = vmax.f32 %v1541_v26, 0.0  ;;  %v1619_v46 = vadd.f32 %v15571_v57, %v11807_v3  ;;  %15575 = vst [vmem:[#allocation32_spill] sm:$0xff] %v12074_v63  ;;  %v8166_v26 = vld [vmem:[%s14350_s2] sm:$0xff]  ;;  %v15579_v36 = vld [vmem:[#allocation288_spill] sm:$0xff] }
 0x8b5   : > { %4819 = vmatpush.msrb.mxu0 %v3468_v21  ;;  %4839 = vmatpush.msrb.mxu1 %v3724_v38  ;;  %v1659_v59 = vadd.f32 %v15572_v32, %v11807_v3  ;;  %v3692_v45 = vmax.f32 %v1581_v60, 0.0  ;;  %v3948_v25 = vmax.f32 %v1621_v50, 0.0  ;;  %v1536_v39 = vadd.f32 %v15573_v42, %v11807_v3  ;;  %v15580_v28 = vld [vmem:[#allocation345_spill] sm:$0xff] }
 0x8b6   : > { %4859 = vmatpush.msrb.mxu2 %v3980_v1  ;;  %4879 = vmatpush.msrb.mxu3 %v4236_v0  ;;  %v3420_v33 = vmax.f32 %v1539_v15, 0.0  ;;  %v1576_v44 = vadd.f32 %v15574_v9, %v11807_v3  ;;  %v4204_v35 = vmax.f32 %v1661_v29, 0.0  ;;  %v12080_v21 = vperm.slane %v8166_v26, 6  ;;  %v15578_v1 = vld [vmem:[#allocation232_spill] sm:$0xff] }
 0x8b7   : > { %4820 = vmatpush.msrb.mxu0 %v3452_v18  ;;  %4840 = vmatpush.msrb.mxu1 %v3708_v16  ;;  %v3676_v38 = vmax.f32 %v1579_v31, 0.0  ;;  %v1616_v60 = vadd.f32 %v15576_v24, %v11807_v3  ;;  %v1656_v50 = vadd.f32 %v15577_v7, %v11807_v3  ;;  %v1534_v0 = vadd.f32 %v15578_v1, %v11807_v3  ;;  %v15590_v7 = vld [vmem:[#allocation339_spill] sm:$0xff] }
 0x8b8   : > { %4860 = vmatpush.msrb.mxu2 %v3964_v22  ;;  %4880 = vmatpush.msrb.mxu3 %v4220_v54  ;;  %v1574_v15 = vadd.f32 %v15579_v36, %v11807_v3  ;;  %v3932_v18 = vmax.f32 %v1619_v46, 0.0  ;;  %v4188_v16 = vmax.f32 %v1659_v59, 0.0  ;;  %v1614_v29 = vadd.f32 %v15580_v28, %v11807_v3  ;;  %v15582_v54 = vld [vmem:[#allocation285_spill] sm:$0xff]  ;;  %v15583_v46 = vld [vmem:[#allocation342_spill] sm:$0xff] }
 0x8b9   : > { %4785 = vmatmul.f32.vlgmr.msra.gmra.mxu2 %v15353_v6  ;;  %4821 = vmatpush.msrb.mxu0 %v3436_v37  ;;  %v1654_v31 = vadd.f32 %v15581_v51, %v11807_v3  ;;  %v3404_v22 = vmax.f32 %v1536_v39, 0.0  ;;  %v1740_v37 = vadd.f32 %v15582_v54, %v12080_v21  ;;  %v3660_v57 = vmax.f32 %v1576_v44, 0.0  ;;  %v15586_v39 = vld [vmem:[#allocation282_spill] sm:$0xff]  ;;  %v12109_v24 = vpop.f32.mrf.mxu0 }
 0x8ba   : > { %4841 = vmatpush.msrb.mxu1 %v3692_v45  ;;  %4861 = vmatpush.msrb.mxu2 %v3948_v25  ;;  %v1780_v32 = vadd.f32 %v15583_v46, %v12080_v21  ;;  %v3916_v59 = vmax.f32 %v1616_v60, 0.0  ;;  %v15584_v45 = vld [vmem:[#allocation399_spill] sm:$0xff]  ;;  %v4172_v42 = vmax.f32 %v1656_v50, 0.0  ;;  %v3388_v3 = vmax.f32 %v1534_v0, 0.0  ;;  %15588 = vst [vmem:[#allocation144_spill] sm:$0xff] %v12109_v24  ;;  %v12111_v60 = vpop.f32.mrf.mxu1 }
 0x8bb   : > { %4881 = vmatpush.msrb.mxu3 %v4204_v35  ;;  %4822 = vmatpush.msrb.mxu0 %v3420_v33  ;;  %v1820_v25 = vadd.f32 %v15584_v45, %v12080_v21  ;;  %v12101_v33 = vpop.f32.mrf.mxu2  ;;  %v1738_v9 = vadd.f32 %v15586_v39, %v12080_v21  ;;  %v3644_v44 = vmax.f32 %v1574_v15, 0.0  ;;  %v15587_v35 = vld [vmem:[#allocation418_spill] sm:$0xff]  ;;  %15589 = vst [vmem:[#allocation201_spill] sm:$0xff] %v12111_v60  ;;  %v3900_v1 = vmax.f32 %v1614_v29, 0.0  ;;  %v15593_v29 = vld [vmem:[#allocation279_spill] sm:$0xff]  ;;  %v12125_v45 = vpop.f32.mrf.mxu3  ;;  %v15598_v39 = vld [vmem:[#allocation412_spill] sm:$0xff] }
 0x8bc   : > { %4805 = vmatmul.f32.vlgmr.msra.gmra.mxu3 %v15353_v6  ;;  %4842 = vmatpush.msrb.mxu1 %v3676_v38  ;;  %15585 = vst [vmem:[#allocation88_spill] sm:$0xff] %v12101_v33  ;;  %v1860_v38 = vadd.f32 %v15587_v35, %v12080_v21  ;;  %v1778_v50 = vadd.f32 %v15590_v7, %v12080_v21  ;;  %v4156_v36 = vmax.f32 %v1654_v31, 0.0  ;;  %v3629_v0 = vmax.f32 %v1740_v37, 0.0  ;;  %v15594_v37 = vld [vmem:[#allocation336_spill] sm:$0xff]  ;;  %v15937_v24 = vld [vmem:[#allocation19_spill] sm:$0xff] }
 0x8bd   : > { %4862 = vmatpush.msrb.mxu2 %v3932_v18  ;;  %4882 = vmatpush.msrb.mxu3 %v4188_v16  ;;  %v15591_v18 = vld [vmem:[#allocation396_spill] sm:$0xff]  ;;  %v15592_v16 = vld [vmem:[#allocation415_spill] sm:$0xff]  ;;  %v12119_v51 = vperm.slane %v8166_v26, 7  ;;  %v4141_v54 = vmax.f32 %v1820_v25, 0.0  ;;  %v1735_v31 = vadd.f32 %v15593_v29, %v12080_v21  ;;  %v1775_v46 = vadd.f32 %v15594_v37, %v12080_v21  ;;  %15595 = vst [vmem:[#allocation28_spill] sm:$0xff] %v12125_v45  ;;  %v15596_v26 = vld [vmem:[#allocation233_spill] sm:$0xff] }
 0x8be   : > { %4745 = vmatmul.f32.vlgmr.msra.gmra.mxu0 %v15353_v6  ;;  %4765 = vmatmul.f32.vlgmr.msra.gmra.mxu1 %v15353_v6  ;;  %v1818_v15 = vadd.f32 %v15591_v18, %v12080_v21  ;;  %v1858_v28 = vadd.f32 %v15592_v16, %v12080_v21  ;;  %v15597_v25 = vld [vmem:[#allocation393_spill] sm:$0xff]  ;;  %v15602_v18 = vld [vmem:[#allocation390_spill] sm:$0xff] }
 0x8bf   : > { %4823 = vmatpush.msrb.mxu0 %v3404_v22  ;;  %4843 = vmatpush.msrb.mxu1 %v3660_v57  ;;  %v3885_v22 = vmax.f32 %v1780_v32, 0.0  ;;  %v3613_v57 = vmax.f32 %v1738_v9, 0.0  ;;  %v3869_v32 = vmax.f32 %v1778_v50, 0.0  ;;  %v1855_v9 = vadd.f32 %v15598_v39, %v12080_v21  ;;  %v15601_v50 = vld [vmem:[#allocation234_spill] sm:$0xff]  ;;  %v15604_v29 = vld [vmem:[#allocation273_spill] sm:$0xff] }
 0x8c0   : > { %4863 = vmatpush.msrb.mxu2 %v3916_v59  ;;  %4883 = vmatpush.msrb.mxu3 %v4172_v42  ;;  %v4397_v59 = vmax.f32 %v1860_v38, 0.0  ;;  %v12130_v42 = vadd.f32 %v15596_v26, %v12080_v21  ;;  %v15600_v38 = vld [vmem:[#allocation333_spill] sm:$0xff]  ;;  %v1813_v16 = vadd.f32 %v15602_v18, %v12080_v21  ;;  %v1730_v37 = vadd.f32 %v15604_v29, %v12080_v21  ;;  %v15606_v26 = vld [vmem:[#allocation387_spill] sm:$0xff] }
 0x8c1   : > { %4824 = vmatpush.msrb.mxu0 %v3388_v3  ;;  %4844 = vmatpush.msrb.mxu1 %v3644_v44  ;;  %v1815_v3 = vadd.f32 %v15597_v25, %v12080_v21  ;;  %v15599_v44 = vld [vmem:[#allocation276_spill] sm:$0xff]  ;;  %v1773_v7 = vadd.f32 %v15600_v38, %v12080_v21  ;;  %v1810_v25 = vadd.f32 %v15606_v26, %v12080_v21  ;;  %v12165_v29 = vpop.f32.mrf.mxu0 }
 0x8c2   : > { %4864 = vmatpush.msrb.mxu2 %v3900_v1  ;;  %4884 = vmatpush.msrb.mxu3 %v4156_v36  ;;  %v1733_v35 = vadd.f32 %v15599_v44, %v12080_v21  ;;  %v4125_v1 = vmax.f32 %v1818_v15, 0.0  ;;  %v4381_v36 = vmax.f32 %v1858_v28, 0.0  ;;  %v3597_v15 = vmax.f32 %v1735_v31, 0.0  ;;  %v15605_v28 = vld [vmem:[#allocation330_spill] sm:$0xff]  ;;  %15611 = vst [vmem:[#allocation140_spill] sm:$0xff] %v12165_v29 }
 0x8c3   : > { %4865 = vmatmul.f32.vlgmr.msrb.gmra.mxu2 %v15353_v6  ;;  %4889 = vmatpush.msra.mxu0 %v3629_v0  ;;  %v12142_v0 = vadd.f32 %v15601_v50, %v12119_v51  ;;  %v4109_v39 = vmax.f32 %v1815_v3, 0.0  ;;  %v15607_v44 = vld [vmem:[#allocation6_spill] sm:$0xff]  ;;  %v4365_v50 = vmax.f32 %v1855_v9, 0.0  ;;  %v12157_v18 = vpop.f32.mrf.mxu2  ;;  %v12167_v3 = vpop.f32.mrf.mxu1  ;;  %v15613_v9 = vld [vmem:[#allocation384_spill] sm:$0xff]  ;;  %v4093_v26 = vmax.f32 %v1813_v16, 0.0 }
 0x8c4   : > { %4909 = vmatpush.msra.mxu1 %v3885_v22  ;;  %4929 = vmatpush.msra.mxu2 %v4141_v54  ;;  %v15603_v22 = vld [vmem:[#allocation175_spill] sm:$0xff]  ;;  %v1850_v38 = vadd.f32 %v15607_v44, %v12080_v21  ;;  %15608 = vst [vmem:[#allocation84_spill] sm:$0xff] %v12157_v18  ;;  %v15609_v31 = vld [vmem:[#allocation270_spill] sm:$0xff]  ;;  %v4077_v16 = vmax.f32 %v1810_v25, 0.0  ;;  %v1949_v19 = vadd.f32 %v15663_v27, %v12119_v51 }
 0x8c5   : > { %4949 = vmatpush.msra.mxu3 %v4397_v59  ;;  %4890 = vmatpush.msra.mxu0 %v3613_v57  ;;  %v1853_v54 = vadd.f32 %v15603_v22, %v12080_v21  ;;  %v1770_v57 = vadd.f32 %v15605_v28, %v12080_v21  ;;  %v3853_v59 = vmax.f32 %v1775_v46, 0.0  ;;  %v3581_v46 = vmax.f32 %v1733_v35, 0.0  ;;  %15612 = vst [vmem:[#allocation197_spill] sm:$0xff] %v12167_v3  ;;  %v15614_v44 = vld [vmem:[#allocation66_spill] sm:$0xff]  ;;  %v15615_v35 = vld [vmem:[#allocation267_spill] sm:$0xff] }
 0x8c6   : > { %4885 = vmatmul.f32.vlgmr.msrb.gmra.mxu3 %v15353_v6  ;;  %4910 = vmatpush.msra.mxu1 %v3869_v32  ;;  %v1728_v32 = vadd.f32 %v15609_v31, %v12080_v21  ;;  %v3837_v22 = vmax.f32 %v1773_v7, 0.0  ;;  %v1808_v28 = vadd.f32 %v15613_v9, %v12080_v21  ;;  %v1848_v10 = vadd.f32 %v15614_v44, %v12080_v21  ;;  %v15618_v9 = vld [vmem:[#allocation126_spill] sm:$0xff] }
 0x8c7   : > { %4930 = vmatpush.msra.mxu2 %v4125_v1  ;;  %4950 = vmatpush.msra.mxu3 %v4381_v36  ;;  %v15610_v1 = vld [vmem:[#allocation327_spill] sm:$0xff]  ;;  %v4349_v63 = vmax.f32 %v1853_v54, 0.0  ;;  %v1725_v31 = vadd.f32 %v15615_v35, %v12080_v21  ;;  %v3565_v7 = vmax.f32 %v1730_v37, 0.0  ;;  %v3821_v47 = vmax.f32 %v1770_v57, 0.0  ;;  %v15620_v35 = vld [vmem:[#allocation321_spill] sm:$0xff]  ;;  %v15622_v25 = vld [vmem:[#allocation378_spill] sm:$0xff] }
 0x8c8   : > { %4825 = vmatmul.f32.vlgmr.msrb.gmra.mxu0 %v15353_v6  ;;  %4845 = vmatmul.f32.vlgmr.msrb.gmra.mxu1 %v15353_v6  ;;  %v1768_v36 = vadd.f32 %v15610_v1, %v12080_v21  ;;  %v15616_v1 = vld [vmem:[#allocation324_spill] sm:$0xff]  ;;  %v1845_v44 = vadd.f32 %v15618_v9, %v12080_v21  ;;  %v4333_v54 = vmax.f32 %v1850_v38, 0.0  ;;  %v3549_v37 = vmax.f32 %v1728_v32, 0.0  ;;  %v15623_v38 = vld [vmem:[#allocation187_spill] sm:$0xff]  ;;  %v15624_v32 = vld [vmem:[#allocation261_spill] sm:$0xff] }
 0x8c9   : > { %4891 = vmatpush.msra.mxu0 %v3597_v15  ;;  %4911 = vmatpush.msra.mxu1 %v3853_v59  ;;  %v1765_v45 = vadd.f32 %v15616_v1, %v12080_v21  ;;  %v15617_v15 = vld [vmem:[#allocation381_spill] sm:$0xff]  ;;  %v1763_v1 = vadd.f32 %v15620_v35, %v12080_v21  ;;  %v1720_v9 = vadd.f32 %v15624_v32, %v12080_v21 }
 0x8ca   : > { %4931 = vmatpush.msra.mxu2 %v4109_v39  ;;  %4951 = vmatpush.msra.mxu3 %v4365_v50  ;;  %v1805_v59 = vadd.f32 %v15617_v15, %v12080_v21  ;;  %v15619_v39 = vld [vmem:[#allocation264_spill] sm:$0xff]  ;;  %v3805_v57 = vmax.f32 %v1768_v36, 0.0  ;;  %v4061_v15 = vmax.f32 %v1808_v28, 0.0  ;;  %v15625_v36 = vld [vmem:[#allocation317_spill] sm:$0xff] }
 0x8cb   : > { %4892 = vmatpush.msra.mxu0 %v3581_v46  ;;  %4912 = vmatpush.msra.mxu1 %v3837_v22  ;;  %v1723_v50 = vadd.f32 %v15619_v39, %v12080_v21  ;;  %v12185_v46 = vpop.f32.mrf.mxu3  ;;  %v1803_v22 = vadd.f32 %v15622_v25, %v12080_v21  ;;  %v3533_v39 = vmax.f32 %v1725_v31, 0.0  ;;  %v1760_v35 = vadd.f32 %v15625_v36, %v12080_v21  ;;  %v15627_v25 = vld [vmem:[#allocation18_spill] sm:$0xff]  ;;  %v15629_v32 = vld [vmem:[#allocation313_spill] sm:$0xff] }
 0x8cc   : > { %4932 = vmatpush.msra.mxu2 %v4093_v26  ;;  %4952 = vmatpush.msra.mxu3 %v4349_v63  ;;  %15621 = vst [vmem:[#allocation24_spill] sm:$0xff] %v12185_v46  ;;  %v1843_v26 = vadd.f32 %v15623_v38, %v12080_v21  ;;  %v4317_v63 = vmax.f32 %v1848_v10, 0.0  ;;  %v3789_v46 = vmax.f32 %v1765_v45, 0.0  ;;  %v4045_v28 = vmax.f32 %v1805_v59, 0.0 }
 0x8cd   : > { %4893 = vmatpush.msra.mxu0 %v3565_v7  ;;  %4913 = vmatpush.msra.mxu1 %v3821_v47  ;;  %v15626_v47 = vld [vmem:[#allocation374_spill] sm:$0xff]  ;;  %v1840_v38 = vadd.f32 %v15627_v25, %v12080_v21  ;;  %v4301_v10 = vmax.f32 %v1845_v44, 0.0  ;;  %v3517_v31 = vmax.f32 %v1723_v50, 0.0  ;;  %v1758_v36 = vadd.f32 %v15629_v32, %v12080_v21  ;;  %v15633_v50 = vld [vmem:[#allocation253_spill] sm:$0xff]  ;;  %v12213_v32 = vpop.f32.mrf.mxu0 }
 0x8ce   : > { %4933 = vmatpush.msra.mxu2 %v4077_v16  ;;  %4953 = vmatpush.msra.mxu3 %v4333_v54  ;;  %v1800_v7 = vadd.f32 %v15626_v47, %v12080_v21  ;;  %v15628_v16 = vld [vmem:[#allocation257_spill] sm:$0xff]  ;;  %v3773_v45 = vmax.f32 %v1763_v1, 0.0  ;;  %v4029_v59 = vmax.f32 %v1803_v22, 0.0  ;;  %v15631_v47 = vld [vmem:[#allocation78_spill] sm:$0xff]  ;;  %v4285_v44 = vmax.f32 %v1843_v26, 0.0  ;;  %15635 = vst [vmem:[#allocation136_spill] sm:$0xff] %v12213_v32 }
 0x8cf   : > { %4894 = vmatpush.msra.mxu0 %v3549_v37  ;;  %4914 = vmatpush.msra.mxu1 %v3805_v57  ;;  %v1718_v54 = vadd.f32 %v15628_v16, %v12080_v21  ;;  %v15630_v37 = vld [vmem:[#allocation370_spill] sm:$0xff]  ;;  %v1838_v25 = vadd.f32 %v15631_v47, %v12080_v21  ;;  %v3501_v16 = vmax.f32 %v1720_v9, 0.0  ;;  %v15634_v1 = vld [vmem:[#allocation309_spill] sm:$0xff]  ;;  %v4269_v48 = vmax.f32 %v1840_v38, 0.0 }
 0x8d0   : > { %4934 = vmatpush.msra.mxu2 %v4061_v15  ;;  %4954 = vmatpush.msra.mxu3 %v4317_v63  ;;  %v1798_v57 = vadd.f32 %v15630_v37, %v12080_v21  ;;  %v12207_v15 = vpop.f32.mrf.mxu2  ;;  %v1715_v63 = vadd.f32 %v15633_v50, %v12080_v21  ;;  %v12215_v37 = vpop.f32.mrf.mxu1  ;;  %v15637_v22 = vld [vmem:[#allocation366_spill] sm:$0xff]  ;;  %v4013_v47 = vmax.f32 %v1800_v7, 0.0  ;;  %v15639_v9 = vld [vmem:[#allocation249_spill] sm:$0xff]  ;;  %v3741_v62 = vmax.f32 %v1758_v36, 0.0 }
 0x8d1   : > { %4895 = vmatpush.msra.mxu0 %v3533_v39  ;;  %4915 = vmatpush.msra.mxu1 %v3789_v46  ;;  %15632 = vst [vmem:[#allocation80_spill] sm:$0xff] %v12207_v15  ;;  %v1755_v39 = vadd.f32 %v15634_v1, %v12080_v21  ;;  %v3757_v46 = vmax.f32 %v1760_v35, 0.0  ;;  %v1795_v26 = vadd.f32 %v15637_v22, %v12080_v21  ;;  %v3485_v35 = vmax.f32 %v1718_v54, 0.0  ;;  %v15640_v1 = vld [vmem:[#allocation305_spill] sm:$0xff]  ;;  %v15642_v22 = vld [vmem:[#allocation199_spill] sm:$0xff] }
 0x8d2   : > { %4935 = vmatpush.msra.mxu2 %v4045_v28  ;;  %4955 = vmatpush.msra.mxu3 %v4301_v10  ;;  %15636 = vst [vmem:[#allocation193_spill] sm:$0xff] %v12215_v37  ;;  %v15638_v28 = vld [vmem:[#allocation138_spill] sm:$0xff]  ;;  %v1713_v50 = vadd.f32 %v15639_v9, %v12080_v21  ;;  %v1753_v56 = vadd.f32 %v15640_v1, %v12080_v21  ;;  %v3997_v7 = vmax.f32 %v1798_v57, 0.0  ;;  %v4253_v38 = vmax.f32 %v1838_v25, 0.0  ;;  %v15644_v9 = vld [vmem:[#allocation301_spill] sm:$0xff] }
 0x8d3   : > { %4896 = vmatpush.msra.mxu0 %v3517_v31  ;;  %4916 = vmatpush.msra.mxu1 %v3773_v45  ;;  %v1835_v10 = vadd.f32 %v15638_v28, %v12080_v21  ;;  %v15641_v31 = vld [vmem:[#allocation362_spill] sm:$0xff]  ;;  %v1833_v28 = vadd.f32 %v15642_v22, %v12080_v21  ;;  %v3469_v54 = vmax.f32 %v1715_v63, 0.0  ;;  %v1750_v1 = vadd.f32 %v15644_v9, %v12080_v21  ;;  %v15648_v63 = vld [vmem:[#allocation241_spill] sm:$0xff] }
 0x8d4   : > { %4936 = vmatpush.msra.mxu2 %v4029_v59  ;;  %4956 = vmatpush.msra.mxu3 %v4285_v44  ;;  %v1793_v45 = vadd.f32 %v15641_v31, %v12080_v21  ;;  %v15643_v59 = vld [vmem:[#allocation245_spill] sm:$0xff]  ;;  %v3725_v36 = vmax.f32 %v1755_v39, 0.0  ;;  %v15646_v57 = vld [vmem:[#allocation358_spill] sm:$0xff]  ;;  %v3981_v31 = vmax.f32 %v1795_v26, 0.0  ;;  %v1708_v22 = vadd.f32 %v15648_v63, %v12080_v21 }
 0x8d5   : > { %4897 = vmatpush.msra.mxu0 %v3501_v16  ;;  %4917 = vmatpush.msra.mxu1 %v3757_v46  ;;  %v1710_v44 = vadd.f32 %v15643_v59, %v12080_v21  ;;  %v12233_v16 = vpop.f32.mrf.mxu3  ;;  %v1790_v46 = vadd.f32 %v15646_v57, %v12080_v21  ;;  %v15647_v25 = vld [vmem:[#allocation30_spill] sm:$0xff]  ;;  %v3453_v59 = vmax.f32 %v1713_v50, 0.0  ;;  %v15649_v39 = vld [vmem:[#allocation297_spill] sm:$0xff] }
 0x8d6   : > { %4937 = vmatpush.msra.mxu2 %v4013_v47  ;;  %4957 = vmatpush.msra.mxu3 %v4269_v48  ;;  %15645 = vst [vmem:[#allocation20_spill] sm:$0xff] %v12233_v16  ;;  %v1830_v47 = vadd.f32 %v15647_v25, %v12080_v21  ;;  %v4237_v48 = vmax.f32 %v1835_v10, 0.0  ;;  %v1748_v9 = vadd.f32 %v15649_v39, %v12080_v21  ;;  %v3709_v16 = vmax.f32 %v1753_v56, 0.0  ;;  %v15651_v57 = vld [vmem:[#allocation34_spill] sm:$0xff]  ;;  %v15653_v63 = vld [vmem:[#allocation293_spill] sm:$0xff] }
 0x8d7   : > { %4898 = vmatpush.msra.mxu0 %v3485_v35  ;;  %4918 = vmatpush.msra.mxu1 %v3741_v62  ;;  %v15650_v62 = vld [vmem:[#allocation354_spill] sm:$0xff]  ;;  %v3965_v26 = vmax.f32 %v1793_v45, 0.0  ;;  %v1828_v25 = vadd.f32 %v15651_v57, %v12080_v21  ;;  %v4221_v10 = vmax.f32 %v1833_v28, 0.0  ;;  %v3437_v50 = vmax.f32 %v1710_v44, 0.0 }
 0x8d8   : > { %4938 = vmatpush.msra.mxu2 %v3997_v7  ;;  %4958 = vmatpush.msra.mxu3 %v4253_v38  ;;  %v1788_v35 = vadd.f32 %v15650_v62, %v12080_v21  ;;  %v15652_v7 = vld [vmem:[#allocation237_spill] sm:$0xff]  ;;  %v1745_v39 = vadd.f32 %v15653_v63, %v12080_v21  ;;  %v3693_v56 = vmax.f32 %v1750_v1, 0.0  ;;  %v3949_v45 = vmax.f32 %v1790_v46, 0.0  ;;  %v15655_v62 = vld [vmem:[#allocation150_spill] sm:$0xff]  ;;  %v12262_v63 = vpop.f32.mrf.mxu1 }
 0x8d9   : > { %4899 = vmatpush.msra.mxu0 %v3469_v54  ;;  %4919 = vmatpush.msra.mxu1 %v3725_v36  ;;  %v1705_v38 = vadd.f32 %v15652_v7, %v12080_v21  ;;  %v15654_v54 = vld [vmem:[#allocation350_spill] sm:$0xff]  ;;  %v1825_v57 = vadd.f32 %v15655_v62, %v12080_v21  ;;  %v4205_v28 = vmax.f32 %v1830_v47, 0.0  ;;  %v3389_v44 = vmax.f32 %v12130_v42, 0.0  ;;  %v15657_v7 = vld [vmem:[#allocation289_spill] sm:$0xff]  ;;  %15659 = vst [vmem:[#allocation189_spill] sm:$0xff] %v12262_v63 }
 0x8da   : > { %4939 = vmatpush.msra.mxu2 %v3981_v31  ;;  %4959 = vmatpush.msra.mxu3 %v4237_v48  ;;  %v1785_v36 = vadd.f32 %v15654_v54, %v12080_v21  ;;  %v12255_v31 = vpop.f32.mrf.mxu2  ;;  %v3421_v48 = vmax.f32 %v1708_v22, 0.0  ;;  %v1743_v1 = vadd.f32 %v15657_v7, %v12080_v21  ;;  %v15660_v46 = vld [vmem:[#allocation346_spill] sm:$0xff]  ;;  %v3933_v54 = vmax.f32 %v1788_v35, 0.0 }
 0x8db   : > { %4900 = vmatpush.msra.mxu0 %v3453_v59  ;;  %4920 = vmatpush.msra.mxu1 %v3709_v16  ;;  %15656 = vst [vmem:[#allocation76_spill] sm:$0xff] %v12255_v31  ;;  %v3677_v59 = vmax.f32 %v1748_v9, 0.0  ;;  %v12260_v16 = vpop.f32.mrf.mxu0  ;;  %v1783_v47 = vadd.f32 %v15660_v46, %v12080_v21  ;;  %v4189_v62 = vmax.f32 %v1828_v25, 0.0  ;;  %v3405_v42 = vmax.f32 %v1705_v38, 0.0  ;;  %v15662_v22 = vld [vmem:[#allocation286_spill] sm:$0xff] }
 0x8dc   : > { %4940 = vmatpush.msra.mxu2 %v3965_v26  ;;  %4960 = vmatpush.msra.mxu3 %v4221_v10  ;;  %15658 = vst [vmem:[#allocation132_spill] sm:$0xff] %v12260_v16  ;;  %v15661_v26 = vld [vmem:[#allocation403_spill] sm:$0xff]  ;;  %v1909_v9 = vadd.f32 %v15662_v22, %v12119_v51  ;;  %v3661_v7 = vmax.f32 %v1745_v39, 0.0  ;;  %v4173_v46 = vmax.f32 %v1825_v57, 0.0  ;;  %v15666_v38 = vld [vmem:[#allocation242_spill] sm:$0xff]  ;;  %v3645_v27 = vmax.f32 %v1743_v1, 0.0 }
 0x8dd   : > { %4901 = vmatpush.msra.mxu0 %v3437_v50  ;;  %4921 = vmatpush.msra.mxu1 %v3693_v56  ;;  %v1823_v10 = vadd.f32 %v15661_v26, %v12080_v21  ;;  %v3917_v50 = vmax.f32 %v1785_v36, 0.0  ;;  %v15664_v56 = vld [vmem:[#allocation400_spill] sm:$0xff]  ;;  %v15665_v21 = vld [vmem:[#allocation419_spill] sm:$0xff]  ;;  %v3901_v57 = vmax.f32 %v1783_v47, 0.0  ;;  %v15670_v26 = vld [vmem:[#allocation397_spill] sm:$0xff] }
 0x8de   : > { %4941 = vmatpush.msra.mxu2 %v3949_v45  ;;  %4961 = vmatpush.msra.mxu3 %v4205_v28  ;;  %v1989_v35 = vadd.f32 %v15664_v56, %v12119_v51  ;;  %v2029_v25 = vadd.f32 %v15665_v21, %v12119_v51  ;;  %v12278_v45 = vadd.f32 %v15666_v38, %v12119_v51  ;;  %v15667_v39 = vld [vmem:[#allocation283_spill] sm:$0xff]  ;;  %v15671_v22 = vld [vmem:[#allocation416_spill] sm:$0xff]  ;;  %v3630_v38 = vmax.f32 %v1909_v9, 0.0  ;;  %v15674_v47 = vld [vmem:[#allocation394_spill] sm:$0xff] }
 0x8df   : > { %4902 = vmatpush.msra.mxu0 %v3421_v48  ;;  %4922 = vmatpush.msra.mxu1 %v3677_v59  ;;  %v1907_v28 = vadd.f32 %v15667_v39, %v12119_v51  ;;  %v15668_v48 = vld [vmem:[#allocation340_spill] sm:$0xff]  ;;  %v12284_v59 = vpop.f32.mrf.mxu3  ;;  %v2027_v56 = vadd.f32 %v15671_v22, %v12119_v51  ;;  %v15673_v39 = vld [vmem:[#allocation337_spill] sm:$0xff]  ;;  %v15942_v16 = vld [vmem:[#allocation458_spill] sm:$0xff] }
 0x8e0   : > { %4942 = vmatpush.msra.mxu2 %v3933_v54  ;;  %4962 = vmatpush.msra.mxu3 %v4189_v62  ;;  %v1947_v36 = vadd.f32 %v15668_v48, %v12119_v51  ;;  %15669 = vst [vmem:[#allocation16_spill] sm:$0xff] %v12284_v59  ;;  %v1987_v54 = vadd.f32 %v15670_v26, %v12119_v51  ;;  %v4157_v62 = vmax.f32 %v1823_v10, 0.0  ;;  %v15672_v21 = vld [vmem:[#allocation280_spill] sm:$0xff]  ;;  %v3886_v59 = vmax.f32 %v1949_v19, 0.0  ;;  %v15675_v10 = vld [vmem:[#allocation413_spill] sm:$0xff] }
 0x8e1   : > { %4903 = vmatpush.msra.mxu0 %v3405_v42  ;;  %4923 = vmatpush.msra.mxu1 %v3661_v7  ;;  %v1904_v1 = vadd.f32 %v15672_v21, %v12119_v51  ;;  %v1944_v48 = vadd.f32 %v15673_v39, %v12119_v51  ;;  %v1984_v42 = vadd.f32 %v15674_v47, %v12119_v51  ;;  %v4142_v7 = vmax.f32 %v1989_v35, 0.0  ;;  %v15677_v21 = vld [vmem:[#allocation334_spill] sm:$0xff] }
 0x8e2   : > { %4943 = vmatpush.msra.mxu2 %v3917_v50  ;;  %4963 = vmatpush.msra.mxu3 %v4173_v46  ;;  %v2024_v26 = vadd.f32 %v15675_v10, %v12119_v51  ;;  %v4398_v22 = vmax.f32 %v2029_v25, 0.0  ;;  %v15676_v50 = vld [vmem:[#allocation277_spill] sm:$0xff]  ;;  %v3614_v9 = vmax.f32 %v1907_v28, 0.0  ;;  %v1942_v39 = vadd.f32 %v15677_v21, %v12119_v51  ;;  %v15679_v47 = vld [vmem:[#allocation410_spill] sm:$0xff] }
 0x8e3   : > { %4904 = vmatpush.msra.mxu0 %v3389_v44  ;;  %4924 = vmatpush.msra.mxu1 %v3645_v27  ;;  %v1902_v46 = vadd.f32 %v15676_v50, %v12119_v51  ;;  %v3870_v19 = vmax.f32 %v1947_v36, 0.0  ;;  %v15678_v44 = vld [vmem:[#allocation391_spill] sm:$0xff]  ;;  %v4126_v35 = vmax.f32 %v1987_v54, 0.0  ;;  %v2022_v10 = vadd.f32 %v15679_v47, %v12119_v51  ;;  %v15681_v28 = vld [vmem:[#allocation274_spill] sm:$0xff]  ;;  %v12312_v21 = vpop.f32.mrf.mxu0  ;;  %v15685_v54 = vld [vmem:[#allocation388_spill] sm:$0xff] }
 0x8e4   : > { %4944 = vmatpush.msra.mxu2 %v3901_v57  ;;  %4964 = vmatpush.msra.mxu3 %v4157_v62  ;;  %v1982_v27 = vadd.f32 %v15678_v44, %v12119_v51  ;;  %v4382_v25 = vmax.f32 %v2027_v56, 0.0  ;;  %v12306_v57 = vpop.f32.mrf.mxu2  ;;  %v1899_v62 = vadd.f32 %v15681_v28, %v12119_v51  ;;  %v3598_v50 = vmax.f32 %v1904_v1, 0.0  ;;  %v15682_v36 = vld [vmem:[#allocation331_spill] sm:$0xff]  ;;  %15683 = vst [vmem:[#allocation128_spill] sm:$0xff] %v12312_v21  ;;  %v12314_v44 = vpop.f32.mrf.mxu1  ;;  %v15943_v21 = vld [vmem:[#allocation522_spill] sm:$0xff] }
 0x8e5   : > { %4969 = vmatpush.msrb.mxu0 %v3630_v38  ;;  %4989 = vmatpush.msrb.mxu1 %v3886_v59  ;;  %15680 = vst [vmem:[#allocation72_spill] sm:$0xff] %v12306_v57  ;;  %v1939_v38 = vadd.f32 %v15682_v36, %v12119_v51  ;;  %v3854_v59 = vmax.f32 %v1944_v48, 0.0  ;;  %v1979_v56 = vadd.f32 %v15685_v54, %v12119_v51  ;;  %v4110_v47 = vmax.f32 %v1984_v42, 0.0  ;;  %v15687_v1 = vld [vmem:[#allocation271_spill] sm:$0xff]  ;;  %v15688_v36 = vld [vmem:[#allocation328_spill] sm:$0xff]  ;;  %v15690_v54 = vld [vmem:[#allocation122_spill] sm:$0xff] }
 0x8e6   : > { %5009 = vmatpush.msrb.mxu2 %v4142_v7  ;;  %5029 = vmatpush.msrb.mxu3 %v4398_v22  ;;  %15684 = vst [vmem:[#allocation185_spill] sm:$0xff] %v12314_v44  ;;  %v15686_v7 = vld [vmem:[#allocation62_spill] sm:$0xff]  ;;  %v4366_v5 = vmax.f32 %v2024_v26, 0.0  ;;  %v1897_v28 = vadd.f32 %v15687_v1, %v12119_v51  ;;  %v3582_v48 = vmax.f32 %v1902_v46, 0.0  ;;  %v1937_v20 = vadd.f32 %v15688_v36, %v12119_v51  ;;  %v15692_v1 = vld [vmem:[#allocation325_spill] sm:$0xff] }
 0x8e7   : > { %4970 = vmatpush.msrb.mxu0 %v3614_v9  ;;  %4990 = vmatpush.msrb.mxu1 %v3870_v19  ;;  %v2019_v22 = vadd.f32 %v15686_v7, %v12119_v51  ;;  %v3838_v33 = vmax.f32 %v1942_v39, 0.0  ;;  %v15689_v9 = vld [vmem:[#allocation385_spill] sm:$0xff]  ;;  %v4094_v42 = vmax.f32 %v1982_v27, 0.0  ;;  %v2017_v7 = vadd.f32 %v15690_v54, %v12119_v51  ;;  %v15694_v27 = vld [vmem:[#allocation382_spill] sm:$0xff] }
 0x8e8   : > { %5010 = vmatpush.msrb.mxu2 %v4126_v35  ;;  %5030 = vmatpush.msrb.mxu3 %v4382_v25  ;;  %v1977_v19 = vadd.f32 %v15689_v9, %v12119_v51  ;;  %v4350_v26 = vmax.f32 %v2022_v10, 0.0  ;;  %v15691_v35 = vld [vmem:[#allocation268_spill] sm:$0xff]  ;;  %v3566_v46 = vmax.f32 %v1899_v62, 0.0  ;;  %v1934_v36 = vadd.f32 %v15692_v1, %v12119_v51  ;;  %v15695_v10 = vld [vmem:[#allocation183_spill] sm:$0xff]  ;;  %v15696_v62 = vld [vmem:[#allocation265_spill] sm:$0xff] }
 0x8e9   : > { %4971 = vmatpush.msrb.mxu0 %v3598_v50  ;;  %4991 = vmatpush.msrb.mxu1 %v3854_v59  ;;  %v1894_v25 = vadd.f32 %v15691_v35, %v12119_v51  ;;  %v3822_v39 = vmax.f32 %v1939_v38, 0.0  ;;  %v12332_v50 = vpop.f32.mrf.mxu3  ;;  %v1974_v59 = vadd.f32 %v15694_v27, %v12119_v51  ;;  %v4078_v9 = vmax.f32 %v1979_v56, 0.0  ;;  %v15697_v38 = vld [vmem:[#allocation322_spill] sm:$0xff] }
 0x8ea   : > { %5011 = vmatpush.msrb.mxu2 %v4110_v47  ;;  %5031 = vmatpush.msrb.mxu3 %v4366_v5  ;;  %15693 = vst [vmem:[#allocation12_spill] sm:$0xff] %v12332_v50  ;;  %v2014_v47 = vadd.f32 %v15695_v10, %v12119_v51  ;;  %v4334_v5 = vmax.f32 %v2019_v22, 0.0  ;;  %v1892_v54 = vadd.f32 %v15696_v62, %v12119_v51  ;;  %v3550_v35 = vmax.f32 %v1897_v28, 0.0  ;;  %v15699_v27 = vld [vmem:[#allocation14_spill] sm:$0xff] }
 0x8eb   : > { %4972 = vmatpush.msrb.mxu0 %v3582_v48  ;;  %4992 = vmatpush.msrb.mxu1 %v3838_v33  ;;  %v1932_v1 = vadd.f32 %v15697_v38, %v12119_v51  ;;  %v3806_v50 = vmax.f32 %v1937_v20, 0.0  ;;  %v15698_v33 = vld [vmem:[#allocation379_spill] sm:$0xff]  ;;  %v4062_v56 = vmax.f32 %v1977_v19, 0.0  ;;  %v2012_v10 = vadd.f32 %v15699_v27, %v12119_v51  ;;  %v15701_v62 = vld [vmem:[#allocation318_spill] sm:$0xff] }
 0x8ec   : > { %5012 = vmatpush.msrb.mxu2 %v4094_v42  ;;  %5032 = vmatpush.msrb.mxu3 %v4350_v26  ;;  %v1972_v48 = vadd.f32 %v15698_v33, %v12119_v51  ;;  %v4318_v22 = vmax.f32 %v2017_v7, 0.0  ;;  %v15700_v42 = vld [vmem:[#allocation262_spill] sm:$0xff]  ;;  %v3534_v28 = vmax.f32 %v1894_v25, 0.0  ;;  %v1929_v38 = vadd.f32 %v15701_v62, %v12119_v51  ;;  %v12360_v62 = vpop.f32.mrf.mxu0 }
 0x8ed   : > { %4973 = vmatpush.msrb.mxu0 %v3566_v46  ;;  %4993 = vmatpush.msrb.mxu1 %v3822_v39  ;;  %v1889_v26 = vadd.f32 %v15700_v42, %v12119_v51  ;;  %v3790_v20 = vmax.f32 %v1934_v36, 0.0  ;;  %v15702_v46 = vld [vmem:[#allocation375_spill] sm:$0xff]  ;;  %v4046_v19 = vmax.f32 %v1974_v59, 0.0  ;;  %v15703_v33 = vld [vmem:[#allocation74_spill] sm:$0xff]  ;;  %v4302_v7 = vmax.f32 %v2014_v47, 0.0  ;;  %15707 = vst [vmem:[#allocation124_spill] sm:$0xff] %v12360_v62 }
 0x8ee   : > { %5013 = vmatpush.msrb.mxu2 %v4078_v9  ;;  %5033 = vmatpush.msrb.mxu3 %v4334_v5  ;;  %v1969_v39 = vadd.f32 %v15702_v46, %v12119_v51  ;;  %v2009_v27 = vadd.f32 %v15703_v33, %v12119_v51  ;;  %v12354_v9 = vpop.f32.mrf.mxu2  ;;  %v15705_v25 = vld [vmem:[#allocation258_spill] sm:$0xff]  ;;  %v3518_v42 = vmax.f32 %v1892_v54, 0.0  ;;  %v12362_v46 = vpop.f32.mrf.mxu1  ;;  %v15709_v59 = vld [vmem:[#allocation371_spill] sm:$0xff]  ;;  %v4030_v33 = vmax.f32 %v1972_v48, 0.0 }
 0x8ef   : > { %4974 = vmatpush.msrb.mxu0 %v3550_v35  ;;  %4994 = vmatpush.msrb.mxu1 %v3806_v50  ;;  %15704 = vst [vmem:[#allocation68_spill] sm:$0xff] %v12354_v9  ;;  %v1887_v5 = vadd.f32 %v15705_v25, %v12119_v51  ;;  %v15706_v36 = vld [vmem:[#allocation314_spill] sm:$0xff]  ;;  %v3774_v50 = vmax.f32 %v1932_v1, 0.0  ;;  %v1967_v47 = vadd.f32 %v15709_v59, %v12119_v51  ;;  %v4286_v18 = vmax.f32 %v2012_v10, 0.0  ;;  %v15714_v59 = vld [vmem:[#allocation195_spill] sm:$0xff] }
 0x8f0   : > { %5014 = vmatpush.msrb.mxu2 %v4062_v56  ;;  %5034 = vmatpush.msrb.mxu3 %v4318_v22  ;;  %v1927_v35 = vadd.f32 %v15706_v36, %v12119_v51  ;;  %15708 = vst [vmem:[#allocation181_spill] sm:$0xff] %v12362_v46  ;;  %v15710_v56 = vld [vmem:[#allocation134_spill] sm:$0xff]  ;;  %v3502_v1 = vmax.f32 %v1889_v26, 0.0  ;;  %v3758_v31 = vmax.f32 %v1929_v38, 0.0  ;;  %v4014_v48 = vmax.f32 %v1969_v39, 0.0  ;;  %v15718_v39 = vld [vmem:[#allocation363_spill] sm:$0xff] }
 0x8f1   : > { %4975 = vmatpush.msrb.mxu0 %v3534_v28  ;;  %4995 = vmatpush.msrb.mxu1 %v3790_v20  ;;  %v2007_v22 = vadd.f32 %v15710_v56, %v12119_v51  ;;  %v15711_v54 = vld [vmem:[#allocation254_spill] sm:$0xff]  ;;  %v15713_v28 = vld [vmem:[#allocation367_spill] sm:$0xff]  ;;  %v2004_v56 = vadd.f32 %v15714_v59, %v12119_v51  ;;  %v4270_v10 = vmax.f32 %v2009_v27, 0.0  ;;  %v3486_v26 = vmax.f32 %v1887_v5, 0.0 }
 0x8f2   : > { %5015 = vmatpush.msrb.mxu2 %v4046_v19  ;;  %5035 = vmatpush.msrb.mxu3 %v4302_v7  ;;  %v1884_v25 = vadd.f32 %v15711_v54, %v12119_v51  ;;  %v15712_v36 = vld [vmem:[#allocation310_spill] sm:$0xff]  ;;  %v1964_v20 = vadd.f32 %v15713_v28, %v12119_v51  ;;  %v3742_v38 = vmax.f32 %v1927_v35, 0.0  ;;  %v3998_v28 = vmax.f32 %v1967_v47, 0.0 }
 0x8f3   : > { %v1924_v15 = vadd.f32 %v15712_v36, %v12119_v51  ;;  %4976 = vmatpush.msrb.mxu0 %v3518_v42  ;;  %4996 = vmatpush.msrb.mxu1 %v3774_v50  ;;  %v15715_v19 = vld [vmem:[#allocation250_spill] sm:$0xff]  ;;  %v12380_v42 = vpop.f32.mrf.mxu3  ;;  %v1962_v50 = vadd.f32 %v15718_v39, %v12119_v51  ;;  %v15723_v39 = vld [vmem:[#allocation359_spill] sm:$0xff] }
 0x8f4   : > { %5016 = vmatpush.msrb.mxu2 %v4030_v33  ;;  %5036 = vmatpush.msrb.mxu3 %v4286_v18  ;;  %v1882_v7 = vadd.f32 %v15715_v19, %v12119_v51  ;;  %v15716_v54 = vld [vmem:[#allocation306_spill] sm:$0xff]  ;;  %15717 = vst [vmem:[#allocation8_spill] sm:$0xff] %v12380_v42  ;;  %v4254_v18 = vmax.f32 %v2007_v22, 0.0  ;;  %v3982_v22 = vmax.f32 %v1964_v20, 0.0 }
 0x8f5   : > { %v1922_v36 = vadd.f32 %v15716_v54, %v12119_v51  ;;  %4977 = vmatpush.msrb.mxu0 %v3502_v1  ;;  %4997 = vmatpush.msrb.mxu1 %v3758_v31  ;;  %v15719_v27 = vld [vmem:[#allocation26_spill] sm:$0xff]  ;;  %v3470_v54 = vmax.f32 %v1884_v25, 0.0  ;;  %v3726_v1 = vmax.f32 %v1924_v15, 0.0  ;;  %v326_v15 = vld [vmem:[%s14350_s2 + $0x8] sm:$0xff] }
 0x8f6   : > { %v2002_v33 = vadd.f32 %v15719_v27, %v12119_v51  ;;  %5017 = vmatpush.msrb.mxu2 %v4014_v48  ;;  %5037 = vmatpush.msrb.mxu3 %v4270_v10  ;;  %v15720_v5 = vld [vmem:[#allocation238_spill] sm:$0xff]  ;;  %v1959_v27 = vadd.f32 %v15723_v39, %v12119_v51  ;;  %v4238_v48 = vmax.f32 %v2004_v56, 0.0  ;;  %v3422_v10 = vmax.f32 %v12278_v45, 0.0  ;;  %v12418_v57 = vpop.f32.mrf.mxu1 }
 0x8f7   : > { %v12388_v59 = vadd.f32 %v15720_v5, %v12119_v51  ;;  %v15721_v35 = vld [vmem:[#allocation246_spill] sm:$0xff]  ;;  %4978 = vmatpush.msrb.mxu0 %v3486_v26  ;;  %4998 = vmatpush.msrb.mxu1 %v3742_v38  ;;  %v3454_v5 = vmax.f32 %v1882_v7, 0.0  ;;  %v3710_v42 = vmax.f32 %v1922_v36, 0.0  ;;  %v12408_v7 = vpop.f32.mrf.mxu2  ;;  %15732 = vst [vmem:[#allocation177_spill] sm:$0xff] %v12418_v57 }
 0x8f8   : > { %v1879_v19 = vadd.f32 %v15721_v35, %v12119_v51  ;;  %v15722_v31 = vld [vmem:[#allocation302_spill] sm:$0xff]  ;;  %5018 = vmatpush.msrb.mxu2 %v3998_v28  ;;  %5038 = vmatpush.msrb.mxu3 %v4254_v18  ;;  %v3966_v28 = vmax.f32 %v1962_v50, 0.0  ;;  %v4222_v45 = vmax.f32 %v2002_v33, 0.0  ;;  %15727 = vst [vmem:[#allocation64_spill] sm:$0xff] %v12408_v7  ;;  %v3950_v33 = vmax.f32 %v1959_v27, 0.0 }
 0x8f9   : > { %v1919_v47 = vadd.f32 %v15722_v31, %v12119_v51  ;;  %v15724_v35 = vld [vmem:[#allocation86_spill] sm:$0xff]  ;;  %4979 = vmatpush.msrb.mxu0 %v3470_v54  ;;  %4999 = vmatpush.msrb.mxu1 %v3726_v1  ;;  %v15729_v54 = vld [vmem:[#allocation355_spill] sm:$0xff] }
 0x8fa   : > { %v1999_v25 = vadd.f32 %v15724_v35, %v12119_v51  ;;  %v15725_v26 = vld [vmem:[#allocation290_spill] sm:$0xff]  ;;  %5019 = vmatpush.msrb.mxu2 %v3982_v22  ;;  %5039 = vmatpush.msrb.mxu3 %v4238_v48  ;;  %v3438_v36 = vmax.f32 %v1879_v19, 0.0  ;;  %v1957_v1 = vadd.f32 %v15729_v54, %v12119_v51  ;;  %v12420_v22 = vperm.slane %v326_v15, 0  ;;  %v15733_v48 = vld [vmem:[#allocation351_spill] sm:$0xff] }
 0x8fb   : > { %v12404_v38 = vadd.f32 %v15725_v26, %v12119_v51  ;;  %v15726_v20 = vld [vmem:[#allocation298_spill] sm:$0xff]  ;;  %v12416_v26 = vpop.f32.mrf.mxu0  ;;  %4980 = vmatpush.msrb.mxu0 %v3454_v5  ;;  %5000 = vmatpush.msrb.mxu1 %v3710_v42  ;;  %v3694_v50 = vmax.f32 %v1919_v47, 0.0  ;;  %v12422_v19 = vperm.slane %v326_v15, 1  ;;  %v12426_v54 = vperm.slane %v326_v15, 2  ;;  %v15734_v5 = vld [vmem:[#allocation407_spill] sm:$0xff]  ;;  %v12439_v11 = vpop.f32.mrf.mxu3 }
 0x8fc   : > { %v1917_v56 = vadd.f32 %v15726_v20, %v12119_v51  ;;  %v15728_v18 = vld [vmem:[#allocation294_spill] sm:$0xff]  ;;  %15731 = vst [vmem:[#allocation120_spill] sm:$0xff] %v12416_v26  ;;  %5020 = vmatpush.msrb.mxu2 %v3966_v28  ;;  %5040 = vmatpush.msrb.mxu3 %v4222_v45  ;;  %v1954_v20 = vadd.f32 %v15733_v48, %v12119_v51  ;;  %v3390_v42 = vmax.f32 %v12142_v0, 0.0  ;;  %v3406_v47 = vmax.f32 %v12388_v59, 0.0  ;;  %v15735_v45 = vld [vmem:[#allocation347_spill] sm:$0xff] }
 0x8fd   : > { %v1914_v31 = vadd.f32 %v15728_v18, %v12119_v51  ;;  %v15730_v39 = vld [vmem:[#allocation90_spill] sm:$0xff]  ;;  %v4206_v18 = vmax.f32 %v1999_v25, 0.0  ;;  %4945 = vmatmul.f32.vlgmr.msra.gmra.mxu2 %v15353_v6  ;;  %4981 = vmatpush.msrb.mxu0 %v3438_v36  ;;  %v1994_v28 = vadd.f32 %v15734_v5, %v12119_v51  ;;  %v1952_v25 = vadd.f32 %v15735_v45, %v12119_v51  ;;  %v15744_v45 = vld [vmem:[#allocation424_spill] sm:$0xff] }
 0x8fe   : > { %v1997_v35 = vadd.f32 %v15730_v39, %v12119_v51  ;;  %v12428_v39 = vperm.slane %v326_v15, 3  ;;  %v3678_v27 = vmax.f32 %v1917_v56, 0.0  ;;  %5001 = vmatpush.msrb.mxu1 %v3694_v50  ;;  %5021 = vmatpush.msrb.mxu2 %v3950_v33  ;;  %v3934_v48 = vmax.f32 %v1957_v1, 0.0  ;;  %v15736_v15 = vld [vmem:[#allocation404_spill] sm:$0xff]  ;;  %15737 = vst [vmem:[#allocation61_spill] sm:$0xff] %v12439_v11  ;;  %v15739_v50 = vld [vmem:[#allocation421_spill] sm:$0xff] }
 0x8ff   : > { %v1992_v9 = vadd.f32 %v15736_v15, %v12119_v51  ;;  %5041 = vmatpush.msrb.mxu3 %v4206_v18  ;;  %4982 = vmatpush.msrb.mxu0 %v3422_v10  ;;  %v3646_v0 = vmax.f32 %v12404_v38, 0.0  ;;  %v3662_v59 = vmax.f32 %v1914_v31, 0.0  ;;  %v15738_v56 = vld [vmem:[#allocation420_spill] sm:$0xff]  ;;  %v12448_v33 = vadd.f32 %v15739_v50, %v12422_v19  ;;  %v15740_v1 = vld [vmem:[#allocation422_spill] sm:$0xff]  ;;  %v15741_v10 = vld [vmem:[#allocation423_spill] sm:$0xff] }
 0x900   : > { %v4190_v7 = vmax.f32 %v1997_v35, 0.0  ;;  %v12444_v36 = vadd.f32 %v15738_v56, %v12420_v22  ;;  %4965 = vmatmul.f32.vlgmr.msra.gmra.mxu3 %v15353_v6  ;;  %5002 = vmatpush.msrb.mxu1 %v3678_v27  ;;  %v3918_v51 = vmax.f32 %v1954_v20, 0.0  ;;  %v12453_v35 = vadd.f32 %v15740_v1, %v12426_v54  ;;  %v15743_v31 = vld [vmem:[#allocation480_spill] sm:$0xff]  ;;  %v15947_v62 = vld [vmem:[#allocation518_spill] sm:$0xff] }
 0x901   : > { %v12457_v38 = vadd.f32 %v15741_v10, %v12428_v39  ;;  %v2078_v18 = vadd.f32 %v15743_v31, %v12420_v22  ;;  %5022 = vmatpush.msrb.mxu2 %v3934_v48  ;;  %v4174_v5 = vmax.f32 %v1994_v28, 0.0  ;;  %v12463_v15 = vadd.f32 %v15744_v45, %v12420_v22  ;;  %v15745_v20 = vld [vmem:[#allocation544_spill] sm:$0xff]  ;;  %4905 = vmatmul.f32.vlgmr.msra.gmra.mxu0 %v15353_v6  ;;  %v15748_v28 = vld [vmem:[#allocation119_spill] sm:$0xff] }
 0x902   : > { %5042 = vmatpush.msrb.mxu3 %v4190_v7  ;;  %v2118_v27 = vadd.f32 %v15745_v20, %v12420_v22  ;;  %v15746_v56 = vld [vmem:[#allocation608_spill] sm:$0xff]  ;;  %4925 = vmatmul.f32.vlgmr.msra.gmra.mxu1 %v15353_v6  ;;  %v3902_v1 = vmax.f32 %v1952_v25, 0.0  ;;  %v4158_v10 = vmax.f32 %v1992_v9, 0.0  ;;  %v2198_v31 = vadd.f32 %v15748_v28, %v12420_v22  ;;  %v12483_v9 = vpop.f32.mrf.mxu2  ;;  %v15753_v45 = vld [vmem:[#allocation123_spill] sm:$0xff] }
 0x903   : > { %15742 = vst [vmem:[#allocation117_spill] sm:$0xff] %v12457_v38  ;;  %v2158_v50 = vadd.f32 %v15746_v56, %v12420_v22  ;;  %v15747_v48 = vld [vmem:[#allocation476_spill] sm:$0xff]  ;;  %4983 = vmatpush.msrb.mxu0 %v3406_v47  ;;  %5003 = vmatpush.msrb.mxu1 %v3662_v59  ;;  %v15749_v56 = vld [vmem:[#allocation425_spill] sm:$0xff]  ;;  %v2116_v25 = vadd.f32 %v15750_v52, %v12420_v22  ;;  %v3631_v28 = vmax.f32 %v2078_v18, 0.0  ;;  %v12490_v4 = vpop.f32.mrf.mxu0  ;;  %v12513_v23 = vpop.f32.mrf.mxu3 }
 0x904   : > { %v2076_v7 = vadd.f32 %v15747_v48, %v12420_v22  ;;  %v12479_v11 = vadd.f32 %v15749_v56, %v12422_v19  ;;  %15751 = vst [vmem:[#allocation174_spill] sm:$0xff] %v12483_v9  ;;  %5023 = vmatpush.msrb.mxu2 %v3918_v51  ;;  %5043 = vmatpush.msrb.mxu3 %v4174_v5  ;;  %v15752_v47 = vld [vmem:[#allocation604_spill] sm:$0xff]  ;;  %v12492_v56 = vpop.f32.mrf.mxu1  ;;  %v3887_v5 = vmax.f32 %v2118_v27, 0.0  ;;  %v4399_v61 = vmax.f32 %v2198_v31, 0.0 }
 0x905   : > { %v2156_v59 = vadd.f32 %v15752_v47, %v12420_v22  ;;  %v2196_v20 = vadd.f32 %v15753_v45, %v12420_v22  ;;  %15754 = vst [vmem:[#allocation230_spill] sm:$0xff] %v12490_v4  ;;  %4984 = vmatpush.msrb.mxu0 %v3390_v42  ;;  %5004 = vmatpush.msrb.mxu1 %v3646_v0  ;;  %v4143_v9 = vmax.f32 %v2158_v50, 0.0  ;;  %v15756_v18 = vld [vmem:[#allocation472_spill] sm:$0xff]  ;;  %v15758_v42 = vld [vmem:[#allocation426_spill] sm:$0xff]  ;;  %v3871_v52 = vmax.f32 %v2116_v25, 0.0 }
 0x906   : > { %15755 = vst [vmem:[#allocation58_spill] sm:$0xff] %v12492_v56  ;;  %5024 = vmatpush.msrb.mxu2 %v3902_v1  ;;  %5044 = vmatpush.msrb.mxu3 %v4158_v10  ;;  %v2073_v47 = vadd.f32 %v15756_v18, %v12420_v22  ;;  %v3615_v48 = vmax.f32 %v2076_v7, 0.0  ;;  %v15757_v45 = vld [vmem:[#allocation536_spill] sm:$0xff]  ;;  %v12503_v0 = vadd.f32 %v15758_v42, %v12426_v54  ;;  %v15760_v1 = vld [vmem:[#allocation127_spill] sm:$0xff] }
 0x907   : > { %v2113_v12 = vadd.f32 %v15757_v45, %v12420_v22  ;;  %5025 = vmatmul.f32.vlgmr.msrb.gmra.mxu2 %v15353_v6  ;;  %5049 = vmatpush.msra.mxu0 %v3631_v28  ;;  %v15759_v27 = vld [vmem:[#allocation600_spill] sm:$0xff]  ;;  %v2193_v10 = vadd.f32 %v15760_v1, %v12420_v22  ;;  %v4127_v28 = vmax.f32 %v2156_v59, 0.0  ;;  %v4383_v51 = vmax.f32 %v2196_v20, 0.0  ;;  %15763 = vst [vmem:[#allocation114_spill] sm:$0xff] %v12513_v23  ;;  %v15764_v42 = vld [vmem:[#allocation427_spill] sm:$0xff] }
 0x908   : > { %v2153_v50 = vadd.f32 %v15759_v27, %v12420_v22  ;;  %5069 = vmatpush.msra.mxu1 %v3887_v5  ;;  %5089 = vmatpush.msra.mxu2 %v4143_v9  ;;  %v15761_v7 = vld [vmem:[#allocation468_spill] sm:$0xff]  ;;  %v12518_v27 = vadd.f32 %v15764_v42, %v12428_v39  ;;  %v15767_v1 = vld [vmem:[#allocation131_spill] sm:$0xff] }
 0x909   : > { %v2071_v18 = vadd.f32 %v15761_v7, %v12420_v22  ;;  %v15762_v31 = vld [vmem:[#allocation532_spill] sm:$0xff]  ;;  %5109 = vmatpush.msra.mxu3 %v4399_v61  ;;  %5050 = vmatpush.msra.mxu0 %v3615_v48  ;;  %v2191_v7 = vadd.f32 %v15767_v1, %v12420_v22  ;;  %v3599_v61 = vmax.f32 %v2073_v47, 0.0  ;;  %v3855_v25 = vmax.f32 %v2113_v12, 0.0 }
 0x90a   : > { %v2111_v45 = vadd.f32 %v15762_v31, %v12420_v22  ;;  %15765 = vst [vmem:[#allocation171_spill] sm:$0xff] %v12518_v27  ;;  %v15766_v9 = vld [vmem:[#allocation596_spill] sm:$0xff]  ;;  %5045 = vmatmul.f32.vlgmr.msrb.gmra.mxu3 %v15353_v6  ;;  %5070 = vmatpush.msra.mxu1 %v3871_v52  ;;  %v2188_v1 = vadd.f32 %v15771_v55, %v12420_v22  ;;  %v4367_v60 = vmax.f32 %v2193_v10, 0.0  ;;  %v15775_v55 = vld [vmem:[#allocation139_spill] sm:$0xff]  ;;  %v12543_v37 = vpop.f32.mrf.mxu2 }
 0x90b   : > { %v2151_v5 = vadd.f32 %v15766_v9, %v12420_v22  ;;  %v15768_v20 = vld [vmem:[#allocation464_spill] sm:$0xff]  ;;  %5090 = vmatpush.msra.mxu2 %v4127_v28  ;;  %5110 = vmatpush.msra.mxu3 %v4383_v51  ;;  %v4111_v9 = vmax.f32 %v2153_v50, 0.0  ;;  %v2186_v10 = vadd.f32 %v15775_v55, %v12420_v22  ;;  %v4351_v3 = vmax.f32 %v2191_v7, 0.0  ;;  %15776 = vst [vmem:[#allocation227_spill] sm:$0xff] %v12543_v37 }
 0x90c   : > { %v2068_v59 = vadd.f32 %v15768_v20, %v12420_v22  ;;  %v15769_v48 = vld [vmem:[#allocation528_spill] sm:$0xff]  ;;  %4985 = vmatmul.f32.vlgmr.msrb.gmra.mxu0 %v15353_v6  ;;  %5005 = vmatmul.f32.vlgmr.msrb.gmra.mxu1 %v15353_v6  ;;  %v3583_v20 = vmax.f32 %v2071_v18, 0.0  ;;  %v3839_v51 = vmax.f32 %v2111_v45, 0.0  ;;  %v4335_v37 = vmax.f32 %v2188_v1, 0.0 }
 0x90d   : > { %v2108_v31 = vadd.f32 %v15769_v48, %v12420_v22  ;;  %v15770_v42 = vld [vmem:[#allocation592_spill] sm:$0xff]  ;;  %5051 = vmatpush.msra.mxu0 %v3599_v61  ;;  %5071 = vmatpush.msra.mxu1 %v3855_v25  ;;  %v4319_v1 = vmax.f32 %v2186_v10, 0.0  ;;  %v15791_v10 = vld [vmem:[#allocation151_spill] sm:$0xff] }
 0x90e   : > { %v2148_v23 = vadd.f32 %v15770_v42, %v12420_v22  ;;  %v15772_v52 = vld [vmem:[#allocation460_spill] sm:$0xff]  ;;  %v4095_v42 = vmax.f32 %v2151_v5, 0.0  ;;  %5091 = vmatpush.msra.mxu2 %v4111_v9  ;;  %5111 = vmatpush.msra.mxu3 %v4367_v60  ;;  %v3567_v63 = vmax.f32 %v2068_v59, 0.0  ;;  %v15782_v60 = vld [vmem:[#allocation143_spill] sm:$0xff] }
 0x90f   : > { %v2066_v47 = vadd.f32 %v15772_v52, %v12420_v22  ;;  %v15773_v12 = vld [vmem:[#allocation524_spill] sm:$0xff]  ;;  %v3823_v25 = vmax.f32 %v2108_v31, 0.0  ;;  %5052 = vmatpush.msra.mxu0 %v3583_v20  ;;  %5072 = vmatpush.msra.mxu1 %v3839_v51  ;;  %v2183_v9 = vadd.f32 %v15782_v60, %v12420_v22 }
 0x910   : > { %v2106_v28 = vadd.f32 %v15773_v12, %v12420_v22  ;;  %v15774_v50 = vld [vmem:[#allocation588_spill] sm:$0xff]  ;;  %v12549_v12 = vpop.f32.mrf.mxu0  ;;  %v4079_v55 = vmax.f32 %v2148_v23, 0.0  ;;  %5092 = vmatpush.msra.mxu2 %v4095_v42  ;;  %5112 = vmatpush.msra.mxu3 %v4351_v3 }
 0x911   : > { %v2146_v48 = vadd.f32 %v15774_v50, %v12420_v22  ;;  %v15777_v18 = vld [vmem:[#allocation456_spill] sm:$0xff]  ;;  %15779 = vst [vmem:[#allocation55_spill] sm:$0xff] %v12549_v12  ;;  %v12551_v50 = vpop.f32.mrf.mxu1  ;;  %v3551_v31 = vmax.f32 %v2066_v47, 0.0  ;;  %5053 = vmatpush.msra.mxu0 %v3567_v63  ;;  %5073 = vmatpush.msra.mxu1 %v3823_v25  ;;  %v12569_v63 = vpop.f32.mrf.mxu3 }
 0x912   : > { %v2063_v52 = vadd.f32 %v15777_v18, %v12420_v22  ;;  %v15778_v45 = vld [vmem:[#allocation520_spill] sm:$0xff]  ;;  %15780 = vst [vmem:[#allocation111_spill] sm:$0xff] %v12551_v50  ;;  %v3807_v46 = vmax.f32 %v2106_v28, 0.0  ;;  %5093 = vmatpush.msra.mxu2 %v4079_v55  ;;  %5113 = vmatpush.msra.mxu3 %v4335_v37  ;;  %v2178_v55 = vadd.f32 %v15791_v10, %v12420_v22  ;;  %v4303_v37 = vmax.f32 %v2183_v9, 0.0 }
 0x913   : > { %v2103_v61 = vadd.f32 %v15778_v45, %v12420_v22  ;;  %v15781_v5 = vld [vmem:[#allocation584_spill] sm:$0xff]  ;;  %v4063_v23 = vmax.f32 %v2146_v48, 0.0  ;;  %15789 = vst [vmem:[#allocation168_spill] sm:$0xff] %v12569_v63  ;;  %5054 = vmatpush.msra.mxu0 %v3551_v31 }
 0x914   : > { %v2143_v7 = vadd.f32 %v15781_v5, %v12420_v22  ;;  %v15783_v59 = vld [vmem:[#allocation452_spill] sm:$0xff]  ;;  %v15786_v5 = vld [vmem:[#allocation147_spill] sm:$0xff]  ;;  %v3535_v47 = vmax.f32 %v2063_v52, 0.0  ;;  %5074 = vmatpush.msra.mxu1 %v3807_v46  ;;  %5114 = vmatpush.msra.mxu3 %v4319_v1 }
 0x915   : > { %v2061_v18 = vadd.f32 %v15783_v59, %v12420_v22  ;;  %v15784_v45 = vld [vmem:[#allocation516_spill] sm:$0xff]  ;;  %v2181_v60 = vadd.f32 %v15786_v5, %v12420_v22  ;;  %v3791_v28 = vmax.f32 %v2103_v61, 0.0  ;;  %5094 = vmatpush.msra.mxu2 %v4063_v23 }
 0x916   : > { %v2101_v44 = vadd.f32 %v15784_v45, %v12420_v22  ;;  %v15785_v20 = vld [vmem:[#allocation580_spill] sm:$0xff]  ;;  %5055 = vmatpush.msra.mxu0 %v3535_v47  ;;  %5115 = vmatpush.msra.mxu3 %v4303_v37 }
 0x917   : > { %v2141_v51 = vadd.f32 %v15785_v20, %v12420_v22  ;;  %v15787_v3 = vld [vmem:[#allocation448_spill] sm:$0xff]  ;;  %v4047_v20 = vmax.f32 %v2143_v7, 0.0  ;;  %5075 = vmatpush.msra.mxu1 %v3791_v28  ;;  %v4287_v9 = vmax.f32 %v2181_v60, 0.0  ;;  %v4271_v60 = vmax.f32 %v2178_v55, 0.0 }
 0x918   : > { %v2058_v42 = vadd.f32 %v15787_v3, %v12420_v22  ;;  %v15788_v59 = vld [vmem:[#allocation512_spill] sm:$0xff]  ;;  %v3519_v3 = vmax.f32 %v2061_v18, 0.0  ;;  %v3775_v63 = vmax.f32 %v2101_v44, 0.0 }
 0x919   : > { %v2098_v45 = vadd.f32 %v15788_v59, %v12420_v22  ;;  %v15790_v48 = vld [vmem:[#allocation576_spill] sm:$0xff]  ;;  %v4031_v7 = vmax.f32 %v2141_v51, 0.0  ;;  %5095 = vmatpush.msra.mxu2 %v4047_v20  ;;  %v12591_v20 = vpop.f32.mrf.mxu2  ;;  %5116 = vmatpush.msra.mxu3 %v4287_v9 }
 0x91a   : > { %v2138_v25 = vadd.f32 %v15790_v48, %v12420_v22  ;;  %v15792_v52 = vld [vmem:[#allocation444_spill] sm:$0xff]  ;;  %v15795_v48 = vld [vmem:[#allocation154_spill] sm:$0xff]  ;;  %v3503_v18 = vmax.f32 %v2058_v42, 0.0  ;;  %5056 = vmatpush.msra.mxu0 %v3519_v3  ;;  %5076 = vmatpush.msra.mxu1 %v3775_v63  ;;  %15800 = vst [vmem:[#allocation224_spill] sm:$0xff] %v12591_v20 }
 0x91b   : > { %v2056_v5 = vadd.f32 %v15792_v52, %v12420_v22  ;;  %v15793_v61 = vld [vmem:[#allocation508_spill] sm:$0xff]  ;;  %v2176_v10 = vadd.f32 %v15795_v48, %v12420_v22  ;;  %v3759_v44 = vmax.f32 %v2098_v45, 0.0  ;;  %5096 = vmatpush.msra.mxu2 %v4031_v7  ;;  %5117 = vmatpush.msra.mxu3 %v4271_v60 }
 0x91c   : > { %v2096_v59 = vadd.f32 %v15793_v61, %v12420_v22  ;;  %v15794_v46 = vld [vmem:[#allocation572_spill] sm:$0xff]  ;;  %v4015_v51 = vmax.f32 %v2138_v25, 0.0  ;;  %5057 = vmatpush.msra.mxu0 %v3503_v18 }
 0x91d   : > { %v2136_v31 = vadd.f32 %v15794_v46, %v12420_v22  ;;  %v15796_v23 = vld [vmem:[#allocation440_spill] sm:$0xff]  ;;  %v15799_v46 = vld [vmem:[#allocation157_spill] sm:$0xff]  ;;  %5077 = vmatpush.msra.mxu1 %v3759_v44  ;;  %v4255_v20 = vmax.f32 %v2176_v10, 0.0 }
 0x91e   : > { %v2053_v1 = vadd.f32 %v15796_v23, %v12420_v22  ;;  %v15797_v52 = vld [vmem:[#allocation504_spill] sm:$0xff]  ;;  %v2173_v48 = vadd.f32 %v15799_v46, %v12420_v22  ;;  %v3487_v23 = vmax.f32 %v2056_v5, 0.0  ;;  %v3743_v63 = vmax.f32 %v2096_v59, 0.0  ;;  %5097 = vmatpush.msra.mxu2 %v4015_v51 }
 0x91f   : > { %v2093_v61 = vadd.f32 %v15797_v52, %v12420_v22  ;;  %v15798_v47 = vld [vmem:[#allocation568_spill] sm:$0xff]  ;;  %v12597_v52 = vpop.f32.mrf.mxu0  ;;  %v3999_v46 = vmax.f32 %v2136_v31, 0.0  ;;  %5118 = vmatpush.msra.mxu3 %v4255_v20 }
 0x920   : > { %v2133_v28 = vadd.f32 %v15798_v47, %v12420_v22  ;;  %v15801_v42 = vld [vmem:[#allocation436_spill] sm:$0xff]  ;;  %15803 = vst [vmem:[#allocation52_spill] sm:$0xff] %v12597_v52  ;;  %v12599_v47 = vpop.f32.mrf.mxu1  ;;  %v3471_v59 = vmax.f32 %v2053_v1, 0.0  ;;  %5058 = vmatpush.msra.mxu0 %v3487_v23  ;;  %5078 = vmatpush.msra.mxu1 %v3743_v63  ;;  %v4239_v10 = vmax.f32 %v2173_v48, 0.0  ;;  %v12617_v23 = vpop.f32.mrf.mxu3  ;;  %v15815_v48 = vld [vmem:[#allocation166_spill] sm:$0xff] }
 0x921   : > { %v2051_v37 = vadd.f32 %v15801_v42, %v12420_v22  ;;  %v15802_v45 = vld [vmem:[#allocation500_spill] sm:$0xff]  ;;  %15804 = vst [vmem:[#allocation108_spill] sm:$0xff] %v12599_v47  ;;  %v3727_v56 = vmax.f32 %v2093_v61, 0.0  ;;  %5098 = vmatpush.msra.mxu2 %v3999_v46  ;;  %v2166_v46 = vadd.f32 %v15815_v48, %v12420_v22 }
 0x922   : > { %v2091_v3 = vadd.f32 %v15802_v45, %v12420_v22  ;;  %v15805_v25 = vld [vmem:[#allocation564_spill] sm:$0xff]  ;;  %v3983_v31 = vmax.f32 %v2133_v28, 0.0  ;;  %15813 = vst [vmem:[#allocation165_spill] sm:$0xff] %v12617_v23  ;;  %5059 = vmatpush.msra.mxu0 %v3471_v59  ;;  %5119 = vmatpush.msra.mxu3 %v4239_v10 }
 0x923   : > { %v2131_v55 = vadd.f32 %v15805_v25, %v12420_v22  ;;  %v15806_v7 = vld [vmem:[#allocation160_spill] sm:$0xff]  ;;  %v15810_v25 = vld [vmem:[#allocation163_spill] sm:$0xff]  ;;  %v3455_v1 = vmax.f32 %v2051_v37, 0.0  ;;  %5079 = vmatpush.msra.mxu1 %v3727_v56 }
 0x924   : > { %v2171_v9 = vadd.f32 %v15806_v7, %v12420_v22  ;;  %v15807_v5 = vld [vmem:[#allocation432_spill] sm:$0xff]  ;;  %v2168_v7 = vadd.f32 %v15810_v25, %v12420_v22  ;;  %v3711_v61 = vmax.f32 %v2091_v3, 0.0  ;;  %5099 = vmatpush.msra.mxu2 %v3983_v31 }
 0x925   : > { %v2048_v42 = vadd.f32 %v15807_v5, %v12420_v22  ;;  %v15808_v45 = vld [vmem:[#allocation496_spill] sm:$0xff]  ;;  %5060 = vmatpush.msra.mxu0 %v3455_v1 }
 0x926   : > { %v2088_v57 = vadd.f32 %v15808_v45, %v12420_v22  ;;  %v15809_v18 = vld [vmem:[#allocation560_spill] sm:$0xff]  ;;  %v4223_v20 = vmax.f32 %v2171_v9, 0.0  ;;  %5080 = vmatpush.msra.mxu1 %v3711_v61  ;;  %v4207_v48 = vmax.f32 %v2168_v7, 0.0  ;;  %v12637_v7 = vpop.f32.mrf.mxu2 }
 0x927   : > { %v2128_v44 = vadd.f32 %v15809_v18, %v12420_v22  ;;  %v15811_v51 = vld [vmem:[#allocation428_spill] sm:$0xff]  ;;  %v3967_v18 = vmax.f32 %v2131_v55, 0.0  ;;  %v3439_v25 = vmax.f32 %v2048_v42, 0.0  ;;  %v15818_v55 = vld [vmem:[#allocation169_spill] sm:$0xff]  ;;  %15822 = vst [vmem:[#allocation221_spill] sm:$0xff] %v12637_v7 }
 0x928   : > { %v2046_v60 = vadd.f32 %v15811_v51, %v12420_v22  ;;  %v15812_v5 = vld [vmem:[#allocation492_spill] sm:$0xff]  ;;  %v2163_v23 = vadd.f32 %v15818_v55, %v12420_v22  ;;  %5120 = vmatpush.msra.mxu3 %v4223_v20  ;;  %v4191_v55 = vmax.f32 %v2166_v46, 0.0  ;;  %v15828_v46 = vld [vmem:[#allocation609_spill] sm:$0xff] }
 0x929   : > { %v2086_v45 = vadd.f32 %v15812_v5, %v12420_v22  ;;  %v15814_v28 = vld [vmem:[#allocation556_spill] sm:$0xff]  ;;  %v3695_v5 = vmax.f32 %v2088_v57, 0.0  ;;  %5100 = vmatpush.msra.mxu2 %v3967_v18  ;;  %5061 = vmatpush.msra.mxu0 %v3439_v25 }
 0x92a   : > { %v2126_v63 = vadd.f32 %v15814_v28, %v12420_v22  ;;  %v15816_v51 = vld [vmem:[#allocation488_spill] sm:$0xff]  ;;  %v3951_v28 = vmax.f32 %v2128_v44, 0.0  ;;  %v3423_v31 = vmax.f32 %v2046_v60, 0.0  ;;  %5121 = vmatpush.msra.mxu3 %v4207_v48  ;;  %v15823_v60 = vld [vmem:[#allocation429_spill] sm:$0xff]  ;;  %v4175_v48 = vmax.f32 %v2163_v23, 0.0 }
 0x92b   : > { %v2083_v3 = vadd.f32 %v15816_v51, %v12420_v22  ;;  %v15817_v56 = vld [vmem:[#allocation552_spill] sm:$0xff]  ;;  %v3679_v51 = vmax.f32 %v2086_v45, 0.0  ;;  %5081 = vmatpush.msra.mxu1 %v3695_v5  ;;  %v12641_v18 = vadd.f32 %v15823_v60, %v12422_v19  ;;  %v15824_v45 = vld [vmem:[#allocation481_spill] sm:$0xff] }
 0x92c   : > { %v2123_v59 = vadd.f32 %v15817_v56, %v12420_v22  ;;  %v15819_v42 = vld [vmem:[#allocation484_spill] sm:$0xff]  ;;  %v3935_v61 = vmax.f32 %v2126_v63, 0.0  ;;  %5101 = vmatpush.msra.mxu2 %v3951_v28  ;;  %v2247_v20 = vadd.f32 %v15824_v45, %v12422_v19  ;;  %v15825_v5 = vld [vmem:[#allocation545_spill] sm:$0xff]  ;;  %v12647_v63 = vpop.f32.mrf.mxu0  ;;  %5062 = vmatpush.msra.mxu0 %v3423_v31  ;;  %v2327_v28 = vadd.f32 %v15828_v46, %v12422_v19 }
 0x92d   : > { %v2081_v10 = vadd.f32 %v15819_v42, %v12420_v22  ;;  %v15820_v57 = vld [vmem:[#allocation548_spill] sm:$0xff]  ;;  %v3663_v25 = vmax.f32 %v2083_v3, 0.0  ;;  %v2287_v42 = vadd.f32 %v15825_v5, %v12422_v19  ;;  %15826 = vst [vmem:[#allocation49_spill] sm:$0xff] %v12647_v63  ;;  %5082 = vmatpush.msra.mxu1 %v3679_v51  ;;  %5122 = vmatpush.msra.mxu3 %v4191_v55  ;;  %v15830_v3 = vld [vmem:[#allocation430_spill] sm:$0xff]  ;;  %v15831_v5 = vld [vmem:[#allocation477_spill] sm:$0xff]  ;;  %v15833_v51 = vmax.f32 %v12463_v15, 0.0 }
 0x92e   : > { %v2121_v1 = vadd.f32 %v15820_v57, %v12420_v22  ;;  %v15821_v44 = vld [vmem:[#allocation172_spill] sm:$0xff]  ;;  %v12649_v57 = vpop.f32.mrf.mxu1  ;;  %5102 = vmatpush.msra.mxu2 %v3935_v61  ;;  %v12657_v45 = vadd.f32 %v15830_v3, %v12426_v54  ;;  %v2245_v9 = vadd.f32 %v15831_v5, %v12422_v19  ;;  %v15832_v31 = vld [vmem:[#allocation541_spill] sm:$0xff]  ;;  %v3632_v7 = vmax.f32 %v2247_v20, 0.0  ;;  %v15986_v63 = vld [vmem:[#allocation487_spill] sm:$0xff] }
 0x92f   : > { %v2161_v56 = vadd.f32 %v15821_v44, %v12420_v22  ;;  %15827 = vst [vmem:[#allocation105_spill] sm:$0xff] %v12649_v57  ;;  %v3919_v22 = vmax.f32 %v2123_v59, 0.0  ;;  %v15829_v44 = vld [vmem:[#allocation176_spill] sm:$0xff]  ;;  %v3647_v37 = vmax.f32 %v2081_v10, 0.0  ;;  %v2285_v59 = vadd.f32 %v15832_v31, %v12422_v19  ;;  %5063 = vmatpush.msra.mxu0 %v15833_v51  ;;  %5083 = vmatpush.msra.mxu1 %v3663_v25  ;;  %v15834_v46 = vld [vmem:[#allocation605_spill] sm:$0xff]  ;;  %v12673_v51 = vpop.f32.mrf.mxu3 }
 0x930   : > { %v2367_v60 = vadd.f32 %v15829_v44, %v12422_v19  ;;  %v3903_v23 = vmax.f32 %v2121_v1, 0.0  ;;  %v2325_v61 = vadd.f32 %v15834_v46, %v12422_v19  ;;  %v15835_v44 = vld [vmem:[#allocation180_spill] sm:$0xff]  ;;  %5123 = vmatpush.msra.mxu3 %v4175_v48  ;;  %v15836_v5 = vld [vmem:[#allocation473_spill] sm:$0xff]  ;;  %v3888_v15 = vmax.f32 %v2287_v42, 0.0  ;;  %15838 = vst [vmem:[#allocation162_spill] sm:$0xff] %v12673_v51 }
 0x931   : > { %v4159_v55 = vmax.f32 %v2161_v56, 0.0  ;;  %v2365_v3 = vadd.f32 %v15835_v44, %v12422_v19  ;;  %5103 = vmatpush.msra.mxu2 %v3919_v22  ;;  %v2242_v10 = vadd.f32 %v15836_v5, %v12422_v19  ;;  %v15837_v31 = vld [vmem:[#allocation537_spill] sm:$0xff]  ;;  %v15839_v1 = vmax.f32 %v12444_v36, 0.0  ;;  %5084 = vmatpush.msra.mxu1 %v3647_v37  ;;  %v15841_v22 = vld [vmem:[#allocation184_spill] sm:$0xff] }
 0x932   : > { %v2282_v50 = vadd.f32 %v15837_v31, %v12422_v19  ;;  %v15840_v56 = vld [vmem:[#allocation601_spill] sm:$0xff]  ;;  %v4144_v46 = vmax.f32 %v2327_v28, 0.0  ;;  %v2362_v48 = vadd.f32 %v15841_v22, %v12422_v19  ;;  %v4400_v44 = vmax.f32 %v2367_v60, 0.0  ;;  %5085 = vmatmul.f32.vlgmr.msra.gmra.mxu1 %v15353_v6 }
 0x933   : > { %5064 = vmatpush.msra.mxu0 %v15839_v1  ;;  %v2322_v25 = vadd.f32 %v15840_v56, %v12422_v19  ;;  %5104 = vmatpush.msra.mxu2 %v3903_v23  ;;  %v15842_v20 = vld [vmem:[#allocation469_spill] sm:$0xff]  ;;  %v3616_v42 = vmax.f32 %v2245_v9, 0.0  ;;  %v3872_v36 = vmax.f32 %v2285_v59, 0.0  ;;  %v4128_v28 = vmax.f32 %v2325_v61, 0.0  ;;  %v15845_v56 = vld [vmem:[#allocation188_spill] sm:$0xff] }
 0x934   : > { %5124 = vmatpush.msra.mxu3 %v4159_v55  ;;  %v2240_v5 = vadd.f32 %v15842_v20, %v12422_v19  ;;  %v15843_v31 = vld [vmem:[#allocation533_spill] sm:$0xff]  ;;  %5149 = vmatpush.msrb.mxu1 %v3888_v15  ;;  %v2360_v22 = vadd.f32 %v15845_v56, %v12422_v19  ;;  %v4384_v60 = vmax.f32 %v2365_v3, 0.0  ;;  %v3600_v9 = vmax.f32 %v2242_v10, 0.0 }
 0x935   : > { %v2280_v51 = vadd.f32 %v15843_v31, %v12422_v19  ;;  %5129 = vmatpush.msrb.mxu0 %v3632_v7  ;;  %v15844_v37 = vld [vmem:[#allocation597_spill] sm:$0xff]  ;;  %5169 = vmatpush.msrb.mxu2 %v4144_v46  ;;  %v3856_v59 = vmax.f32 %v2282_v50, 0.0  ;;  %v4112_v61 = vmax.f32 %v2322_v25, 0.0  ;;  %v4368_v3 = vmax.f32 %v2362_v48, 0.0  ;;  %v12697_v46 = vpop.f32.mrf.mxu2 }
 0x936   : > { %v2320_v1 = vadd.f32 %v15844_v37, %v12422_v19  ;;  %5189 = vmatpush.msrb.mxu3 %v4400_v44  ;;  %v15846_v23 = vld [vmem:[#allocation465_spill] sm:$0xff]  ;;  %5150 = vmatpush.msrb.mxu1 %v3872_v36  ;;  %v15849_v37 = vld [vmem:[#allocation192_spill] sm:$0xff]  ;;  %15850 = vst [vmem:[#allocation218_spill] sm:$0xff] %v12697_v46  ;;  %v4352_v46 = vmax.f32 %v2360_v22, 0.0 }
 0x937   : > { %v2237_v55 = vadd.f32 %v15846_v23, %v12422_v19  ;;  %v15847_v20 = vld [vmem:[#allocation529_spill] sm:$0xff]  ;;  %5130 = vmatpush.msrb.mxu0 %v3616_v42  ;;  %v2357_v56 = vadd.f32 %v15849_v37, %v12422_v19  ;;  %5170 = vmatpush.msrb.mxu2 %v4128_v28  ;;  %v3584_v23 = vmax.f32 %v2240_v5, 0.0  ;;  %v3840_v36 = vmax.f32 %v2280_v51, 0.0  ;;  %v15856_v28 = vld [vmem:[#allocation196_spill] sm:$0xff] }
 0x938   : > { %v2277_v31 = vadd.f32 %v15847_v20, %v12422_v19  ;;  %v15848_v7 = vld [vmem:[#allocation593_spill] sm:$0xff]  ;;  %5190 = vmatpush.msrb.mxu3 %v4384_v60  ;;  %v12703_v20 = vpop.f32.mrf.mxu0  ;;  %5151 = vmatpush.msrb.mxu1 %v3856_v59  ;;  %v4096_v37 = vmax.f32 %v2320_v1, 0.0  ;;  %v2355_v60 = vadd.f32 %v15856_v28, %v12422_v19 }
 0x939   : > { %v2317_v15 = vadd.f32 %v15848_v7, %v12422_v19  ;;  %v15851_v10 = vld [vmem:[#allocation461_spill] sm:$0xff]  ;;  %15853 = vst [vmem:[#allocation46_spill] sm:$0xff] %v12703_v20  ;;  %v12705_v7 = vpop.f32.mrf.mxu1  ;;  %5131 = vmatpush.msrb.mxu0 %v3600_v9  ;;  %5171 = vmatpush.msrb.mxu2 %v4112_v61  ;;  %v3568_v51 = vmax.f32 %v2237_v55, 0.0  ;;  %v4336_v22 = vmax.f32 %v2357_v56, 0.0  ;;  %v15865_v56 = vld [vmem:[#allocation204_spill] sm:$0xff] }
 0x93a   : > { %v2235_v44 = vadd.f32 %v15851_v10, %v12422_v19  ;;  %v15852_v50 = vld [vmem:[#allocation525_spill] sm:$0xff]  ;;  %15854 = vst [vmem:[#allocation102_spill] sm:$0xff] %v12705_v7  ;;  %5191 = vmatpush.msrb.mxu3 %v4368_v3  ;;  %v3824_v13 = vmax.f32 %v2277_v31, 0.0  ;;  %5152 = vmatpush.msrb.mxu1 %v3840_v36 }
 0x93b   : > { %v2275_v42 = vadd.f32 %v15852_v50, %v12422_v19  ;;  %v15855_v25 = vld [vmem:[#allocation589_spill] sm:$0xff]  ;;  %5132 = vmatpush.msrb.mxu0 %v3584_v23  ;;  %v4080_v1 = vmax.f32 %v2317_v15, 0.0  ;;  %5172 = vmatpush.msrb.mxu2 %v4096_v37  ;;  %v12723_v23 = vpop.f32.mrf.mxu3  ;;  %v2350_v37 = vadd.f32 %v15865_v56, %v12422_v19 }
 0x93c   : > { %v2315_v48 = vadd.f32 %v15855_v25, %v12422_v19  ;;  %v15857_v5 = vld [vmem:[#allocation457_spill] sm:$0xff]  ;;  %v15860_v25 = vld [vmem:[#allocation200_spill] sm:$0xff]  ;;  %5192 = vmatpush.msrb.mxu3 %v4352_v46  ;;  %v3552_v55 = vmax.f32 %v2235_v44, 0.0  ;;  %15863 = vst [vmem:[#allocation159_spill] sm:$0xff] %v12723_v23  ;;  %5153 = vmatpush.msrb.mxu1 %v3824_v13  ;;  %v4320_v46 = vmax.f32 %v2355_v60, 0.0 }
 0x93d   : > { %v2232_v10 = vadd.f32 %v15857_v5, %v12422_v19  ;;  %v15858_v50 = vld [vmem:[#allocation521_spill] sm:$0xff]  ;;  %v2352_v28 = vadd.f32 %v15860_v25, %v12422_v19  ;;  %v3808_v31 = vmax.f32 %v2275_v42, 0.0  ;;  %5133 = vmatpush.msrb.mxu0 %v3568_v51  ;;  %5173 = vmatpush.msrb.mxu2 %v4080_v1 }
 0x93e   : > { %v2272_v47 = vadd.f32 %v15858_v50, %v12422_v19  ;;  %v15859_v9 = vld [vmem:[#allocation585_spill] sm:$0xff]  ;;  %5193 = vmatpush.msrb.mxu3 %v4336_v22  ;;  %5105 = vmatmul.f32.vlgmr.msra.gmra.mxu2 %v15353_v6 }
 0x93f   : > { %v2312_v59 = vadd.f32 %v15859_v9, %v12422_v19  ;;  %v15861_v61 = vld [vmem:[#allocation453_spill] sm:$0xff]  ;;  %v4064_v9 = vmax.f32 %v2315_v48, 0.0  ;;  %5134 = vmatpush.msrb.mxu0 %v3552_v55  ;;  %5154 = vmatpush.msrb.mxu1 %v3808_v31  ;;  %v4304_v60 = vmax.f32 %v2352_v28, 0.0  ;;  %v4288_v28 = vmax.f32 %v2350_v37, 0.0 }
 0x940   : > { %v2230_v3 = vadd.f32 %v15861_v61, %v12422_v19  ;;  %v15862_v5 = vld [vmem:[#allocation517_spill] sm:$0xff]  ;;  %v3536_v61 = vmax.f32 %v2232_v10, 0.0  ;;  %v3792_v23 = vmax.f32 %v2272_v47, 0.0  ;;  %5194 = vmatpush.msrb.mxu3 %v4320_v46  ;;  %5065 = vmatmul.f32.vlgmr.msra.gmra.mxu0 %v15353_v6 }
 0x941   : > { %v2270_v50 = vadd.f32 %v15862_v5, %v12422_v19  ;;  %v15864_v15 = vld [vmem:[#allocation581_spill] sm:$0xff]  ;;  %v4048_v48 = vmax.f32 %v2312_v59, 0.0  ;;  %5174 = vmatpush.msrb.mxu2 %v4064_v9  ;;  %v12745_v9 = vpop.f32.mrf.mxu2  ;;  %5125 = vmatmul.f32.vlgmr.msra.gmra.mxu3 %v15353_v6 }
 0x942   : > { %v2310_v36 = vadd.f32 %v15864_v15, %v12422_v19  ;;  %v15866_v44 = vld [vmem:[#allocation449_spill] sm:$0xff]  ;;  %v15869_v15 = vld [vmem:[#allocation207_spill] sm:$0xff]  ;;  %v3520_v10 = vmax.f32 %v2230_v3, 0.0  ;;  %5135 = vmatpush.msrb.mxu0 %v3536_v61  ;;  %5155 = vmatpush.msrb.mxu1 %v3792_v23  ;;  %15874 = vst [vmem:[#allocation215_spill] sm:$0xff] %v12745_v9 }
 0x943   : > { %v2227_v25 = vadd.f32 %v15866_v44, %v12422_v19  ;;  %v15867_v42 = vld [vmem:[#allocation513_spill] sm:$0xff]  ;;  %v2347_v56 = vadd.f32 %v15869_v15, %v12422_v19  ;;  %v3776_v47 = vmax.f32 %v2270_v50, 0.0  ;;  %5175 = vmatpush.msrb.mxu2 %v4048_v48  ;;  %5195 = vmatpush.msrb.mxu3 %v4304_v60 }
 0x944   : > { %v2267_v5 = vadd.f32 %v15867_v42, %v12422_v19  ;;  %v15868_v13 = vld [vmem:[#allocation577_spill] sm:$0xff]  ;;  %v4032_v59 = vmax.f32 %v2310_v36, 0.0  ;;  %5136 = vmatpush.msrb.mxu0 %v3520_v10 }
 0x945   : > { %v2307_v51 = vadd.f32 %v15868_v13, %v12422_v19  ;;  %v15870_v1 = vld [vmem:[#allocation445_spill] sm:$0xff]  ;;  %v15873_v13 = vld [vmem:[#allocation210_spill] sm:$0xff]  ;;  %5156 = vmatpush.msrb.mxu1 %v3776_v47  ;;  %v4272_v9 = vmax.f32 %v2347_v56, 0.0  ;;  %5196 = vmatpush.msrb.mxu3 %v4288_v28 }
 0x946   : > { %v2225_v22 = vadd.f32 %v15870_v1, %v12422_v19  ;;  %v15871_v44 = vld [vmem:[#allocation509_spill] sm:$0xff]  ;;  %v2345_v15 = vadd.f32 %v15873_v13, %v12422_v19  ;;  %v3504_v1 = vmax.f32 %v2227_v25, 0.0  ;;  %v3760_v23 = vmax.f32 %v2267_v5, 0.0  ;;  %5176 = vmatpush.msrb.mxu2 %v4032_v59  ;;  %v15885_v59 = vld [vmem:[#allocation431_spill] sm:$0xff] }
 0x947   : > { %v2265_v42 = vadd.f32 %v15871_v44, %v12422_v19  ;;  %v15872_v55 = vld [vmem:[#allocation573_spill] sm:$0xff]  ;;  %v12751_v44 = vpop.f32.mrf.mxu0  ;;  %v4016_v13 = vmax.f32 %v2307_v51, 0.0  ;;  %5197 = vmatpush.msrb.mxu3 %v4272_v9  ;;  %v12769_v28 = vadd.f32 %v15885_v59, %v12428_v39 }
 0x948   : > { %v2305_v31 = vadd.f32 %v15872_v55, %v12422_v19  ;;  %v15875_v3 = vld [vmem:[#allocation441_spill] sm:$0xff]  ;;  %15877 = vst [vmem:[#allocation43_spill] sm:$0xff] %v12751_v44  ;;  %v12753_v55 = vpop.f32.mrf.mxu1  ;;  %v3488_v5 = vmax.f32 %v2225_v22, 0.0  ;;  %5137 = vmatpush.msrb.mxu0 %v3504_v1  ;;  %5157 = vmatpush.msrb.mxu1 %v3760_v23  ;;  %v4256_v56 = vmax.f32 %v2345_v15, 0.0  ;;  %v12773_v23 = vpop.f32.mrf.mxu3  ;;  %v16011_v44 = vld [vmem:[#allocation527_spill] sm:$0xff] }
 0x949   : > { %v2222_v46 = vadd.f32 %v15875_v3, %v12422_v19  ;;  %v15876_v50 = vld [vmem:[#allocation505_spill] sm:$0xff]  ;;  %15878 = vst [vmem:[#allocation99_spill] sm:$0xff] %v12753_v55  ;;  %v3744_v30 = vmax.f32 %v2265_v42, 0.0  ;;  %5177 = vmatpush.msrb.mxu2 %v4016_v13 }
 0x94a   : > { %v2262_v61 = vadd.f32 %v15876_v50, %v12422_v19  ;;  %v15879_v36 = vld [vmem:[#allocation569_spill] sm:$0xff]  ;;  %v4000_v51 = vmax.f32 %v2305_v31, 0.0  ;;  %15887 = vst [vmem:[#allocation156_spill] sm:$0xff] %v12773_v23  ;;  %5138 = vmatpush.msrb.mxu0 %v3488_v5  ;;  %5198 = vmatpush.msrb.mxu3 %v4256_v56 }
 0x94b   : > { %v2302_v37 = vadd.f32 %v15879_v36, %v12422_v19  ;;  %v15880_v48 = vld [vmem:[#allocation213_spill] sm:$0xff]  ;;  %v15884_v36 = vld [vmem:[#allocation216_spill] sm:$0xff]  ;;  %v3472_v42 = vmax.f32 %v2222_v46, 0.0  ;;  %5158 = vmatpush.msrb.mxu1 %v3744_v30  ;;  %v15892_v30 = vld [vmem:[#allocation435_spill] sm:$0xff] }
 0x94c   : > { %v2342_v60 = vadd.f32 %v15880_v48, %v12422_v19  ;;  %v15881_v25 = vld [vmem:[#allocation437_spill] sm:$0xff]  ;;  %v2340_v48 = vadd.f32 %v15884_v36, %v12422_v19  ;;  %v3728_v1 = vmax.f32 %v2262_v61, 0.0  ;;  %5178 = vmatpush.msrb.mxu2 %v4000_v51  ;;  %v15890_v36 = vld [vmem:[#allocation434_spill] sm:$0xff] }
 0x94d   : > { %v2220_v3 = vadd.f32 %v15881_v25, %v12422_v19  ;;  %v15882_v50 = vld [vmem:[#allocation501_spill] sm:$0xff]  ;;  %v3984_v9 = vmax.f32 %v2302_v37, 0.0  ;;  %v12781_v59 = vadd.f32 %v15890_v36, %v12426_v54  ;;  %5139 = vmatpush.msrb.mxu0 %v3472_v42  ;;  %v15895_v42 = vld [vmem:[#allocation222_spill] sm:$0xff] }
 0x94e   : > { %v2260_v57 = vadd.f32 %v15882_v50, %v12422_v19  ;;  %v15883_v10 = vld [vmem:[#allocation565_spill] sm:$0xff]  ;;  %5159 = vmatpush.msrb.mxu1 %v3728_v1  ;;  %v4224_v56 = vmax.f32 %v2340_v48, 0.0  ;;  %v2335_v1 = vadd.f32 %v15895_v42, %v12422_v19 }
 0x94f   : > { %v2300_v47 = vadd.f32 %v15883_v10, %v12422_v19  ;;  %v15886_v22 = vld [vmem:[#allocation433_spill] sm:$0xff]  ;;  %v4240_v10 = vmax.f32 %v2342_v60, 0.0  ;;  %v3456_v46 = vmax.f32 %v2220_v3, 0.0  ;;  %5179 = vmatpush.msrb.mxu2 %v3984_v9  ;;  %v12801_v9 = vpop.f32.mrf.mxu2 }
 0x950   : > { %v2217_v25 = vadd.f32 %v15886_v22, %v12422_v19  ;;  %v15888_v31 = vld [vmem:[#allocation497_spill] sm:$0xff]  ;;  %v3712_v61 = vmax.f32 %v2260_v57, 0.0  ;;  %v15891_v22 = vld [vmem:[#allocation219_spill] sm:$0xff]  ;;  %15897 = vst [vmem:[#allocation212_spill] sm:$0xff] %v12801_v9  ;;  %v12809_v42 = vpop.f32.mrf.mxu1  ;;  %v12843_v9 = vpop.f32.mrf.mxu3 }
 0x951   : > { %v2257_v50 = vadd.f32 %v15888_v31, %v12422_v19  ;;  %v15889_v15 = vld [vmem:[#allocation561_spill] sm:$0xff]  ;;  %v2337_v5 = vadd.f32 %v15891_v22, %v12422_v19  ;;  %v12787_v31 = vadd.f32 %v15892_v30, %v12428_v39  ;;  %v3968_v51 = vmax.f32 %v2300_v47, 0.0  ;;  %5199 = vmatpush.msrb.mxu3 %v4240_v10  ;;  %5140 = vmatpush.msrb.mxu0 %v3456_v46  ;;  %v15896_v30 = vld [vmem:[#allocation438_spill] sm:$0xff] }
 0x952   : > { %v2297_v13 = vadd.f32 %v15889_v15, %v12422_v19  ;;  %v15893_v37 = vld [vmem:[#allocation493_spill] sm:$0xff]  ;;  %v3424_v15 = vmax.f32 %v12641_v18, 0.0  ;;  %v3440_v3 = vmax.f32 %v2217_v25, 0.0  ;;  %5160 = vmatpush.msrb.mxu1 %v3712_v61  ;;  %15900 = vst [vmem:[#allocation96_spill] sm:$0xff] %v12809_v42 }
 0x953   : > { %v2255_v60 = vadd.f32 %v15893_v37, %v12422_v19  ;;  %v15894_v57 = vld [vmem:[#allocation557_spill] sm:$0xff]  ;;  %v12799_v37 = vadd.f32 %v15896_v30, %v12426_v54  ;;  %v3696_v47 = vmax.f32 %v2257_v50, 0.0  ;;  %5180 = vmatpush.msrb.mxu2 %v3968_v51  ;;  %5200 = vmatpush.msrb.mxu3 %v4224_v56  ;;  %v4208_v61 = vmax.f32 %v2337_v5, 0.0  ;;  %v15903_v5 = vld [vmem:[#allocation439_spill] sm:$0xff]  ;;  %15911 = vst [vmem:[#allocation153_spill] sm:$0xff] %v12843_v9 }
 0x954   : > { %v2295_v36 = vadd.f32 %v15894_v57, %v12422_v19  ;;  %v3952_v48 = vmax.f32 %v2297_v13, 0.0  ;;  %v15898_v10 = vld [vmem:[#allocation489_spill] sm:$0xff]  ;;  %v12807_v57 = vpop.f32.mrf.mxu0  ;;  %5141 = vmatpush.msrb.mxu0 %v3440_v3  ;;  %v4192_v3 = vmax.f32 %v2335_v1, 0.0 }
 0x955   : > { %v2252_v46 = vadd.f32 %v15898_v10, %v12422_v19  ;;  %15899 = vst [vmem:[#allocation40_spill] sm:$0xff] %v12807_v57  ;;  %v3680_v13 = vmax.f32 %v2255_v60, 0.0  ;;  %v15901_v51 = vld [vmem:[#allocation553_spill] sm:$0xff]  ;;  %5161 = vmatpush.msrb.mxu1 %v3696_v47  ;;  %v12819_v10 = vadd.f32 %v15903_v5, %v12428_v39  ;;  %5201 = vmatpush.msrb.mxu3 %v4208_v61  ;;  %v15910_v61 = vld [vmem:[#allocation482_spill] sm:$0xff] }
 0x956   : > { %v2292_v56 = vadd.f32 %v15901_v51, %v12422_v19  ;;  %v15902_v30 = vld [vmem:[#allocation225_spill] sm:$0xff]  ;;  %5181 = vmatpush.msrb.mxu2 %v3952_v48  ;;  %v3936_v23 = vmax.f32 %v2295_v36, 0.0  ;;  %5142 = vmatpush.msrb.mxu0 %v3424_v15  ;;  %v15905_v51 = vld [vmem:[#allocation442_spill] sm:$0xff]  ;;  %v15908_v36 = vld [vmem:[#allocation443_spill] sm:$0xff] }
 0x957   : > { %v2332_v18 = vadd.f32 %v15902_v30, %v12422_v19  ;;  %v15904_v22 = vld [vmem:[#allocation485_spill] sm:$0xff]  ;;  %v12826_v50 = vadd.f32 %v15905_v51, %v12426_v54  ;;  %v15907_v30 = vld [vmem:[#allocation228_spill] sm:$0xff]  ;;  %5162 = vmatpush.msrb.mxu1 %v3680_v13  ;;  %v12835_v1 = vadd.f32 %v15908_v36, %v12428_v39  ;;  %v15909_v15 = vld [vmem:[#allocation446_spill] sm:$0xff]  ;;  %v2416_v51 = vadd.f32 %v15910_v61, %v12426_v54 }
 0x958   : > { %v2250_v25 = vadd.f32 %v15904_v22, %v12422_v19  ;;  %v15906_v47 = vld [vmem:[#allocation549_spill] sm:$0xff]  ;;  %v2330_v5 = vadd.f32 %v15907_v30, %v12422_v19  ;;  %v12839_v22 = vadd.f32 %v15909_v15, %v12426_v54  ;;  %v3664_v60 = vmax.f32 %v2252_v46, 0.0  ;;  %5182 = vmatpush.msrb.mxu2 %v3936_v23  ;;  %5202 = vmatpush.msrb.mxu3 %v4192_v3  ;;  %v15913_v30 = vld [vmem:[#allocation59_spill] sm:$0xff]  ;;  %v15914_v46 = vld [vmem:[#allocation478_spill] sm:$0xff]  ;;  %v12896_v49 = vpop.f32.mrf.mxu3 }
 0x959   : > { %v2290_v48 = vadd.f32 %v15906_v47, %v12422_v19  ;;  %v15912_v19 = vld [vmem:[#allocation546_spill] sm:$0xff]  ;;  %v3920_v13 = vmax.f32 %v2292_v56, 0.0  ;;  %v2496_v36 = vadd.f32 %v15913_v30, %v12426_v54  ;;  %v4176_v7 = vmax.f32 %v2332_v18, 0.0  ;;  %15930 = vst [vmem:[#allocation37_spill] sm:$0xff] %v12896_v49 }
 0x95a   : > { %v2456_v47 = vadd.f32 %v15912_v19, %v12426_v54  ;;  %v2414_v61 = vadd.f32 %v15914_v46, %v12426_v54  ;;  %v3648_v9 = vmax.f32 %v2250_v25, 0.0  ;;  %v15915_v23 = vld [vmem:[#allocation610_spill] sm:$0xff]  ;;  %v15916_v19 = vmax.f32 %v12479_v11, 0.0  ;;  %5163 = vmatpush.msrb.mxu1 %v3664_v60  ;;  %v12868_v60 = vpop.f32.mrf.mxu1 }
 0x95b   : > { %v2536_v3 = vadd.f32 %v15915_v23, %v12426_v54  ;;  %v15917_v18 = vld [vmem:[#allocation542_spill] sm:$0xff]  ;;  %v3904_v41 = vmax.f32 %v2290_v48, 0.0  ;;  %v4160_v55 = vmax.f32 %v2330_v5, 0.0  ;;  %5183 = vmatpush.msrb.mxu2 %v3920_v13  ;;  %5203 = vmatpush.msrb.mxu3 %v4176_v7  ;;  %v3633_v46 = vmax.f32 %v2416_v51, 0.0  ;;  %v15919_v23 = vld [vmem:[#allocation7_spill] sm:$0xff] }
 0x95c   : > { %5143 = vmatpush.msrb.mxu0 %v15916_v19  ;;  %v2454_v30 = vadd.f32 %v15917_v18, %v12426_v54  ;;  %v15918_v25 = vld [vmem:[#allocation606_spill] sm:$0xff]  ;;  %v2534_v11 = vadd.f32 %v15919_v23, %v12426_v54  ;;  %v12866_v19 = vpop.f32.mrf.mxu0  ;;  %v15920_v56 = vmax.f32 %v12448_v33, 0.0  ;;  %5164 = vmatpush.msrb.mxu1 %v3648_v9  ;;  %v15921_v7 = vld [vmem:[#allocation447_spill] sm:$0xff]  ;;  %v3889_v51 = vmax.f32 %v2456_v47, 0.0  ;;  %v12877_v18 = vpop.f32.mrf.mxu2 }
 0x95d   : > { %v2494_v8 = vadd.f32 %v15918_v25, %v12426_v54  ;;  %v12875_v5 = vadd.f32 %v15921_v7, %v12428_v39  ;;  %v4145_v13 = vmax.f32 %v2496_v36, 0.0  ;;  %15922 = vst [vmem:[#allocation209_spill] sm:$0xff] %v12877_v18  ;;  %5184 = vmatpush.msrb.mxu2 %v3904_v41  ;;  %5204 = vmatpush.msrb.mxu3 %v4160_v55  ;;  %v15923_v25 = vld [vmem:[#allocation474_spill] sm:$0xff]  ;;  %v3617_v15 = vmax.f32 %v2414_v61, 0.0  ;;  %v15927_v55 = vld [vmem:[#allocation11_spill] sm:$0xff] }
 0x95e   : > { %5144 = vmatpush.msrb.mxu0 %v15920_v56  ;;  %v2411_v23 = vadd.f32 %v15923_v25, %v12426_v54  ;;  %v15924_v33 = vld [vmem:[#allocation538_spill] sm:$0xff]  ;;  %v4401_v9 = vmax.f32 %v2536_v3, 0.0  ;;  %5185 = vmatmul.f32.vlgmr.msrb.gmra.mxu2 %v15353_v6  ;;  %v3873_v47 = vmax.f32 %v2454_v30, 0.0  ;;  %v2531_v42 = vadd.f32 %v15927_v55, %v12426_v54  ;;  %v15933_v55 = vld [vmem:[#allocation15_spill] sm:$0xff] }
 0x95f   : > { %v2451_v56 = vadd.f32 %v15924_v33, %v12426_v54  ;;  %v15925_v7 = vld [vmem:[#allocation450_spill] sm:$0xff]  ;;  %5229 = vmatpush.msra.mxu1 %v3889_v51  ;;  %5249 = vmatpush.msra.mxu2 %v4145_v13  ;;  %v4385_v53 = vmax.f32 %v2534_v11, 0.0 }
 0x960   : > { %5209 = vmatpush.msra.mxu0 %v3633_v46  ;;  %v12886_v48 = vadd.f32 %v15925_v7, %v12426_v54  ;;  %v15926_v36 = vld [vmem:[#allocation602_spill] sm:$0xff]  ;;  %v4129_v46 = vmax.f32 %v2494_v8, 0.0  ;;  %5269 = vmatpush.msra.mxu3 %v4401_v9  ;;  %v15931_v7 = vld [vmem:[#allocation451_spill] sm:$0xff]  ;;  %v3601_v9 = vmax.f32 %v2411_v23, 0.0  ;;  %v4369_v29 = vmax.f32 %v2531_v42, 0.0 }
 0x961   : > { %v2491_v41 = vadd.f32 %v15926_v36, %v12426_v54  ;;  %v15928_v61 = vld [vmem:[#allocation470_spill] sm:$0xff]  ;;  %v12901_v36 = vadd.f32 %v15931_v7, %v12428_v39  ;;  %5205 = vmatmul.f32.vlgmr.msrb.gmra.mxu3 %v15353_v6  ;;  %5230 = vmatpush.msra.mxu1 %v3873_v47  ;;  %v3857_v30 = vmax.f32 %v2451_v56, 0.0 }
 0x962   : > { %v2409_v25 = vadd.f32 %v15928_v61, %v12426_v54  ;;  %v15929_v3 = vld [vmem:[#allocation534_spill] sm:$0xff]  ;;  %5210 = vmatpush.msra.mxu0 %v3617_v15  ;;  %v2529_v61 = vadd.f32 %v15933_v55, %v12426_v54  ;;  %5250 = vmatpush.msra.mxu2 %v4129_v46  ;;  %v2526_v55 = vadd.f32 %v15937_v24, %v12426_v54  ;;  %v15941_v24 = vld [vmem:[#allocation23_spill] sm:$0xff] }
 0x963   : > { %v2449_v33 = vadd.f32 %v15929_v3, %v12426_v54  ;;  %v15932_v51 = vld [vmem:[#allocation598_spill] sm:$0xff]  ;;  %5270 = vmatpush.msra.mxu3 %v4385_v53  ;;  %5145 = vmatmul.f32.vlgmr.msrb.gmra.mxu0 %v15353_v6  ;;  %v2524_v42 = vadd.f32 %v15941_v24, %v12426_v54 }
 0x964   : > { %v2489_v13 = vadd.f32 %v15932_v51, %v12426_v54  ;;  %v15934_v8 = vld [vmem:[#allocation466_spill] sm:$0xff]  ;;  %v4113_v51 = vmax.f32 %v2491_v41, 0.0  ;;  %5165 = vmatmul.f32.vlgmr.msrb.gmra.mxu1 %v15353_v6  ;;  %5211 = vmatpush.msra.mxu0 %v3601_v9  ;;  %v4353_v32 = vmax.f32 %v2529_v61, 0.0  ;;  %v12930_v9 = vpop.f32.mrf.mxu0  ;;  %v4337_v24 = vmax.f32 %v2526_v55, 0.0  ;;  %v15949_v55 = vld [vmem:[#allocation31_spill] sm:$0xff] }
 0x965   : > { %v2406_v11 = vadd.f32 %v15934_v8, %v12426_v54  ;;  %v15935_v15 = vld [vmem:[#allocation530_spill] sm:$0xff]  ;;  %v3585_v8 = vmax.f32 %v2409_v25, 0.0  ;;  %v3841_v53 = vmax.f32 %v2449_v33, 0.0  ;;  %5231 = vmatpush.msra.mxu1 %v3857_v30  ;;  %5271 = vmatpush.msra.mxu3 %v4369_v29  ;;  %v12932_v30 = vpop.f32.mrf.mxu1  ;;  %v15945_v29 = vld [vmem:[#allocation27_spill] sm:$0xff]  ;;  %v4321_v4 = vmax.f32 %v2524_v42, 0.0 }
 0x966   : > { %v2446_v3 = vadd.f32 %v15935_v15, %v12426_v54  ;;  %v15936_v7 = vld [vmem:[#allocation594_spill] sm:$0xff]  ;;  %5251 = vmatpush.msra.mxu2 %v4113_v51  ;;  %v2521_v51 = vadd.f32 %v15945_v29, %v12426_v54  ;;  %v2519_v29 = vadd.f32 %v15949_v55, %v12426_v54  ;;  %v15953_v42 = vld [vmem:[#allocation35_spill] sm:$0xff] }
 0x967   : > { %v2486_v43 = vadd.f32 %v15936_v7, %v12426_v54  ;;  %v15938_v23 = vld [vmem:[#allocation462_spill] sm:$0xff]  ;;  %v4097_v7 = vmax.f32 %v2489_v13, 0.0  ;;  %v3569_v25 = vmax.f32 %v2406_v11, 0.0  ;;  %5212 = vmatpush.msra.mxu0 %v3585_v8  ;;  %5232 = vmatpush.msra.mxu1 %v3841_v53  ;;  %v2439_v8 = vadd.f32 %v15947_v62, %v12426_v54 }
 0x968   : > { %v2404_v47 = vadd.f32 %v15938_v23, %v12426_v54  ;;  %v15939_v56 = vld [vmem:[#allocation526_spill] sm:$0xff]  ;;  %v2401_v23 = vadd.f32 %v15942_v16, %v12426_v54  ;;  %v3825_v33 = vmax.f32 %v2446_v3, 0.0  ;;  %v12938_v16 = vpop.f32.mrf.mxu2  ;;  %5272 = vmatpush.msra.mxu3 %v4353_v32  ;;  %v15950_v32 = vld [vmem:[#allocation455_spill] sm:$0xff] }
 0x969   : > { %v2444_v46 = vadd.f32 %v15939_v56, %v12426_v54  ;;  %v15940_v41 = vld [vmem:[#allocation590_spill] sm:$0xff]  ;;  %v2441_v56 = vadd.f32 %v15943_v21, %v12426_v54  ;;  %v4081_v61 = vmax.f32 %v2486_v43, 0.0  ;;  %5252 = vmatpush.msra.mxu2 %v4097_v7  ;;  %5213 = vmatpush.msra.mxu0 %v3569_v25  ;;  %v12950_v7 = vadd.f32 %v15950_v32, %v12428_v39 }
 0x96a   : > { %v2484_v15 = vadd.f32 %v15940_v41, %v12426_v54  ;;  %v15944_v13 = vld [vmem:[#allocation586_spill] sm:$0xff]  ;;  %v3553_v3 = vmax.f32 %v2404_v47, 0.0  ;;  %5233 = vmatpush.msra.mxu1 %v3825_v33  ;;  %5273 = vmatpush.msra.mxu3 %v4337_v24  ;;  %v3537_v47 = vmax.f32 %v2401_v23, 0.0  ;;  %v12954_v33 = vpop.f32.mrf.mxu3  ;;  %v4305_v24 = vmax.f32 %v2521_v51, 0.0 }
 0x96b   : > { %v2481_v41 = vadd.f32 %v15944_v13, %v12426_v54  ;;  %v15946_v21 = vld [vmem:[#allocation454_spill] sm:$0xff]  ;;  %v3809_v53 = vmax.f32 %v2444_v46, 0.0  ;;  %5253 = vmatpush.msra.mxu2 %v4081_v61  ;;  %v3793_v25 = vmax.f32 %v2441_v56, 0.0  ;;  %v2516_v61 = vadd.f32 %v15953_v42, %v12426_v54 }
 0x96c   : > { %v2399_v11 = vadd.f32 %v15946_v21, %v12426_v54  ;;  %v15948_v43 = vld [vmem:[#allocation582_spill] sm:$0xff]  ;;  %v4065_v26 = vmax.f32 %v2484_v15, 0.0  ;;  %5214 = vmatpush.msra.mxu0 %v3553_v3  ;;  %5274 = vmatpush.msra.mxu3 %v4321_v4  ;;  %v3505_v23 = vmax.f32 %v12886_v48, 0.0  ;;  %v4289_v42 = vmax.f32 %v2519_v29, 0.0 }
 0x96d   : > { %v2479_v13 = vadd.f32 %v15948_v43, %v12426_v54  ;;  %v15951_v62 = vld [vmem:[#allocation514_spill] sm:$0xff]  ;;  %5234 = vmatpush.msra.mxu1 %v3809_v53  ;;  %v4049_v43 = vmax.f32 %v2481_v41, 0.0 }
 0x96e   : > { %v2436_v46 = vadd.f32 %v15951_v62, %v12426_v54  ;;  %v15952_v15 = vld [vmem:[#allocation578_spill] sm:$0xff]  ;;  %5254 = vmatpush.msra.mxu2 %v4065_v26  ;;  %v3521_v55 = vmax.f32 %v2399_v11, 0.0  ;;  %v3777_v62 = vmax.f32 %v2439_v8, 0.0  ;;  %5215 = vmatpush.msra.mxu0 %v3537_v47  ;;  %v12971_v8 = vpop.f32.mrf.mxu0  ;;  %v12973_v47 = vpop.f32.mrf.mxu1 }
 0x96f   : > { %v2476_v21 = vadd.f32 %v15952_v15, %v12426_v54  ;;  %v15954_v32 = vld [vmem:[#allocation510_spill] sm:$0xff]  ;;  %5235 = vmatpush.msra.mxu1 %v3793_v25  ;;  %v4033_v15 = vmax.f32 %v2479_v13, 0.0  ;;  %5275 = vmatpush.msra.mxu3 %v4305_v24 }
 0x970   : > { %v2434_v56 = vadd.f32 %v15954_v32, %v12426_v54  ;;  %v15955_v3 = vld [vmem:[#allocation574_spill] sm:$0xff]  ;;  %5255 = vmatpush.msra.mxu2 %v4049_v43  ;;  %v3761_v11 = vmax.f32 %v2436_v46, 0.0  ;;  %5216 = vmatpush.msra.mxu0 %v3521_v55  ;;  %v15959_v43 = vld [vmem:[#allocation41_spill] sm:$0xff]  ;;  %v4273_v32 = vmax.f32 %v2516_v61, 0.0  ;;  %v15960_v46 = vld [vmem:[#allocation459_spill] sm:$0xff] }
 0x971   : > { %v2474_v53 = vadd.f32 %v15955_v3, %v12426_v54  ;;  %v15956_v41 = vld [vmem:[#allocation38_spill] sm:$0xff]  ;;  %5236 = vmatpush.msra.mxu1 %v3777_v62  ;;  %v4017_v29 = vmax.f32 %v2476_v21, 0.0  ;;  %v2511_v24 = vadd.f32 %v15959_v43, %v12426_v54  ;;  %v12979_v3 = vpop.f32.mrf.mxu2  ;;  %5276 = vmatpush.msra.mxu3 %v4289_v42 }
 0x972   : > { %v2514_v12 = vadd.f32 %v15956_v41, %v12426_v54  ;;  %v15957_v48 = vld [vmem:[#allocation506_spill] sm:$0xff]  ;;  %5256 = vmatpush.msra.mxu2 %v4033_v15  ;;  %v12983_v41 = vadd.f32 %v15960_v46, %v12428_v39  ;;  %v3745_v21 = vmax.f32 %v2434_v56, 0.0  ;;  %5217 = vmatpush.msra.mxu0 %v3505_v23  ;;  %v15964_v15 = vld [vmem:[#allocation44_spill] sm:$0xff]  ;;  %v15965_v46 = vld [vmem:[#allocation467_spill] sm:$0xff] }
 0x973   : > { %v2431_v51 = vadd.f32 %v15957_v48, %v12426_v54  ;;  %v15958_v13 = vld [vmem:[#allocation570_spill] sm:$0xff]  ;;  %v15961_v48 = vld [vmem:[#allocation463_spill] sm:$0xff]  ;;  %5237 = vmatpush.msra.mxu1 %v3761_v11  ;;  %v4001_v4 = vmax.f32 %v2474_v53, 0.0  ;;  %v2509_v42 = vadd.f32 %v15964_v15, %v12426_v54  ;;  %5277 = vmatpush.msra.mxu3 %v4273_v32  ;;  %v15968_v53 = vmax.f32 %v12839_v22, 0.0 }
 0x974   : > { %v2471_v25 = vadd.f32 %v15958_v13, %v12426_v54  ;;  %v12987_v55 = vadd.f32 %v15961_v48, %v12428_v39  ;;  %v15962_v62 = vld [vmem:[#allocation502_spill] sm:$0xff]  ;;  %v4257_v26 = vmax.f32 %v2514_v12, 0.0  ;;  %5257 = vmatpush.msra.mxu2 %v4017_v29  ;;  %v12997_v48 = vadd.f32 %v15965_v46, %v12428_v39  ;;  %v15970_v15 = vld [vmem:[#allocation47_spill] sm:$0xff] }
 0x975   : > { %v2429_v13 = vadd.f32 %v15962_v62, %v12426_v54  ;;  %v15963_v61 = vld [vmem:[#allocation566_spill] sm:$0xff]  ;;  %v13001_v62 = vadd.f32 %v15966_v14, %v12428_v39  ;;  %v3729_v11 = vmax.f32 %v2431_v51, 0.0  ;;  %5218 = vmatpush.msra.mxu0 %v15968_v53  ;;  %5238 = vmatpush.msra.mxu1 %v3745_v21  ;;  %v2506_v46 = vadd.f32 %v15970_v15, %v12426_v54 }
 0x976   : > { %v2469_v43 = vadd.f32 %v15963_v61, %v12426_v54  ;;  %v15967_v23 = vld [vmem:[#allocation498_spill] sm:$0xff]  ;;  %v13005_v61 = vpop.f32.mrf.mxu3  ;;  %v3985_v32 = vmax.f32 %v2471_v25, 0.0  ;;  %v4241_v52 = vmax.f32 %v2511_v24, 0.0  ;;  %5258 = vmatpush.msra.mxu2 %v4001_v4  ;;  %5278 = vmatpush.msra.mxu3 %v4257_v26  ;;  %v15972_v21 = vmax.f32 %v12826_v50, 0.0 }
 0x977   : > { %v2426_v56 = vadd.f32 %v15967_v23, %v12426_v54  ;;  %v15969_v12 = vld [vmem:[#allocation562_spill] sm:$0xff]  ;;  %v3713_v22 = vmax.f32 %v2429_v13, 0.0  ;;  %5239 = vmatpush.msra.mxu1 %v3729_v11  ;;  %v4225_v26 = vmax.f32 %v2509_v42, 0.0  ;;  %v15976_v11 = vmax.f32 %v12799_v37, 0.0  ;;  %v15978_v42 = vld [vmem:[#allocation53_spill] sm:$0xff] }
 0x978   : > { %v2466_v29 = vadd.f32 %v15969_v12, %v12426_v54  ;;  %v15971_v23 = vld [vmem:[#allocation494_spill] sm:$0xff]  ;;  %5219 = vmatpush.msra.mxu0 %v15972_v21  ;;  %v3969_v12 = vmax.f32 %v2469_v43, 0.0  ;;  %5259 = vmatpush.msra.mxu2 %v3985_v32  ;;  %v2501_v32 = vadd.f32 %v15978_v42, %v12426_v54 }
 0x979   : > { %v2424_v2 = vadd.f32 %v15971_v23, %v12426_v54  ;;  %v15973_v25 = vld [vmem:[#allocation558_spill] sm:$0xff]  ;;  %5279 = vmatpush.msra.mxu3 %v4241_v52  ;;  %v3697_v50 = vmax.f32 %v2426_v56, 0.0  ;;  %5240 = vmatpush.msra.mxu1 %v3713_v22  ;;  %v4209_v52 = vmax.f32 %v2506_v46, 0.0  ;;  %v15980_v56 = vld [vmem:[#allocation479_spill] sm:$0xff]  ;;  %v15982_v46 = vmax.f32 %v12781_v59, 0.0  ;;  %v13053_v14 = vpop.f32.mrf.mxu2 }
 0x97a   : > { %v2464_v53 = vadd.f32 %v15973_v25, %v12426_v54  ;;  %v15974_v24 = vld [vmem:[#allocation50_spill] sm:$0xff]  ;;  %5220 = vmatpush.msra.mxu0 %v15976_v11  ;;  %v3953_v25 = vmax.f32 %v2466_v29, 0.0  ;;  %5260 = vmatpush.msra.mxu2 %v3969_v12  ;;  %v13045_v29 = vpop.f32.mrf.mxu1  ;;  %v13059_v59 = vadd.f32 %v15986_v63, %v12428_v39 }
 0x97b   : > { %v2504_v4 = vadd.f32 %v15974_v24, %v12426_v54  ;;  %v15975_v13 = vld [vmem:[#allocation490_spill] sm:$0xff]  ;;  %5280 = vmatpush.msra.mxu3 %v4225_v26  ;;  %v15979_v24 = vld [vmem:[#allocation475_spill] sm:$0xff]  ;;  %v3681_v11 = vmax.f32 %v2424_v2, 0.0  ;;  %5241 = vmatpush.msra.mxu1 %v3697_v50 }
 0x97c   : > { %v2421_v23 = vadd.f32 %v15975_v13, %v12426_v54  ;;  %v15977_v43 = vld [vmem:[#allocation554_spill] sm:$0xff]  ;;  %v13035_v51 = vadd.f32 %v15979_v24, %v12428_v39  ;;  %v13039_v13 = vadd.f32 %v15980_v56, %v12428_v39  ;;  %5221 = vmatpush.msra.mxu0 %v15982_v46  ;;  %v3937_v42 = vmax.f32 %v2464_v53, 0.0  ;;  %v15984_v24 = vld [vmem:[#allocation56_spill] sm:$0xff]  ;;  %5261 = vmatpush.msra.mxu2 %v3953_v25  ;;  %v15985_v2 = vld [vmem:[#allocation483_spill] sm:$0xff] }
 0x97d   : > { %v2461_v21 = vadd.f32 %v15977_v43, %v12426_v54  ;;  %v15981_v37 = vld [vmem:[#allocation486_spill] sm:$0xff]  ;;  %v13043_v43 = vpop.f32.mrf.mxu0  ;;  %v2499_v56 = vadd.f32 %v15984_v24, %v12426_v54  ;;  %v4193_v15 = vmax.f32 %v2504_v4, 0.0  ;;  %5281 = vmatpush.msra.mxu3 %v4209_v52  ;;  %15987 = vst [vmem:[#allocation93_spill] sm:$0xff] %v13059_v59  ;;  %v15988_v46 = vld [vmem:[#allocation547_spill] sm:$0xff]  ;;  %v15989_v53 = vmax.f32 %v12657_v45, 0.0  ;;  %5242 = vmatpush.msra.mxu1 %v3681_v11 }
 0x97e   : > { %v2419_v22 = vadd.f32 %v15981_v37, %v12426_v54  ;;  %v15983_v12 = vld [vmem:[#allocation550_spill] sm:$0xff]  ;;  %v2585_v37 = vadd.f32 %v15985_v2, %v12428_v39  ;;  %v3665_v50 = vmax.f32 %v2421_v23, 0.0  ;;  %v15990_v4 = vld [vmem:[#allocation115_spill] sm:$0xff]  ;;  %v4177_v52 = vmax.f32 %v2501_v32, 0.0  ;;  %5262 = vmatpush.msra.mxu2 %v3937_v42 }
 0x97f   : > { %v2459_v26 = vadd.f32 %v15983_v12, %v12426_v54  ;;  %v2625_v12 = vadd.f32 %v15988_v46, %v12428_v39  ;;  %5222 = vmatpush.msra.mxu0 %v15989_v53  ;;  %v3921_v54 = vmax.f32 %v2461_v21, 0.0  ;;  %v2665_v25 = vadd.f32 %v15990_v4, %v12428_v39  ;;  %v15991_v24 = vld [vmem:[#allocation611_spill] sm:$0xff]  ;;  %5282 = vmatpush.msra.mxu3 %v4193_v15  ;;  %v13073_v53 = vpop.f32.mrf.mxu3 }
 0x980   : > { %v2705_v2 = vadd.f32 %v15991_v24, %v12428_v39  ;;  %v3602_v63 = vmax.f32 %v13035_v51, 0.0  ;;  %v3618_v23 = vmax.f32 %v13039_v13, 0.0  ;;  %v3649_v49 = vmax.f32 %v2419_v22, 0.0  ;;  %v15992_v46 = vld [vmem:[#allocation543_spill] sm:$0xff]  ;;  %5243 = vmatpush.msra.mxu1 %v3665_v50 }
 0x981   : > { %v2623_v45 = vadd.f32 %v15992_v46, %v12428_v39  ;;  %v15993_v21 = vmax.f32 %v12503_v0, 0.0  ;;  %v3905_v32 = vmax.f32 %v2459_v26, 0.0  ;;  %v15994_v11 = vld [vmem:[#allocation607_spill] sm:$0xff]  ;;  %v4161_v42 = vmax.f32 %v2499_v56, 0.0  ;;  %5263 = vmatpush.msra.mxu2 %v3921_v54  ;;  %5283 = vmatpush.msra.mxu3 %v4177_v52 }
 0x982   : > { %v2663_v4 = vadd.f32 %v15994_v11, %v12428_v39  ;;  %v15995_v15 = vld [vmem:[#allocation63_spill] sm:$0xff]  ;;  %v3634_v13 = vmax.f32 %v2585_v37, 0.0  ;;  %v3890_v20 = vmax.f32 %v2625_v12, 0.0  ;;  %v15997_v0 = vmax.f32 %v12453_v35, 0.0  ;;  %5244 = vmatpush.msra.mxu1 %v3649_v49 }
 0x983   : > { %5223 = vmatpush.msra.mxu0 %v15993_v21  ;;  %v2703_v51 = vadd.f32 %v15995_v15, %v12428_v39  ;;  %v15996_v24 = vld [vmem:[#allocation539_spill] sm:$0xff]  ;;  %v4146_v56 = vmax.f32 %v2665_v25, 0.0  ;;  %v4402_v54 = vmax.f32 %v2705_v2, 0.0  ;;  %5264 = vmatpush.msra.mxu2 %v3905_v32  ;;  %v13102_v25 = vpop.f32.mrf.mxu1 }
 0x984   : > { %v2620_v46 = vadd.f32 %v15996_v24, %v12428_v39  ;;  %v15998_v26 = vld [vmem:[#allocation603_spill] sm:$0xff]  ;;  %5284 = vmatpush.msra.mxu3 %v4161_v42  ;;  %v3874_v24 = vmax.f32 %v2623_v45, 0.0  ;;  %5309 = vmatpush.msrb.mxu1 %v3890_v20  ;;  %v4130_v42 = vmax.f32 %v2663_v4, 0.0 }
 0x985   : > { %5224 = vmatpush.msra.mxu0 %v15997_v0  ;;  %v2660_v50 = vadd.f32 %v15998_v26, %v12428_v39  ;;  %v15999_v21 = vld [vmem:[#allocation67_spill] sm:$0xff]  ;;  %v13100_v0 = vpop.f32.mrf.mxu0  ;;  %5329 = vmatpush.msrb.mxu2 %v4146_v56 }
 0x986   : > { %v2700_v11 = vadd.f32 %v15999_v21, %v12428_v39  ;;  %v16000_v37 = vld [vmem:[#allocation491_spill] sm:$0xff]  ;;  %5349 = vmatpush.msrb.mxu3 %v4402_v54  ;;  %v3858_v4 = vmax.f32 %v2620_v46, 0.0  ;;  %5310 = vmatpush.msrb.mxu1 %v3874_v24 }
 0x987   : > { %v13092_v52 = vadd.f32 %v16000_v37, %v12428_v39  ;;  %v16002_v12 = vld [vmem:[#allocation495_spill] sm:$0xff]  ;;  %5289 = vmatpush.msrb.mxu0 %v3634_v13  ;;  %v4386_v37 = vmax.f32 %v2703_v51, 0.0  ;;  %v4114_v59 = vmax.f32 %v2660_v50, 0.0  ;;  %5330 = vmatpush.msrb.mxu2 %v4130_v42 }
 0x988   : > { %v13096_v15 = vadd.f32 %v16002_v12, %v12428_v39  ;;  %v16003_v49 = vld [vmem:[#allocation535_spill] sm:$0xff]  ;;  %v13108_v12 = vpop.f32.mrf.mxu2  ;;  %v4370_v38 = vmax.f32 %v2700_v11, 0.0  ;;  %5311 = vmatpush.msrb.mxu1 %v3858_v4  ;;  %5265 = vmatmul.f32.vlgmr.msra.gmra.mxu2 %v15353_v6 }
 0x989   : > { %16001 = vst [vmem:[#allocation149_spill] sm:$0xff] %v13092_v52  ;;  %v2618_v35 = vadd.f32 %v16003_v49, %v12428_v39  ;;  %v16004_v2 = vld [vmem:[#allocation599_spill] sm:$0xff]  ;;  %5290 = vmatpush.msrb.mxu0 %v3618_v23  ;;  %5350 = vmatpush.msrb.mxu3 %v4386_v37  ;;  %v13128_v23 = vpop.f32.mrf.mxu3 }
 0x98a   : > { %v2658_v32 = vadd.f32 %v16004_v2, %v12428_v39  ;;  %v16005_v26 = vld [vmem:[#allocation71_spill] sm:$0xff]  ;;  %5331 = vmatpush.msrb.mxu2 %v4114_v59  ;;  %5285 = vmatmul.f32.vlgmr.msra.gmra.mxu3 %v15353_v6 }
 0x98b   : > { %v2698_v21 = vadd.f32 %v16005_v26, %v12428_v39  ;;  %v16006_v45 = vld [vmem:[#allocation499_spill] sm:$0xff]  ;;  %v3842_v46 = vmax.f32 %v2618_v35, 0.0  ;;  %5291 = vmatpush.msrb.mxu0 %v3602_v63  ;;  %5351 = vmatpush.msrb.mxu3 %v4370_v38  ;;  %v16015_v63 = vmax.f32 %v13001_v62, 0.0 }
 0x98c   : > { %v13112_v49 = vadd.f32 %v16006_v45, %v12428_v39  ;;  %v16007_v22 = vld [vmem:[#allocation503_spill] sm:$0xff]  ;;  %5225 = vmatmul.f32.vlgmr.msra.gmra.mxu0 %v15353_v6  ;;  %5245 = vmatmul.f32.vlgmr.msra.gmra.mxu1 %v15353_v6 }
 0x98d   : > { %v13116_v13 = vadd.f32 %v16007_v22, %v12428_v39  ;;  %v16008_v20 = vld [vmem:[#allocation531_spill] sm:$0xff]  ;;  %v4354_v37 = vmax.f32 %v2698_v21, 0.0  ;;  %5292 = vmatpush.msrb.mxu0 %v16015_v63  ;;  %5312 = vmatpush.msrb.mxu1 %v3842_v46 }
 0x98e   : > { %v2615_v2 = vadd.f32 %v16008_v20, %v12428_v39  ;;  %v16009_v51 = vld [vmem:[#allocation595_spill] sm:$0xff]  ;;  %v2613_v20 = vadd.f32 %v16011_v44, %v12428_v39 }
 0x98f   : > { %v2655_v26 = vadd.f32 %v16009_v51, %v12428_v39  ;;  %v16010_v56 = vld [vmem:[#allocation75_spill] sm:$0xff]  ;;  %v4098_v51 = vmax.f32 %v2658_v32, 0.0  ;;  %5352 = vmatpush.msrb.mxu3 %v4354_v37 }
 0x990   : > { %v2695_v54 = vadd.f32 %v16010_v56, %v12428_v39  ;;  %v16012_v50 = vld [vmem:[#allocation591_spill] sm:$0xff]  ;;  %v3826_v22 = vmax.f32 %v2615_v2, 0.0  ;;  %v3810_v63 = vmax.f32 %v2613_v20, 0.0 }
 0x991   : > { %v2653_v24 = vadd.f32 %v16012_v50, %v12428_v39  ;;  %v16013_v11 = vld [vmem:[#allocation79_spill] sm:$0xff]  ;;  %v4082_v50 = vmax.f32 %v2655_v26, 0.0  ;;  %5332 = vmatpush.msrb.mxu2 %v4098_v51  ;;  %v16021_v26 = vmax.f32 %v12997_v48, 0.0 }
 0x992   : > { %v2693_v42 = vadd.f32 %v16013_v11, %v12428_v39  ;;  %v16014_v44 = vld [vmem:[#allocation523_spill] sm:$0xff]  ;;  %v4338_v38 = vmax.f32 %v2695_v54, 0.0  ;;  %5313 = vmatpush.msrb.mxu1 %v3826_v22 }
 0x993   : > { %v2610_v35 = vadd.f32 %v16014_v44, %v12428_v39  ;;  %v16016_v32 = vld [vmem:[#allocation587_spill] sm:$0xff]  ;;  %5293 = vmatpush.msrb.mxu0 %v16021_v26  ;;  %v4066_v37 = vmax.f32 %v2653_v24, 0.0  ;;  %5333 = vmatpush.msrb.mxu2 %v4082_v50  ;;  %v13170_v26 = vpop.f32.mrf.mxu0  ;;  %v13172_v24 = vpop.f32.mrf.mxu1 }
 0x994   : > { %v2650_v4 = vadd.f32 %v16016_v32, %v12428_v39  ;;  %v16017_v21 = vld [vmem:[#allocation83_spill] sm:$0xff]  ;;  %5353 = vmatpush.msrb.mxu3 %v4338_v38  ;;  %5314 = vmatpush.msrb.mxu1 %v3810_v63 }
 0x995   : > { %v2690_v59 = vadd.f32 %v16017_v21, %v12428_v39  ;;  %v16018_v11 = vld [vmem:[#allocation507_spill] sm:$0xff]  ;;  %v3794_v18 = vmax.f32 %v2610_v35, 0.0  ;;  %5334 = vmatpush.msrb.mxu2 %v4066_v37 }
 0x996   : > { %v13146_v56 = vadd.f32 %v16018_v11, %v12428_v39  ;;  %v16019_v2 = vld [vmem:[#allocation511_spill] sm:$0xff]  ;;  %v4322_v11 = vmax.f32 %v2693_v42, 0.0  ;;  %v16027_v42 = vmax.f32 %v12987_v55, 0.0  ;;  %v4050_v35 = vmax.f32 %v2650_v4, 0.0 }
 0x997   : > { %v13150_v44 = vadd.f32 %v16019_v2, %v12428_v39  ;;  %v16020_v62 = vld [vmem:[#allocation519_spill] sm:$0xff]  ;;  %5315 = vmatpush.msrb.mxu1 %v3794_v18  ;;  %v16036_v18 = vmax.f32 %v12950_v7, 0.0  ;;  %v16039_v7 = vmax.f32 %v12901_v36, 0.0 }
 0x998   : > { %v2608_v46 = vadd.f32 %v16020_v62, %v12428_v39  ;;  %v16022_v54 = vld [vmem:[#allocation583_spill] sm:$0xff]  ;;  %5294 = vmatpush.msrb.mxu0 %v16027_v42  ;;  %5354 = vmatpush.msrb.mxu3 %v4322_v11 }
 0x999   : > { %v2648_v51 = vadd.f32 %v16022_v54, %v12428_v39  ;;  %v16023_v32 = vld [vmem:[#allocation87_spill] sm:$0xff]  ;;  %5335 = vmatpush.msrb.mxu2 %v4050_v35 }
 0x99a   : > { %v2688_v21 = vadd.f32 %v16023_v32, %v12428_v39  ;;  %v16024_v2 = vld [vmem:[#allocation515_spill] sm:$0xff] }
 0x99b   : > { %v2605_v45 = vadd.f32 %v16024_v2, %v12428_v39  ;;  %v16025_v20 = vld [vmem:[#allocation551_spill] sm:$0xff]  ;;  %v4306_v2 = vmax.f32 %v2690_v59, 0.0  ;;  %v3730_v59 = vmax.f32 %v13146_v56, 0.0  ;;  %v4034_v37 = vmax.f32 %v2648_v51, 0.0  ;;  %v4926_v57 = vpop.f32.mrf.mxu1 }
 0x99c   : > { %v13164_v62 = vadd.f32 %v16025_v20, %v12428_v39  ;;  %v16026_v48 = vld [vmem:[#allocation555_spill] sm:$0xff]  ;;  %v13180_v20 = vpop.f32.mrf.mxu2 }
 0x99d   : > { %v13168_v22 = vadd.f32 %v16026_v48, %v12428_v39  ;;  %v16028_v50 = vld [vmem:[#allocation579_spill] sm:$0xff]  ;;  %v3778_v48 = vmax.f32 %v2608_v46, 0.0  ;;  %v16034_v46 = vld [vmem:[#allocation94_spill] sm:$0xff]  ;;  %5355 = vmatpush.msrb.mxu3 %v4306_v2  ;;  %5336 = vmatpush.msrb.mxu2 %v4034_v37 }
 0x99e   : > { %v2645_v38 = vadd.f32 %v16028_v50, %v12428_v39  ;;  %v16029_v54 = vld [vmem:[#allocation91_spill] sm:$0xff]  ;;  %v16033_v50 = vmax.f32 %v12983_v41, 0.0  ;;  %v2683_v11 = vadd.f32 %v16034_v46, %v12428_v39  ;;  %v13201_v41 = vpop.f32.mrf.mxu3 }
 0x99f   : > { %v2685_v32 = vadd.f32 %v16029_v54, %v12428_v39  ;;  %v16030_v52 = vld [vmem:[#allocation559_spill] sm:$0xff]  ;;  %v4290_v54 = vmax.f32 %v2688_v21, 0.0  ;;  %5316 = vmatpush.msrb.mxu1 %v3778_v48  ;;  %v3922_v56 = vmax.f32 %v13168_v22, 0.0  ;;  %v16037_v21 = vld [vmem:[#allocation97_spill] sm:$0xff]  ;;  %v16076_v22 = vmax.f32 %v13164_v62, 0.0 }
 0x9a0   : > { %v13184_v27 = vadd.f32 %v16030_v52, %v12428_v39  ;;  %v16031_v55 = vld [vmem:[#allocation563_spill] sm:$0xff]  ;;  %5295 = vmatpush.msrb.mxu0 %v16033_v50  ;;  %v3746_v52 = vmax.f32 %v13150_v44, 0.0  ;;  %v4018_v51 = vmax.f32 %v2645_v38, 0.0  ;;  %v2680_v35 = vadd.f32 %v16037_v21, %v12428_v39  ;;  %v16040_v38 = vld [vmem:[#allocation112_spill] sm:$0xff]  ;;  %v16043_v21 = vld [vmem:[#allocation106_spill] sm:$0xff] }
 0x9a1   : > { %v13188_v63 = vadd.f32 %v16031_v55, %v12428_v39  ;;  %v16032_v42 = vld [vmem:[#allocation575_spill] sm:$0xff]  ;;  %v3762_v55 = vmax.f32 %v2605_v45, 0.0  ;;  %v4274_v2 = vmax.f32 %v2685_v32, 0.0  ;;  %5356 = vmatpush.msrb.mxu3 %v4290_v54  ;;  %v13216_v48 = vadd.f32 %v16040_v38, %v12428_v39  ;;  %v16041_v32 = vld [vmem:[#allocation100_spill] sm:$0xff] }
 0x9a2   : > { %v2643_v4 = vadd.f32 %v16032_v42, %v12428_v39  ;;  %v16035_v42 = vld [vmem:[#allocation571_spill] sm:$0xff]  ;;  %5296 = vmatpush.msrb.mxu0 %v16036_v18  ;;  %v3938_v45 = vmax.f32 %v13184_v27, 0.0  ;;  %v2678_v37 = vadd.f32 %v16041_v32, %v12428_v39  ;;  %v4258_v54 = vmax.f32 %v2683_v11, 0.0  ;;  %5337 = vmatpush.msrb.mxu2 %v4018_v51  ;;  %v4906_v32 = vpop.f32.mrf.mxu0  ;;  %v16064_v27 = vld [vmem:[#allocation214_spill] sm:$0xff] }
 0x9a3   : > { %v2640_v58 = vadd.f32 %v16035_v42, %v12428_v39  ;;  %v3954_v44 = vmax.f32 %v13188_v63, 0.0  ;;  %v16038_v50 = vld [vmem:[#allocation567_spill] sm:$0xff]  ;;  %5317 = vmatpush.msrb.mxu1 %v3762_v55  ;;  %5357 = vmatpush.msrb.mxu3 %v4274_v2  ;;  %v16045_v38 = vmax.f32 %v12875_v5, 0.0  ;;  %v4242_v51 = vmax.f32 %v2680_v35, 0.0  ;;  %v16047_v5 = vld [vmem:[#allocation656_spill] sm:$0xff] }
 0x9a4   : > { %v2638_v46 = vadd.f32 %v16038_v50, %v12428_v39  ;;  %v4002_v42 = vmax.f32 %v2643_v4, 0.0  ;;  %5297 = vmatpush.msrb.mxu0 %v16039_v7  ;;  %v13223_v63 = vld [vmem:[%s14350_s2 + $0x8] sm:$0xff]  ;;  %v16042_v4 = vld [vmem:[#allocation109_spill] sm:$0xff]  ;;  %v13234_v50 = vadd.f32 %v16043_v21, %v12428_v39  ;;  %v4687_v21 = vadd.f32 %v13045_v29, %v13043_v43 }
 0x9a5   : > { %v13226_v18 = vperm.slane %v13223_v63, 4  ;;  %v3986_v36 = vmax.f32 %v2640_v58, 0.0  ;;  %v13230_v55 = vadd.f32 %v16042_v4, %v12428_v39  ;;  %v16044_v11 = vld [vmem:[#allocation103_spill] sm:$0xff]  ;;  %5318 = vmatpush.msrb.mxu1 %v3746_v52  ;;  %v16046_v58 = vld [vmem:[#allocation652_spill] sm:$0xff]  ;;  %v4607_v4 = vadd.f32 %v12973_v47, %v12971_v8  ;;  %5358 = vmatpush.msrb.mxu3 %v4258_v54 }
 0x9a6   : > { %v2675_v7 = vadd.f32 %v16044_v11, %v12428_v39  ;;  %5298 = vmatpush.msrb.mxu0 %v16045_v38  ;;  %5338 = vmatpush.msrb.mxu2 %v4002_v42  ;;  %v4946_v39 = vpop.f32.mrf.mxu2  ;;  %v3970_v11 = vmax.f32 %v2638_v46, 0.0  ;;  %v4527_v35 = vadd.f32 %v12932_v30, %v12930_v9  ;;  %v4767_v38 = vadd.f32 %v13102_v25, %v13100_v0  ;;  %v16049_v47 = vld [vmem:[#allocation660_spill] sm:$0xff] }
 0x9a7   : > { %v13242_v2 = vadd.f32 %v16046_v58, %v13226_v18  ;;  %v13250_v52 = vadd.f32 %v16047_v5, %v13226_v18  ;;  %v16048_v58 = vmax.f32 %v12835_v1, 0.0  ;;  %5319 = vmatpush.msrb.mxu1 %v3730_v59  ;;  %v4226_v8 = vmax.f32 %v2678_v37, 0.0  ;;  %5359 = vmatpush.msrb.mxu3 %v4242_v51  ;;  %v16050_v30 = vld [vmem:[#allocation664_spill] sm:$0xff] }
 0x9a8   : > { %v13260_v43 = vadd.f32 %v16049_v47, %v13226_v18  ;;  %v4847_v29 = vadd.f32 %v13172_v24, %v13170_v26  ;;  %5339 = vmatpush.msrb.mxu2 %v3986_v36  ;;  %v4927_v46 = vadd.f32 %v4926_v57, %v4906_v32  ;;  %v4162_v9 = vmax.f32 %v13216_v48, 0.0  ;;  %v16051_v1 = vld [vmem:[#allocation668_spill] sm:$0xff]  ;;  %v4966_v57 = vpop.f32.mrf.mxu3 }
 0x9a9   : > { %5299 = vmatpush.msrb.mxu0 %v16048_v58  ;;  %v13267_v0 = vadd.f32 %v16050_v30, %v13226_v18  ;;  %v13271_v25 = vadd.f32 %v16051_v1, %v13226_v18  ;;  %v16052_v59 = vld [vmem:[#allocation672_spill] sm:$0xff]  ;;  %v16053_v37 = vmax.f32 %v12819_v10, 0.0  ;;  %v16054_v26 = vmax.f32 %v13116_v13, 0.0  ;;  %5360 = vmatpush.msrb.mxu3 %v4226_v8 }
 0x9aa   : > { %v13275_v42 = vadd.f32 %v16052_v59, %v13226_v18  ;;  %v4178_v24 = vmax.f32 %v13230_v55, 0.0  ;;  %v16055_v54 = vld [vmem:[#allocation720_spill] sm:$0xff]  ;;  %v4627_v32 = vadd.f32 %v12979_v3, %v4607_v4  ;;  %v4707_v51 = vadd.f32 %v13053_v14, %v4687_v21  ;;  %5340 = vmatpush.msrb.mxu2 %v3970_v11 }
 0x9ab   : > { %5300 = vmatpush.msrb.mxu0 %v16053_v37  ;;  %5320 = vmatpush.msrb.mxu1 %v16054_v26  ;;  %v13284_v36 = vadd.f32 %v16055_v54, %v13226_v18  ;;  %v4210_v5 = vmax.f32 %v2675_v7, 0.0  ;;  %v16056_v10 = vld [vmem:[#allocation724_spill] sm:$0xff]  ;;  %v4547_v13 = vadd.f32 %v12938_v16, %v4527_v35  ;;  %v4787_v47 = vadd.f32 %v13108_v12, %v4767_v38  ;;  %v16068_v37 = vld [vmem:[#allocation149_spill] sm:$0xff] }
 0x9ac   : > { %v13290_v58 = vadd.f32 %v16056_v10, %v13226_v18  ;;  %v16057_v55 = vmax.f32 %v12787_v31, 0.0  ;;  %v4194_v3 = vmax.f32 %v13234_v50, 0.0  ;;  %v16058_v14 = vld [vmem:[#allocation732_spill] sm:$0xff]  ;;  %v4867_v7 = vadd.f32 %v13180_v20, %v4847_v29  ;;  %5341 = vmatpush.msrb.mxu2 %v3954_v44  ;;  %v16071_v10 = vld [vmem:[#allocation43_spill] sm:$0xff] }
 0x9ad   : > { %v13300_v4 = vadd.f32 %v16058_v14, %v13226_v18  ;;  %v16059_v21 = vmax.f32 %v13112_v49, 0.0  ;;  %v4947_v16 = vadd.f32 %v4946_v39, %v4927_v46  ;;  %v13306_v12 = vperm.slane %v13223_v63, 5  ;;  %v16060_v11 = vld [vmem:[#allocation728_spill] sm:$0xff]  ;;  %5361 = vmatpush.msrb.mxu3 %v4210_v5  ;;  %v16074_v14 = vld [vmem:[#allocation93_spill] sm:$0xff] }
 0x9ae   : > { %5301 = vmatpush.msrb.mxu0 %v16057_v55  ;;  %v13310_v31 = vadd.f32 %v16060_v11, %v13226_v18  ;;  %v16061_v50 = vld [vmem:[#allocation736_spill] sm:$0xff]  ;;  %v13316_v38 = vadd.f32 %v11820_v17, %v13226_v18  ;;  %v16062_v49 = vmax.f32 %v12769_v28, 0.0  ;;  %v3619_v20 = vmax.f32 %v13271_v25, 0.0  ;;  %5342 = vmatpush.msrb.mxu2 %v3938_v45  ;;  %v5026_v1 = vpop.f32.mrf.mxu2  ;;  %v16072_v55 = vld [vmem:[#allocation117_spill] sm:$0xff]  ;;  %v16077_v11 = vld [vmem:[#allocation46_spill] sm:$0xff] }
 0x9af   : > { %5321 = vmatpush.msrb.mxu1 %v16059_v21  ;;  %v2794_v35 = vadd.f32 %v16061_v50, %v13226_v18  ;;  %v4447_v44 = vadd.f32 %v12868_v60, %v12866_v19  ;;  %v4647_v39 = vadd.f32 %v13005_v61, %v4627_v32  ;;  %v4727_v8 = vadd.f32 %v13073_v53, %v4707_v51  ;;  %v4986_v19 = vpop.f32.mrf.mxu0  ;;  %v5006_v60 = vpop.f32.mrf.mxu1  ;;  %v16065_v25 = vld [vmem:[#allocation40_spill] sm:$0xff] }
 0x9b0   : > { %5302 = vmatpush.msrb.mxu0 %v16062_v49  ;;  %v16063_v29 = vmax.f32 %v13096_v15, 0.0  ;;  %v3635_v17 = vmax.f32 %v13275_v42, 0.0  ;;  %v2834_v28 = vadd.f32 %v11966_v40, %v13226_v18  ;;  %v4567_v46 = vadd.f32 %v12954_v33, %v4547_v13  ;;  %5362 = vmatpush.msrb.mxu3 %v4194_v3  ;;  %v16066_v42 = vld [vmem:[#allocation171_spill] sm:$0xff]  ;;  %v16078_v49 = vld [vmem:[#allocation37_spill] sm:$0xff] }
 0x9b1   : > { %v4807_v30 = vadd.f32 %v13128_v23, %v4787_v47  ;;  %v3875_v61 = vmax.f32 %v13300_v4, 0.0  ;;  %v4887_v53 = vadd.f32 %v13201_v41, %v4867_v7  ;;  %v4967_v15 = vadd.f32 %v4966_v57, %v4947_v16  ;;  %v16070_v57 = vld [vmem:[#allocation209_spill] sm:$0xff]  ;;  %5343 = vmatpush.msrb.mxu2 %v3922_v56  ;;  %v5046_v7 = vpop.f32.mrf.mxu3 }
 0x9b2   : > { %5322 = vmatpush.msrb.mxu1 %v16063_v29  ;;  %v5007_v40 = vadd.f32 %v5006_v60, %v4986_v19  ;;  %v3891_v33 = vmax.f32 %v2794_v35, 0.0  ;;  %v13341_v23 = vadd.f32 %v11870_v34, %v13226_v18  ;;  %v2832_v45 = vadd.f32 %v16064_v27, %v13226_v18  ;;  %5363 = vmatpush.msrb.mxu3 %v4178_v24 }
 0x9b3   : > { %v2874_v59 = vadd.f32 %v16065_v25, %v13226_v18  ;;  %v16067_v41 = vmax.f32 %v16066_v42, 0.0  ;;  %v16069_v26 = vmax.f32 %v16068_v37, 0.0  ;;  %v4467_v54 = vadd.f32 %v16070_v57, %v4447_v44  ;;  %5344 = vmatpush.msrb.mxu2 %v16076_v22  ;;  %v16083_v42 = vld [vmem:[#allocation110_spill] sm:$0xff] }
 0x9b4   : > { %v5706_v32 = vrot.slane %v4647_v39, 6  ;;  %v5707_v51 = vrot.slane %v4727_v8, 5  ;;  %v5027_v34 = vadd.f32 %v5026_v1, %v5007_v40  ;;  %v4147_v5 = vmax.f32 %v2834_v28, 0.0  ;;  %5364 = vmatpush.msrb.mxu3 %v4162_v9  ;;  %5345 = vmatmul.f32.vlgmr.msrb.gmra.mxu2 %v15353_v6  ;;  %v16079_v9 = vld [vmem:[#allocation49_spill] sm:$0xff]  ;;  %v16081_v1 = vld [vmem:[#allocation52_spill] sm:$0xff] }
 0x9b5   : > { %5303 = vmatpush.msrb.mxu0 %v16067_v41  ;;  %5323 = vmatpush.msrb.mxu1 %v16069_v26  ;;  %v2872_v13 = vadd.f32 %v16071_v10, %v13226_v18  ;;  %v5705_v47 = vrot.slane %v4567_v46, 7  ;;  %v16073_v3 = vmax.f32 %v16072_v55, 0.0  ;;  %v16075_v4 = vmax.f32 %v16074_v14, 0.0  ;;  %v16084_v26 = vld [vmem:[#allocation55_spill] sm:$0xff] }
 0x9b6   : > { %v5708_v21 = vrot.slane %v4807_v30, 4  ;;  %v5709_v16 = vrot.slane %v4887_v53, 3  ;;  %v5710_v56 = vrot.slane %v4967_v15, 2  ;;  %v5047_v24 = vadd.f32 %v5046_v7, %v5027_v34  ;;  %5409 = vmatpush.msra.mxu2 %v4147_v5  ;;  %5365 = vmatmul.f32.vlgmr.msrb.gmra.mxu3 %v15353_v6  ;;  %v4407_v30 = vld [vmem:[#allocation2] sm:$0xff] }
 0x9b7   : > { %5304 = vmatpush.msrb.mxu0 %v16073_v3  ;;  %5324 = vmatpush.msrb.mxu1 %v16075_v4  ;;  %v2869_v50 = vadd.f32 %v16077_v11, %v13226_v18  ;;  %v4403_v35 = vmax.f32 %v2874_v59, 0.0  ;;  %v4487_v44 = vadd.f32 %v16078_v49, %v4467_v54  ;;  %v5721_v39 = vsel %vm5720_vm3, %v5706_v32, %v5707_v51  ;;  %v16080_v53 = vld [vmem:[#allocation107_spill] sm:$0xff] }
 0x9b8   : > { %v5711_v62 = vrot.slane %v5047_v24, 1  ;;  %v4131_v48 = vmax.f32 %v2832_v45, 0.0  ;;  %v2867_v8 = vadd.f32 %v16079_v9, %v13226_v18  ;;  %v4387_v29 = vmax.f32 %v2872_v13, 0.0  ;;  %5305 = vmatmul.f32.vlgmr.msrb.gmra.mxu0 %v15353_v6  ;;  %5325 = vmatmul.f32.vlgmr.msrb.gmra.mxu1 %v15353_v6  ;;  %v16082_v45 = vld [vmem:[#allocation716_spill] sm:$0xff] }
 0x9b9   : > { %5369 = vmatpush.msra.mxu0 %v3635_v17  ;;  %5389 = vmatpush.msra.mxu1 %v3891_v33  ;;  %v3603_v28 = vmax.f32 %v13267_v0, 0.0  ;;  %v5719_v17 = vsel %vm643_vm0, %v4487_v44, %v5705_v47  ;;  %v5724_v46 = vsel %vm5723_vm4, %v5708_v21, %v5709_v16  ;;  %v3859_v60 = vmax.f32 %v13310_v31, 0.0  ;;  %v16088_v47 = vld [vmem:[#allocation230_spill] sm:$0xff]  ;;  %v16091_v16 = vld [vmem:[#allocation60_spill] sm:$0xff] }
 0x9ba   : > { %5429 = vmatpush.msra.mxu3 %v4403_v35  ;;  %v5726_v19 = vsel %vm5725_vm5, %v5710_v56, %v5711_v62  ;;  %v2824_v15 = vadd.f32 %v16080_v53, %v13226_v18  ;;  %5410 = vmatpush.msra.mxu2 %v4131_v48  ;;  %v4115_v40 = vmax.f32 %v13341_v23, 0.0  ;;  %v2864_v33 = vadd.f32 %v16081_v1, %v13226_v18  ;;  %v16092_v24 = vld [vmem:[#allocation120_spill] sm:$0xff] }
 0x9bb   : > { %5370 = vmatpush.msra.mxu0 %v3619_v20  ;;  %5390 = vmatpush.msra.mxu1 %v3875_v61  ;;  %v5722_v20 = vsel %vm644_vm1, %v5719_v17, %v5721_v39  ;;  %v5728_v0 = vsel %vm5727_vm6, %v5724_v46, %v5726_v19  ;;  %v4371_v61 = vmax.f32 %v2869_v50, 0.0  ;;  %v3587_v27 = vmax.f32 %v13260_v43, 0.0  ;;  %v16085_v43 = vld [vmem:[#allocation648_spill] sm:$0xff] }
 0x9bc   : > { %5430 = vmatpush.msra.mxu3 %v4387_v29  ;;  %v5730_v31 = vsel %vm5729_vm7, %v5722_v20, %v5728_v0  ;;  %v2782_v25 = vadd.f32 %v16082_v45, %v13226_v18  ;;  %v3843_v59 = vmax.f32 %v13290_v58, 0.0  ;;  %v2822_v41 = vadd.f32 %v16083_v42, %v13226_v18  ;;  %5411 = vmatpush.msra.mxu2 %v4115_v40  ;;  %v16086_v58 = vld [vmem:[#allocation712_spill] sm:$0xff] }
 0x9bd   : > { %5371 = vmatpush.msra.mxu0 %v3603_v28  ;;  %5391 = vmatpush.msra.mxu1 %v3859_v60  ;;  %v5740_v23 = vadd.f32 %v5730_v31, %v4407_v30  ;;  %v4099_v37 = vmax.f32 %v13316_v38, 0.0  ;;  %v2862_v57 = vadd.f32 %v16084_v26, %v13226_v18  ;;  %v4355_v54 = vmax.f32 %v2867_v8, 0.0  ;;  %v16087_v38 = vld [vmem:[#allocation170_spill] sm:$0xff]  ;;  %v16093_v35 = vld [vmem:[#allocation640_spill] sm:$0xff] }
 0x9be   : > { %5431 = vmatpush.msra.mxu3 %v4371_v61  ;;  %v2739_v32 = vadd.f32 %v16085_v43, %v13226_v18  ;;  %v3571_v51 = vmax.f32 %v13250_v52, 0.0  ;;  %v2779_v34 = vadd.f32 %v16086_v58, %v13226_v18  ;;  %v3827_v5 = vmax.f32 %v13284_v36, 0.0  ;;  %v16089_v52 = vld [vmem:[#allocation644_spill] sm:$0xff] }
 0x9bf   : > { %5372 = vmatpush.msra.mxu0 %v3587_v27  ;;  %5392 = vmatpush.msra.mxu1 %v3843_v59  ;;  %5742 = vst [vmem:[#allocation2] sm:$0xff] %v5740_v23  ;;  %v2819_v10 = vadd.f32 %v16087_v38, %v13226_v18  ;;  %v4083_v13 = vmax.f32 %v2824_v15, 0.0  ;;  %v2859_v55 = vadd.f32 %v16088_v47, %v13226_v18  ;;  %v4339_v3 = vmax.f32 %v2864_v33, 0.0  ;;  %v16090_v36 = vld [vmem:[#allocation708_spill] sm:$0xff] }
 0x9c0   : > { %5412 = vmatpush.msra.mxu2 %v4099_v37  ;;  %5432 = vmatpush.msra.mxu3 %v4355_v54  ;;  %v2737_v14 = vadd.f32 %v16089_v52, %v13226_v18  ;;  %v3555_v4 = vmax.f32 %v13242_v2, 0.0  ;;  %v2777_v7 = vadd.f32 %v16090_v36, %v13226_v18  ;;  %v3811_v21 = vmax.f32 %v2782_v25, 0.0  ;;  %v16094_v44 = vld [vmem:[#allocation704_spill] sm:$0xff] }
 0x9c1   : > { %5373 = vmatpush.msra.mxu0 %v3571_v51  ;;  %5393 = vmatpush.msra.mxu1 %v3827_v5  ;;  %v2817_v22 = vadd.f32 %v16091_v16, %v13226_v18  ;;  %v4067_v56 = vmax.f32 %v2822_v41, 0.0  ;;  %v2857_v11 = vadd.f32 %v16092_v24, %v13226_v18  ;;  %v4323_v50 = vmax.f32 %v2862_v57, 0.0  ;;  %v16095_v48 = vld [vmem:[#allocation768_spill] sm:$0xff] }
 0x9c2   : > { %5413 = vmatpush.msra.mxu2 %v4083_v13  ;;  %5433 = vmatpush.msra.mxu3 %v4339_v3  ;;  %v2734_v49 = vadd.f32 %v16093_v35, %v13226_v18  ;;  %v3539_v2 = vmax.f32 %v2739_v32, 0.0  ;;  %v2774_v39 = vadd.f32 %v16094_v44, %v13226_v18  ;;  %v3795_v62 = vmax.f32 %v2779_v34, 0.0  ;;  %v16096_v29 = vld [vmem:[#allocation124_spill] sm:$0xff] }
 0x9c3   : > { %5374 = vmatpush.msra.mxu0 %v3555_v4  ;;  %5394 = vmatpush.msra.mxu1 %v3811_v21  ;;  %v2814_v9 = vadd.f32 %v16095_v48, %v13226_v18  ;;  %v4051_v8 = vmax.f32 %v2819_v10, 0.0  ;;  %v2854_v28 = vadd.f32 %v16096_v29, %v13226_v18  ;;  %v4307_v17 = vmax.f32 %v2859_v55, 0.0  ;;  %v16097_v46 = vld [vmem:[#allocation636_spill] sm:$0xff] }
 0x9c4   : > { %5414 = vmatpush.msra.mxu2 %v4067_v56  ;;  %5434 = vmatpush.msra.mxu3 %v4323_v50  ;;  %v2732_v30 = vadd.f32 %v16097_v46, %v13226_v18  ;;  %v3523_v19 = vmax.f32 %v2737_v14, 0.0  ;;  %v16098_v60 = vld [vmem:[#allocation700_spill] sm:$0xff]  ;;  %v3779_v15 = vmax.f32 %v2777_v7, 0.0  ;;  %v4035_v40 = vmax.f32 %v2817_v22, 0.0 }
 0x9c5   : > { %v2772_v53 = vadd.f32 %v16098_v60, %v13226_v18  ;;  %5375 = vmatpush.msra.mxu0 %v3539_v2  ;;  %5395 = vmatpush.msra.mxu1 %v3795_v62  ;;  %v16099_v20 = vld [vmem:[#allocation764_spill] sm:$0xff]  ;;  %v4291_v61 = vmax.f32 %v2857_v11, 0.0  ;;  %v3507_v45 = vmax.f32 %v2734_v49, 0.0  ;;  %v3763_v23 = vmax.f32 %v2774_v39, 0.0 }
 0x9c6   : > { %v2812_v0 = vadd.f32 %v16099_v20, %v13226_v18  ;;  %v16100_v1 = vld [vmem:[#allocation128_spill] sm:$0xff]  ;;  %5415 = vmatpush.msra.mxu2 %v4051_v8  ;;  %5435 = vmatpush.msra.mxu3 %v4307_v17  ;;  %v4019_v37 = vmax.f32 %v2814_v9, 0.0  ;;  %v4275_v54 = vmax.f32 %v2854_v28, 0.0  ;;  %v3491_v51 = vmax.f32 %v2732_v30, 0.0 }
 0x9c7   : > { %v2852_v33 = vadd.f32 %v16100_v1, %v13226_v18  ;;  %v16101_v31 = vld [vmem:[#allocation632_spill] sm:$0xff]  ;;  %5376 = vmatpush.msra.mxu0 %v3523_v19  ;;  %5396 = vmatpush.msra.mxu1 %v3779_v15  ;;  %v3747_v5 = vmax.f32 %v2772_v53, 0.0 }
 0x9c8   : > { %v2729_v27 = vadd.f32 %v16101_v31, %v13226_v18  ;;  %v16102_v25 = vld [vmem:[#allocation696_spill] sm:$0xff]  ;;  %5416 = vmatpush.msra.mxu2 %v4035_v40  ;;  %5436 = vmatpush.msra.mxu3 %v4291_v61  ;;  %v4003_v13 = vmax.f32 %v2812_v0, 0.0 }
 0x9c9   : > { %v2769_v59 = vadd.f32 %v16102_v25, %v13226_v18  ;;  %v16103_v42 = vld [vmem:[#allocation760_spill] sm:$0xff]  ;;  %5377 = vmatpush.msra.mxu0 %v3507_v45  ;;  %5397 = vmatpush.msra.mxu1 %v3763_v23  ;;  %v4259_v3 = vmax.f32 %v2852_v33, 0.0 }
 0x9ca   : > { %v2809_v41 = vadd.f32 %v16103_v42, %v13226_v18  ;;  %v16104_v26 = vld [vmem:[#allocation132_spill] sm:$0xff]  ;;  %5417 = vmatpush.msra.mxu2 %v4019_v37  ;;  %5437 = vmatpush.msra.mxu3 %v4275_v54  ;;  %v3475_v4 = vmax.f32 %v2729_v27, 0.0 }
 0x9cb   : > { %v2849_v57 = vadd.f32 %v16104_v26, %v13226_v18  ;;  %v16105_v43 = vld [vmem:[#allocation628_spill] sm:$0xff]  ;;  %v3731_v21 = vmax.f32 %v2769_v59, 0.0  ;;  %5378 = vmatpush.msra.mxu0 %v3491_v51  ;;  %5398 = vmatpush.msra.mxu1 %v3747_v5 }
 0x9cc   : > { %v2727_v32 = vadd.f32 %v16105_v43, %v13226_v18  ;;  %v16106_v58 = vld [vmem:[#allocation692_spill] sm:$0xff]  ;;  %v3987_v56 = vmax.f32 %v2809_v41, 0.0  ;;  %5418 = vmatpush.msra.mxu2 %v4003_v13  ;;  %5438 = vmatpush.msra.mxu3 %v4259_v3 }
 0x9cd   : > { %v2767_v34 = vadd.f32 %v16106_v58, %v13226_v18  ;;  %v16107_v38 = vld [vmem:[#allocation756_spill] sm:$0xff]  ;;  %v4243_v50 = vmax.f32 %v2849_v57, 0.0  ;;  %5379 = vmatpush.msra.mxu0 %v3475_v4  ;;  %5399 = vmatpush.msra.mxu1 %v3731_v21 }
 0x9ce   : > { %v2807_v10 = vadd.f32 %v16107_v38, %v13226_v18  ;;  %v16108_v47 = vld [vmem:[#allocation136_spill] sm:$0xff]  ;;  %v3459_v2 = vmax.f32 %v2727_v32, 0.0  ;;  %5419 = vmatpush.msra.mxu2 %v3987_v56  ;;  %v16125_v32 = vld [vmem:[#allocation673_spill] sm:$0xff] }
 0x9cf   : > { %v2847_v55 = vadd.f32 %v16108_v47, %v13226_v18  ;;  %v16109_v52 = vld [vmem:[#allocation624_spill] sm:$0xff]  ;;  %v3715_v62 = vmax.f32 %v2767_v34, 0.0  ;;  %5439 = vmatpush.msra.mxu3 %v4243_v50  ;;  %v2923_v51 = vadd.f32 %v16125_v32, %v13306_v12  ;;  %v16126_v34 = vld [vmem:[#allocation737_spill] sm:$0xff] }
 0x9d0   : > { %v2724_v14 = vadd.f32 %v16109_v52, %v13226_v18  ;;  %v16110_v36 = vld [vmem:[#allocation688_spill] sm:$0xff]  ;;  %v3971_v8 = vmax.f32 %v2807_v10, 0.0  ;;  %5380 = vmatpush.msra.mxu0 %v3459_v2  ;;  %v2963_v5 = vadd.f32 %v16126_v34, %v13306_v12  ;;  %v16127_v10 = vld [vmem:[#allocation211_spill] sm:$0xff]  ;;  %v16129_v52 = vld [vmem:[#allocation669_spill] sm:$0xff] }
 0x9d1   : > { %v2764_v7 = vadd.f32 %v16110_v36, %v13226_v18  ;;  %v16111_v16 = vld [vmem:[#allocation752_spill] sm:$0xff]  ;;  %v4227_v17 = vmax.f32 %v2847_v55, 0.0  ;;  %5400 = vmatpush.msra.mxu1 %v3715_v62  ;;  %v3003_v13 = vadd.f32 %v16127_v10, %v13306_v12  ;;  %v16130_v36 = vld [vmem:[#allocation733_spill] sm:$0xff] }
 0x9d2   : > { %v2804_v22 = vadd.f32 %v16111_v16, %v13226_v18  ;;  %v16112_v24 = vld [vmem:[#allocation140_spill] sm:$0xff]  ;;  %v3443_v19 = vmax.f32 %v2724_v14, 0.0  ;;  %5420 = vmatpush.msra.mxu2 %v3971_v8  ;;  %v2921_v14 = vadd.f32 %v16129_v52, %v13306_v12  ;;  %v16131_v16 = vld [vmem:[#allocation42_spill] sm:$0xff]  ;;  %v16133_v50 = vld [vmem:[#allocation665_spill] sm:$0xff] }
 0x9d3   : > { %v2844_v11 = vadd.f32 %v16112_v24, %v13226_v18  ;;  %v16113_v35 = vld [vmem:[#allocation620_spill] sm:$0xff]  ;;  %v3699_v15 = vmax.f32 %v2764_v7, 0.0  ;;  %5440 = vmatpush.msra.mxu3 %v4227_v17  ;;  %v2961_v7 = vadd.f32 %v16130_v36, %v13306_v12  ;;  %v16132_v24 = vld [vmem:[#allocation99_spill] sm:$0xff]  ;;  %v16134_v2 = vld [vmem:[#allocation729_spill] sm:$0xff] }
 0x9d4   : > { %v2722_v49 = vadd.f32 %v16113_v35, %v13226_v18  ;;  %v16114_v44 = vld [vmem:[#allocation684_spill] sm:$0xff]  ;;  %v3955_v40 = vmax.f32 %v2804_v22, 0.0  ;;  %5381 = vmatpush.msra.mxu0 %v3443_v19  ;;  %v3001_v22 = vadd.f32 %v16131_v16, %v13306_v12  ;;  %v2918_v35 = vadd.f32 %v16133_v50, %v13306_v12  ;;  %v16135_v62 = vld [vmem:[#allocation217_spill] sm:$0xff]  ;;  %v16136_v8 = vld [vmem:[#allocation102_spill] sm:$0xff] }
 0x9d5   : > { %v2762_v39 = vadd.f32 %v16114_v44, %v13226_v18  ;;  %v16115_v48 = vld [vmem:[#allocation748_spill] sm:$0xff]  ;;  %v4211_v61 = vmax.f32 %v2844_v11, 0.0  ;;  %5401 = vmatpush.msra.mxu1 %v3699_v15  ;;  %v3041_v11 = vadd.f32 %v16132_v24, %v13306_v12  ;;  %v2958_v44 = vadd.f32 %v16134_v2, %v13306_v12  ;;  %v16137_v17 = vld [vmem:[#allocation661_spill] sm:$0xff] }
 0x9d6   : > { %v2802_v9 = vadd.f32 %v16115_v48, %v13226_v18  ;;  %v16116_v29 = vld [vmem:[#allocation144_spill] sm:$0xff]  ;;  %v3427_v45 = vmax.f32 %v2722_v49, 0.0  ;;  %5421 = vmatpush.msra.mxu2 %v3955_v40  ;;  %v3636_v49 = vmax.f32 %v2923_v51, 0.0  ;;  %v2998_v48 = vadd.f32 %v16135_v62, %v13306_v12  ;;  %v16138_v19 = vld [vmem:[#allocation725_spill] sm:$0xff] }
 0x9d7   : > { %v2842_v28 = vadd.f32 %v16116_v29, %v13226_v18  ;;  %v16117_v46 = vld [vmem:[#allocation616_spill] sm:$0xff]  ;;  %v3683_v23 = vmax.f32 %v2762_v39, 0.0  ;;  %5441 = vmatpush.msra.mxu3 %v4211_v61  ;;  %v3892_v39 = vmax.f32 %v2963_v5, 0.0  ;;  %v3038_v29 = vadd.f32 %v16136_v8, %v13306_v12  ;;  %v16140_v40 = vld [vmem:[#allocation105_spill] sm:$0xff]  ;;  %v16147_v5 = vld [vmem:[#allocation167_spill] sm:$0xff] }
 0x9d8   : > { %v2719_v30 = vadd.f32 %v16117_v46, %v13226_v18  ;;  %v16118_v60 = vld [vmem:[#allocation680_spill] sm:$0xff]  ;;  %v3939_v37 = vmax.f32 %v2802_v9, 0.0  ;;  %5382 = vmatpush.msra.mxu0 %v3427_v45  ;;  %v4148_v9 = vmax.f32 %v3003_v13, 0.0  ;;  %v2916_v46 = vadd.f32 %v16137_v17, %v13306_v12  ;;  %v16141_v61 = vld [vmem:[#allocation657_spill] sm:$0xff]  ;;  %v16148_v13 = vld [vmem:[#allocation111_spill] sm:$0xff] }
 0x9d9   : > { %v2759_v53 = vadd.f32 %v16118_v60, %v13226_v18  ;;  %v16119_v20 = vld [vmem:[#allocation744_spill] sm:$0xff]  ;;  %v4195_v54 = vmax.f32 %v2842_v28, 0.0  ;;  %5402 = vmatpush.msra.mxu1 %v3683_v23  ;;  %v2956_v60 = vadd.f32 %v16138_v19, %v13306_v12  ;;  %v16142_v45 = vld [vmem:[#allocation721_spill] sm:$0xff] }
 0x9da   : > { %v2799_v0 = vadd.f32 %v16119_v20, %v13226_v18  ;;  %v16120_v1 = vld [vmem:[#allocation148_spill] sm:$0xff]  ;;  %v3411_v43 = vmax.f32 %v2719_v30, 0.0  ;;  %5422 = vmatpush.msra.mxu2 %v3939_v37  ;;  %v3620_v30 = vmax.f32 %v2921_v14, 0.0  ;;  %v3588_v32 = vmax.f32 %v2916_v46, 0.0  ;;  %v16146_v51 = vld [vmem:[#allocation717_spill] sm:$0xff] }
 0x9db   : > { %v2839_v33 = vadd.f32 %v16120_v1, %v13226_v18  ;;  %v16121_v31 = vld [vmem:[#allocation612_spill] sm:$0xff]  ;;  %v3667_v58 = vmax.f32 %v2759_v53, 0.0  ;;  %5442 = vmatpush.msra.mxu3 %v4195_v54  ;;  %v3876_v53 = vmax.f32 %v2961_v7, 0.0  ;;  %v3036_v1 = vadd.f32 %v16140_v40, %v13306_v12  ;;  %v16145_v54 = vld [vmem:[#allocation653_spill] sm:$0xff]  ;;  %v16151_v7 = vld [vmem:[#allocation226_spill] sm:$0xff] }
 0x9dc   : > { %v2717_v27 = vadd.f32 %v16121_v31, %v13226_v18  ;;  %v16122_v25 = vld [vmem:[#allocation676_spill] sm:$0xff]  ;;  %v3923_v38 = vmax.f32 %v2799_v0, 0.0  ;;  %5383 = vmatpush.msra.mxu0 %v3411_v43  ;;  %v4132_v0 = vmax.f32 %v3001_v22, 0.0  ;;  %v2913_v31 = vadd.f32 %v16141_v61, %v13306_v12  ;;  %v16150_v14 = vld [vmem:[#allocation713_spill] sm:$0xff]  ;;  %v16152_v22 = vld [vmem:[#allocation58_spill] sm:$0xff] }
 0x9dd   : > { %v2757_v59 = vadd.f32 %v16122_v25, %v13226_v18  ;;  %v16123_v42 = vld [vmem:[#allocation740_spill] sm:$0xff]  ;;  %v4179_v47 = vmax.f32 %v2839_v33, 0.0  ;;  %5403 = vmatpush.msra.mxu1 %v3667_v58  ;;  %v4388_v33 = vmax.f32 %v3041_v11, 0.0  ;;  %v2953_v25 = vadd.f32 %v16142_v45, %v13306_v12  ;;  %v16153_v11 = vld [vmem:[#allocation645_spill] sm:$0xff] }
 0x9de   : > { %v2797_v41 = vadd.f32 %v16123_v42, %v13226_v18  ;;  %v16124_v26 = vld [vmem:[#allocation152_spill] sm:$0xff]  ;;  %v3395_v3 = vmax.f32 %v2717_v27, 0.0  ;;  %5423 = vmatpush.msra.mxu2 %v3923_v38  ;;  %v3604_v27 = vmax.f32 %v2918_v35, 0.0  ;;  %v2911_v43 = vadd.f32 %v16145_v54, %v13306_v12 }
 0x9df   : > { %v2837_v57 = vadd.f32 %v16124_v26, %v13226_v18  ;;  %v16128_v18 = vld [vmem:[#allocation96_spill] sm:$0xff]  ;;  %v3651_v4 = vmax.f32 %v2757_v59, 0.0  ;;  %5443 = vmatpush.msra.mxu3 %v4179_v47  ;;  %v3860_v59 = vmax.f32 %v2958_v44, 0.0  ;;  %v2951_v58 = vadd.f32 %v16146_v51, %v13306_v12 }
 0x9e0   : > { %v3043_v55 = vadd.f32 %v16128_v18, %v13306_v12  ;;  %v3907_v21 = vmax.f32 %v2797_v41, 0.0  ;;  %5384 = vmatpush.msra.mxu0 %v3395_v3  ;;  %v16139_v15 = vld [vmem:[#allocation104_spill] sm:$0xff]  ;;  %v4116_v41 = vmax.f32 %v2998_v48, 0.0  ;;  %v3844_v34 = vmax.f32 %v2956_v60, 0.0 }
 0x9e1   : > { %v4163_v56 = vmax.f32 %v2837_v57, 0.0  ;;  %5404 = vmatpush.msra.mxu1 %v3651_v4  ;;  %v2996_v20 = vadd.f32 %v16139_v15, %v13306_v12  ;;  %v16143_v23 = vld [vmem:[#allocation164_spill] sm:$0xff]  ;;  %v4372_v57 = vmax.f32 %v3038_v29, 0.0  ;;  %v2991_v38 = vadd.f32 %v16147_v5, %v13306_v12  ;;  %5385 = vmatmul.f32.vlgmr.msra.gmra.mxu0 %v15353_v6 }
 0x9e2   : > { %v4404_v28 = vmax.f32 %v3043_v55, 0.0  ;;  %5424 = vmatpush.msra.mxu2 %v3907_v21  ;;  %5449 = vmatpush.msrb.mxu0 %v3636_v49  ;;  %v2993_v42 = vadd.f32 %v16143_v23, %v13306_v12  ;;  %v16144_v37 = vld [vmem:[#allocation108_spill] sm:$0xff]  ;;  %v3031_v47 = vadd.f32 %v16148_v13, %v13306_v12  ;;  %v4356_v18 = vmax.f32 %v3036_v1, 0.0  ;;  %v16149_v55 = vld [vmem:[#allocation649_spill] sm:$0xff] }
 0x9e3   : > { %5444 = vmatpush.msra.mxu3 %v4163_v56  ;;  %5469 = vmatpush.msrb.mxu1 %v3892_v39  ;;  %v3033_v26 = vadd.f32 %v16144_v37, %v13306_v12  ;;  %v4100_v10 = vmax.f32 %v2996_v20, 0.0  ;;  %v2908_v3 = vadd.f32 %v16149_v55, %v13306_v12  ;;  %v3572_v52 = vmax.f32 %v2913_v31, 0.0  ;;  %v16154_v49 = vld [vmem:[#allocation709_spill] sm:$0xff]  ;;  %v16155_v39 = vld [vmem:[#allocation116_spill] sm:$0xff] }
 0x9e4   : > { %5489 = vmatpush.msrb.mxu2 %v4148_v9  ;;  %5450 = vmatpush.msrb.mxu0 %v3620_v30  ;;  %v2948_v4 = vadd.f32 %v16150_v14, %v13306_v12  ;;  %v3828_v36 = vmax.f32 %v2953_v25, 0.0  ;;  %v2988_v21 = vadd.f32 %v16151_v7, %v13306_v12  ;;  %v4084_v16 = vmax.f32 %v2993_v42, 0.0  ;;  %v16156_v9 = vld [vmem:[#allocation177_spill] sm:$0xff] }
 0x9e5   : > { %5509 = vmatpush.msrb.mxu3 %v4404_v28  ;;  %5470 = vmatpush.msrb.mxu1 %v3876_v53  ;;  %v3028_v56 = vadd.f32 %v16152_v22, %v13306_v12  ;;  %v4340_v24 = vmax.f32 %v3033_v26, 0.0  ;;  %v2906_v50 = vadd.f32 %v16153_v11, %v13306_v12  ;;  %v3556_v35 = vmax.f32 %v2911_v43, 0.0  ;;  %v16157_v28 = vld [vmem:[#allocation641_spill] sm:$0xff] }
 0x9e6   : > { %5490 = vmatpush.msrb.mxu2 %v4132_v0  ;;  %5451 = vmatpush.msrb.mxu0 %v3604_v27  ;;  %v2946_v2 = vadd.f32 %v16154_v49, %v13306_v12  ;;  %v3812_v44 = vmax.f32 %v2951_v58, 0.0  ;;  %v2986_v62 = vadd.f32 %v16155_v39, %v13306_v12  ;;  %v4068_v48 = vmax.f32 %v2991_v38, 0.0  ;;  %v16158_v30 = vld [vmem:[#allocation705_spill] sm:$0xff] }
 0x9e7   : > { %5510 = vmatpush.msrb.mxu3 %v4388_v33  ;;  %5471 = vmatpush.msrb.mxu1 %v3860_v59  ;;  %v3026_v8 = vadd.f32 %v16156_v9, %v13306_v12  ;;  %v4324_v29 = vmax.f32 %v3031_v47, 0.0  ;;  %v2903_v17 = vadd.f32 %v16157_v28, %v13306_v12  ;;  %v3540_v46 = vmax.f32 %v2908_v3, 0.0  ;;  %v16159_v53 = vld [vmem:[#allocation769_spill] sm:$0xff] }
 0x9e8   : > { %5491 = vmatpush.msrb.mxu2 %v4116_v41  ;;  %5452 = vmatpush.msrb.mxu0 %v3588_v32  ;;  %v2943_v19 = vadd.f32 %v16158_v30, %v13306_v12  ;;  %v3796_v60 = vmax.f32 %v2948_v4, 0.0  ;;  %v2983_v15 = vadd.f32 %v16159_v53, %v13306_v12  ;;  %v4052_v20 = vmax.f32 %v2988_v21, 0.0  ;;  %v16160_v0 = vld [vmem:[#allocation181_spill] sm:$0xff] }
 0x9e9   : > { %5511 = vmatpush.msrb.mxu3 %v4372_v57  ;;  %5472 = vmatpush.msrb.mxu1 %v3844_v34  ;;  %v3023_v40 = vadd.f32 %v16160_v0, %v13306_v12  ;;  %v4308_v1 = vmax.f32 %v3028_v56, 0.0  ;;  %v16161_v33 = vld [vmem:[#allocation637_spill] sm:$0xff]  ;;  %v3524_v31 = vmax.f32 %v2906_v50, 0.0  ;;  %v3780_v25 = vmax.f32 %v2946_v2, 0.0 }
 0x9ea   : > { %5492 = vmatpush.msrb.mxu2 %v4100_v10  ;;  %5453 = vmatpush.msrb.mxu0 %v3572_v52  ;;  %v2901_v61 = vadd.f32 %v16161_v33, %v13306_v12  ;;  %v16162_v27 = vld [vmem:[#allocation701_spill] sm:$0xff]  ;;  %v4036_v42 = vmax.f32 %v2986_v62, 0.0  ;;  %v4292_v26 = vmax.f32 %v3026_v8, 0.0  ;;  %v3508_v43 = vmax.f32 %v2903_v17, 0.0 }
 0x9eb   : > { %5512 = vmatpush.msrb.mxu3 %v4356_v18  ;;  %5473 = vmatpush.msrb.mxu1 %v3828_v36  ;;  %v2941_v45 = vadd.f32 %v16162_v27, %v13306_v12  ;;  %v16163_v59 = vld [vmem:[#allocation765_spill] sm:$0xff]  ;;  %v3764_v58 = vmax.f32 %v2943_v19, 0.0  ;;  %v4020_v38 = vmax.f32 %v2983_v15, 0.0  ;;  %v4276_v47 = vmax.f32 %v3023_v40, 0.0 }
 0x9ec   : > { %5493 = vmatpush.msrb.mxu2 %v4084_v16  ;;  %5454 = vmatpush.msrb.mxu0 %v3556_v35  ;;  %v2981_v23 = vadd.f32 %v16163_v59, %v13306_v12  ;;  %v16164_v41 = vld [vmem:[#allocation185_spill] sm:$0xff]  ;;  %v3492_v3 = vmax.f32 %v2901_v61, 0.0 }
 0x9ed   : > { %5513 = vmatpush.msrb.mxu3 %v4340_v24  ;;  %5474 = vmatpush.msrb.mxu1 %v3812_v44  ;;  %v3021_v37 = vadd.f32 %v16164_v41, %v13306_v12  ;;  %v16165_v57 = vld [vmem:[#allocation633_spill] sm:$0xff]  ;;  %v3748_v4 = vmax.f32 %v2941_v45, 0.0 }
 0x9ee   : > { %5494 = vmatpush.msrb.mxu2 %v4068_v48  ;;  %5455 = vmatpush.msrb.mxu0 %v3540_v46  ;;  %v2898_v54 = vadd.f32 %v16165_v57, %v13306_v12  ;;  %v16166_v32 = vld [vmem:[#allocation697_spill] sm:$0xff]  ;;  %v4004_v21 = vmax.f32 %v2981_v23, 0.0 }
 0x9ef   : > { %5514 = vmatpush.msrb.mxu3 %v4324_v29  ;;  %5475 = vmatpush.msrb.mxu1 %v3796_v60  ;;  %v2938_v51 = vadd.f32 %v16166_v32, %v13306_v12  ;;  %v16167_v34 = vld [vmem:[#allocation761_spill] sm:$0xff]  ;;  %v4260_v56 = vmax.f32 %v3021_v37, 0.0 }
 0x9f0   : > { %5495 = vmatpush.msrb.mxu2 %v4052_v20  ;;  %5456 = vmatpush.msrb.mxu0 %v3524_v31  ;;  %v2978_v5 = vadd.f32 %v16167_v34, %v13306_v12  ;;  %v16168_v10 = vld [vmem:[#allocation189_spill] sm:$0xff]  ;;  %v3476_v50 = vmax.f32 %v2898_v54, 0.0 }
 0x9f1   : > { %5515 = vmatpush.msrb.mxu3 %v4308_v1  ;;  %5476 = vmatpush.msrb.mxu1 %v3780_v25  ;;  %v3018_v13 = vadd.f32 %v16168_v10, %v13306_v12  ;;  %v16169_v18 = vld [vmem:[#allocation629_spill] sm:$0xff]  ;;  %v3732_v35 = vmax.f32 %v2938_v51, 0.0  ;;  %v16188_v10 = vld [vmem:[#allocation208_spill] sm:$0xff] }
 0x9f2   : > { %5496 = vmatpush.msrb.mxu2 %v4036_v42  ;;  %v2896_v55 = vadd.f32 %v16169_v18, %v13306_v12  ;;  %v16170_v52 = vld [vmem:[#allocation693_spill] sm:$0xff]  ;;  %5457 = vmatpush.msrb.mxu0 %v3508_v43  ;;  %v3988_v62 = vmax.f32 %v2978_v5, 0.0  ;;  %v13597_v42 = vperm.slane %v13223_v63, 6  ;;  %v16189_v18 = vld [vmem:[#allocation674_spill] sm:$0xff] }
 0x9f3   : > { %5516 = vmatpush.msrb.mxu3 %v4292_v26  ;;  %v2936_v14 = vadd.f32 %v16170_v52, %v13306_v12  ;;  %5477 = vmatpush.msrb.mxu1 %v3764_v58  ;;  %v16171_v36 = vld [vmem:[#allocation757_spill] sm:$0xff]  ;;  %v4244_v48 = vmax.f32 %v3018_v13, 0.0  ;;  %v3006_v13 = vadd.f32 %v16188_v10, %v13306_v12  ;;  %v16190_v52 = vld [vmem:[#allocation738_spill] sm:$0xff] }
 0x9f4   : > { %v2976_v7 = vadd.f32 %v16171_v36, %v13306_v12  ;;  %v16172_v16 = vld [vmem:[#allocation193_spill] sm:$0xff]  ;;  %5497 = vmatpush.msrb.mxu2 %v4020_v38  ;;  %5458 = vmatpush.msrb.mxu0 %v3492_v3  ;;  %v3460_v29 = vmax.f32 %v2896_v55, 0.0  ;;  %v3092_v55 = vadd.f32 %v16189_v18, %v13597_v42  ;;  %v16191_v36 = vld [vmem:[#allocation155_spill] sm:$0xff] }
 0x9f5   : > { %v3016_v22 = vadd.f32 %v16172_v16, %v13306_v12  ;;  %5517 = vmatpush.msrb.mxu3 %v4276_v47  ;;  %v16173_v24 = vld [vmem:[#allocation625_spill] sm:$0xff]  ;;  %5478 = vmatpush.msrb.mxu1 %v3748_v4  ;;  %v3716_v28 = vmax.f32 %v2936_v14, 0.0  ;;  %v3132_v14 = vadd.f32 %v16190_v52, %v13597_v42  ;;  %v16192_v16 = vld [vmem:[#allocation670_spill] sm:$0xff] }
 0x9f6   : > { %v2893_v11 = vadd.f32 %v16173_v24, %v13306_v12  ;;  %v16174_v49 = vld [vmem:[#allocation689_spill] sm:$0xff]  ;;  %5498 = vmatpush.msrb.mxu2 %v4004_v21  ;;  %5459 = vmatpush.msrb.mxu0 %v3476_v50  ;;  %v3972_v60 = vmax.f32 %v2976_v7, 0.0  ;;  %v3172_v7 = vadd.f32 %v16191_v36, %v13597_v42  ;;  %v16193_v24 = vld [vmem:[#allocation212_spill] sm:$0xff]  ;;  %v16194_v50 = vld [vmem:[#allocation734_spill] sm:$0xff] }
 0x9f7   : > { %v2933_v2 = vadd.f32 %v16174_v49, %v13306_v12  ;;  %v16175_v44 = vld [vmem:[#allocation753_spill] sm:$0xff]  ;;  %5518 = vmatpush.msrb.mxu3 %v4260_v56  ;;  %5479 = vmatpush.msrb.mxu1 %v3732_v35  ;;  %v4228_v53 = vmax.f32 %v3016_v22, 0.0  ;;  %v3090_v22 = vadd.f32 %v16192_v16, %v13597_v42  ;;  %v3130_v35 = vadd.f32 %v16194_v50, %v13597_v42 }
 0x9f8   : > { %v2973_v39 = vadd.f32 %v16175_v44, %v13306_v12  ;;  %v16176_v9 = vld [vmem:[#allocation621_spill] sm:$0xff]  ;;  %5499 = vmatpush.msrb.mxu2 %v3988_v62  ;;  %v3444_v15 = vmax.f32 %v2893_v11, 0.0  ;;  %5460 = vmatpush.msrb.mxu0 %v3460_v29  ;;  %v3212_v11 = vadd.f32 %v16193_v24, %v13597_v42  ;;  %v3637_v44 = vmax.f32 %v3092_v55, 0.0 }
 0x9f9   : > { %v2891_v8 = vadd.f32 %v16176_v9, %v13306_v12  ;;  %v16177_v17 = vld [vmem:[#allocation197_spill] sm:$0xff]  ;;  %5519 = vmatpush.msrb.mxu3 %v4244_v48  ;;  %5480 = vmatpush.msrb.mxu1 %v3716_v28  ;;  %v3700_v33 = vmax.f32 %v2933_v2, 0.0  ;;  %v4164_v2 = vmax.f32 %v3006_v13, 0.0  ;;  %v16196_v48 = vld [vmem:[#allocation215_spill] sm:$0xff]  ;;  %v4149_v29 = vmax.f32 %v3172_v7, 0.0  ;;  %v16197_v28 = vld [vmem:[#allocation666_spill] sm:$0xff] }
 0x9fa   : > { %v3013_v46 = vadd.f32 %v16177_v17, %v13306_v12  ;;  %v16178_v30 = vld [vmem:[#allocation685_spill] sm:$0xff]  ;;  %v3956_v61 = vmax.f32 %v2973_v39, 0.0  ;;  %5500 = vmatpush.msrb.mxu2 %v3972_v60  ;;  %5461 = vmatpush.msrb.mxu0 %v3444_v15  ;;  %v16195_v39 = vld [vmem:[#allocation158_spill] sm:$0xff]  ;;  %v3210_v9 = vadd.f32 %v16196_v48, %v13597_v42  ;;  %v3087_v17 = vadd.f32 %v16197_v28, %v13597_v42 }
 0x9fb   : > { %v2931_v19 = vadd.f32 %v16178_v30, %v13306_v12  ;;  %v16179_v20 = vld [vmem:[#allocation749_spill] sm:$0xff]  ;;  %5520 = vmatpush.msrb.mxu3 %v4228_v53  ;;  %v3428_v45 = vmax.f32 %v2891_v8, 0.0  ;;  %5425 = vmatmul.f32.vlgmr.msra.gmra.mxu2 %v15353_v6  ;;  %v3170_v62 = vadd.f32 %v16195_v39, %v13597_v42  ;;  %v3893_v8 = vmax.f32 %v3132_v14, 0.0  ;;  %v16198_v30 = vld [vmem:[#allocation730_spill] sm:$0xff] }
 0x9fc   : > { %v2971_v0 = vadd.f32 %v16179_v20, %v13306_v12  ;;  %v16180_v40 = vld [vmem:[#allocation201_spill] sm:$0xff]  ;;  %v4212_v23 = vmax.f32 %v3013_v46, 0.0  ;;  %5481 = vmatpush.msrb.mxu1 %v3700_v33  ;;  %5501 = vmatpush.msrb.mxu2 %v3956_v61  ;;  %v3621_v46 = vmax.f32 %v3090_v22, 0.0  ;;  %v4405_v60 = vmax.f32 %v3212_v11, 0.0  ;;  %v16202_v61 = vld [vmem:[#allocation726_spill] sm:$0xff] }
 0x9fd   : > { %v3011_v1 = vadd.f32 %v16180_v40, %v13306_v12  ;;  %v16181_v31 = vld [vmem:[#allocation617_spill] sm:$0xff]  ;;  %v3684_v41 = vmax.f32 %v2931_v19, 0.0  ;;  %5462 = vmatpush.msrb.mxu0 %v3428_v45  ;;  %5445 = vmatmul.f32.vlgmr.msra.gmra.mxu3 %v15353_v6  ;;  %v3127_v19 = vadd.f32 %v16198_v30, %v13597_v42  ;;  %v3877_v53 = vmax.f32 %v3130_v35, 0.0  ;;  %v16213_v22 = vld [vmem:[#allocation650_spill] sm:$0xff] }
 0x9fe   : > { %v2888_v27 = vadd.f32 %v16181_v31, %v13306_v12  ;;  %v16182_v25 = vld [vmem:[#allocation681_spill] sm:$0xff]  ;;  %v3940_v34 = vmax.f32 %v2971_v0, 0.0  ;;  %5521 = vmatpush.msrb.mxu3 %v4212_v23  ;;  %5405 = vmatmul.f32.vlgmr.msra.gmra.mxu1 %v15353_v6  ;;  %v16200_v0 = vld [vmem:[#allocation218_spill] sm:$0xff]  ;;  %v3125_v31 = vadd.f32 %v16202_v61, %v13597_v42  ;;  %v4389_v45 = vmax.f32 %v3210_v9, 0.0  ;;  %v16203_v23 = vld [vmem:[#allocation48_spill] sm:$0xff] }
 0x9ff   : > { %v2928_v59 = vadd.f32 %v16182_v25, %v13306_v12  ;;  %v16183_v37 = vld [vmem:[#allocation745_spill] sm:$0xff]  ;;  %v4196_v5 = vmax.f32 %v3011_v1, 0.0  ;;  %5482 = vmatpush.msrb.mxu1 %v3684_v41  ;;  %v3207_v40 = vadd.f32 %v16200_v0, %v13597_v42  ;;  %v16201_v1 = vld [vmem:[#allocation662_spill] sm:$0xff]  ;;  %v8168_v25 = vld [vmem:[%s14350_s2 + $0x8] sm:$0xff]  ;;  %v3165_v41 = vadd.f32 %v16203_v23, %v13597_v42 }
 0xa00   : > { %v2968_v26 = vadd.f32 %v16183_v37, %v13306_v12  ;;  %v16184_v57 = vld [vmem:[#allocation205_spill] sm:$0xff]  ;;  %v3412_v47 = vmax.f32 %v2888_v27, 0.0  ;;  %5502 = vmatpush.msrb.mxu2 %v3940_v34  ;;  %v3085_v33 = vadd.f32 %v16201_v1, %v13597_v42  ;;  %v4133_v27 = vmax.f32 %v3170_v62, 0.0  ;;  %v16207_v34 = vld [vmem:[#allocation51_spill] sm:$0xff]  ;;  %v16214_v11 = vld [vmem:[#allocation714_spill] sm:$0xff] }
 0xa01   : > { %v3008_v54 = vadd.f32 %v16184_v57, %v13306_v12  ;;  %v16185_v43 = vld [vmem:[#allocation613_spill] sm:$0xff]  ;;  %v3668_v3 = vmax.f32 %v2928_v59, 0.0  ;;  %5522 = vmatpush.msrb.mxu3 %v4196_v5  ;;  %v13646_v59 = vperm.slane %v8168_v25, 7  ;;  %v16205_v57 = vld [vmem:[#allocation658_spill] sm:$0xff]  ;;  %v3162_v5 = vadd.f32 %v16207_v34, %v13597_v42  ;;  %v16224_v23 = vld [vmem:[#allocation68_spill] sm:$0xff] }
 0xa02   : > { %v2886_v32 = vadd.f32 %v16185_v43, %v13306_v12  ;;  %v16186_v51 = vld [vmem:[#allocation677_spill] sm:$0xff]  ;;  %v3924_v4 = vmax.f32 %v2968_v26, 0.0  ;;  %5463 = vmatpush.msrb.mxu0 %v3412_v47  ;;  %v3605_v43 = vmax.f32 %v3087_v17, 0.0  ;;  %v4373_v13 = vmax.f32 %v3207_v40, 0.0  ;;  %v16209_v47 = vld [vmem:[#allocation654_spill] sm:$0xff] }
 0xa03   : > { %v2926_v58 = vadd.f32 %v16186_v51, %v13306_v12  ;;  %v16187_v63 = vld [vmem:[#allocation741_spill] sm:$0xff]  ;;  %v4180_v21 = vmax.f32 %v3008_v54, 0.0  ;;  %5483 = vmatpush.msrb.mxu1 %v3668_v3  ;;  %v3082_v54 = vadd.f32 %v16205_v57, %v13597_v42  ;;  %v3080_v18 = vadd.f32 %v16209_v47, %v13597_v42  ;;  %v16210_v3 = vld [vmem:[#allocation718_spill] sm:$0xff] }
 0xa04   : > { %v2966_v38 = vadd.f32 %v16187_v63, %v13306_v12  ;;  %v3396_v12 = vmax.f32 %v2886_v32, 0.0  ;;  %5503 = vmatpush.msrb.mxu2 %v3924_v4  ;;  %v16199_v15 = vld [vmem:[#allocation45_spill] sm:$0xff]  ;;  %v16206_v32 = vld [vmem:[#allocation722_spill] sm:$0xff]  ;;  %v3589_v55 = vmax.f32 %v3085_v33, 0.0  ;;  %v3120_v52 = vadd.f32 %v16210_v3, %v13597_v42 }
 0xa05   : > { %v3652_v56 = vmax.f32 %v2926_v58, 0.0  ;;  %5523 = vmatpush.msrb.mxu3 %v4180_v21  ;;  %v3167_v20 = vadd.f32 %v16199_v15, %v13597_v42  ;;  %v16204_v37 = vld [vmem:[#allocation221_spill] sm:$0xff]  ;;  %v3122_v51 = vadd.f32 %v16206_v32, %v13597_v42  ;;  %v3861_v58 = vmax.f32 %v3127_v19, 0.0  ;;  %v16211_v4 = vld [vmem:[#allocation54_spill] sm:$0xff]  ;;  %v16212_v21 = vld [vmem:[#allocation227_spill] sm:$0xff] }
 0xa06   : > { %v3908_v49 = vmax.f32 %v2966_v38, 0.0  ;;  %5464 = vmatpush.msrb.mxu0 %v3396_v12  ;;  %v3205_v26 = vadd.f32 %v16204_v37, %v13597_v42  ;;  %v16208_v38 = vld [vmem:[#allocation224_spill] sm:$0xff]  ;;  %v3845_v14 = vmax.f32 %v3125_v31, 0.0  ;;  %v3160_v36 = vadd.f32 %v16211_v4, %v13597_v42  ;;  %v16216_v39 = vld [vmem:[#allocation174_spill] sm:$0xff]  ;;  %v16219_v30 = vld [vmem:[#allocation173_spill] sm:$0xff] }
 0xa07   : > { %5484 = vmatpush.msrb.mxu1 %v3652_v56  ;;  %5524 = vmatpush.msrb.mxu3 %v4164_v2  ;;  %v4117_v63 = vmax.f32 %v3167_v20, 0.0  ;;  %v3202_v10 = vadd.f32 %v16208_v38, %v13597_v42  ;;  %v4101_v7 = vmax.f32 %v3165_v41, 0.0  ;;  %v3200_v12 = vadd.f32 %v16212_v21, %v13597_v42  ;;  %v16217_v9 = vld [vmem:[#allocation646_spill] sm:$0xff] }
 0xa08   : > { %5504 = vmatpush.msrb.mxu2 %v3908_v49  ;;  %5529 = vmatpush.msra.mxu0 %v3637_v44  ;;  %v4357_v16 = vmax.f32 %v3205_v26, 0.0  ;;  %v3077_v56 = vadd.f32 %v16213_v22, %v13597_v42  ;;  %v3573_v24 = vmax.f32 %v3082_v54, 0.0  ;;  %v3117_v50 = vadd.f32 %v16214_v11, %v13597_v42  ;;  %v16215_v49 = vld [vmem:[#allocation57_spill] sm:$0xff]  ;;  %v16218_v28 = vld [vmem:[#allocation710_spill] sm:$0xff] }
 0xa09   : > { %5505 = vmatmul.f32.vlgmr.msrb.gmra.mxu2 %v15353_v6  ;;  %5549 = vmatpush.msra.mxu1 %v3893_v8  ;;  %v3829_v35 = vmax.f32 %v3122_v51, 0.0  ;;  %v3157_v2 = vadd.f32 %v16215_v49, %v13597_v42  ;;  %v4085_v44 = vmax.f32 %v3162_v5, 0.0  ;;  %v3197_v62 = vadd.f32 %v16216_v39, %v13597_v42  ;;  %v16221_v0 = vld [vmem:[#allocation642_spill] sm:$0xff] }
 0xa0a   : > { %5569 = vmatpush.msra.mxu2 %v4149_v29  ;;  %5589 = vmatpush.msra.mxu3 %v4405_v60  ;;  %v4341_v48 = vmax.f32 %v3202_v10, 0.0  ;;  %v3075_v8 = vadd.f32 %v16217_v9, %v13597_v42  ;;  %v3557_v29 = vmax.f32 %v3080_v18, 0.0  ;;  %v3115_v17 = vadd.f32 %v16218_v28, %v13597_v42  ;;  %v16222_v33 = vld [vmem:[#allocation706_spill] sm:$0xff] }
 0xa0b   : > { %5530 = vmatpush.msra.mxu0 %v3621_v46  ;;  %5525 = vmatmul.f32.vlgmr.msrb.gmra.mxu3 %v15353_v6  ;;  %v3813_v46 = vmax.f32 %v3120_v52, 0.0  ;;  %v3155_v19 = vadd.f32 %v16219_v30, %v13597_v42  ;;  %v4069_v60 = vmax.f32 %v3160_v36, 0.0  ;;  %v4325_v20 = vmax.f32 %v3200_v12, 0.0  ;;  %v16225_v26 = vld [vmem:[#allocation638_spill] sm:$0xff] }
 0xa0c   : > { %5550 = vmatpush.msra.mxu1 %v3877_v53  ;;  %5570 = vmatpush.msra.mxu2 %v4133_v27  ;;  %v16220_v53 = vld [vmem:[#allocation64_spill] sm:$0xff]  ;;  %v3072_v40 = vadd.f32 %v16221_v0, %v13597_v42  ;;  %v3541_v1 = vmax.f32 %v3077_v56, 0.0  ;;  %v3112_v61 = vadd.f32 %v16222_v33, %v13597_v42  ;;  %v3797_v31 = vmax.f32 %v3117_v50, 0.0  ;;  %v16223_v27 = vld [vmem:[#allocation770_spill] sm:$0xff] }
 0xa0d   : > { %5590 = vmatpush.msra.mxu3 %v4389_v45  ;;  %5465 = vmatmul.f32.vlgmr.msrb.gmra.mxu0 %v15353_v6  ;;  %v3195_v15 = vadd.f32 %v16220_v53, %v13597_v42  ;;  %v3152_v45 = vadd.f32 %v16223_v27, %v13597_v42  ;;  %v4053_v25 = vmax.f32 %v3157_v2, 0.0  ;;  %v3192_v41 = vadd.f32 %v16224_v23, %v13597_v42 }
 0xa0e   : > { %5485 = vmatmul.f32.vlgmr.msrb.gmra.mxu1 %v15353_v6  ;;  %5531 = vmatpush.msra.mxu0 %v3605_v43  ;;  %v4309_v37 = vmax.f32 %v3197_v62, 0.0  ;;  %v3070_v57 = vadd.f32 %v16225_v26, %v13597_v42  ;;  %v3525_v54 = vmax.f32 %v3075_v8, 0.0  ;;  %v16226_v43 = vld [vmem:[#allocation702_spill] sm:$0xff]  ;;  %v3781_v51 = vmax.f32 %v3115_v17, 0.0 }
 0xa0f   : > { %5551 = vmatpush.msra.mxu1 %v3861_v58  ;;  %5571 = vmatpush.msra.mxu2 %v4117_v63  ;;  %v3110_v32 = vadd.f32 %v16226_v43, %v13597_v42  ;;  %v16227_v58 = vld [vmem:[#allocation766_spill] sm:$0xff]  ;;  %v4037_v5 = vmax.f32 %v3155_v19, 0.0  ;;  %v16228_v63 = vld [vmem:[#allocation72_spill] sm:$0xff]  ;;  %v4293_v10 = vmax.f32 %v3195_v15, 0.0  ;;  %v3509_v18 = vmax.f32 %v3072_v40, 0.0 }
 0xa10   : > { %5591 = vmatpush.msra.mxu3 %v4373_v13  ;;  %5532 = vmatpush.msra.mxu0 %v3589_v55  ;;  %v3150_v34 = vadd.f32 %v16227_v58, %v13597_v42  ;;  %v3190_v38 = vadd.f32 %v16228_v63, %v13597_v42  ;;  %v16229_v13 = vld [vmem:[#allocation634_spill] sm:$0xff]  ;;  %v3765_v52 = vmax.f32 %v3112_v61, 0.0  ;;  %v4021_v36 = vmax.f32 %v3152_v45, 0.0 }
 0xa11   : > { %5552 = vmatpush.msra.mxu1 %v3845_v14  ;;  %5572 = vmatpush.msra.mxu2 %v4101_v7  ;;  %v3067_v47 = vadd.f32 %v16229_v13, %v13597_v42  ;;  %v16230_v55 = vld [vmem:[#allocation698_spill] sm:$0xff]  ;;  %v16232_v7 = vld [vmem:[#allocation76_spill] sm:$0xff]  ;;  %v4277_v12 = vmax.f32 %v3192_v41, 0.0  ;;  %v3493_v56 = vmax.f32 %v3070_v57, 0.0  ;;  %v3749_v50 = vmax.f32 %v3110_v32, 0.0 }
 0xa12   : > { %5592 = vmatpush.msra.mxu3 %v4357_v16  ;;  %5533 = vmatpush.msra.mxu0 %v3573_v24  ;;  %v3107_v3 = vadd.f32 %v16230_v55, %v13597_v42  ;;  %v16231_v14 = vld [vmem:[#allocation762_spill] sm:$0xff]  ;;  %v3187_v21 = vadd.f32 %v16232_v7, %v13597_v42  ;;  %v4005_v2 = vmax.f32 %v3150_v34, 0.0  ;;  %v4261_v62 = vmax.f32 %v3190_v38, 0.0 }
 0xa13   : > { %5553 = vmatpush.msra.mxu1 %v3829_v35  ;;  %5573 = vmatpush.msra.mxu2 %v4085_v44  ;;  %v3147_v4 = vadd.f32 %v16231_v14, %v13597_v42  ;;  %v16233_v16 = vld [vmem:[#allocation630_spill] sm:$0xff]  ;;  %v16236_v44 = vld [vmem:[#allocation80_spill] sm:$0xff]  ;;  %v3477_v8 = vmax.f32 %v3067_v47, 0.0 }
 0xa14   : > { %5593 = vmatpush.msra.mxu3 %v4341_v48  ;;  %5534 = vmatpush.msra.mxu0 %v3557_v29  ;;  %v3065_v22 = vadd.f32 %v16233_v16, %v13597_v42  ;;  %v16234_v24 = vld [vmem:[#allocation694_spill] sm:$0xff]  ;;  %v3185_v39 = vadd.f32 %v16236_v44, %v13597_v42  ;;  %v3733_v17 = vmax.f32 %v3107_v3, 0.0  ;;  %v4245_v15 = vmax.f32 %v3187_v21, 0.0  ;;  %v16253_v16 = vld [vmem:[#allocation675_spill] sm:$0xff] }
 0xa15   : > { %5554 = vmatpush.msra.mxu1 %v3813_v46  ;;  %5574 = vmatpush.msra.mxu2 %v4069_v60  ;;  %v3105_v11 = vadd.f32 %v16234_v24, %v13597_v42  ;;  %v16235_v35 = vld [vmem:[#allocation758_spill] sm:$0xff]  ;;  %v3989_v19 = vmax.f32 %v3147_v4, 0.0  ;;  %v16240_v60 = vld [vmem:[#allocation84_spill] sm:$0xff]  ;;  %v16254_v24 = vld [vmem:[#allocation739_spill] sm:$0xff] }
 0xa16   : > { %5594 = vmatpush.msra.mxu3 %v4325_v20  ;;  %5535 = vmatpush.msra.mxu0 %v3541_v1  ;;  %v3145_v49 = vadd.f32 %v16235_v35, %v13597_v42  ;;  %v16237_v48 = vld [vmem:[#allocation626_spill] sm:$0xff]  ;;  %v3182_v53 = vadd.f32 %v16240_v60, %v13597_v42  ;;  %v3461_v40 = vmax.f32 %v3065_v22, 0.0  ;;  %v4229_v41 = vmax.f32 %v3185_v39, 0.0  ;;  %v16255_v35 = vld [vmem:[#allocation39_spill] sm:$0xff] }
 0xa17   : > { %5555 = vmatpush.msra.mxu1 %v3797_v31  ;;  %5575 = vmatpush.msra.mxu2 %v4053_v25  ;;  %v3062_v9 = vadd.f32 %v16237_v48, %v13597_v42  ;;  %v16238_v29 = vld [vmem:[#allocation690_spill] sm:$0xff]  ;;  %v3717_v61 = vmax.f32 %v3105_v11, 0.0  ;;  %v16244_v25 = vld [vmem:[#allocation88_spill] sm:$0xff]  ;;  %v3261_v22 = vadd.f32 %v16253_v16, %v13646_v59  ;;  %v3301_v11 = vadd.f32 %v16254_v24, %v13646_v59  ;;  %v16274_v16 = vld [vmem:[#allocation719_spill] sm:$0xff] }
 0xa18   : > { %5595 = vmatpush.msra.mxu3 %v4309_v37  ;;  %5536 = vmatpush.msra.mxu0 %v3525_v54  ;;  %v3102_v28 = vadd.f32 %v16238_v29, %v13597_v42  ;;  %v16239_v46 = vld [vmem:[#allocation754_spill] sm:$0xff]  ;;  %v3973_v45 = vmax.f32 %v3145_v49, 0.0  ;;  %v3180_v23 = vadd.f32 %v16244_v25, %v13597_v42  ;;  %v4213_v38 = vmax.f32 %v3182_v53, 0.0  ;;  %v16261_v53 = vld [vmem:[#allocation667_spill] sm:$0xff] }
 0xa19   : > { %5556 = vmatpush.msra.mxu1 %v3781_v51  ;;  %5576 = vmatpush.msra.mxu2 %v4037_v5  ;;  %v3142_v30 = vadd.f32 %v16239_v46, %v13597_v42  ;;  %v16241_v20 = vld [vmem:[#allocation622_spill] sm:$0xff]  ;;  %v3445_v57 = vmax.f32 %v3062_v9, 0.0  ;;  %v16248_v5 = vld [vmem:[#allocation92_spill] sm:$0xff]  ;;  %v3341_v49 = vadd.f32 %v16255_v35, %v13646_v59  ;;  %v16275_v24 = vld [vmem:[#allocation223_spill] sm:$0xff] }
 0xa1a   : > { %5596 = vmatpush.msra.mxu3 %v4293_v10  ;;  %5537 = vmatpush.msra.mxu0 %v3509_v18  ;;  %v3060_v0 = vadd.f32 %v16241_v20, %v13597_v42  ;;  %v16242_v1 = vld [vmem:[#allocation686_spill] sm:$0xff]  ;;  %v3701_v32 = vmax.f32 %v3102_v28, 0.0  ;;  %v3177_v63 = vadd.f32 %v16248_v5, %v13597_v42  ;;  %v4197_v21 = vmax.f32 %v3180_v23, 0.0  ;;  %v16265_v23 = vld [vmem:[#allocation663_spill] sm:$0xff]  ;;  %v16276_v35 = vld [vmem:[#allocation168_spill] sm:$0xff] }
 0xa1b   : > { %5557 = vmatpush.msra.mxu1 %v3765_v52  ;;  %5577 = vmatpush.msra.mxu2 %v4021_v36  ;;  %v3100_v33 = vadd.f32 %v16242_v1, %v13597_v42  ;;  %v16243_v31 = vld [vmem:[#allocation750_spill] sm:$0xff]  ;;  %v3957_v34 = vmax.f32 %v3142_v30, 0.0  ;;  %v16252_v36 = vld [vmem:[#allocation95_spill] sm:$0xff]  ;;  %v3638_v20 = vmax.f32 %v3261_v22, 0.0  ;;  %v3894_v1 = vmax.f32 %v3301_v11, 0.0 }
 0xa1c   : > { %5597 = vmatpush.msra.mxu3 %v4277_v12  ;;  %5538 = vmatpush.msra.mxu0 %v3493_v56  ;;  %v3140_v27 = vadd.f32 %v16243_v31, %v13597_v42  ;;  %v16245_v37 = vld [vmem:[#allocation618_spill] sm:$0xff]  ;;  %v3429_v47 = vmax.f32 %v3060_v0, 0.0  ;;  %v3175_v7 = vadd.f32 %v16252_v36, %v13597_v42  ;;  %v16262_v0 = vld [vmem:[#allocation731_spill] sm:$0xff]  ;;  %v4150_v31 = vmax.f32 %v3341_v49, 0.0 }
 0xa1d   : > { %5558 = vmatpush.msra.mxu1 %v3749_v50  ;;  %5578 = vmatpush.msra.mxu2 %v4005_v2  ;;  %v3057_v26 = vadd.f32 %v16245_v37, %v13597_v42  ;;  %v16246_v54 = vld [vmem:[#allocation682_spill] sm:$0xff]  ;;  %v3685_v3 = vmax.f32 %v3100_v33, 0.0  ;;  %v4181_v2 = vmax.f32 %v3177_v63, 0.0  ;;  %v16263_v33 = vld [vmem:[#allocation101_spill] sm:$0xff]  ;;  %v16269_v63 = vld [vmem:[#allocation659_spill] sm:$0xff]  ;;  %v3289_v22 = vadd.f32 %v16274_v16, %v13646_v59 }
 0xa1e   : > { %5598 = vmatpush.msra.mxu3 %v4261_v62  ;;  %5539 = vmatpush.msra.mxu0 %v3477_v8  ;;  %v3097_v43 = vadd.f32 %v16246_v54, %v13597_v42  ;;  %v16247_v51 = vld [vmem:[#allocation746_spill] sm:$0xff]  ;;  %v3941_v4 = vmax.f32 %v3140_v27, 0.0  ;;  %v16257_v62 = vld [vmem:[#allocation671_spill] sm:$0xff]  ;;  %v4165_v30 = vmax.f32 %v3175_v7, 0.0  ;;  %v3329_v11 = vadd.f32 %v16275_v24, %v13646_v59 }
 0xa1f   : > { %5559 = vmatpush.msra.mxu1 %v3733_v17  ;;  %5579 = vmatpush.msra.mxu2 %v3989_v19  ;;  %v3137_v58 = vadd.f32 %v16247_v51, %v13597_v42  ;;  %v16249_v10 = vld [vmem:[#allocation614_spill] sm:$0xff]  ;;  %v3413_v12 = vmax.f32 %v3057_v26, 0.0  ;;  %v3259_v48 = vadd.f32 %v16257_v62, %v13646_v59  ;;  %v16258_v8 = vld [vmem:[#allocation735_spill] sm:$0xff]  ;;  %v16260_v19 = vld [vmem:[#allocation156_spill] sm:$0xff]  ;;  %v3369_v49 = vadd.f32 %v16276_v35, %v13646_v59 }
 0xa20   : > { %5599 = vmatpush.msra.mxu3 %v4245_v15  ;;  %5540 = vmatpush.msra.mxu0 %v3461_v40  ;;  %v3055_v13 = vadd.f32 %v16249_v10, %v13597_v42  ;;  %v16250_v18 = vld [vmem:[#allocation678_spill] sm:$0xff]  ;;  %v3669_v56 = vmax.f32 %v3097_v43, 0.0  ;;  %v3299_v29 = vadd.f32 %v16258_v8, %v13646_v59  ;;  %v3379_v60 = vadd.f32 %v16260_v19, %v13646_v59  ;;  %v16264_v27 = vld [vmem:[#allocation159_spill] sm:$0xff]  ;;  %v16267_v43 = vld [vmem:[#allocation161_spill] sm:$0xff] }
 0xa21   : > { %5560 = vmatpush.msra.mxu1 %v3717_v61  ;;  %5580 = vmatpush.msra.mxu2 %v3973_v45  ;;  %v3095_v55 = vadd.f32 %v16250_v18, %v13597_v42  ;;  %v16251_v52 = vld [vmem:[#allocation742_spill] sm:$0xff]  ;;  %v3925_v50 = vmax.f32 %v3137_v58, 0.0  ;;  %v3256_v15 = vadd.f32 %v16261_v53, %v13646_v59  ;;  %v3296_v40 = vadd.f32 %v16262_v0, %v13646_v59  ;;  %v16266_v26 = vld [vmem:[#allocation727_spill] sm:$0xff]  ;;  %v16279_v8 = vld [vmem:[#allocation113_spill] sm:$0xff] }
 0xa22   : > { %5600 = vmatpush.msra.mxu3 %v4229_v41  ;;  %5541 = vmatpush.msra.mxu0 %v3445_v57  ;;  %v3135_v14 = vadd.f32 %v16251_v52, %v13597_v42  ;;  %v16256_v42 = vld [vmem:[#allocation153_spill] sm:$0xff]  ;;  %v3397_v39 = vmax.f32 %v3055_v13, 0.0  ;;  %v16259_v17 = vld [vmem:[#allocation98_spill] sm:$0xff]  ;;  %v3336_v61 = vadd.f32 %v16263_v33, %v13646_v59  ;;  %v3376_v45 = vadd.f32 %v16264_v27, %v13646_v59  ;;  %v16270_v13 = vld [vmem:[#allocation723_spill] sm:$0xff] }
 0xa23   : > { %5561 = vmatpush.msra.mxu1 %v3701_v32  ;;  %5581 = vmatpush.msra.mxu2 %v3957_v34  ;;  %v3381_v44 = vadd.f32 %v16256_v42, %v13646_v59  ;;  %v3653_v9 = vmax.f32 %v3095_v55, 0.0  ;;  %v3339_v46 = vadd.f32 %v16259_v17, %v13646_v59  ;;  %v3254_v41 = vadd.f32 %v16265_v23, %v13646_v59  ;;  %v16268_v58 = vld [vmem:[#allocation162_spill] sm:$0xff]  ;;  %v16271_v55 = vld [vmem:[#allocation220_spill] sm:$0xff]  ;;  %v16273_v7 = vld [vmem:[#allocation655_spill] sm:$0xff] }
 0xa24   : > { %5601 = vmatpush.msra.mxu3 %v4213_v38  ;;  %5542 = vmatpush.msra.mxu0 %v3429_v47  ;;  %v3909_v28 = vmax.f32 %v3135_v14, 0.0  ;;  %v3622_v37 = vmax.f32 %v3259_v48, 0.0  ;;  %v3294_v57 = vadd.f32 %v16266_v26, %v13646_v59  ;;  %v3878_v54 = vmax.f32 %v3299_v29, 0.0  ;;  %v16272_v14 = vld [vmem:[#allocation165_spill] sm:$0xff]  ;;  %v16277_v42 = vld [vmem:[#allocation651_spill] sm:$0xff]  ;;  %v16280_v17 = vld [vmem:[#allocation114_spill] sm:$0xff] }
 0xa25   : > { %5562 = vmatpush.msra.mxu1 %v3685_v3  ;;  %5582 = vmatpush.msra.mxu2 %v3941_v4  ;;  %v4406_v25 = vmax.f32 %v3381_v44, 0.0  ;;  %v3334_v32 = vadd.f32 %v16267_v43, %v13646_v59  ;;  %v4134_v51 = vmax.f32 %v3339_v46, 0.0  ;;  %v3374_v34 = vadd.f32 %v16268_v58, %v13646_v59  ;;  %v16278_v62 = vld [vmem:[#allocation715_spill] sm:$0xff] }
 0xa26   : > { %5602 = vmatpush.msra.mxu3 %v4197_v21  ;;  %5543 = vmatpush.msra.mxu0 %v3413_v12  ;;  %v4390_v5 = vmax.f32 %v3379_v60, 0.0  ;;  %v3251_v38 = vadd.f32 %v16269_v63, %v13646_v59  ;;  %v3606_v10 = vmax.f32 %v3256_v15, 0.0  ;;  %v3291_v47 = vadd.f32 %v16270_v13, %v13646_v59  ;;  %v16281_v19 = vld [vmem:[#allocation647_spill] sm:$0xff] }
 0xa27   : > { %5563 = vmatpush.msra.mxu1 %v3669_v56  ;;  %5583 = vmatpush.msra.mxu2 %v3925_v50  ;;  %v3862_v18 = vmax.f32 %v3296_v40, 0.0  ;;  %v3331_v3 = vadd.f32 %v16271_v55, %v13646_v59  ;;  %v4118_v52 = vmax.f32 %v3336_v61, 0.0  ;;  %v3371_v4 = vadd.f32 %v16272_v14, %v13646_v59  ;;  %v16282_v15 = vld [vmem:[#allocation711_spill] sm:$0xff]  ;;  %v16283_v40 = vld [vmem:[#allocation229_spill] sm:$0xff] }
 0xa28   : > { %5603 = vmatpush.msra.mxu3 %v4181_v2  ;;  %5544 = vmatpush.msra.mxu0 %v3397_v39  ;;  %v4374_v36 = vmax.f32 %v3376_v45, 0.0  ;;  %v3249_v21 = vadd.f32 %v16273_v7, %v13646_v59  ;;  %v3590_v12 = vmax.f32 %v3254_v41, 0.0  ;;  %v3846_v56 = vmax.f32 %v3294_v57, 0.0  ;;  %v16284_v61 = vld [vmem:[#allocation61_spill] sm:$0xff]  ;;  %v16285_v45 = vld [vmem:[#allocation643_spill] sm:$0xff] }
 0xa29   : > { %5564 = vmatpush.msra.mxu1 %v3653_v9  ;;  %5584 = vmatpush.msra.mxu2 %v3909_v28  ;;  %v4102_v50 = vmax.f32 %v3334_v32, 0.0  ;;  %v4358_v2 = vmax.f32 %v3374_v34, 0.0  ;;  %v3246_v44 = vadd.f32 %v16277_v42, %v13646_v59  ;;  %v3574_v39 = vmax.f32 %v3251_v38, 0.0  ;;  %v16286_v41 = vld [vmem:[#allocation707_spill] sm:$0xff]  ;;  %v16288_v32 = vld [vmem:[#allocation8_spill] sm:$0xff] }
 0xa2a   : > { %5604 = vmatpush.msra.mxu3 %v4165_v30  ;;  %5609 = vmatpush.msrb.mxu0 %v3638_v20  ;;  %v3286_v48 = vadd.f32 %v16278_v62, %v13646_v59  ;;  %v3830_v9 = vmax.f32 %v3291_v47, 0.0  ;;  %v3326_v29 = vadd.f32 %v16279_v8, %v13646_v59  ;;  %v4086_v28 = vmax.f32 %v3331_v3, 0.0  ;;  %v16287_v57 = vld [vmem:[#allocation771_spill] sm:$0xff]  ;;  %v16292_v3 = vld [vmem:[#allocation12_spill] sm:$0xff] }
 0xa2b   : > { %5629 = vmatpush.msrb.mxu1 %v3894_v1  ;;  %5649 = vmatpush.msrb.mxu2 %v4150_v31  ;;  %v3366_v46 = vadd.f32 %v16280_v17, %v13646_v59  ;;  %v4342_v30 = vmax.f32 %v3371_v4, 0.0  ;;  %v3244_v60 = vadd.f32 %v16281_v19, %v13646_v59  ;;  %v3558_v53 = vmax.f32 %v3249_v21, 0.0  ;;  %v16289_v34 = vld [vmem:[#allocation639_spill] sm:$0xff] }
 0xa2c   : > { %5669 = vmatpush.msrb.mxu3 %v4406_v25  ;;  %5610 = vmatpush.msrb.mxu0 %v3622_v37  ;;  %v3284_v20 = vadd.f32 %v16282_v15, %v13646_v59  ;;  %v3814_v0 = vmax.f32 %v3289_v22, 0.0  ;;  %v3324_v1 = vadd.f32 %v16283_v40, %v13646_v59  ;;  %v4070_v33 = vmax.f32 %v3329_v11, 0.0  ;;  %v16290_v38 = vld [vmem:[#allocation703_spill] sm:$0xff]  ;;  %v16296_v11 = vld [vmem:[#allocation16_spill] sm:$0xff] }
 0xa2d   : > { %5630 = vmatpush.msrb.mxu1 %v3878_v54  ;;  %5650 = vmatpush.msrb.mxu2 %v4134_v51  ;;  %v3364_v31 = vadd.f32 %v16284_v61, %v13646_v59  ;;  %v4326_v27 = vmax.f32 %v3369_v49, 0.0  ;;  %v3241_v25 = vadd.f32 %v16285_v45, %v13646_v59  ;;  %v3542_v23 = vmax.f32 %v3246_v44, 0.0  ;;  %v16291_v47 = vld [vmem:[#allocation767_spill] sm:$0xff]  ;;  %v16305_v45 = vld [vmem:[#allocation24_spill] sm:$0xff] }
 0xa2e   : > { %5670 = vmatpush.msrb.mxu3 %v4390_v5  ;;  %5611 = vmatpush.msrb.mxu0 %v3606_v10  ;;  %v3281_v37 = vadd.f32 %v16286_v41, %v13646_v59  ;;  %v3798_v26 = vmax.f32 %v3286_v48, 0.0  ;;  %v3321_v54 = vadd.f32 %v16287_v57, %v13646_v59  ;;  %v4054_v43 = vmax.f32 %v3326_v29, 0.0  ;;  %v16293_v4 = vld [vmem:[#allocation635_spill] sm:$0xff]  ;;  %v16300_v29 = vld [vmem:[#allocation20_spill] sm:$0xff] }
 0xa2f   : > { %5631 = vmatpush.msrb.mxu1 %v3862_v18  ;;  %5651 = vmatpush.msrb.mxu2 %v4118_v52  ;;  %v3361_v51 = vadd.f32 %v16288_v32, %v13646_v59  ;;  %v4310_v58 = vmax.f32 %v3366_v46, 0.0  ;;  %v3239_v5 = vadd.f32 %v16289_v34, %v13646_v59  ;;  %v3526_v63 = vmax.f32 %v3244_v60, 0.0  ;;  %v16294_v21 = vld [vmem:[#allocation699_spill] sm:$0xff]  ;;  %v16308_v32 = vld [vmem:[#allocation28_spill] sm:$0xff] }
 0xa30   : > { %5671 = vmatpush.msrb.mxu3 %v4374_v36  ;;  %5612 = vmatpush.msrb.mxu0 %v3590_v12  ;;  %v3279_v10 = vadd.f32 %v16290_v38, %v13646_v59  ;;  %v3782_v13 = vmax.f32 %v3284_v20, 0.0  ;;  %v3319_v18 = vadd.f32 %v16291_v47, %v13646_v59  ;;  %v4038_v55 = vmax.f32 %v3324_v1, 0.0  ;;  %v16295_v22 = vld [vmem:[#allocation763_spill] sm:$0xff] }
 0xa31   : > { %5632 = vmatpush.msrb.mxu1 %v3846_v56  ;;  %5652 = vmatpush.msrb.mxu2 %v4102_v50  ;;  %v3359_v52 = vadd.f32 %v16292_v3, %v13646_v59  ;;  %v4294_v14 = vmax.f32 %v3364_v31, 0.0  ;;  %v3236_v36 = vadd.f32 %v16293_v4, %v13646_v59  ;;  %v3510_v7 = vmax.f32 %v3241_v25, 0.0  ;;  %v16297_v49 = vld [vmem:[#allocation631_spill] sm:$0xff] }
 0xa32   : > { %5672 = vmatpush.msrb.mxu3 %v4358_v2  ;;  %5613 = vmatpush.msrb.mxu0 %v3574_v39  ;;  %v3276_v12 = vadd.f32 %v16294_v21, %v13646_v59  ;;  %v3766_v16 = vmax.f32 %v3281_v37, 0.0  ;;  %v3316_v56 = vadd.f32 %v16295_v22, %v13646_v59  ;;  %v4022_v24 = vmax.f32 %v3321_v54, 0.0  ;;  %v16298_v44 = vld [vmem:[#allocation695_spill] sm:$0xff] }
 0xa33   : > { %5633 = vmatpush.msrb.mxu1 %v3830_v9  ;;  %5653 = vmatpush.msrb.mxu2 %v4086_v28  ;;  %v3356_v50 = vadd.f32 %v16296_v11, %v13646_v59  ;;  %v4278_v35 = vmax.f32 %v3361_v51, 0.0  ;;  %v3234_v2 = vadd.f32 %v16297_v49, %v13646_v59  ;;  %v3494_v42 = vmax.f32 %v3239_v5, 0.0  ;;  %v16299_v48 = vld [vmem:[#allocation759_spill] sm:$0xff] }
 0xa34   : > { %5673 = vmatpush.msrb.mxu3 %v4342_v30  ;;  %5614 = vmatpush.msrb.mxu0 %v3558_v53  ;;  %v3274_v39 = vadd.f32 %v16298_v44, %v13646_v59  ;;  %v3750_v62 = vmax.f32 %v3279_v10, 0.0  ;;  %v3314_v9 = vadd.f32 %v16299_v48, %v13646_v59  ;;  %v4006_v8 = vmax.f32 %v3319_v18, 0.0  ;;  %v16301_v46 = vld [vmem:[#allocation627_spill] sm:$0xff]  ;;  %v5086_v48 = vpop.f32.mrf.mxu1 }
 0xa35   : > { %5634 = vmatpush.msrb.mxu1 %v3814_v0  ;;  %5654 = vmatpush.msrb.mxu2 %v4070_v33  ;;  %v3354_v28 = vadd.f32 %v16300_v29, %v13646_v59  ;;  %v4262_v17 = vmax.f32 %v3359_v52, 0.0  ;;  %v3231_v30 = vadd.f32 %v16301_v46, %v13646_v59  ;;  %v3478_v19 = vmax.f32 %v3236_v36, 0.0  ;;  %v16302_v53 = vld [vmem:[#allocation691_spill] sm:$0xff]  ;;  %v16312_v52 = vld [vmem:[#allocation32_spill] sm:$0xff] }
 0xa36   : > { %5674 = vmatpush.msrb.mxu3 %v4326_v27  ;;  %5615 = vmatpush.msrb.mxu0 %v3542_v23  ;;  %v3734_v60 = vmax.f32 %v3276_v12, 0.0  ;;  %v3271_v15 = vadd.f32 %v16302_v53, %v13646_v59  ;;  %v16303_v20 = vld [vmem:[#allocation755_spill] sm:$0xff]  ;;  %v3990_v40 = vmax.f32 %v3316_v56, 0.0  ;;  %v4246_v1 = vmax.f32 %v3356_v50, 0.0 }
 0xa37   : > { %5635 = vmatpush.msrb.mxu1 %v3798_v26  ;;  %5655 = vmatpush.msrb.mxu2 %v4054_v43  ;;  %v3311_v0 = vadd.f32 %v16303_v20, %v13646_v59  ;;  %v16304_v33 = vld [vmem:[#allocation623_spill] sm:$0xff]  ;;  %v3462_v31 = vmax.f32 %v3234_v2, 0.0  ;;  %v3718_v27 = vmax.f32 %v3274_v39, 0.0  ;;  %v3351_v25 = vadd.f32 %v16305_v45, %v13646_v59 }
 0xa38   : > { %5675 = vmatpush.msrb.mxu3 %v4310_v58  ;;  %5616 = vmatpush.msrb.mxu0 %v3526_v63  ;;  %v3229_v61 = vadd.f32 %v16304_v33, %v13646_v59  ;;  %v16306_v23 = vld [vmem:[#allocation687_spill] sm:$0xff]  ;;  %v3974_v37 = vmax.f32 %v3314_v9, 0.0  ;;  %v4230_v26 = vmax.f32 %v3354_v28, 0.0  ;;  %v3446_v57 = vmax.f32 %v3231_v30, 0.0  ;;  %v5106_v9 = vpop.f32.mrf.mxu2 }
 0xa39   : > { %5636 = vmatpush.msrb.mxu1 %v3782_v13  ;;  %5656 = vmatpush.msrb.mxu2 %v4038_v55  ;;  %v3269_v41 = vadd.f32 %v16306_v23, %v13646_v59  ;;  %v16307_v54 = vld [vmem:[#allocation751_spill] sm:$0xff]  ;;  %v3349_v51 = vadd.f32 %v16308_v32, %v13646_v59  ;;  %v3702_v58 = vmax.f32 %v3271_v15, 0.0  ;;  %v3958_v34 = vmax.f32 %v3311_v0, 0.0 }
 0xa3a   : > { %5676 = vmatpush.msrb.mxu3 %v4294_v14  ;;  %5617 = vmatpush.msrb.mxu0 %v3510_v7  ;;  %v3309_v43 = vadd.f32 %v16307_v54, %v13646_v59  ;;  %v16309_v5 = vld [vmem:[#allocation619_spill] sm:$0xff]  ;;  %v3430_v38 = vmax.f32 %v3229_v61, 0.0  ;;  %v4214_v47 = vmax.f32 %v3351_v25, 0.0  ;;  %v3346_v14 = vadd.f32 %v16312_v52, %v13646_v59 }
 0xa3b   : > { %5637 = vmatpush.msrb.mxu1 %v3766_v16  ;;  %5657 = vmatpush.msrb.mxu2 %v4022_v24  ;;  %v3226_v63 = vadd.f32 %v16309_v5, %v13646_v59  ;;  %v16310_v10 = vld [vmem:[#allocation683_spill] sm:$0xff]  ;;  %v3686_v18 = vmax.f32 %v3269_v41, 0.0  ;;  %v4198_v16 = vmax.f32 %v3349_v51, 0.0  ;;  %v16316_v24 = vld [vmem:[#allocation36_spill] sm:$0xff] }
 0xa3c   : > { %5677 = vmatpush.msrb.mxu3 %v4278_v35  ;;  %5618 = vmatpush.msrb.mxu0 %v3494_v42  ;;  %v3266_v13 = vadd.f32 %v16310_v10, %v13646_v59  ;;  %v16311_v55 = vld [vmem:[#allocation747_spill] sm:$0xff]  ;;  %v3942_v12 = vmax.f32 %v3309_v43, 0.0  ;;  %v3344_v11 = vadd.f32 %v16316_v24, %v13646_v59  ;;  %v4182_v2 = vmax.f32 %v3346_v14, 0.0  ;;  %v5166_v28 = vpop.f32.mrf.mxu1 }
 0xa3d   : > { %5638 = vmatpush.msrb.mxu1 %v3750_v62  ;;  %5658 = vmatpush.msrb.mxu2 %v4006_v8  ;;  %v3306_v3 = vadd.f32 %v16311_v55, %v13646_v59  ;;  %v16313_v4 = vld [vmem:[#allocation615_spill] sm:$0xff]  ;;  %v3414_v50 = vmax.f32 %v3226_v63, 0.0  ;;  %v5126_v8 = vpop.f32.mrf.mxu3 }
 0xa3e   : > { %5678 = vmatpush.msrb.mxu3 %v4262_v17  ;;  %5619 = vmatpush.msrb.mxu0 %v3478_v19  ;;  %v3224_v36 = vadd.f32 %v16313_v4, %v13646_v59  ;;  %v16314_v7 = vld [vmem:[#allocation679_spill] sm:$0xff]  ;;  %v3670_v35 = vmax.f32 %v3266_v13, 0.0  ;;  %v4166_v62 = vmax.f32 %v3344_v11, 0.0 }
 0xa3f   : > { %5639 = vmatpush.msrb.mxu1 %v3734_v60  ;;  %5659 = vmatpush.msrb.mxu2 %v3990_v40  ;;  %v3264_v21 = vadd.f32 %v16314_v7, %v13646_v59  ;;  %v16315_v22 = vld [vmem:[#allocation743_spill] sm:$0xff]  ;;  %v3926_v49 = vmax.f32 %v3306_v3, 0.0 }
 0xa40   : > { %5679 = vmatpush.msrb.mxu3 %v4246_v1  ;;  %5620 = vmatpush.msrb.mxu0 %v3462_v31  ;;  %v3304_v56 = vadd.f32 %v16315_v22, %v13646_v59  ;;  %v3398_v42 = vmax.f32 %v3224_v36, 0.0  ;;  %v5066_v59 = vpop.f32.mrf.mxu0  ;;  %v5186_v17 = vpop.f32.mrf.mxu2 }
 0xa41   : > { %5640 = vmatpush.msrb.mxu1 %v3718_v27  ;;  %5660 = vmatpush.msrb.mxu2 %v3974_v37  ;;  %v3654_v44 = vmax.f32 %v3264_v21, 0.0  ;;  %v5087_v13 = vadd.f32 %v5086_v48, %v5066_v59 }
 0xa42   : > { %5680 = vmatpush.msrb.mxu3 %v4230_v26  ;;  %5585 = vmatmul.f32.vlgmr.msra.gmra.mxu2 %v15353_v6  ;;  %v3910_v39 = vmax.f32 %v3304_v56, 0.0 }
 0xa43   : > { %5621 = vmatpush.msrb.mxu0 %v3446_v57  ;;  %5641 = vmatpush.msrb.mxu1 %v3702_v58  ;;  %v5107_v21 = vadd.f32 %v5106_v9, %v5087_v13  ;;  %v4408_v9 = vld [vmem:[#allocation2 + $0x8] sm:$0xff] }
 0xa44   : > { %5661 = vmatpush.msrb.mxu2 %v3958_v34  ;;  %5681 = vmatpush.msrb.mxu3 %v4214_v47  ;;  %v5246_v19 = vpop.f32.mrf.mxu1 }
 0xa45   : > { %5622 = vmatpush.msrb.mxu0 %v3430_v38  ;;  %5605 = vmatmul.f32.vlgmr.msra.gmra.mxu3 %v15353_v6  ;;  %v5206_v46 = vpop.f32.mrf.mxu3 }
 0xa46   : > { %5642 = vmatpush.msrb.mxu1 %v3686_v18  ;;  %5662 = vmatpush.msrb.mxu2 %v3942_v12 }
 0xa47   : > { %5682 = vmatpush.msrb.mxu3 %v4198_v16  ;;  %5545 = vmatmul.f32.vlgmr.msra.gmra.mxu0 %v15353_v6 }
 0xa48   : > { %5565 = vmatmul.f32.vlgmr.msra.gmra.mxu1 %v15353_v6  ;;  %5623 = vmatpush.msrb.mxu0 %v3414_v50  ;;  %v5146_v29 = vpop.f32.mrf.mxu0  ;;  %v5266_v60 = vpop.f32.mrf.mxu2 }
 0xa49   : > { %5643 = vmatpush.msrb.mxu1 %v3670_v35  ;;  %5663 = vmatpush.msrb.mxu2 %v3926_v49  ;;  %v5167_v54 = vadd.f32 %v5166_v28, %v5146_v29 }
 0xa4a   : > { %5683 = vmatpush.msrb.mxu3 %v4182_v2  ;;  %5624 = vmatpush.msrb.mxu0 %v3398_v42  ;;  %v5127_v42 = vadd.f32 %v5126_v8, %v5107_v21 }
 0xa4b   : > { %5644 = vmatpush.msrb.mxu1 %v3654_v44  ;;  %5664 = vmatpush.msrb.mxu2 %v3910_v39  ;;  %v5187_v63 = vadd.f32 %v5186_v17, %v5167_v54 }
 0xa4c   : > { %5684 = vmatpush.msrb.mxu3 %v4166_v62  ;;  %5665 = vmatmul.f32.vlgmr.msrb.gmra.mxu2 %v15353_v6  ;;  %v5326_v20 = vpop.f32.mrf.mxu1 }
 0xa4d   : > { %5685 = vmatmul.f32.vlgmr.msrb.gmra.mxu3 %v15353_v6  ;;  %v5286_v53 = vpop.f32.mrf.mxu3  ;;  %v5207_v4 = vadd.f32 %v5206_v46, %v5187_v63 }
 0xa4f   : > { %5625 = vmatmul.f32.vlgmr.msrb.gmra.mxu0 %v15353_v6  ;;  %v5712_v50 = vrot.slane %v5207_v4, 7 }
 0xa50   : > { %5645 = vmatmul.f32.vlgmr.msrb.gmra.mxu1 %v15353_v6  ;;  %v5226_v30 = vpop.f32.mrf.mxu0  ;;  %v5346_v0 = vpop.f32.mrf.mxu2 }
 0xa51   : > { %v5247_v23 = vadd.f32 %v5246_v19, %v5226_v30  ;;  %v5731_v59 = vsel %vm643_vm0, %v5127_v42, %v5712_v50 }
 0xa53   : > { %v5267_v51 = vadd.f32 %v5266_v60, %v5247_v23 }
 0xa55   : > { %v5366_v40 = vpop.f32.mrf.mxu3  ;;  %v5287_v47 = vadd.f32 %v5286_v53, %v5267_v51 }
 0xa57   : > { %v5713_v16 = vrot.slane %v5287_v47, 6 }
 0xa58   : > { %v5306_v15 = vpop.f32.mrf.mxu0 }
 0xa59   : > { %v5327_v41 = vadd.f32 %v5326_v20, %v5306_v15 }
 0xa5b   : > { %v5347_v58 = vadd.f32 %v5346_v0, %v5327_v41 }
 0xa5d   : > { %v5367_v18 = vadd.f32 %v5366_v40, %v5347_v58 }
 0xa5f   : > { %v5714_v22 = vrot.slane %v5367_v18, 5 }
 0xa60   : > { %v5386_v1 = vpop.f32.mrf.mxu0 }
 0xa61   : > { %v5732_v44 = vsel %vm5720_vm3, %v5713_v16, %v5714_v22 }
 0xa62   : > { %v5733_v28 = vsel %vm644_vm1, %v5731_v59, %v5732_v44 }
 0xa7b   : > { %v5406_v33 = vpop.f32.mrf.mxu1 }
 0xa7c   : > { %v5407_v43 = vadd.f32 %v5406_v33, %v5386_v1 }
 0xa7e   : > { %v5426_v61 = vpop.f32.mrf.mxu2 }
 0xa7f   : > { %v5427_v38 = vadd.f32 %v5426_v61, %v5407_v43 }
 0xa80   : > { %v5446_v6 = vpop.f32.mrf.mxu3 }
 0xa81   : > { %v5447_v36 = vadd.f32 %v5446_v6, %v5427_v38 }
 0xa83   : > { %v5715_v35 = vrot.slane %v5447_v36, 4 }
 0xa8a   : > { %v5466_v31 = vpop.f32.mrf.mxu0 }
 0xa8b   : > { %v5486_v27 = vpop.f32.mrf.mxu1 }
 0xa8c   : > { %v5506_v45 = vpop.f32.mrf.mxu2  ;;  %v5487_v32 = vadd.f32 %v5486_v27, %v5466_v31 }
 0xa8e   : > { %v5526_v25 = vpop.f32.mrf.mxu3  ;;  %v5507_v10 = vadd.f32 %v5506_v45, %v5487_v32 }
 0xa90   : > { %v5527_v7 = vadd.f32 %v5526_v25, %v5507_v10 }
 0xa92   : > { %v5716_v49 = vrot.slane %v5527_v7, 3 }
 0xa94   : > { %v5734_v48 = vsel %vm5723_vm4, %v5715_v35, %v5716_v49 }
 0xac4   : > { %v5546_v37 = vpop.f32.mrf.mxu0 }
 0xac5   : > { %v5566_v26 = vpop.f32.mrf.mxu1  ;;  %v5586_v57 = vpop.f32.mrf.mxu2 }
 0xac6   : > { %v5567_v34 = vadd.f32 %v5566_v26, %v5546_v37 }
 0xac8   : > { %v5606_v5 = vpop.f32.mrf.mxu3  ;;  %v5587_v55 = vadd.f32 %v5586_v57, %v5567_v34 }
 0xaca   : > { %v5607_v56 = vadd.f32 %v5606_v5, %v5587_v55 }
 0xacc   : > { %v5626_v3 = vpop.f32.mrf.mxu0  ;;  %v5717_v39 = vrot.slane %v5607_v56, 2 }
 0xacd   : > { %v5646_v52 = vpop.f32.mrf.mxu1 }
 0xace   : > { %v5647_v14 = vadd.f32 %v5646_v52, %v5626_v3 }
 0xacf   : > { %v5666_v12 = vpop.f32.mrf.mxu2 }
 0xad0   : > { %v5667_v24 = vadd.f32 %v5666_v12, %v5647_v14  ;;  %v5686_v11 = vpop.f32.mrf.mxu3 }
 0xad2   : > { %v5687_v2 = vadd.f32 %v5686_v11, %v5667_v24 }
 0xad4   : > { %v5718_v62 = vrot.slane %v5687_v2, 1 }
 0xad6   : > { %v5735_v29 = vsel %vm5725_vm5, %v5717_v39, %v5718_v62 }
 0xad7   : > { %v5736_v17 = vsel %vm5727_vm6, %v5734_v48, %v5735_v29  ;;  %5747 = sbr.rel (%p7352_p1) target bundleno = 3054 (0xbee), region = 48 }
 0xad8   : > { %v5737_v46 = vsel %vm5729_vm7, %v5733_v28, %v5736_v17 }
 0xad9   : > { %v5741_v30 = vadd.f32 %v5737_v46, %v4408_v9 }
 0xadb   : > { %5743 = vst [vmem:[#allocation2 + $0x8] sm:$0xff] %v5741_v30 }
 0xadc   : > { %v7905_v8 = vld [vmem:[%s14351_s3 + $0x38] sm:$0xff]   ;;  %v7904_v1 = vld [vmem:[%s14351_s3 + $0x30] sm:$0xff]   ;;  %v7903_v57 = vld [vmem:[%s14351_s3 + $0x28] sm:$0xff]  }
 0xadd   : > { %v7921_v19 = vld [vmem:[%s14351_s3 + $0xb8] sm:$0xff]   ;;  %v7418_v53 = vunpack.c.h.bf16 %v7905_v8  ;;  %v7417_v20 = vunpack.c.l.bf16 %v7905_v8  ;;  %v7920_v33 = vld [vmem:[%s14351_s3 + $0xb0] sm:$0xff]   ;;  %v7414_v25 = vunpack.c.h.bf16 %v7904_v1  ;;  %v7919_v54 = vld [vmem:[%s14351_s3 + $0xa8] sm:$0xff]   ;;  %v7413_v43 = vunpack.c.l.bf16 %v7904_v1 }
 0xade   : > { %v7913_v60 = vld [vmem:[%s14351_s3 + $0x78] sm:$0xff]   ;;  %v7482_v15 = vunpack.c.h.bf16 %v7921_v19  ;;  %v7481_v61 = vunpack.c.l.bf16 %v7921_v19  ;;  %v7912_v27 = vld [vmem:[%s14351_s3 + $0x70] sm:$0xff]   ;;  %v7478_v23 = vunpack.c.h.bf16 %v7920_v33  ;;  %v7477_v32 = vunpack.c.l.bf16 %v7920_v33  ;;  %v7911_v51 = vld [vmem:[%s14351_s3 + $0x68] sm:$0xff]  }
 0xadf   : > { %v7450_v0 = vunpack.c.h.bf16 %v7913_v60  ;;  %v7929_v40 = vld [vmem:[%s14351_s3 + $0xf8] sm:$0xff]   ;;  %v7449_v31 = vunpack.c.l.bf16 %v7913_v60  ;;  %v7928_v45 = vld [vmem:[%s14351_s3 + $0xf0] sm:$0xff]   ;;  %6297 = vmatpush.msra.mxu0 %v7418_v53  ;;  %v7446_v37 = vunpack.c.h.bf16 %v7912_v27  ;;  %v7927_v58 = vld [vmem:[%s14351_s3 + $0xe8] sm:$0xff]   ;;  %v7445_v34 = vunpack.c.l.bf16 %v7912_v27 }
 0xae0   : > { %v7514_v6 = vunpack.c.h.bf16 %v7929_v40  ;;  %6337 = vmatpush.msra.mxu2 %v7482_v15  ;;  %v7513_v41 = vunpack.c.l.bf16 %v7929_v40  ;;  %v7510_v26 = vunpack.c.h.bf16 %v7928_v45  ;;  %v7509_v5 = vunpack.c.l.bf16 %v7928_v45  ;;  %v7902_v47 = vld [vmem:[%s14351_s3 + $0x20] sm:$0xff]   ;;  %v7901_v22 = vld [vmem:[%s14351_s3 + $0x18] sm:$0xff]   ;;  %v7900_v59 = vld [vmem:[%s14351_s3 + $0x10] sm:$0xff]  }
 0xae1   : > { %6317 = vmatpush.msra.mxu1 %v7450_v0  ;;  %6298 = vmatpush.msra.mxu0 %v7417_v20  ;;  %v7410_v63 = vunpack.c.h.bf16 %v7903_v57  ;;  %v7474_v38 = vunpack.c.h.bf16 %v7919_v54  ;;  %v7442_v10 = vunpack.c.h.bf16 %v7911_v51  ;;  %v7506_v13 = vunpack.c.h.bf16 %v7927_v58  ;;  %v7918_v18 = vld [vmem:[%s14351_s3 + $0xa0] sm:$0xff]   ;;  %v7917_v56 = vld [vmem:[%s14351_s3 + $0x98] sm:$0xff]   ;;  %v7916_v48 = vld [vmem:[%s14351_s3 + $0x90] sm:$0xff]  }
 0xae2   : > { %6357 = vmatpush.msra.mxu3 %v7514_v6  ;;  %6338 = vmatpush.msra.mxu2 %v7481_v61  ;;  %v7409_v55 = vunpack.c.l.bf16 %v7903_v57  ;;  %v7473_v3 = vunpack.c.l.bf16 %v7919_v54  ;;  %v7910_v52 = vld [vmem:[%s14351_s3 + $0x60] sm:$0xff]   ;;  %v7441_v4 = vunpack.c.l.bf16 %v7911_v51  ;;  %v7505_v36 = vunpack.c.l.bf16 %v7927_v58  ;;  %v7909_v50 = vld [vmem:[%s14351_s3 + $0x58] sm:$0xff]   ;;  %v7908_v28 = vld [vmem:[%s14351_s3 + $0x50] sm:$0xff]  }
 0xae3   : > { %6318 = vmatpush.msra.mxu1 %v7449_v31  ;;  %6299 = vmatpush.msra.mxu0 %v7414_v25  ;;  %v7926_v14 = vld [vmem:[%s14351_s3 + $0xe0] sm:$0xff]   ;;  %v7406_v7 = vunpack.c.h.bf16 %v7902_v47  ;;  %v7470_v21 = vunpack.c.h.bf16 %v7918_v18  ;;  %v7438_v12 = vunpack.c.h.bf16 %v7910_v52  ;;  %v7405_v24 = vunpack.c.l.bf16 %v7902_v47  ;;  %v7925_v35 = vld [vmem:[%s14351_s3 + $0xd8] sm:$0xff]   ;;  %v7924_v17 = vld [vmem:[%s14351_s3 + $0xd0] sm:$0xff]  }
 0xae4   : > { %6358 = vmatpush.msra.mxu3 %v7513_v41  ;;  %6339 = vmatpush.msra.mxu2 %v7478_v23  ;;  %v7502_v16 = vunpack.c.h.bf16 %v7926_v14  ;;  %v7469_v11 = vunpack.c.l.bf16 %v7918_v18  ;;  %v7437_v49 = vunpack.c.l.bf16 %v7910_v52  ;;  %v7501_v2 = vunpack.c.l.bf16 %v7926_v14  ;;  %v7899_v15 = vld [vmem:[%s14351_s3 + $0x8] sm:$0xff]   ;;  %v7388_v23 = vld [vmem:[%s14351_s3] sm:$0xff]   ;;  %v7945_v47 = vld [vmem:[%s14351_s3 + $0x178] sm:$0xff]  }
 0xae5   : > { %6319 = vmatpush.msra.mxu1 %v7446_v37  ;;  %6300 = vmatpush.msra.mxu0 %v7413_v43  ;;  %v7402_v42 = vunpack.c.h.bf16 %v7901_v22  ;;  %v7466_v44 = vunpack.c.h.bf16 %v7917_v56  ;;  %v7434_v39 = vunpack.c.h.bf16 %v7909_v50  ;;  %v7498_v62 = vunpack.c.h.bf16 %v7925_v35  ;;  %v7915_v20 = vld [vmem:[%s14351_s3 + $0x88] sm:$0xff]   ;;  %v7914_v41 = vld [vmem:[%s14351_s3 + $0x80] sm:$0xff]  }
 0xae6   : > { %6359 = vmatpush.msra.mxu3 %v7510_v26  ;;  %6340 = vmatpush.msra.mxu2 %v7477_v32  ;;  %v7401_v9 = vunpack.c.l.bf16 %v7901_v22  ;;  %v7465_v29 = vunpack.c.l.bf16 %v7917_v56  ;;  %v7433_v46 = vunpack.c.l.bf16 %v7909_v50  ;;  %v7497_v30 = vunpack.c.l.bf16 %v7925_v35  ;;  %v7907_v1 = vld [vmem:[%s14351_s3 + $0x48] sm:$0xff]   ;;  %v7906_v57 = vld [vmem:[%s14351_s3 + $0x40] sm:$0xff]   ;;  %v7944_v22 = vld [vmem:[%s14351_s3 + $0x170] sm:$0xff]  }
 0xae7   : > { %6320 = vmatpush.msra.mxu1 %v7445_v34  ;;  %6301 = vmatpush.msra.mxu0 %v7410_v63  ;;  %v7398_v8 = vunpack.c.h.bf16 %v7900_v59  ;;  %v7462_v19 = vunpack.c.h.bf16 %v7916_v48  ;;  %v7430_v60 = vunpack.c.h.bf16 %v7908_v28  ;;  %v7494_v53 = vunpack.c.h.bf16 %v7924_v17  ;;  %v7923_v33 = vld [vmem:[%s14351_s3 + $0xc8] sm:$0xff]   ;;  %v7922_v54 = vld [vmem:[%s14351_s3 + $0xc0] sm:$0xff]   ;;  %v7937_v34 = vld [vmem:[%s14351_s3 + $0x138] sm:$0xff]  }
 0xae8   : > { %6360 = vmatpush.msra.mxu3 %v7509_v5  ;;  %6341 = vmatpush.msra.mxu2 %v7474_v38  ;;  %v7397_v0 = vunpack.c.l.bf16 %v7900_v59  ;;  %v7461_v40 = vunpack.c.l.bf16 %v7916_v48  ;;  %v7429_v61 = vunpack.c.l.bf16 %v7908_v28  ;;  %v7493_v6 = vunpack.c.l.bf16 %v7924_v17  ;;  %v7953_v5 = vld [vmem:[%s14351_s3 + $0x1b8] sm:$0xff]   ;;  %v7943_v59 = vld [vmem:[%s14351_s3 + $0x168] sm:$0xff]  }
 0xae9   : > { %6321 = vmatpush.msra.mxu1 %v7442_v10  ;;  %6302 = vmatpush.msra.mxu0 %v7409_v55  ;;  %v7394_v31 = vunpack.c.h.bf16 %v7899_v15  ;;  %v7458_v27 = vunpack.c.h.bf16 %v7915_v20  ;;  %v7426_v45 = vunpack.c.h.bf16 %v7907_v1  ;;  %v7490_v25 = vunpack.c.h.bf16 %v7923_v33 }
 0xaea   : > { %6361 = vmatpush.msra.mxu3 %v7506_v13  ;;  %6342 = vmatpush.msra.mxu2 %v7473_v3  ;;  %v7393_v37 = vunpack.c.l.bf16 %v7899_v15  ;;  %v7457_v26 = vunpack.c.l.bf16 %v7915_v20  ;;  %v7425_v43 = vunpack.c.l.bf16 %v7907_v1  ;;  %v7489_v32 = vunpack.c.l.bf16 %v7923_v33  ;;  %v7961_v3 = vld [vmem:[%s14351_s3 + $0x1f8] sm:$0xff]   ;;  %v7942_v15 = vld [vmem:[%s14351_s3 + $0x160] sm:$0xff]  }
 0xaeb   : > { %6322 = vmatpush.msra.mxu1 %v7441_v4  ;;  %6303 = vmatpush.msra.mxu0 %v7406_v7  ;;  %v7390_v51 = vunpack.c.h.bf16 %v7388_v23  ;;  %v7454_v58 = vunpack.c.h.bf16 %v7914_v41  ;;  %v7422_v63 = vunpack.c.h.bf16 %v7906_v57  ;;  %v7486_v38 = vunpack.c.h.bf16 %v7922_v54  ;;  %v7936_v4 = vld [vmem:[%s14351_s3 + $0x130] sm:$0xff]  }
 0xaec   : > { %6362 = vmatpush.msra.mxu3 %v7505_v36  ;;  %6343 = vmatpush.msra.mxu2 %v7470_v21  ;;  %v7389_v10 = vunpack.c.l.bf16 %v7388_v23  ;;  %v7453_v13 = vunpack.c.l.bf16 %v7914_v41  ;;  %v7546_v18 = vunpack.c.h.bf16 %v7937_v34  ;;  %v7610_v55 = vunpack.c.h.bf16 %v7953_v5  ;;  %v7952_v21 = vld [vmem:[%s14351_s3 + $0x1b0] sm:$0xff]   ;;  %v7941_v23 = vld [vmem:[%s14351_s3 + $0x158] sm:$0xff]  }
 0xaed   : > { %6323 = vmatpush.msra.mxu1 %v7438_v12  ;;  %6304 = vmatpush.msra.mxu0 %v7405_v24  ;;  %v7421_v52 = vunpack.c.l.bf16 %v7906_v57  ;;  %v7485_v14 = vunpack.c.l.bf16 %v7922_v54  ;;  %v7545_v36 = vunpack.c.l.bf16 %v7937_v34  ;;  %v7578_v7 = vunpack.c.h.bf16 %v7945_v47 }
 0xaee   : > { %6363 = vmatpush.msra.mxu3 %v7502_v16  ;;  %6344 = vmatpush.msra.mxu2 %v7469_v11  ;;  %v7609_v12 = vunpack.c.l.bf16 %v7953_v5  ;;  %v7642_v16 = vunpack.c.h.bf16 %v7961_v3  ;;  %v7542_v56 = vunpack.c.h.bf16 %v7936_v4  ;;  %v7577_v24 = vunpack.c.l.bf16 %v7945_v47  ;;  %v7960_v11 = vld [vmem:[%s14351_s3 + $0x1f0] sm:$0xff]  }
 0xaef   : > { %6324 = vmatpush.msra.mxu1 %v7437_v49  ;;  %6305 = vmatpush.msra.mxu0 %v7402_v42  ;;  %v7606_v50 = vunpack.c.h.bf16 %v7952_v21  ;;  %v7641_v35 = vunpack.c.l.bf16 %v7961_v3  ;;  %v7935_v49 = vld [vmem:[%s14351_s3 + $0x128] sm:$0xff]   ;;  %v7574_v42 = vunpack.c.h.bf16 %v7944_v22  ;;  %v7637_v17 = vunpack.c.l.bf16 %v7960_v11 }
 0xaf0   : > { %6364 = vmatpush.msra.mxu3 %v7501_v2  ;;  %6345 = vmatpush.msra.mxu2 %v7466_v44  ;;  %v7541_v2 = vunpack.c.l.bf16 %v7936_v4  ;;  %v7951_v44 = vld [vmem:[%s14351_s3 + $0x1a8] sm:$0xff]   ;;  %v7538_v48 = vunpack.c.h.bf16 %v7935_v49 }
 0xaf1   : > { %6325 = vmatpush.msra.mxu1 %v7434_v39  ;;  %6306 = vmatpush.msra.mxu0 %v7401_v9  ;;  %v7605_v39 = vunpack.c.l.bf16 %v7952_v21  ;;  %v7573_v9 = vunpack.c.l.bf16 %v7944_v22  ;;  %v7602_v28 = vunpack.c.h.bf16 %v7951_v44 }
 0xaf2   : > { %6365 = vmatpush.msra.mxu3 %v7498_v62  ;;  %6346 = vmatpush.msra.mxu2 %v7465_v29  ;;  %v7638_v62 = vunpack.c.h.bf16 %v7960_v11  ;;  %v7959_v29 = vld [vmem:[%s14351_s3 + $0x1e8] sm:$0xff]  }
 0xaf3   : > { %6326 = vmatpush.msra.mxu1 %v7433_v46  ;;  %6307 = vmatpush.msra.mxu0 %v7398_v8  ;;  %v7934_v46 = vld [vmem:[%s14351_s3 + $0x120] sm:$0xff]   ;;  %v7570_v8 = vunpack.c.h.bf16 %v7943_v59  ;;  %v7633_v33 = vunpack.c.l.bf16 %v7959_v29 }
 0xaf4   : > { %6366 = vmatpush.msra.mxu3 %v7497_v30  ;;  %6347 = vmatpush.msra.mxu2 %v7462_v19  ;;  %v7537_v30 = vunpack.c.l.bf16 %v7935_v49  ;;  %v7950_v19 = vld [vmem:[%s14351_s3 + $0x1a0] sm:$0xff]   ;;  %v7534_v20 = vunpack.c.h.bf16 %v7934_v46 }
 0xaf5   : > { %6327 = vmatpush.msra.mxu1 %v7430_v60  ;;  %6308 = vmatpush.msra.mxu0 %v7397_v0  ;;  %v7601_v60 = vunpack.c.l.bf16 %v7951_v44  ;;  %v7569_v0 = vunpack.c.l.bf16 %v7943_v59  ;;  %v7598_v1 = vunpack.c.h.bf16 %v7950_v19 }
 0xaf6   : > { %6367 = vmatpush.msra.mxu3 %v7494_v53  ;;  %6348 = vmatpush.msra.mxu2 %v7461_v40  ;;  %v7634_v53 = vunpack.c.h.bf16 %v7959_v29  ;;  %v7958_v40 = vld [vmem:[%s14351_s3 + $0x1e0] sm:$0xff]  }
 0xaf7   : > { %6328 = vmatpush.msra.mxu1 %v7429_v61  ;;  %6309 = vmatpush.msra.mxu0 %v7394_v31  ;;  %v7933_v61 = vld [vmem:[%s14351_s3 + $0x118] sm:$0xff]   ;;  %v7566_v31 = vunpack.c.h.bf16 %v7942_v15  ;;  %v7629_v54 = vunpack.c.l.bf16 %v7958_v40 }
 0xaf8   : > { %6368 = vmatpush.msra.mxu3 %v7493_v6  ;;  %6349 = vmatpush.msra.mxu2 %v7458_v27  ;;  %v7533_v6 = vunpack.c.l.bf16 %v7934_v46  ;;  %v7949_v27 = vld [vmem:[%s14351_s3 + $0x198] sm:$0xff]   ;;  %v7530_v41 = vunpack.c.h.bf16 %v7933_v61 }
 0xaf9   : > { %6329 = vmatpush.msra.mxu1 %v7426_v45  ;;  %6310 = vmatpush.msra.mxu0 %v7393_v37  ;;  %v7597_v45 = vunpack.c.l.bf16 %v7950_v19  ;;  %v7565_v37 = vunpack.c.l.bf16 %v7942_v15  ;;  %v7594_v57 = vunpack.c.h.bf16 %v7949_v27  ;;  %v7593_v34 = vunpack.c.l.bf16 %v7949_v27  ;;  %v7985_v46 = vld [vmem:[%s14351_s3 + $0x2b8] sm:$0xff]  }
 0xafa   : > { %6369 = vmatpush.msra.mxu3 %v7490_v25  ;;  %6350 = vmatpush.msra.mxu2 %v7457_v26  ;;  %v7630_v25 = vunpack.c.h.bf16 %v7958_v40  ;;  %v7957_v26 = vld [vmem:[%s14351_s3 + $0x1d8] sm:$0xff]   ;;  %v7738_v15 = vunpack.c.h.bf16 %v7985_v46 }
 0xafb   : > { %6330 = vmatpush.msra.mxu1 %v7425_v43  ;;  %6311 = vmatpush.msra.mxu0 %v7390_v51  ;;  %v7932_v43 = vld [vmem:[%s14351_s3 + $0x110] sm:$0xff]   ;;  %v7562_v51 = vunpack.c.h.bf16 %v7941_v23  ;;  %v7626_v5 = vunpack.c.h.bf16 %v7957_v26 }
 0xafc   : > { %6370 = vmatpush.msra.mxu3 %v7489_v32  ;;  %6351 = vmatpush.msra.mxu2 %v7454_v58  ;;  %v7529_v32 = vunpack.c.l.bf16 %v7933_v61  ;;  %v7948_v58 = vld [vmem:[%s14351_s3 + $0x190] sm:$0xff]   ;;  %v7525_v3 = vunpack.c.l.bf16 %v7932_v43 }
 0xafd   : > { %6331 = vmatpush.msra.mxu1 %v7422_v63  ;;  %6312 = vmatpush.msra.mxu0 %v7389_v10  ;;  %v7940_v63 = vld [vmem:[%s14351_s3 + $0x150] sm:$0xff]   ;;  %v7561_v10 = vunpack.c.l.bf16 %v7941_v23  ;;  %v7590_v47 = vunpack.c.h.bf16 %v7948_v58  ;;  %v7589_v4 = vunpack.c.l.bf16 %v7948_v58 }
 0xafe   : > { %6371 = vmatpush.msra.mxu3 %v7486_v38  ;;  %6352 = vmatpush.msra.mxu2 %v7453_v13  ;;  %v7526_v38 = vunpack.c.h.bf16 %v7932_v43  ;;  %v7956_v13 = vld [vmem:[%s14351_s3 + $0x1d0] sm:$0xff]  }
 0xaff   : > { %6377 = vmatpush.msrb.mxu0 %v7546_v18  ;;  %6332 = vmatpush.msra.mxu1 %v7421_v52  ;;  %v7625_v18 = vunpack.c.l.bf16 %v7957_v26  ;;  %v7558_v52 = vunpack.c.h.bf16 %v7940_v63 }
 0xb00   : > { %6417 = vmatpush.msrb.mxu2 %v7610_v55  ;;  %6372 = vmatpush.msra.mxu3 %v7485_v14  ;;  %v7931_v55 = vld [vmem:[%s14351_s3 + $0x108] sm:$0xff]  }
 0xb01   : > { %6378 = vmatpush.msrb.mxu0 %v7545_v36  ;;  %6397 = vmatpush.msrb.mxu1 %v7578_v7  ;;  %v7947_v14 = vld [vmem:[%s14351_s3 + $0x188] sm:$0xff]   ;;  %v7622_v36 = vunpack.c.h.bf16 %v7956_v13  ;;  %v7522_v21 = vunpack.c.h.bf16 %v7931_v55  ;;  %v7521_v11 = vunpack.c.l.bf16 %v7931_v55 }
 0xb02   : > { %6418 = vmatpush.msrb.mxu2 %v7609_v12  ;;  %6437 = vmatpush.msrb.mxu3 %v7642_v16  ;;  %v7939_v7 = vld [vmem:[%s14351_s3 + $0x148] sm:$0xff]   ;;  %v7557_v12 = vunpack.c.l.bf16 %v7940_v63  ;;  %v7586_v22 = vunpack.c.h.bf16 %v7947_v14  ;;  %v7585_v49 = vunpack.c.l.bf16 %v7947_v14 }
 0xb03   : > { %6379 = vmatpush.msrb.mxu0 %v7542_v56  ;;  %6398 = vmatpush.msrb.mxu1 %v7577_v24  ;;  %v7955_v16 = vld [vmem:[%s14351_s3 + $0x1c8] sm:$0xff]   ;;  %v7621_v56 = vunpack.c.l.bf16 %v7956_v13  ;;  %v7930_v24 = vld [vmem:[%s14351_s3 + $0x100] sm:$0xff]  }
 0xb04   : > { %6419 = vmatpush.msrb.mxu2 %v7606_v50  ;;  %6438 = vmatpush.msrb.mxu3 %v7641_v35  ;;  %v7554_v50 = vunpack.c.h.bf16 %v7939_v7  ;;  %v7946_v35 = vld [vmem:[%s14351_s3 + $0x180] sm:$0xff]   ;;  %v7518_v44 = vunpack.c.h.bf16 %v7930_v24  ;;  %v7517_v29 = vunpack.c.l.bf16 %v7930_v24 }
 0xb05   : > { %6380 = vmatpush.msrb.mxu0 %v7541_v2  ;;  %6399 = vmatpush.msrb.mxu1 %v7574_v42  ;;  %v7618_v2 = vunpack.c.h.bf16 %v7955_v16  ;;  %v7938_v42 = vld [vmem:[%s14351_s3 + $0x140] sm:$0xff]   ;;  %v7582_v59 = vunpack.c.h.bf16 %v7946_v35 }
 0xb06   : > { %6420 = vmatpush.msrb.mxu2 %v7605_v39  ;;  %6439 = vmatpush.msrb.mxu3 %v7638_v62  ;;  %v7553_v39 = vunpack.c.l.bf16 %v7939_v7  ;;  %v7954_v62 = vld [vmem:[%s14351_s3 + $0x1c0] sm:$0xff]  }
 0xb07   : > { %6381 = vmatpush.msrb.mxu0 %v7538_v48  ;;  %6400 = vmatpush.msrb.mxu1 %v7573_v9  ;;  %v7617_v48 = vunpack.c.l.bf16 %v7955_v16  ;;  %v14087_v9 = vld [vmem:[#allocation2] sm:$0xff]  ;;  %v7613_v40 = vunpack.c.l.bf16 %v7954_v62 }
 0xb08   : > { %6421 = vmatpush.msrb.mxu2 %v7602_v28  ;;  %6440 = vmatpush.msrb.mxu3 %v7637_v17  ;;  %v7550_v28 = vunpack.c.h.bf16 %v7938_v42  ;;  %v7969_v17 = vld [vmem:[%s14351_s3 + $0x238] sm:$0xff]   ;;  %v6265_v19 = vperm.slane %v14087_v9, 0  ;;  %v6268_v61 = vperm.slane %v14087_v9, 3  ;;  %v6272_v14 = vperm.slane %v14087_v9, 7 }
 0xb09   : > { %6382 = vmatpush.msrb.mxu0 %v7537_v30  ;;  %6401 = vmatpush.msrb.mxu1 %v7570_v8  ;;  %v7581_v30 = vunpack.c.l.bf16 %v7946_v35  ;;  %v7614_v8 = vunpack.c.h.bf16 %v7954_v62 }
 0xb0a   : > { %6422 = vmatpush.msrb.mxu2 %v7601_v60  ;;  %6441 = vmatpush.msrb.mxu3 %v7634_v53  ;;  %v6267_v60 = vperm.slane %v14087_v9, 2  ;;  %v7674_v53 = vunpack.c.h.bf16 %v7969_v17 }
 0xb0b   : > { %6383 = vmatpush.msrb.mxu0 %v7534_v20  ;;  %6402 = vmatpush.msrb.mxu1 %v7569_v0  ;;  %v7977_v20 = vld [vmem:[%s14351_s3 + $0x278] sm:$0xff]   ;;  %v7549_v0 = vunpack.c.l.bf16 %v7938_v42 }
 0xb0c   : > { %6423 = vmatpush.msrb.mxu2 %v7598_v1  ;;  %6442 = vmatpush.msrb.mxu3 %v7633_v33  ;;  %v7993_v1 = vld [vmem:[%s14351_s3 + $0x2f8] sm:$0xff]   ;;  %v6266_v33 = vperm.slane %v14087_v9, 1  ;;  %v7706_v27 = vunpack.c.h.bf16 %v7977_v20  ;;  %v7705_v26 = vunpack.c.l.bf16 %v7977_v20  ;;  %v7972_v20 = vld [vmem:[%s14351_s3 + $0x250] sm:$0xff]  }
 0xb0d   : > { %6384 = vmatpush.msrb.mxu0 %v7533_v6  ;;  %6403 = vmatpush.msrb.mxu1 %v7566_v31  ;;  %v7968_v6 = vld [vmem:[%s14351_s3 + $0x230] sm:$0xff]   ;;  %v7673_v31 = vunpack.c.l.bf16 %v7969_v17  ;;  %v7770_v23 = vunpack.c.h.bf16 %v7993_v1  ;;  %v7769_v43 = vunpack.c.l.bf16 %v7993_v1 }
 0xb0e   : > { %6424 = vmatpush.msrb.mxu2 %v7597_v45  ;;  %6443 = vmatpush.msrb.mxu3 %v7630_v25  ;;  %v7984_v45 = vld [vmem:[%s14351_s3 + $0x2b0] sm:$0xff]   ;;  %v7737_v25 = vunpack.c.l.bf16 %v7985_v46 }
 0xb0f   : > { %6385 = vmatpush.msrb.mxu0 %v7530_v41  ;;  %6404 = vmatpush.msrb.mxu1 %v7565_v37  ;;  %v7976_v41 = vld [vmem:[%s14351_s3 + $0x270] sm:$0xff]   ;;  %v7670_v37 = vunpack.c.h.bf16 %v7968_v6 }
 0xb10   : > { %6425 = vmatpush.msrb.mxu2 %v7594_v57  ;;  %6444 = vmatpush.msrb.mxu3 %v7629_v54  ;;  %v7992_v57 = vld [vmem:[%s14351_s3 + $0x2f0] sm:$0xff]   ;;  %v7734_v54 = vunpack.c.h.bf16 %v7984_v45  ;;  %v7702_v58 = vunpack.c.h.bf16 %v7976_v41  ;;  %v7701_v13 = vunpack.c.l.bf16 %v7976_v41  ;;  %v7971_v41 = vld [vmem:[%s14351_s3 + $0x248] sm:$0xff]  }
 0xb11   : > { %6386 = vmatpush.msrb.mxu0 %v7529_v32  ;;  %6405 = vmatpush.msrb.mxu1 %v7562_v51  ;;  %v7967_v32 = vld [vmem:[%s14351_s3 + $0x228] sm:$0xff]   ;;  %v7669_v51 = vunpack.c.l.bf16 %v7968_v6  ;;  %v7766_v63 = vunpack.c.h.bf16 %v7992_v57  ;;  %v7765_v55 = vunpack.c.l.bf16 %v7992_v57  ;;  %v7988_v1 = vld [vmem:[%s14351_s3 + $0x2d0] sm:$0xff]  }
 0xb12   : > { %6426 = vmatpush.msrb.mxu2 %v7593_v34  ;;  %6445 = vmatpush.msrb.mxu3 %v7626_v5  ;;  %v7983_v34 = vld [vmem:[%s14351_s3 + $0x2a8] sm:$0xff]   ;;  %v7733_v5 = vunpack.c.l.bf16 %v7984_v45 }
 0xb13   : > { %6387 = vmatpush.msrb.mxu0 %v7526_v38  ;;  %6406 = vmatpush.msrb.mxu1 %v7561_v10  ;;  %v6271_v38 = vperm.slane %v14087_v9, 6  ;;  %v7666_v10 = vunpack.c.h.bf16 %v7967_v32  ;;  %v7963_v6 = vld [vmem:[%s14351_s3 + $0x208] sm:$0xff]  }
 0xb14   : > { %6427 = vmatpush.msrb.mxu2 %v7590_v47  ;;  %6446 = vmatpush.msrb.mxu3 %v7625_v18  ;;  %v7730_v47 = vunpack.c.h.bf16 %v7983_v34  ;;  %v7975_v18 = vld [vmem:[%s14351_s3 + $0x268] sm:$0xff]  }
 0xb15   : > { %6388 = vmatpush.msrb.mxu0 %v7525_v3  ;;  %6407 = vmatpush.msrb.mxu1 %v7558_v52  ;;  %v6269_v3 = vperm.slane %v14087_v9, 4  ;;  %v7991_v52 = vld [vmem:[%s14351_s3 + $0x2e8] sm:$0xff]   ;;  %v7698_v7 = vunpack.c.h.bf16 %v7975_v18 }
 0xb16   : > { %6428 = vmatpush.msrb.mxu2 %v7589_v4  ;;  %6447 = vmatpush.msrb.mxu3 %v7622_v36  ;;  %v7665_v4 = vunpack.c.l.bf16 %v7967_v32  ;;  %v7966_v36 = vld [vmem:[%s14351_s3 + $0x220] sm:$0xff]   ;;  %v7762_v16 = vunpack.c.h.bf16 %v7991_v52  ;;  %v7979_v45 = vld [vmem:[%s14351_s3 + $0x288] sm:$0xff]  }
 0xb17   : > { %6389 = vmatpush.msrb.mxu0 %v7522_v21  ;;  %6408 = vmatpush.msrb.mxu1 %v7557_v12  ;;  %v7729_v21 = vunpack.c.l.bf16 %v7983_v34  ;;  %v7982_v12 = vld [vmem:[%s14351_s3 + $0x2a0] sm:$0xff]   ;;  %v7662_v24 = vunpack.c.h.bf16 %v7966_v36  ;;  %v7661_v42 = vunpack.c.l.bf16 %v7966_v36  ;;  %v7987_v57 = vld [vmem:[%s14351_s3 + $0x2c8] sm:$0xff]   ;;  %v8017_v36 = vld [vmem:[%s14351_s3 + $0x3b8] sm:$0xff]  }
 0xb18   : > { %6429 = vmatpush.msrb.mxu2 %v7586_v22  ;;  %6448 = vmatpush.msrb.mxu3 %v7621_v56  ;;  %v6270_v22 = vperm.slane %v14087_v9, 5  ;;  %v7974_v56 = vld [vmem:[%s14351_s3 + $0x260] sm:$0xff]   ;;  %v7726_v35 = vunpack.c.h.bf16 %v7982_v12  ;;  %v7725_v62 = vunpack.c.l.bf16 %v7982_v12 }
 0xb19   : > { %6390 = vmatpush.msrb.mxu0 %v7521_v11  ;;  %6409 = vmatpush.msrb.mxu1 %v7554_v50  ;;  %v7697_v11 = vunpack.c.l.bf16 %v7975_v18  ;;  %v7990_v50 = vld [vmem:[%s14351_s3 + $0x2e0] sm:$0xff]  }
 0xb1a   : > { %6430 = vmatpush.msrb.mxu2 %v7585_v49  ;;  %6449 = vmatpush.msrb.mxu3 %v7618_v2  ;;  %v7761_v49 = vunpack.c.l.bf16 %v7991_v52  ;;  %v7965_v2 = vld [vmem:[%s14351_s3 + $0x218] sm:$0xff]   ;;  %v7757_v46 = vunpack.c.l.bf16 %v7990_v50  ;;  %v7962_v32 = vld [vmem:[%s14351_s3 + $0x200] sm:$0xff]  }
 0xb1b   : > { %6391 = vmatpush.msrb.mxu0 %v7518_v44  ;;  %6410 = vmatpush.msrb.mxu1 %v7553_v39  ;;  %v7694_v44 = vunpack.c.h.bf16 %v7974_v56  ;;  %v7981_v39 = vld [vmem:[%s14351_s3 + $0x298] sm:$0xff]   ;;  %v7658_v9 = vunpack.c.h.bf16 %v7965_v2  ;;  %v7978_v34 = vld [vmem:[%s14351_s3 + $0x280] sm:$0xff]   ;;  %v7645_v52 = vunpack.c.l.bf16 %v7962_v32 }
 0xb1c   : > { %6431 = vmatpush.msrb.mxu2 %v7582_v59  ;;  %6450 = vmatpush.msrb.mxu3 %v7617_v48  ;;  %v7758_v59 = vunpack.c.h.bf16 %v7990_v50  ;;  %v7973_v48 = vld [vmem:[%s14351_s3 + $0x258] sm:$0xff]   ;;  %v7722_v17 = vunpack.c.h.bf16 %v7981_v39  ;;  %v7710_v18 = vunpack.c.h.bf16 %v7978_v34 }
 0xb1d   : > { %6392 = vmatpush.msrb.mxu0 %v7517_v29  ;;  %6411 = vmatpush.msrb.mxu1 %v7550_v28  ;;  %v7693_v29 = vunpack.c.l.bf16 %v7974_v56  ;;  %v7989_v28 = vld [vmem:[%s14351_s3 + $0x2d8] sm:$0xff]   ;;  %v7866_v56 = vunpack.c.h.bf16 %v8017_v36 }
 0xb1e   : > { %6432 = vmatpush.msrb.mxu2 %v7581_v30  ;;  %6451 = vmatpush.msrb.mxu3 %v7614_v8  ;;  %v7964_v30 = vld [vmem:[%s14351_s3 + $0x210] sm:$0xff]   ;;  %v7657_v8 = vunpack.c.l.bf16 %v7965_v2 }
 0xb1f   : > { %6313 = vmatmul.f32.vlgmr.msra.gmra.mxu0 %v6265_v19  ;;  %6353 = vmatmul.f32.vlgmr.msra.gmra.mxu2 %v6267_v60  ;;  %v7690_v19 = vunpack.c.h.bf16 %v7973_v48  ;;  %v7980_v60 = vld [vmem:[%s14351_s3 + $0x290] sm:$0xff]  }
 0xb20   : > { %6457 = vmatpush.msra.mxu0 %v7674_v53  ;;  %6497 = vmatpush.msra.mxu2 %v7738_v15  ;;  %v7721_v53 = vunpack.c.l.bf16 %v7981_v39  ;;  %v7754_v15 = vunpack.c.h.bf16 %v7989_v28 }
 0xb21   : > { %6412 = vmatpush.msrb.mxu1 %v7549_v0  ;;  %6452 = vmatpush.msrb.mxu3 %v7613_v40  ;;  %v7654_v0 = vunpack.c.h.bf16 %v7964_v30  ;;  %v7689_v40 = vunpack.c.l.bf16 %v7973_v48 }
 0xb22   : > { %6333 = vmatmul.f32.vlgmr.msra.gmra.mxu1 %v6266_v33  ;;  %6373 = vmatmul.f32.vlgmr.msra.gmra.mxu3 %v6268_v61  ;;  %v7718_v33 = vunpack.c.h.bf16 %v7980_v60  ;;  %v7753_v61 = vunpack.c.l.bf16 %v7989_v28 }
 0xb23   : > { %6458 = vmatpush.msra.mxu0 %v7673_v31  ;;  %6477 = vmatpush.msra.mxu1 %v7706_v27  ;;  %v7653_v31 = vunpack.c.l.bf16 %v7964_v30  ;;  %v7686_v27 = vunpack.c.h.bf16 %v7972_v20 }
 0xb24   : > { %6498 = vmatpush.msra.mxu2 %v7737_v25  ;;  %6517 = vmatpush.msra.mxu3 %v7770_v23  ;;  %v7717_v25 = vunpack.c.l.bf16 %v7980_v60  ;;  %v7750_v23 = vunpack.c.h.bf16 %v7988_v1 }
 0xb25   : > { %6459 = vmatpush.msra.mxu0 %v7670_v37  ;;  %6478 = vmatpush.msra.mxu1 %v7705_v26  ;;  %v7650_v37 = vunpack.c.h.bf16 %v7963_v6  ;;  %v7685_v26 = vunpack.c.l.bf16 %v7972_v20 }
 0xb26   : > { %6499 = vmatpush.msra.mxu2 %v7734_v54  ;;  %6518 = vmatpush.msra.mxu3 %v7769_v43  ;;  %v7714_v54 = vunpack.c.h.bf16 %v7979_v45  ;;  %v7749_v43 = vunpack.c.l.bf16 %v7988_v1 }
 0xb27   : > { %6460 = vmatpush.msra.mxu0 %v7669_v51  ;;  %6479 = vmatpush.msra.mxu1 %v7702_v58  ;;  %v7649_v51 = vunpack.c.l.bf16 %v7963_v6  ;;  %v7682_v58 = vunpack.c.h.bf16 %v7971_v41 }
 0xb28   : > { %6500 = vmatpush.msra.mxu2 %v7733_v5  ;;  %6519 = vmatpush.msra.mxu3 %v7766_v63  ;;  %v7713_v5 = vunpack.c.l.bf16 %v7979_v45  ;;  %v7746_v63 = vunpack.c.h.bf16 %v7987_v57 }
 0xb29   : > { %6433 = vmatmul.f32.vlgmr.msrb.gmra.mxu2 %v6271_v38  ;;  %6461 = vmatpush.msra.mxu0 %v7666_v10  ;;  %v7970_v38 = vld [vmem:[%s14351_s3 + $0x240] sm:$0xff]   ;;  %v7646_v10 = vunpack.c.h.bf16 %v7962_v32 }
 0xb2a   : > { %6480 = vmatpush.msra.mxu1 %v7701_v13  ;;  %6501 = vmatpush.msra.mxu2 %v7730_v47  ;;  %v7681_v13 = vunpack.c.l.bf16 %v7971_v41  ;;  %v7986_v47 = vld [vmem:[%s14351_s3 + $0x2c0] sm:$0xff]  }
 0xb2b   : > { %6520 = vmatpush.msra.mxu3 %v7765_v55  ;;  %6393 = vmatmul.f32.vlgmr.msrb.gmra.mxu0 %v6269_v3  ;;  %v7745_v55 = vunpack.c.l.bf16 %v7987_v57  ;;  %v14193_v3 = vld [vmem:[#allocation2 + $0x8] sm:$0xff]  ;;  %v7741_v50 = vunpack.c.l.bf16 %v7986_v47 }
 0xb2c   : > { %6453 = vmatmul.f32.vlgmr.msrb.gmra.mxu3 %v6272_v14  ;;  %6462 = vmatpush.msra.mxu0 %v7665_v4  ;;  %v7678_v14 = vunpack.c.h.bf16 %v7970_v38  ;;  %v8001_v4 = vld [vmem:[%s14351_s3 + $0x338] sm:$0xff]   ;;  %v6273_v12 = vperm.slane %v14193_v3, 0  ;;  %v6276_v2 = vperm.slane %v14193_v3, 3 }
 0xb2d   : > { %6481 = vmatpush.msra.mxu1 %v7698_v7  ;;  %6502 = vmatpush.msra.mxu2 %v7729_v21  ;;  %v7709_v7 = vunpack.c.l.bf16 %v7978_v34  ;;  %v7742_v21 = vunpack.c.h.bf16 %v7986_v47 }
 0xb2e   : > { %6521 = vmatpush.msra.mxu3 %v7762_v16  ;;  %6413 = vmatmul.f32.vlgmr.msrb.gmra.mxu1 %v6270_v22  ;;  %v6275_v16 = vperm.slane %v14193_v3, 2  ;;  %v7802_v22 = vunpack.c.h.bf16 %v8001_v4 }
 0xb2f   : > { %6463 = vmatpush.msra.mxu0 %v7662_v24  ;;  %6482 = vmatpush.msra.mxu1 %v7697_v11  ;;  %v8009_v24 = vld [vmem:[%s14351_s3 + $0x378] sm:$0xff]   ;;  %v7677_v11 = vunpack.c.l.bf16 %v7970_v38 }
 0xb30   : > { %6503 = vmatpush.msra.mxu2 %v7726_v35  ;;  %6522 = vmatpush.msra.mxu3 %v7761_v49  ;;  %v8025_v35 = vld [vmem:[%s14351_s3 + $0x3f8] sm:$0xff]   ;;  %v6274_v49 = vperm.slane %v14193_v3, 1  ;;  %v7834_v39 = vunpack.c.h.bf16 %v8009_v24  ;;  %v7833_v28 = vunpack.c.l.bf16 %v8009_v24  ;;  %v8020_v24 = vld [vmem:[%s14351_s3 + $0x3d0] sm:$0xff]  }
 0xb31   : > { %6464 = vmatpush.msra.mxu0 %v7661_v42  ;;  %6483 = vmatpush.msra.mxu1 %v7694_v44  ;;  %v8000_v42 = vld [vmem:[%s14351_s3 + $0x330] sm:$0xff]   ;;  %v7801_v44 = vunpack.c.l.bf16 %v8001_v4  ;;  %v7898_v48 = vunpack.c.h.bf16 %v8025_v35  ;;  %v7897_v30 = vunpack.c.l.bf16 %v8025_v35  ;;  %v7995_v35 = vld [vmem:[%s14351_s3 + $0x308] sm:$0xff]  }
 0xb32   : > { %6504 = vmatpush.msra.mxu2 %v7725_v62  ;;  %6523 = vmatpush.msra.mxu3 %v7758_v59  ;;  %v8016_v62 = vld [vmem:[%s14351_s3 + $0x3b0] sm:$0xff]   ;;  %v7865_v59 = vunpack.c.l.bf16 %v8017_v36 }
 0xb33   : > { %6465 = vmatpush.msra.mxu0 %v7658_v9  ;;  %6484 = vmatpush.msra.mxu1 %v7693_v29  ;;  %v8008_v9 = vld [vmem:[%s14351_s3 + $0x370] sm:$0xff]   ;;  %v7798_v29 = vunpack.c.h.bf16 %v8000_v42 }
 0xb34   : > { %6505 = vmatpush.msra.mxu2 %v7722_v17  ;;  %6524 = vmatpush.msra.mxu3 %v7757_v46  ;;  %v8024_v17 = vld [vmem:[%s14351_s3 + $0x3f0] sm:$0xff]   ;;  %v7862_v46 = vunpack.c.h.bf16 %v8016_v62  ;;  %v7830_v60 = vunpack.c.h.bf16 %v8008_v9  ;;  %v7829_v1 = vunpack.c.l.bf16 %v8008_v9  ;;  %v8019_v9 = vld [vmem:[%s14351_s3 + $0x3c8] sm:$0xff]  }
 0xb35   : > { %6466 = vmatpush.msra.mxu0 %v7657_v8  ;;  %6485 = vmatpush.msra.mxu1 %v7690_v19  ;;  %v7999_v8 = vld [vmem:[%s14351_s3 + $0x328] sm:$0xff]   ;;  %v7797_v19 = vunpack.c.l.bf16 %v8000_v42  ;;  %v7894_v20 = vunpack.c.h.bf16 %v8024_v17  ;;  %v7893_v6 = vunpack.c.l.bf16 %v8024_v17  ;;  %v7994_v17 = vld [vmem:[%s14351_s3 + $0x300] sm:$0xff]  }
 0xb36   : > { %6506 = vmatpush.msra.mxu2 %v7721_v53  ;;  %6525 = vmatpush.msra.mxu3 %v7754_v15  ;;  %v8015_v53 = vld [vmem:[%s14351_s3 + $0x3a8] sm:$0xff]   ;;  %v7861_v15 = vunpack.c.l.bf16 %v8016_v62 }
 0xb37   : > { %6467 = vmatpush.msra.mxu0 %v7654_v0  ;;  %6486 = vmatpush.msra.mxu1 %v7689_v40  ;;  %v8007_v0 = vld [vmem:[%s14351_s3 + $0x368] sm:$0xff]   ;;  %v7794_v40 = vunpack.c.h.bf16 %v7999_v8 }
 0xb38   : > { %6507 = vmatpush.msra.mxu2 %v7718_v33  ;;  %6526 = vmatpush.msra.mxu3 %v7753_v61  ;;  %v8023_v33 = vld [vmem:[%s14351_s3 + $0x3e8] sm:$0xff]   ;;  %v7858_v61 = vunpack.c.h.bf16 %v8015_v53  ;;  %v7826_v45 = vunpack.c.h.bf16 %v8007_v0  ;;  %v7825_v57 = vunpack.c.l.bf16 %v8007_v0  ;;  %v8018_v0 = vld [vmem:[%s14351_s3 + $0x3c0] sm:$0xff]  }
 0xb39   : > { %6468 = vmatpush.msra.mxu0 %v7653_v31  ;;  %6487 = vmatpush.msra.mxu1 %v7686_v27  ;;  %v7998_v31 = vld [vmem:[%s14351_s3 + $0x320] sm:$0xff]   ;;  %v7793_v27 = vunpack.c.l.bf16 %v7999_v8  ;;  %v7890_v41 = vunpack.c.h.bf16 %v8023_v33  ;;  %v7889_v32 = vunpack.c.l.bf16 %v8023_v33  ;;  %v8011_v42 = vld [vmem:[%s14351_s3 + $0x388] sm:$0xff]   ;;  %v7773_v33 = vunpack.c.l.bf16 %v7994_v17 }
 0xb3a   : > { %6508 = vmatpush.msra.mxu2 %v7717_v25  ;;  %6527 = vmatpush.msra.mxu3 %v7750_v23  ;;  %v8014_v25 = vld [vmem:[%s14351_s3 + $0x3a0] sm:$0xff]   ;;  %v7857_v23 = vunpack.c.l.bf16 %v8015_v53  ;;  %v8003_v62 = vld [vmem:[%s14351_s3 + $0x348] sm:$0xff]  }
 0xb3b   : > { %6469 = vmatpush.msra.mxu0 %v7650_v37  ;;  %6488 = vmatpush.msra.mxu1 %v7685_v26  ;;  %v8006_v37 = vld [vmem:[%s14351_s3 + $0x360] sm:$0xff]   ;;  %v7790_v26 = vunpack.c.h.bf16 %v7998_v31 }
 0xb3c   : > { %6509 = vmatpush.msra.mxu2 %v7714_v54  ;;  %6528 = vmatpush.msra.mxu3 %v7749_v43  ;;  %v8022_v54 = vld [vmem:[%s14351_s3 + $0x3e0] sm:$0xff]   ;;  %v7854_v43 = vunpack.c.h.bf16 %v8014_v25  ;;  %v7822_v34 = vunpack.c.h.bf16 %v8006_v37  ;;  %v7821_v47 = vunpack.c.l.bf16 %v8006_v37  ;;  %v6280_v37 = vperm.slane %v14193_v3, 7 }
 0xb3d   : > { %6470 = vmatpush.msra.mxu0 %v7649_v51  ;;  %6489 = vmatpush.msra.mxu1 %v7682_v58  ;;  %v7997_v51 = vld [vmem:[%s14351_s3 + $0x318] sm:$0xff]   ;;  %v7789_v58 = vunpack.c.l.bf16 %v7998_v31  ;;  %v7886_v38 = vunpack.c.h.bf16 %v8022_v54  ;;  %v8010_v8 = vld [vmem:[%s14351_s3 + $0x380] sm:$0xff]   ;;  %v7870_v31 = vunpack.c.h.bf16 %v8018_v0 }
 0xb3e   : > { %6510 = vmatpush.msra.mxu2 %v7713_v5  ;;  %6529 = vmatpush.msra.mxu3 %v7746_v63  ;;  %v8013_v5 = vld [vmem:[%s14351_s3 + $0x398] sm:$0xff]   ;;  %v7853_v63 = vunpack.c.l.bf16 %v8014_v25  ;;  %v7785_v4 = vunpack.c.l.bf16 %v7997_v51  ;;  %v8002_v53 = vld [vmem:[%s14351_s3 + $0x340] sm:$0xff]  }
 0xb3f   : > { %6471 = vmatpush.msra.mxu0 %v7646_v10  ;;  %6490 = vmatpush.msra.mxu1 %v7681_v13  ;;  %v8005_v10 = vld [vmem:[%s14351_s3 + $0x358] sm:$0xff]   ;;  %v7786_v13 = vunpack.c.h.bf16 %v7997_v51  ;;  %v7805_v25 = vunpack.c.l.bf16 %v8002_v53 }
 0xb40   : > { %6511 = vmatpush.msra.mxu2 %v7710_v18  ;;  %6530 = vmatpush.msra.mxu3 %v7745_v55  ;;  %v8021_v18 = vld [vmem:[%s14351_s3 + $0x3d8] sm:$0xff]   ;;  %v7850_v55 = vunpack.c.h.bf16 %v8013_v5  ;;  %v7818_v36 = vunpack.c.h.bf16 %v8005_v10 }
 0xb41   : > { %6472 = vmatpush.msra.mxu0 %v7645_v52  ;;  %6491 = vmatpush.msra.mxu1 %v7678_v14  ;;  %v7885_v52 = vunpack.c.l.bf16 %v8022_v54  ;;  %v7996_v14 = vld [vmem:[%s14351_s3 + $0x310] sm:$0xff]  }
 0xb42   : > { %6512 = vmatpush.msra.mxu2 %v7709_v7  ;;  %6531 = vmatpush.msra.mxu3 %v7742_v21  ;;  %v8012_v7 = vld [vmem:[%s14351_s3 + $0x390] sm:$0xff]   ;;  %v7849_v21 = vunpack.c.l.bf16 %v8013_v5 }
 0xb43   : > { %6473 = vmatmul.f32.vlgmr.msra.gmra.mxu0 %v6273_v12  ;;  %6513 = vmatmul.f32.vlgmr.msra.gmra.mxu2 %v6275_v16  ;;  %v7882_v12 = vunpack.c.h.bf16 %v8021_v18  ;;  %v8004_v16 = vld [vmem:[%s14351_s3 + $0x350] sm:$0xff]  }
 0xb44   : > { %6537 = vmatpush.msrb.mxu0 %v7802_v22  ;;  %6577 = vmatpush.msrb.mxu2 %v7866_v56  ;;  %v7782_v22 = vunpack.c.h.bf16 %v7996_v14  ;;  %v7817_v56 = vunpack.c.l.bf16 %v8005_v10 }
 0xb45   : > { %6492 = vmatpush.msra.mxu1 %v7677_v11  ;;  %6532 = vmatpush.msra.mxu3 %v7741_v50  ;;  %v7846_v11 = vunpack.c.h.bf16 %v8012_v7  ;;  %v7881_v50 = vunpack.c.l.bf16 %v8021_v18 }
 0xb46   : > { %6493 = vmatmul.f32.vlgmr.msra.gmra.mxu1 %v6274_v49  ;;  %6533 = vmatmul.f32.vlgmr.msra.gmra.mxu3 %v6276_v2  ;;  %v7781_v49 = vunpack.c.l.bf16 %v7996_v14  ;;  %v7814_v2 = vunpack.c.h.bf16 %v8004_v16 }
 0xb47   : > { %6538 = vmatpush.msrb.mxu0 %v7801_v44  ;;  %6557 = vmatpush.msrb.mxu1 %v7834_v39  ;;  %v7845_v44 = vunpack.c.l.bf16 %v8012_v7  ;;  %v7878_v39 = vunpack.c.h.bf16 %v8020_v24 }
 0xb48   : > { %6578 = vmatpush.msrb.mxu2 %v7865_v59  ;;  %6597 = vmatpush.msrb.mxu3 %v7898_v48  ;;  %v7778_v59 = vunpack.c.h.bf16 %v7995_v35  ;;  %v7813_v48 = vunpack.c.l.bf16 %v8004_v16 }
 0xb49   : > { %6539 = vmatpush.msrb.mxu0 %v7798_v29  ;;  %6558 = vmatpush.msrb.mxu1 %v7833_v28  ;;  %v7842_v29 = vunpack.c.h.bf16 %v8011_v42  ;;  %v7877_v28 = vunpack.c.l.bf16 %v8020_v24 }
 0xb4a   : > { %6579 = vmatpush.msrb.mxu2 %v7862_v46  ;;  %6598 = vmatpush.msrb.mxu3 %v7897_v30  ;;  %v7777_v46 = vunpack.c.l.bf16 %v7995_v35  ;;  %v7810_v30 = vunpack.c.h.bf16 %v8003_v62 }
 0xb4b   : > { %6540 = vmatpush.msrb.mxu0 %v7797_v19  ;;  %6559 = vmatpush.msrb.mxu1 %v7830_v60  ;;  %v7841_v19 = vunpack.c.l.bf16 %v8011_v42  ;;  %v7874_v60 = vunpack.c.h.bf16 %v8019_v9 }
 0xb4c   : > { %6580 = vmatpush.msrb.mxu2 %v7861_v15  ;;  %6599 = vmatpush.msrb.mxu3 %v7894_v20  ;;  %v7774_v15 = vunpack.c.h.bf16 %v7994_v17  ;;  %v7809_v20 = vunpack.c.l.bf16 %v8003_v62 }
 0xb4d   : > { %6541 = vmatpush.msrb.mxu0 %v7794_v40  ;;  %6560 = vmatpush.msrb.mxu1 %v7829_v1  ;;  %v7838_v40 = vunpack.c.h.bf16 %v8010_v8  ;;  %v7873_v1 = vunpack.c.l.bf16 %v8019_v9 }
 0xb4e   : > { %6581 = vmatpush.msrb.mxu2 %v7858_v61  ;;  %6600 = vmatpush.msrb.mxu3 %v7893_v6  ;;  %v7806_v61 = vunpack.c.h.bf16 %v8002_v53  ;;  %v7837_v6 = vunpack.c.l.bf16 %v8010_v8 }
 0xb4f   : > { %6542 = vmatpush.msrb.mxu0 %v7793_v27  ;;  %6561 = vmatpush.msrb.mxu1 %v7826_v45  ;;  %v6277_v27 = vperm.slane %v14193_v3, 4  ;;  %v6279_v45 = vperm.slane %v14193_v3, 6 }
 0xb50   : > { %6582 = vmatpush.msrb.mxu2 %v7857_v23  ;;  %6601 = vmatpush.msrb.mxu3 %v7890_v41  ;;  %v7869_v23 = vunpack.c.l.bf16 %v8018_v0  ;;  %v6278_v41 = vperm.slane %v14193_v3, 5 }
 0xb51   : > { %6543 = vmatpush.msrb.mxu0 %v7790_v26  ;;  %6562 = vmatpush.msrb.mxu1 %v7825_v57  ;;  %v6262_v26 = vld [vmem:[%s14352_s4] sm:$0x1] }
 0xb52   : > { %6583 = vmatpush.msrb.mxu2 %v7854_v43  ;;  %6602 = vmatpush.msrb.mxu3 %v7889_v32 }
 0xb53   : > { %6544 = vmatpush.msrb.mxu0 %v7789_v58  ;;  %6563 = vmatpush.msrb.mxu1 %v7822_v34 }
 0xb54   : > { %6584 = vmatpush.msrb.mxu2 %v7853_v63  ;;  %6603 = vmatpush.msrb.mxu3 %v7886_v38 }
 0xb55   : > { %6545 = vmatpush.msrb.mxu0 %v7786_v13  ;;  %6564 = vmatpush.msrb.mxu1 %v7821_v47 }
 0xb56   : > { %6585 = vmatpush.msrb.mxu2 %v7850_v55  ;;  %6604 = vmatpush.msrb.mxu3 %v7885_v52 }
 0xb57   : > { %6546 = vmatpush.msrb.mxu0 %v7785_v4  ;;  %6565 = vmatpush.msrb.mxu1 %v7818_v36 }
 0xb58   : > { %6586 = vmatpush.msrb.mxu2 %v7849_v21  ;;  %6605 = vmatpush.msrb.mxu3 %v7882_v12 }
 0xb59   : > { %6547 = vmatpush.msrb.mxu0 %v7782_v22  ;;  %6566 = vmatpush.msrb.mxu1 %v7817_v56 }
 0xb5a   : > { %6587 = vmatpush.msrb.mxu2 %v7846_v11  ;;  %6606 = vmatpush.msrb.mxu3 %v7881_v50 }
 0xb5b   : > { %6548 = vmatpush.msrb.mxu0 %v7781_v49  ;;  %6567 = vmatpush.msrb.mxu1 %v7814_v2 }
 0xb5c   : > { %6588 = vmatpush.msrb.mxu2 %v7845_v44  ;;  %6607 = vmatpush.msrb.mxu3 %v7878_v39 }
 0xb5d   : > { %6549 = vmatpush.msrb.mxu0 %v7778_v59  ;;  %6568 = vmatpush.msrb.mxu1 %v7813_v48 }
 0xb5e   : > { %6589 = vmatpush.msrb.mxu2 %v7842_v29  ;;  %6608 = vmatpush.msrb.mxu3 %v7877_v28 }
 0xb5f   : > { %6550 = vmatpush.msrb.mxu0 %v7777_v46  ;;  %6569 = vmatpush.msrb.mxu1 %v7810_v30 }
 0xb60   : > { %6590 = vmatpush.msrb.mxu2 %v7841_v19  ;;  %6609 = vmatpush.msrb.mxu3 %v7874_v60 }
 0xb61   : > { %6551 = vmatpush.msrb.mxu0 %v7774_v15  ;;  %6570 = vmatpush.msrb.mxu1 %v7809_v20 }
 0xb62   : > { %6591 = vmatpush.msrb.mxu2 %v7838_v40  ;;  %6610 = vmatpush.msrb.mxu3 %v7873_v1 }
 0xb63   : > { %6552 = vmatpush.msrb.mxu0 %v7773_v33  ;;  %6571 = vmatpush.msrb.mxu1 %v7806_v61 }
 0xb64   : > { %6592 = vmatpush.msrb.mxu2 %v7837_v6  ;;  %6611 = vmatpush.msrb.mxu3 %v7870_v31 }
 0xb65   : > { %6553 = vmatmul.f32.vlgmr.msrb.gmra.mxu0 %v6277_v27  ;;  %6593 = vmatmul.f32.vlgmr.msrb.gmra.mxu2 %v6279_v45 }
 0xb66   : > { %6572 = vmatpush.msrb.mxu1 %v7805_v25  ;;  %6612 = vmatpush.msrb.mxu3 %v7869_v23 }
 0xb67   : > { %6573 = vmatmul.f32.vlgmr.msrb.gmra.mxu1 %v6278_v41  ;;  %6613 = vmatmul.f32.vlgmr.msrb.gmra.mxu3 %v6280_v37 }
 0xb9c   : > { %v6314_v57 = vpop.f32.mrf.mxu0 }
 0xb9d   : > { %v6315_v54 = vadd.f32 %v6314_v57, %v6262_v26 }
 0xb9f   : > { %v6334_v43 = vpop.f32.mrf.mxu1 }
 0xba0   : > { %v6335_v32 = vadd.f32 %v6334_v43, %v6315_v54 }
 0xba2   : > { %v6354_v51 = vpop.f32.mrf.mxu2 }
 0xba3   : > { %v6355_v58 = vadd.f32 %v6354_v51, %v6335_v32 }
 0xba5   : > { %v6374_v34 = vpop.f32.mrf.mxu3 }
 0xba6   : > { %v6375_v3 = vadd.f32 %v6374_v34, %v6355_v58 }
 0xba8   : > { %v6394_v5 = vpop.f32.mrf.mxu0 }
 0xba9   : > { %v6395_v63 = vadd.f32 %v6394_v5, %v6375_v3 }
 0xbab   : > { %v6414_v38 = vpop.f32.mrf.mxu1 }
 0xbac   : > { %v6415_v10 = vadd.f32 %v6414_v38, %v6395_v63  ;;  %v6434_v13 = vpop.f32.mrf.mxu2 }
 0xbae   : > { %v6435_v47 = vadd.f32 %v6434_v13, %v6415_v10 }
 0xbaf   : > { %v6454_v18 = vpop.f32.mrf.mxu3 }
 0xbb0   : > { %v6455_v52 = vadd.f32 %v6454_v18, %v6435_v47 }
 0xbc0   : > { %v6474_v55 = vpop.f32.mrf.mxu0 }
 0xbc1   : > { %v6475_v14 = vadd.f32 %v6474_v55, %v6455_v52 }
 0xbc3   : > { %v6494_v4 = vpop.f32.mrf.mxu1 }
 0xbc4   : > { %v6495_v7 = vadd.f32 %v6494_v4, %v6475_v14 }
 0xbc6   : > { %v6514_v36 = vpop.f32.mrf.mxu2 }
 0xbc7   : > { %v6515_v21 = vadd.f32 %v6514_v36, %v6495_v7 }
 0xbc9   : > { %v6534_v12 = vpop.f32.mrf.mxu3 }
 0xbca   : > { %v6535_v16 = vadd.f32 %v6534_v12, %v6515_v21 }
 0xbe2   : > { %v6554_v22 = vpop.f32.mrf.mxu0 }
 0xbe3   : > { %v6555_v56 = vadd.f32 %v6554_v22, %v6535_v16 }
 0xbe4   : > { %v6574_v24 = vpop.f32.mrf.mxu1 }
 0xbe5   : > { %v6575_v11 = vadd.f32 %v6574_v24, %v6555_v56 }
 0xbe8   : > { %v6594_v50 = vpop.f32.mrf.mxu2 }
 0xbe9   : > { %v6595_v35 = vadd.f32 %v6594_v50, %v6575_v11 }
 0xbea   : > { %v6614_v49 = vpop.f32.mrf.mxu3 }
 0xbeb   : > { %v6615_v2 = vadd.f32 %v6614_v49, %v6595_v35 }
 0xbed   : > { %6617 = vst [vmem:[%s8378_s27] sm:$0x1] %v6615_v2 }
 0xbee PF: > { %s6627_s7 = scalar_lea.hbm %s14353_s5, %s8251_s22  ;;  %s6629_s21 = sshll.u32 %s8378_s27, 4  ;;  %s6630_s21 = int_to_ptr.vmem [resolvable:$true] %s6629_s21 }
 0xbef   : > { %s6631_s8 = sshll.u32 %s6627_s7, 4  ;;  %s6619_s11 = scalar_lea.sflag [#allocation4], %s238_s10  ;;  %s6632_s8 = int_to_ptr.hbm [resolvable:$true] %s6631_s8 }
 0xbf0   : > { %s8183_s12 = sshra.s32 %s6632_s8, 4  ;;  %s8189_s15 = scalar_lea.hbm %s14353_s5, 2  ;;  %s8184_s12 = int_to_ptr.hbm [resolvable:$true] %s8183_s12 }
 0xbf1   : > { %s8185_s13 = scalar_lea.hbm %s8184_s12, 1  ;;  %p8190_p6 = scmp.lt.s32.totalorder %s8184_s12, %s14353_s5 }
 0xbf2   : > { %p8186_p2 = scmp.ne.s32.totalorder %s8184_s12, %s8185_s13  ;;  %p8191_p7 = scmp.lt.s32.totalorder %s8189_s15, %s8185_s13 }
 0xbf4   : > { %p8187_p4 = pnand %p8186_p2, %p8347_p3  ;;  %p8192_p8 = por %p8191_p7, %p8190_p6 }
 0xbf6   : > { %p8188_p5 = pneg %p8187_p4 }
 0xbf8   : > { %p8193_p10 = pnand %p8192_p8, %p8188_p5 }
 0xbfa   : > { %8196 = shalt.err (!%p8193_p10)
}
 0xbfb   : > { %8026 = dma.vmem_to_hbm [thread:$0]  (%p8347_p3), %s6630_s21, 16, %s6632_s8, %s6619_s11  }
 0xbfc PF: > { %p8032_p11 = scmp.ge.s32.totalorder %s8263_s25, 2  ;;  %s6643_s22 = sand.u32 1, %s8235_s18  }
 0xbfd   : > { %s6644_s10 = scalar_lea.sflag [#allocation4], %s6643_s22 }
 0xbfe   : > { %p8029_p12 = pnand %p8032_p11, %p8357_p9 }
 0xc00   : > { %p8030_p13 = pneg %p8029_p12 }
 0xc02   : > { %8230 = dma.done.wait (%p8030_p13), %s6644_s10, 16  }
 0xc03   : > { %8232 = vsyncadd (%p8030_p13), %s6644_s10, 4294967280  ;;  %s18_s25 = sadd.s32 1, %s8263_s25   ;;  %s16317_s18 = smov %s8239_s19 }
 0xc04   : > { %p15_p0 = scmp.ge.s32.totalorder %s18_s25, 6   ;;  %s16318_s19 = smov %s8243_s20 }
 0xc05   : > { %s16319_s20 = smov %s8365_s9  ;;  %s16320_s21 = smov %s8255_s23 }
 0xc06   : > { %s16321_s22 = smov %s8259_s24  ;;  %s16322_s23 = smov %s16325_s28 }
 0xc07   : > { %s16323_s24 = smov %s16329_s29  ;;  %17 = sbr.rel (!%p15_p0) target bundleno = 5 (0x5), region = 84 }
 0xc0c   :  { %6649 = vsyncpa [#allocation4], 1 }
 0xc0d   :  { %6651 = vsyncpa [#allocation4 + $0x1], 1 }

</bundles_post_ra>
